<compile_context>
chip_gen: v7x
topology: tpu7x:2x2x1
jax: 0.10.0
libtpu: 0.0.40
codegen_flags: <defaults>
</compile_context>

<pallas_src>
import jax
import jax.numpy as jnp
import numpy as np
from jax import lax
from jax.experimental import pallas as pl
from jax.experimental.pallas import tpu as pltpu

H = 16           # spatial height
W = 16           # spatial width
C_HID = 8        # hidden channels of conv1
K = 3            # conv kernel size
PAD = 1
HP = H + 2 * PAD         # 18: extent of the zero-padded hidden tensor conv2 sees
WP = W + 2 * PAD         # 18
HP2 = H + 4 * PAD        # 20: input padded by 2 (so conv1 is evaluated on the 18x18 grid)
WP2 = W + 4 * PAD        # 20


def simple_cnn_kernel(x_ref, w1_ref, b1_ref, w2_ref, b2_ref, o_ref, xpad_ref):
    # x_ref   : (B, 16, 16) VMEM  raw input image (in-channel == 1)
    # w1_ref  : (72,) SMEM        conv1 weights flattened as (c, ky, kx)
    # b1_ref  : (8,)  SMEM        conv1 bias
    # w2_ref  : (72,) SMEM        conv2 weights flattened as (c, ky, kx)
    # b2_ref  : (1,)  SMEM        conv2 bias
    # o_ref   : (B, 16, 16) VMEM  output
    # xpad_ref: (B, 20, 20) VMEM  scratch canvas for the in-kernel 2-wide zero pad
    B = o_ref.shape[0]

    # --- In-kernel zero pad by 2 (replaces the wrapper jnp.pad HLO). ---
    xpad_ref[...] = jnp.zeros_like(xpad_ref)
    xpad_ref[:, 2 * PAD:2 * PAD + H, 2 * PAD:2 * PAD + W] = x_ref[...]

    # --- Hoisted lane-direction (kx) shifts of the padded input: 3 views, built once. ---
    x_kx = [xpad_ref[:, :, kx:kx + WP] for kx in range(K)]          # each (B, 20, 18)

    # 0/1 interior mask over the 18x18 extended conv1 grid, built directly at (B,18,18)
    # (boolean, full batch shape -> no per-channel broadcast, applied via vselect).
    row = lax.broadcasted_iota(jnp.int32, (B, HP, WP), 1)
    col = lax.broadcasted_iota(jnp.int32, (B, HP, WP), 2)
    interior = (row >= PAD) & (row < PAD + H) & (col >= PAD) & (col < PAD + W)

    out = jnp.full((B, H, W), b2_ref[0], jnp.float32)               # conv2 acc (bias folded in)

    # Fused conv1 -> ReLU -> conv2, one hidden channel live at a time.
    for c in range(C_HID):
        # conv1 for channel c, evaluated on the 18x18 padded-hidden grid.
        acc = jnp.full((B, HP, WP), b1_ref[c], jnp.float32)
        for kx in range(K):
            xk = x_kx[kx]                                           # hoisted lane shift
            for ky in range(K):
                w = w1_ref[c * K * K + ky * K + kx]
                acc = acc + xk[:, ky:ky + HP, :] * w                # sublane slice only
        # ReLU on the interior, zero on the 1-wide halo == hidden padded by 1.
        hpad = jnp.where(interior, jnp.maximum(acc, 0.0), 0.0)      # (B, 18, 18)

        # conv2 contribution of channel c: hoist the 3 kx lane shifts, reuse across ky taps.
        for kx in range(K):
            hk = hpad[:, :, kx:kx + W]                              # (B, 18, 16)
            for ky in range(K):
                w = w2_ref[c * K * K + ky * K + kx]
                out = out + hk[:, ky:ky + H, :] * w                 # sublane slice only

    o_ref[...] = out


def simple_cnn_forward(x_nchw, w1, b1, w2, b2):
    """x_nchw: (N, 1, H, W); w1: (8, 1, 3, 3); b1: (8,); w2: (1, 8, 3, 3); b2: (1,)."""
    n = x_nchw.shape[0]
    x = x_nchw.reshape(n, H, W).astype(jnp.float32)        # in-channel == 1, NCHW == NHW

    # Flatten weights to (c, ky, kx) scalars for SMEM.
    w1_flat = w1.reshape(C_HID * K * K).astype(jnp.float32)
    w2_flat = w2.reshape(C_HID * K * K).astype(jnp.float32)
    b1_flat = b1.reshape(C_HID).astype(jnp.float32)
    b2_flat = b2.reshape(1).astype(jnp.float32)

    # Batch tiling: tiny batches are fixed-overhead bound -> one grid step.  Larger batches
    # get >=2 grid steps (sharded across v7x's two TensorCores via "parallel") with a capped
    # block so double-buffered input+output stays far under scoped VMEM on v5e/v6e/v7x.
    if n <= 8:
        b_tile = n
    else:
        b_tile = min(256, pl.cdiv(n, 2))

    out = pl.pallas_call(
        simple_cnn_kernel,
        out_shape=jax.ShapeDtypeStruct((n, H, W), jnp.float32),
        grid=(pl.cdiv(n, b_tile),),
        in_specs=[
            pl.BlockSpec((b_tile, H, W), lambda b: (b, 0, 0)),
            pl.BlockSpec(memory_space=pltpu.MemorySpace.SMEM),
            pl.BlockSpec(memory_space=pltpu.MemorySpace.SMEM),
            pl.BlockSpec(memory_space=pltpu.MemorySpace.SMEM),
            pl.BlockSpec(memory_space=pltpu.MemorySpace.SMEM),
        ],
        out_specs=pl.BlockSpec((b_tile, H, W), lambda b: (b, 0, 0)),
        scratch_shapes=[pltpu.VMEM((b_tile, HP2, WP2), jnp.float32)],
        compiler_params=pltpu.CompilerParams(dimension_semantics=("parallel",)),
    )(x, w1_flat, b1_flat, w2_flat, b2_flat)

    return out.reshape(n, 1, H, W)                          # back to NCHW


def ref_forward(x, w1, b1, w2, b2):
    """Pure-JAX reference of the PyTorch module (NCHW / OIHW)."""
    dn = jax.lax.conv_dimension_numbers(x.shape, w1.shape, ("NCHW", "OIHW", "NCHW"))
    h = jax.lax.conv_general_dilated(x, w1, (1, 1), ((1, 1), (1, 1)), dimension_numbers=dn)
    h = jnp.maximum(h + b1.reshape(1, -1, 1, 1), 0.0)
    dn2 = jax.lax.conv_dimension_numbers(h.shape, w2.shape, ("NCHW", "OIHW", "NCHW"))
    o = jax.lax.conv_general_dilated(h, w2, (1, 1), ((1, 1), (1, 1)), dimension_numbers=dn2)
    return o + b2.reshape(1, -1, 1, 1)


if __name__ == "__main__":
    key = jax.random.PRNGKey(0)
    k_x, k_w1, k_b1, k_w2, k_b2 = jax.random.split(key, 5)

    # Deterministic synthetic parameters (shapes from nn.Conv2d defs in __init__).
    x = jax.random.normal(k_x, (2, 1, H, W), jnp.float32)
    w1 = jax.random.normal(k_w1, (C_HID, 1, K, K), jnp.float32) * 0.1
    b1 = jax.random.normal(k_b1, (C_HID,), jnp.float32) * 0.1
    w2 = jax.random.normal(k_w2, (1, C_HID, K, K), jnp.float32) * 0.1
    b2 = jax.random.normal(k_b2, (1,), jnp.float32) * 0.1

    out = jax.block_until_ready(simple_cnn_forward(x, w1, b1, w2, b2))
    ref = jax.block_until_ready(ref_forward(x, w1, b1, w2, b2))

    assert out.shape == (2, 1, H, W), out.shape
    np.testing.assert_allclose(np.asarray(out), np.asarray(ref), atol=1e-4, rtol=1e-4)
    print("KERNEL_OK")
</pallas_src>

<mosaic_0001>
module attributes {stable_mosaic.version = 11 : i64} {
  func.func @simple_cnn_kernel(%arg0: i32, %arg1: memref<2x16x16xf32, #tpu.memory_space<vmem>>, %arg2: memref<72xf32, #tpu.memory_space<smem>>, %arg3: memref<8xf32, #tpu.memory_space<smem>>, %arg4: memref<72xf32, #tpu.memory_space<smem>>, %arg5: memref<1xf32, #tpu.memory_space<smem>>, %arg6: memref<2x16x16xf32, #tpu.memory_space<vmem>>, %arg7: memref<2x20x20xf32, #tpu.memory_space<vmem>>) attributes {dimension_semantics = [#tpu.dimension_semantics<parallel>], iteration_bounds = array<i64: 1>, scalar_prefetch = 0 : i64, scratch_operands = 1 : i64, tpu.core_type = #tpu.core_type<tc>, window_params = [{transform_indices = @transform_0, window_bounds = array<i64: 2, 16, 16>}, {transform_indices = @transform_1, window_bounds = array<i64: 72>}, {transform_indices = @transform_2, window_bounds = array<i64: 8>}, {transform_indices = @transform_3, window_bounds = array<i64: 72>}, {transform_indices = @transform_4, window_bounds = array<i64: 1>}, {transform_indices = @transform_5, window_bounds = array<i64: 2, 16, 16>}]} {
    %cst = arith.constant 0.000000e+00 : f32
    %0 = vector.broadcast %cst : f32 to vector<2x20x20xf32>
    %c0 = arith.constant 0 : index
    %c0_0 = arith.constant 0 : index
    %c0_1 = arith.constant 0 : index
    %1 = vector.load %arg7[%c0, %c0_0, %c0_1] : memref<2x20x20xf32, #tpu.memory_space<vmem>>, vector<2x20x20xf32>
    tpu.vector_store %arg7[%c0, %c0_0, %c0_1], %0 {strides = array<i32>} : memref<2x20x20xf32, #tpu.memory_space<vmem>>, vector<2x20x20xf32>,
    %c0_2 = arith.constant 0 : index
    %c0_3 = arith.constant 0 : index
    %c0_4 = arith.constant 0 : index
    %2 = vector.load %arg1[%c0_2, %c0_3, %c0_4] : memref<2x16x16xf32, #tpu.memory_space<vmem>>, vector<2x16x16xf32>
    %c0_5 = arith.constant 0 : index
    %c2 = arith.constant 2 : index
    %c2_6 = arith.constant 2 : index
    %3 = vector.load %arg7[%c0_5, %c2, %c2_6] : memref<2x20x20xf32, #tpu.memory_space<vmem>>, vector<2x16x16xf32>
    tpu.vector_store %arg7[%c0_5, %c2, %c2_6], %2 {strides = array<i32>} : memref<2x20x20xf32, #tpu.memory_space<vmem>>, vector<2x16x16xf32>,
    %c0_7 = arith.constant 0 : index
    %c0_8 = arith.constant 0 : index
    %c0_9 = arith.constant 0 : index
    %4 = vector.load %arg7[%c0_7, %c0_8, %c0_9] : memref<2x20x20xf32, #tpu.memory_space<vmem>>, vector<2x20x18xf32>
    %c0_10 = arith.constant 0 : index
    %c0_11 = arith.constant 0 : index
    %c1 = arith.constant 1 : index
    %5 = vector.load %arg7[%c0_10, %c0_11, %c1] : memref<2x20x20xf32, #tpu.memory_space<vmem>>, vector<2x20x18xf32>
    %c0_12 = arith.constant 0 : index
    %c0_13 = arith.constant 0 : index
    %c2_14 = arith.constant 2 : index
    %6 = vector.load %arg7[%c0_12, %c0_13, %c2_14] : memref<2x20x20xf32, #tpu.memory_space<vmem>>, vector<2x20x18xf32>
    %7 = tpu.iota {dimensions = array<i32: 1>} : vector<2x18x18xi32>
    %8 = tpu.iota {dimensions = array<i32: 2>} : vector<2x18x18xi32>
    %c1_i32 = arith.constant 1 : i32
    %9 = vector.broadcast %c1_i32 : i32 to vector<2x18x18xi32>
    %10 = arith.cmpi sge, %7, %9 : vector<2x18x18xi32>
    %c17_i32 = arith.constant 17 : i32
    %11 = vector.broadcast %c17_i32 : i32 to vector<2x18x18xi32>
    %12 = arith.cmpi slt, %7, %11 : vector<2x18x18xi32>
    %13 = arith.andi %10, %12 : vector<2x18x18xi1>
    %c1_i32_15 = arith.constant 1 : i32
    %14 = vector.broadcast %c1_i32_15 : i32 to vector<2x18x18xi32>
    %15 = arith.cmpi sge, %8, %14 : vector<2x18x18xi32>
    %16 = arith.andi %13, %15 : vector<2x18x18xi1>
    %c17_i32_16 = arith.constant 17 : i32
    %17 = vector.broadcast %c17_i32_16 : i32 to vector<2x18x18xi32>
    %18 = arith.cmpi slt, %8, %17 : vector<2x18x18xi32>
    %19 = arith.andi %16, %18 : vector<2x18x18xi1>
    %c0_17 = arith.constant 0 : index
    %20 = memref.load %arg5[%c0_17] : memref<1xf32, #tpu.memory_space<smem>>
    %21 = vector.broadcast %20 : f32 to vector<2x16x16xf32>
    %c0_18 = arith.constant 0 : index
    %22 = memref.load %arg3[%c0_18] : memref<8xf32, #tpu.memory_space<smem>>
    %23 = vector.broadcast %22 : f32 to vector<2x18x18xf32>
    %c0_19 = arith.constant 0 : index
    %24 = memref.load %arg2[%c0_19] : memref<72xf32, #tpu.memory_space<smem>>
    %25 = vector.extract_strided_slice %4 {offsets = [0, 0, 0], sizes = [2, 18, 18], strides = [1, 1, 1]} : vector<2x20x18xf32> to vector<2x18x18xf32>
    %26 = vector.broadcast %24 : f32 to vector<2x18x18xf32>
    %27 = arith.mulf %25, %26 : vector<2x18x18xf32>
    %28 = arith.addf %23, %27 : vector<2x18x18xf32>
    %c3 = arith.constant 3 : index
    %29 = memref.load %arg2[%c3] : memref<72xf32, #tpu.memory_space<smem>>
    %30 = vector.extract_strided_slice %4 {offsets = [0, 1, 0], sizes = [2, 18, 18], strides = [1, 1, 1]} : vector<2x20x18xf32> to vector<2x18x18xf32>
    %31 = vector.broadcast %29 : f32 to vector<2x18x18xf32>
    %32 = arith.mulf %30, %31 : vector<2x18x18xf32>
    %33 = arith.addf %28, %32 : vector<2x18x18xf32>
    %c6 = arith.constant 6 : index
    %34 = memref.load %arg2[%c6] : memref<72xf32, #tpu.memory_space<smem>>
    %35 = vector.extract_strided_slice %4 {offsets = [0, 2, 0], sizes = [2, 18, 18], strides = [1, 1, 1]} : vector<2x20x18xf32> to vector<2x18x18xf32>
    %36 = vector.broadcast %34 : f32 to vector<2x18x18xf32>
    %37 = arith.mulf %35, %36 : vector<2x18x18xf32>
    %38 = arith.addf %33, %37 : vector<2x18x18xf32>
    %c1_20 = arith.constant 1 : index
    %39 = memref.load %arg2[%c1_20] : memref<72xf32, #tpu.memory_space<smem>>
    %40 = vector.extract_strided_slice %5 {offsets = [0, 0, 0], sizes = [2, 18, 18], strides = [1, 1, 1]} : vector<2x20x18xf32> to vector<2x18x18xf32>
    %41 = vector.broadcast %39 : f32 to vector<2x18x18xf32>
    %42 = arith.mulf %40, %41 : vector<2x18x18xf32>
    %43 = arith.addf %38, %42 : vector<2x18x18xf32>
    %c4 = arith.constant 4 : index
    %44 = memref.load %arg2[%c4] : memref<72xf32, #tpu.memory_space<smem>>
    %45 = vector.extract_strided_slice %5 {offsets = [0, 1, 0], sizes = [2, 18, 18], strides = [1, 1, 1]} : vector<2x20x18xf32> to vector<2x18x18xf32>
    %46 = vector.broadcast %44 : f32 to vector<2x18x18xf32>
    %47 = arith.mulf %45, %46 : vector<2x18x18xf32>
    %48 = arith.addf %43, %47 : vector<2x18x18xf32>
    %c7 = arith.constant 7 : index
    %49 = memref.load %arg2[%c7] : memref<72xf32, #tpu.memory_space<smem>>
    %50 = vector.extract_strided_slice %5 {offsets = [0, 2, 0], sizes = [2, 18, 18], strides = [1, 1, 1]} : vector<2x20x18xf32> to vector<2x18x18xf32>
    %51 = vector.broadcast %49 : f32 to vector<2x18x18xf32>
    %52 = arith.mulf %50, %51 : vector<2x18x18xf32>
    %53 = arith.addf %48, %52 : vector<2x18x18xf32>
    %c2_21 = arith.constant 2 : index
    %54 = memref.load %arg2[%c2_21] : memref<72xf32, #tpu.memory_space<smem>>
    %55 = vector.extract_strided_slice %6 {offsets = [0, 0, 0], sizes = [2, 18, 18], strides = [1, 1, 1]} : vector<2x20x18xf32> to vector<2x18x18xf32>
    %56 = vector.broadcast %54 : f32 to vector<2x18x18xf32>
    %57 = arith.mulf %55, %56 : vector<2x18x18xf32>
    %58 = arith.addf %53, %57 : vector<2x18x18xf32>
    %c5 = arith.constant 5 : index
    %59 = memref.load %arg2[%c5] : memref<72xf32, #tpu.memory_space<smem>>
    %60 = vector.extract_strided_slice %6 {offsets = [0, 1, 0], sizes = [2, 18, 18], strides = [1, 1, 1]} : vector<2x20x18xf32> to vector<2x18x18xf32>
    %61 = vector.broadcast %59 : f32 to vector<2x18x18xf32>
    %62 = arith.mulf %60, %61 : vector<2x18x18xf32>
    %63 = arith.addf %58, %62 : vector<2x18x18xf32>
    %c8 = arith.constant 8 : index
    %64 = memref.load %arg2[%c8] : memref<72xf32, #tpu.memory_space<smem>>
    %65 = vector.extract_strided_slice %6 {offsets = [0, 2, 0], sizes = [2, 18, 18], strides = [1, 1, 1]} : vector<2x20x18xf32> to vector<2x18x18xf32>
    %66 = vector.broadcast %64 : f32 to vector<2x18x18xf32>
    %67 = arith.mulf %65, %66 : vector<2x18x18xf32>
    %68 = arith.addf %63, %67 : vector<2x18x18xf32>
    %cst_22 = arith.constant 0.000000e+00 : f32
    %69 = vector.broadcast %cst_22 : f32 to vector<2x18x18xf32>
    %70 = arith.maximumf %68, %69 : vector<2x18x18xf32>
    %cst_23 = arith.constant 0.000000e+00 : f32
    %71 = vector.broadcast %cst_23 : f32 to vector<2x18x18xf32>
    %72 = arith.select %19, %70, %71 : vector<2x18x18xi1>, vector<2x18x18xf32>
    %73 = vector.extract_strided_slice %72 {offsets = [0, 0, 0], sizes = [2, 18, 16], strides = [1, 1, 1]} : vector<2x18x18xf32> to vector<2x18x16xf32>
    %c0_24 = arith.constant 0 : index
    %74 = memref.load %arg4[%c0_24] : memref<72xf32, #tpu.memory_space<smem>>
    %75 = vector.extract_strided_slice %73 {offsets = [0, 0, 0], sizes = [2, 16, 16], strides = [1, 1, 1]} : vector<2x18x16xf32> to vector<2x16x16xf32>
    %76 = vector.broadcast %74 : f32 to vector<2x16x16xf32>
    %77 = arith.mulf %75, %76 : vector<2x16x16xf32>
    %78 = arith.addf %21, %77 : vector<2x16x16xf32>
    %c3_25 = arith.constant 3 : index
    %79 = memref.load %arg4[%c3_25] : memref<72xf32, #tpu.memory_space<smem>>
    %80 = vector.extract_strided_slice %73 {offsets = [0, 1, 0], sizes = [2, 16, 16], strides = [1, 1, 1]} : vector<2x18x16xf32> to vector<2x16x16xf32>
    %81 = vector.broadcast %79 : f32 to vector<2x16x16xf32>
    %82 = arith.mulf %80, %81 : vector<2x16x16xf32>
    %83 = arith.addf %78, %82 : vector<2x16x16xf32>
    %c6_26 = arith.constant 6 : index
    %84 = memref.load %arg4[%c6_26] : memref<72xf32, #tpu.memory_space<smem>>
    %85 = vector.extract_strided_slice %73 {offsets = [0, 2, 0], sizes = [2, 16, 16], strides = [1, 1, 1]} : vector<2x18x16xf32> to vector<2x16x16xf32>
    %86 = vector.broadcast %84 : f32 to vector<2x16x16xf32>
    %87 = arith.mulf %85, %86 : vector<2x16x16xf32>
    %88 = arith.addf %83, %87 : vector<2x16x16xf32>
    %89 = vector.extract_strided_slice %72 {offsets = [0, 0, 1], sizes = [2, 18, 16], strides = [1, 1, 1]} : vector<2x18x18xf32> to vector<2x18x16xf32>
    %c1_27 = arith.constant 1 : index
    %90 = memref.load %arg4[%c1_27] : memref<72xf32, #tpu.memory_space<smem>>
    %91 = vector.extract_strided_slice %89 {offsets = [0, 0, 0], sizes = [2, 16, 16], strides = [1, 1, 1]} : vector<2x18x16xf32> to vector<2x16x16xf32>
    %92 = vector.broadcast %90 : f32 to vector<2x16x16xf32>
    %93 = arith.mulf %91, %92 : vector<2x16x16xf32>
    %94 = arith.addf %88, %93 : vector<2x16x16xf32>
    %c4_28 = arith.constant 4 : index
    %95 = memref.load %arg4[%c4_28] : memref<72xf32, #tpu.memory_space<smem>>
    %96 = vector.extract_strided_slice %89 {offsets = [0, 1, 0], sizes = [2, 16, 16], strides = [1, 1, 1]} : vector<2x18x16xf32> to vector<2x16x16xf32>
    %97 = vector.broadcast %95 : f32 to vector<2x16x16xf32>
    %98 = arith.mulf %96, %97 : vector<2x16x16xf32>
    %99 = arith.addf %94, %98 : vector<2x16x16xf32>
    %c7_29 = arith.constant 7 : index
    %100 = memref.load %arg4[%c7_29] : memref<72xf32, #tpu.memory_space<smem>>
    %101 = vector.extract_strided_slice %89 {offsets = [0, 2, 0], sizes = [2, 16, 16], strides = [1, 1, 1]} : vector<2x18x16xf32> to vector<2x16x16xf32>
    %102 = vector.broadcast %100 : f32 to vector<2x16x16xf32>
    %103 = arith.mulf %101, %102 : vector<2x16x16xf32>
    %104 = arith.addf %99, %103 : vector<2x16x16xf32>
    %105 = vector.extract_strided_slice %72 {offsets = [0, 0, 2], sizes = [2, 18, 16], strides = [1, 1, 1]} : vector<2x18x18xf32> to vector<2x18x16xf32>
    %c2_30 = arith.constant 2 : index
    %106 = memref.load %arg4[%c2_30] : memref<72xf32, #tpu.memory_space<smem>>
    %107 = vector.extract_strided_slice %105 {offsets = [0, 0, 0], sizes = [2, 16, 16], strides = [1, 1, 1]} : vector<2x18x16xf32> to vector<2x16x16xf32>
    %108 = vector.broadcast %106 : f32 to vector<2x16x16xf32>
    %109 = arith.mulf %107, %108 : vector<2x16x16xf32>
    %110 = arith.addf %104, %109 : vector<2x16x16xf32>
    %c5_31 = arith.constant 5 : index
    %111 = memref.load %arg4[%c5_31] : memref<72xf32, #tpu.memory_space<smem>>
    %112 = vector.extract_strided_slice %105 {offsets = [0, 1, 0], sizes = [2, 16, 16], strides = [1, 1, 1]} : vector<2x18x16xf32> to vector<2x16x16xf32>
    %113 = vector.broadcast %111 : f32 to vector<2x16x16xf32>
    %114 = arith.mulf %112, %113 : vector<2x16x16xf32>
    %115 = arith.addf %110, %114 : vector<2x16x16xf32>
    %c8_32 = arith.constant 8 : index
    %116 = memref.load %arg4[%c8_32] : memref<72xf32, #tpu.memory_space<smem>>
    %117 = vector.extract_strided_slice %105 {offsets = [0, 2, 0], sizes = [2, 16, 16], strides = [1, 1, 1]} : vector<2x18x16xf32> to vector<2x16x16xf32>
    %118 = vector.broadcast %116 : f32 to vector<2x16x16xf32>
    %119 = arith.mulf %117, %118 : vector<2x16x16xf32>
    %120 = arith.addf %115, %119 : vector<2x16x16xf32>
    %c1_33 = arith.constant 1 : index
    %121 = memref.load %arg3[%c1_33] : memref<8xf32, #tpu.memory_space<smem>>
    %122 = vector.broadcast %121 : f32 to vector<2x18x18xf32>
    %c9 = arith.constant 9 : index
    %123 = memref.load %arg2[%c9] : memref<72xf32, #tpu.memory_space<smem>>
    %124 = vector.extract_strided_slice %4 {offsets = [0, 0, 0], sizes = [2, 18, 18], strides = [1, 1, 1]} : vector<2x20x18xf32> to vector<2x18x18xf32>
    %125 = vector.broadcast %123 : f32 to vector<2x18x18xf32>
    %126 = arith.mulf %124, %125 : vector<2x18x18xf32>
    %127 = arith.addf %122, %126 : vector<2x18x18xf32>
    %c12 = arith.constant 12 : index
    %128 = memref.load %arg2[%c12] : memref<72xf32, #tpu.memory_space<smem>>
    %129 = vector.extract_strided_slice %4 {offsets = [0, 1, 0], sizes = [2, 18, 18], strides = [1, 1, 1]} : vector<2x20x18xf32> to vector<2x18x18xf32>
    %130 = vector.broadcast %128 : f32 to vector<2x18x18xf32>
    %131 = arith.mulf %129, %130 : vector<2x18x18xf32>
    %132 = arith.addf %127, %131 : vector<2x18x18xf32>
    %c15 = arith.constant 15 : index
    %133 = memref.load %arg2[%c15] : memref<72xf32, #tpu.memory_space<smem>>
    %134 = vector.extract_strided_slice %4 {offsets = [0, 2, 0], sizes = [2, 18, 18], strides = [1, 1, 1]} : vector<2x20x18xf32> to vector<2x18x18xf32>
    %135 = vector.broadcast %133 : f32 to vector<2x18x18xf32>
    %136 = arith.mulf %134, %135 : vector<2x18x18xf32>
    %137 = arith.addf %132, %136 : vector<2x18x18xf32>
    %c10 = arith.constant 10 : index
    %138 = memref.load %arg2[%c10] : memref<72xf32, #tpu.memory_space<smem>>
    %139 = vector.extract_strided_slice %5 {offsets = [0, 0, 0], sizes = [2, 18, 18], strides = [1, 1, 1]} : vector<2x20x18xf32> to vector<2x18x18xf32>
    %140 = vector.broadcast %138 : f32 to vector<2x18x18xf32>
    %141 = arith.mulf %139, %140 : vector<2x18x18xf32>
    %142 = arith.addf %137, %141 : vector<2x18x18xf32>
    %c13 = arith.constant 13 : index
    %143 = memref.load %arg2[%c13] : memref<72xf32, #tpu.memory_space<smem>>
    %144 = vector.extract_strided_slice %5 {offsets = [0, 1, 0], sizes = [2, 18, 18], strides = [1, 1, 1]} : vector<2x20x18xf32> to vector<2x18x18xf32>
    %145 = vector.broadcast %143 : f32 to vector<2x18x18xf32>
    %146 = arith.mulf %144, %145 : vector<2x18x18xf32>
    %147 = arith.addf %142, %146 : vector<2x18x18xf32>
    %c16 = arith.constant 16 : index
    %148 = memref.load %arg2[%c16] : memref<72xf32, #tpu.memory_space<smem>>
    %149 = vector.extract_strided_slice %5 {offsets = [0, 2, 0], sizes = [2, 18, 18], strides = [1, 1, 1]} : vector<2x20x18xf32> to vector<2x18x18xf32>
    %150 = vector.broadcast %148 : f32 to vector<2x18x18xf32>
    %151 = arith.mulf %149, %150 : vector<2x18x18xf32>
    %152 = arith.addf %147, %151 : vector<2x18x18xf32>
    %c11 = arith.constant 11 : index
    %153 = memref.load %arg2[%c11] : memref<72xf32, #tpu.memory_space<smem>>
    %154 = vector.extract_strided_slice %6 {offsets = [0, 0, 0], sizes = [2, 18, 18], strides = [1, 1, 1]} : vector<2x20x18xf32> to vector<2x18x18xf32>
    %155 = vector.broadcast %153 : f32 to vector<2x18x18xf32>
    %156 = arith.mulf %154, %155 : vector<2x18x18xf32>
    %157 = arith.addf %152, %156 : vector<2x18x18xf32>
    %c14 = arith.constant 14 : index
    %158 = memref.load %arg2[%c14] : memref<72xf32, #tpu.memory_space<smem>>
    %159 = vector.extract_strided_slice %6 {offsets = [0, 1, 0], sizes = [2, 18, 18], strides = [1, 1, 1]} : vector<2x20x18xf32> to vector<2x18x18xf32>
    %160 = vector.broadcast %158 : f32 to vector<2x18x18xf32>
    %161 = arith.mulf %159, %160 : vector<2x18x18xf32>
    %162 = arith.addf %157, %161 : vector<2x18x18xf32>
    %c17 = arith.constant 17 : index
    %163 = memref.load %arg2[%c17] : memref<72xf32, #tpu.memory_space<smem>>
    %164 = vector.extract_strided_slice %6 {offsets = [0, 2, 0], sizes = [2, 18, 18], strides = [1, 1, 1]} : vector<2x20x18xf32> to vector<2x18x18xf32>
    %165 = vector.broadcast %163 : f32 to vector<2x18x18xf32>
    %166 = arith.mulf %164, %165 : vector<2x18x18xf32>
    %167 = arith.addf %162, %166 : vector<2x18x18xf32>
    %cst_34 = arith.constant 0.000000e+00 : f32
    %168 = vector.broadcast %cst_34 : f32 to vector<2x18x18xf32>
    %169 = arith.maximumf %167, %168 : vector<2x18x18xf32>
    %cst_35 = arith.constant 0.000000e+00 : f32
    %170 = vector.broadcast %cst_35 : f32 to vector<2x18x18xf32>
    %171 = arith.select %19, %169, %170 : vector<2x18x18xi1>, vector<2x18x18xf32>
    %172 = vector.extract_strided_slice %171 {offsets = [0, 0, 0], sizes = [2, 18, 16], strides = [1, 1, 1]} : vector<2x18x18xf32> to vector<2x18x16xf32>
    %c9_36 = arith.constant 9 : index
    %173 = memref.load %arg4[%c9_36] : memref<72xf32, #tpu.memory_space<smem>>
    %174 = vector.extract_strided_slice %172 {offsets = [0, 0, 0], sizes = [2, 16, 16], strides = [1, 1, 1]} : vector<2x18x16xf32> to vector<2x16x16xf32>
    %175 = vector.broadcast %173 : f32 to vector<2x16x16xf32>
    %176 = arith.mulf %174, %175 : vector<2x16x16xf32>
    %177 = arith.addf %120, %176 : vector<2x16x16xf32>
    %c12_37 = arith.constant 12 : index
    %178 = memref.load %arg4[%c12_37] : memref<72xf32, #tpu.memory_space<smem>>
    %179 = vector.extract_strided_slice %172 {offsets = [0, 1, 0], sizes = [2, 16, 16], strides = [1, 1, 1]} : vector<2x18x16xf32> to vector<2x16x16xf32>
    %180 = vector.broadcast %178 : f32 to vector<2x16x16xf32>
    %181 = arith.mulf %179, %180 : vector<2x16x16xf32>
    %182 = arith.addf %177, %181 : vector<2x16x16xf32>
    %c15_38 = arith.constant 15 : index
    %183 = memref.load %arg4[%c15_38] : memref<72xf32, #tpu.memory_space<smem>>
    %184 = vector.extract_strided_slice %172 {offsets = [0, 2, 0], sizes = [2, 16, 16], strides = [1, 1, 1]} : vector<2x18x16xf32> to vector<2x16x16xf32>
    %185 = vector.broadcast %183 : f32 to vector<2x16x16xf32>
    %186 = arith.mulf %184, %185 : vector<2x16x16xf32>
    %187 = arith.addf %182, %186 : vector<2x16x16xf32>
    %188 = vector.extract_strided_slice %171 {offsets = [0, 0, 1], sizes = [2, 18, 16], strides = [1, 1, 1]} : vector<2x18x18xf32> to vector<2x18x16xf32>
    %c10_39 = arith.constant 10 : index
    %189 = memref.load %arg4[%c10_39] : memref<72xf32, #tpu.memory_space<smem>>
    %190 = vector.extract_strided_slice %188 {offsets = [0, 0, 0], sizes = [2, 16, 16], strides = [1, 1, 1]} : vector<2x18x16xf32> to vector<2x16x16xf32>
    %191 = vector.broadcast %189 : f32 to vector<2x16x16xf32>
    %192 = arith.mulf %190, %191 : vector<2x16x16xf32>
    %193 = arith.addf %187, %192 : vector<2x16x16xf32>
    %c13_40 = arith.constant 13 : index
    %194 = memref.load %arg4[%c13_40] : memref<72xf32, #tpu.memory_space<smem>>
    %195 = vector.extract_strided_slice %188 {offsets = [0, 1, 0], sizes = [2, 16, 16], strides = [1, 1, 1]} : vector<2x18x16xf32> to vector<2x16x16xf32>
    %196 = vector.broadcast %194 : f32 to vector<2x16x16xf32>
    %197 = arith.mulf %195, %196 : vector<2x16x16xf32>
    %198 = arith.addf %193, %197 : vector<2x16x16xf32>
    %c16_41 = arith.constant 16 : index
    %199 = memref.load %arg4[%c16_41] : memref<72xf32, #tpu.memory_space<smem>>
    %200 = vector.extract_strided_slice %188 {offsets = [0, 2, 0], sizes = [2, 16, 16], strides = [1, 1, 1]} : vector<2x18x16xf32> to vector<2x16x16xf32>
    %201 = vector.broadcast %199 : f32 to vector<2x16x16xf32>
    %202 = arith.mulf %200, %201 : vector<2x16x16xf32>
    %203 = arith.addf %198, %202 : vector<2x16x16xf32>
    %204 = vector.extract_strided_slice %171 {offsets = [0, 0, 2], sizes = [2, 18, 16], strides = [1, 1, 1]} : vector<2x18x18xf32> to vector<2x18x16xf32>
    %c11_42 = arith.constant 11 : index
    %205 = memref.load %arg4[%c11_42] : memref<72xf32, #tpu.memory_space<smem>>
    %206 = vector.extract_strided_slice %204 {offsets = [0, 0, 0], sizes = [2, 16, 16], strides = [1, 1, 1]} : vector<2x18x16xf32> to vector<2x16x16xf32>
    %207 = vector.broadcast %205 : f32 to vector<2x16x16xf32>
    %208 = arith.mulf %206, %207 : vector<2x16x16xf32>
    %209 = arith.addf %203, %208 : vector<2x16x16xf32>
    %c14_43 = arith.constant 14 : index
    %210 = memref.load %arg4[%c14_43] : memref<72xf32, #tpu.memory_space<smem>>
    %211 = vector.extract_strided_slice %204 {offsets = [0, 1, 0], sizes = [2, 16, 16], strides = [1, 1, 1]} : vector<2x18x16xf32> to vector<2x16x16xf32>
    %212 = vector.broadcast %210 : f32 to vector<2x16x16xf32>
    %213 = arith.mulf %211, %212 : vector<2x16x16xf32>
    %214 = arith.addf %209, %213 : vector<2x16x16xf32>
    %c17_44 = arith.constant 17 : index
    %215 = memref.load %arg4[%c17_44] : memref<72xf32, #tpu.memory_space<smem>>
    %216 = vector.extract_strided_slice %204 {offsets = [0, 2, 0], sizes = [2, 16, 16], strides = [1, 1, 1]} : vector<2x18x16xf32> to vector<2x16x16xf32>
    %217 = vector.broadcast %215 : f32 to vector<2x16x16xf32>
    %218 = arith.mulf %216, %217 : vector<2x16x16xf32>
    %219 = arith.addf %214, %218 : vector<2x16x16xf32>
    %c2_45 = arith.constant 2 : index
    %220 = memref.load %arg3[%c2_45] : memref<8xf32, #tpu.memory_space<smem>>
    %221 = vector.broadcast %220 : f32 to vector<2x18x18xf32>
    %c18 = arith.constant 18 : index
    %222 = memref.load %arg2[%c18] : memref<72xf32, #tpu.memory_space<smem>>
    %223 = vector.extract_strided_slice %4 {offsets = [0, 0, 0], sizes = [2, 18, 18], strides = [1, 1, 1]} : vector<2x20x18xf32> to vector<2x18x18xf32>
    %224 = vector.broadcast %222 : f32 to vector<2x18x18xf32>
    %225 = arith.mulf %223, %224 : vector<2x18x18xf32>
    %226 = arith.addf %221, %225 : vector<2x18x18xf32>
    %c21 = arith.constant 21 : index
    %227 = memref.load %arg2[%c21] : memref<72xf32, #tpu.memory_space<smem>>
    %228 = vector.extract_strided_slice %4 {offsets = [0, 1, 0], sizes = [2, 18, 18], strides = [1, 1, 1]} : vector<2x20x18xf32> to vector<2x18x18xf32>
    %229 = vector.broadcast %227 : f32 to vector<2x18x18xf32>
    %230 = arith.mulf %228, %229 : vector<2x18x18xf32>
    %231 = arith.addf %226, %230 : vector<2x18x18xf32>
    %c24 = arith.constant 24 : index
    %232 = memref.load %arg2[%c24] : memref<72xf32, #tpu.memory_space<smem>>
    %233 = vector.extract_strided_slice %4 {offsets = [0, 2, 0], sizes = [2, 18, 18], strides = [1, 1, 1]} : vector<2x20x18xf32> to vector<2x18x18xf32>
    %234 = vector.broadcast %232 : f32 to vector<2x18x18xf32>
    %235 = arith.mulf %233, %234 : vector<2x18x18xf32>
    %236 = arith.addf %231, %235 : vector<2x18x18xf32>
    %c19 = arith.constant 19 : index
    %237 = memref.load %arg2[%c19] : memref<72xf32, #tpu.memory_space<smem>>
    %238 = vector.extract_strided_slice %5 {offsets = [0, 0, 0], sizes = [2, 18, 18], strides = [1, 1, 1]} : vector<2x20x18xf32> to vector<2x18x18xf32>
    %239 = vector.broadcast %237 : f32 to vector<2x18x18xf32>
    %240 = arith.mulf %238, %239 : vector<2x18x18xf32>
    %241 = arith.addf %236, %240 : vector<2x18x18xf32>
    %c22 = arith.constant 22 : index
    %242 = memref.load %arg2[%c22] : memref<72xf32, #tpu.memory_space<smem>>
    %243 = vector.extract_strided_slice %5 {offsets = [0, 1, 0], sizes = [2, 18, 18], strides = [1, 1, 1]} : vector<2x20x18xf32> to vector<2x18x18xf32>
    %244 = vector.broadcast %242 : f32 to vector<2x18x18xf32>
    %245 = arith.mulf %243, %244 : vector<2x18x18xf32>
    %246 = arith.addf %241, %245 : vector<2x18x18xf32>
    %c25 = arith.constant 25 : index
    %247 = memref.load %arg2[%c25] : memref<72xf32, #tpu.memory_space<smem>>
    %248 = vector.extract_strided_slice %5 {offsets = [0, 2, 0], sizes = [2, 18, 18], strides = [1, 1, 1]} : vector<2x20x18xf32> to vector<2x18x18xf32>
    %249 = vector.broadcast %247 : f32 to vector<2x18x18xf32>
    %250 = arith.mulf %248, %249 : vector<2x18x18xf32>
    %251 = arith.addf %246, %250 : vector<2x18x18xf32>
    %c20 = arith.constant 20 : index
    %252 = memref.load %arg2[%c20] : memref<72xf32, #tpu.memory_space<smem>>
    %253 = vector.extract_strided_slice %6 {offsets = [0, 0, 0], sizes = [2, 18, 18], strides = [1, 1, 1]} : vector<2x20x18xf32> to vector<2x18x18xf32>
    %254 = vector.broadcast %252 : f32 to vector<2x18x18xf32>
    %255 = arith.mulf %253, %254 : vector<2x18x18xf32>
    %256 = arith.addf %251, %255 : vector<2x18x18xf32>
    %c23 = arith.constant 23 : index
    %257 = memref.load %arg2[%c23] : memref<72xf32, #tpu.memory_space<smem>>
    %258 = vector.extract_strided_slice %6 {offsets = [0, 1, 0], sizes = [2, 18, 18], strides = [1, 1, 1]} : vector<2x20x18xf32> to vector<2x18x18xf32>
    %259 = vector.broadcast %257 : f32 to vector<2x18x18xf32>
    %260 = arith.mulf %258, %259 : vector<2x18x18xf32>
    %261 = arith.addf %256, %260 : vector<2x18x18xf32>
    %c26 = arith.constant 26 : index
    %262 = memref.load %arg2[%c26] : memref<72xf32, #tpu.memory_space<smem>>
    %263 = vector.extract_strided_slice %6 {offsets = [0, 2, 0], sizes = [2, 18, 18], strides = [1, 1, 1]} : vector<2x20x18xf32> to vector<2x18x18xf32>
    %264 = vector.broadcast %262 : f32 to vector<2x18x18xf32>
    %265 = arith.mulf %263, %264 : vector<2x18x18xf32>
    %266 = arith.addf %261, %265 : vector<2x18x18xf32>
    %cst_46 = arith.constant 0.000000e+00 : f32
    %267 = vector.broadcast %cst_46 : f32 to vector<2x18x18xf32>
    %268 = arith.maximumf %266, %267 : vector<2x18x18xf32>
    %cst_47 = arith.constant 0.000000e+00 : f32
    %269 = vector.broadcast %cst_47 : f32 to vector<2x18x18xf32>
    %270 = arith.select %19, %268, %269 : vector<2x18x18xi1>, vector<2x18x18xf32>
    %271 = vector.extract_strided_slice %270 {offsets = [0, 0, 0], sizes = [2, 18, 16], strides = [1, 1, 1]} : vector<2x18x18xf32> to vector<2x18x16xf32>
    %c18_48 = arith.constant 18 : index
    %272 = memref.load %arg4[%c18_48] : memref<72xf32, #tpu.memory_space<smem>>
    %273 = vector.extract_strided_slice %271 {offsets = [0, 0, 0], sizes = [2, 16, 16], strides = [1, 1, 1]} : vector<2x18x16xf32> to vector<2x16x16xf32>
    %274 = vector.broadcast %272 : f32 to vector<2x16x16xf32>
    %275 = arith.mulf %273, %274 : vector<2x16x16xf32>
    %276 = arith.addf %219, %275 : vector<2x16x16xf32>
    %c21_49 = arith.constant 21 : index
    %277 = memref.load %arg4[%c21_49] : memref<72xf32, #tpu.memory_space<smem>>
    %278 = vector.extract_strided_slice %271 {offsets = [0, 1, 0], sizes = [2, 16, 16], strides = [1, 1, 1]} : vector<2x18x16xf32> to vector<2x16x16xf32>
    %279 = vector.broadcast %277 : f32 to vector<2x16x16xf32>
    %280 = arith.mulf %278, %279 : vector<2x16x16xf32>
    %281 = arith.addf %276, %280 : vector<2x16x16xf32>
    %c24_50 = arith.constant 24 : index
    %282 = memref.load %arg4[%c24_50] : memref<72xf32, #tpu.memory_space<smem>>
    %283 = vector.extract_strided_slice %271 {offsets = [0, 2, 0], sizes = [2, 16, 16], strides = [1, 1, 1]} : vector<2x18x16xf32> to vector<2x16x16xf32>
    %284 = vector.broadcast %282 : f32 to vector<2x16x16xf32>
    %285 = arith.mulf %283, %284 : vector<2x16x16xf32>
    %286 = arith.addf %281, %285 : vector<2x16x16xf32>
    %287 = vector.extract_strided_slice %270 {offsets = [0, 0, 1], sizes = [2, 18, 16], strides = [1, 1, 1]} : vector<2x18x18xf32> to vector<2x18x16xf32>
    %c19_51 = arith.constant 19 : index
    %288 = memref.load %arg4[%c19_51] : memref<72xf32, #tpu.memory_space<smem>>
    %289 = vector.extract_strided_slice %287 {offsets = [0, 0, 0], sizes = [2, 16, 16], strides = [1, 1, 1]} : vector<2x18x16xf32> to vector<2x16x16xf32>
    %290 = vector.broadcast %288 : f32 to vector<2x16x16xf32>
    %291 = arith.mulf %289, %290 : vector<2x16x16xf32>
    %292 = arith.addf %286, %291 : vector<2x16x16xf32>
    %c22_52 = arith.constant 22 : index
    %293 = memref.load %arg4[%c22_52] : memref<72xf32, #tpu.memory_space<smem>>
    %294 = vector.extract_strided_slice %287 {offsets = [0, 1, 0], sizes = [2, 16, 16], strides = [1, 1, 1]} : vector<2x18x16xf32> to vector<2x16x16xf32>
    %295 = vector.broadcast %293 : f32 to vector<2x16x16xf32>
    %296 = arith.mulf %294, %295 : vector<2x16x16xf32>
    %297 = arith.addf %292, %296 : vector<2x16x16xf32>
    %c25_53 = arith.constant 25 : index
    %298 = memref.load %arg4[%c25_53] : memref<72xf32, #tpu.memory_space<smem>>
    %299 = vector.extract_strided_slice %287 {offsets = [0, 2, 0], sizes = [2, 16, 16], strides = [1, 1, 1]} : vector<2x18x16xf32> to vector<2x16x16xf32>
    %300 = vector.broadcast %298 : f32 to vector<2x16x16xf32>
    %301 = arith.mulf %299, %300 : vector<2x16x16xf32>
    %302 = arith.addf %297, %301 : vector<2x16x16xf32>
    %303 = vector.extract_strided_slice %270 {offsets = [0, 0, 2], sizes = [2, 18, 16], strides = [1, 1, 1]} : vector<2x18x18xf32> to vector<2x18x16xf32>
    %c20_54 = arith.constant 20 : index
    %304 = memref.load %arg4[%c20_54] : memref<72xf32, #tpu.memory_space<smem>>
    %305 = vector.extract_strided_slice %303 {offsets = [0, 0, 0], sizes = [2, 16, 16], strides = [1, 1, 1]} : vector<2x18x16xf32> to vector<2x16x16xf32>
    %306 = vector.broadcast %304 : f32 to vector<2x16x16xf32>
    %307 = arith.mulf %305, %306 : vector<2x16x16xf32>
    %308 = arith.addf %302, %307 : vector<2x16x16xf32>
    %c23_55 = arith.constant 23 : index
    %309 = memref.load %arg4[%c23_55] : memref<72xf32, #tpu.memory_space<smem>>
    %310 = vector.extract_strided_slice %303 {offsets = [0, 1, 0], sizes = [2, 16, 16], strides = [1, 1, 1]} : vector<2x18x16xf32> to vector<2x16x16xf32>
    %311 = vector.broadcast %309 : f32 to vector<2x16x16xf32>
    %312 = arith.mulf %310, %311 : vector<2x16x16xf32>
    %313 = arith.addf %308, %312 : vector<2x16x16xf32>
    %c26_56 = arith.constant 26 : index
    %314 = memref.load %arg4[%c26_56] : memref<72xf32, #tpu.memory_space<smem>>
    %315 = vector.extract_strided_slice %303 {offsets = [0, 2, 0], sizes = [2, 16, 16], strides = [1, 1, 1]} : vector<2x18x16xf32> to vector<2x16x16xf32>
    %316 = vector.broadcast %314 : f32 to vector<2x16x16xf32>
    %317 = arith.mulf %315, %316 : vector<2x16x16xf32>
    %318 = arith.addf %313, %317 : vector<2x16x16xf32>
    %c3_57 = arith.constant 3 : index
    %319 = memref.load %arg3[%c3_57] : memref<8xf32, #tpu.memory_space<smem>>
    %320 = vector.broadcast %319 : f32 to vector<2x18x18xf32>
    %c27 = arith.constant 27 : index
    %321 = memref.load %arg2[%c27] : memref<72xf32, #tpu.memory_space<smem>>
    %322 = vector.extract_strided_slice %4 {offsets = [0, 0, 0], sizes = [2, 18, 18], strides = [1, 1, 1]} : vector<2x20x18xf32> to vector<2x18x18xf32>
    %323 = vector.broadcast %321 : f32 to vector<2x18x18xf32>
    %324 = arith.mulf %322, %323 : vector<2x18x18xf32>
    %325 = arith.addf %320, %324 : vector<2x18x18xf32>
    %c30 = arith.constant 30 : index
    %326 = memref.load %arg2[%c30] : memref<72xf32, #tpu.memory_space<smem>>
    %327 = vector.extract_strided_slice %4 {offsets = [0, 1, 0], sizes = [2, 18, 18], strides = [1, 1, 1]} : vector<2x20x18xf32> to vector<2x18x18xf32>
    %328 = vector.broadcast %326 : f32 to vector<2x18x18xf32>
    %329 = arith.mulf %327, %328 : vector<2x18x18xf32>
    %330 = arith.addf %325, %329 : vector<2x18x18xf32>
    %c33 = arith.constant 33 : index
    %331 = memref.load %arg2[%c33] : memref<72xf32, #tpu.memory_space<smem>>
    %332 = vector.extract_strided_slice %4 {offsets = [0, 2, 0], sizes = [2, 18, 18], strides = [1, 1, 1]} : vector<2x20x18xf32> to vector<2x18x18xf32>
    %333 = vector.broadcast %331 : f32 to vector<2x18x18xf32>
    %334 = arith.mulf %332, %333 : vector<2x18x18xf32>
    %335 = arith.addf %330, %334 : vector<2x18x18xf32>
    %c28 = arith.constant 28 : index
    %336 = memref.load %arg2[%c28] : memref<72xf32, #tpu.memory_space<smem>>
    %337 = vector.extract_strided_slice %5 {offsets = [0, 0, 0], sizes = [2, 18, 18], strides = [1, 1, 1]} : vector<2x20x18xf32> to vector<2x18x18xf32>
    %338 = vector.broadcast %336 : f32 to vector<2x18x18xf32>
    %339 = arith.mulf %337, %338 : vector<2x18x18xf32>
    %340 = arith.addf %335, %339 : vector<2x18x18xf32>
    %c31 = arith.constant 31 : index
    %341 = memref.load %arg2[%c31] : memref<72xf32, #tpu.memory_space<smem>>
    %342 = vector.extract_strided_slice %5 {offsets = [0, 1, 0], sizes = [2, 18, 18], strides = [1, 1, 1]} : vector<2x20x18xf32> to vector<2x18x18xf32>
    %343 = vector.broadcast %341 : f32 to vector<2x18x18xf32>
    %344 = arith.mulf %342, %343 : vector<2x18x18xf32>
    %345 = arith.addf %340, %344 : vector<2x18x18xf32>
    %c34 = arith.constant 34 : index
    %346 = memref.load %arg2[%c34] : memref<72xf32, #tpu.memory_space<smem>>
    %347 = vector.extract_strided_slice %5 {offsets = [0, 2, 0], sizes = [2, 18, 18], strides = [1, 1, 1]} : vector<2x20x18xf32> to vector<2x18x18xf32>
    %348 = vector.broadcast %346 : f32 to vector<2x18x18xf32>
    %349 = arith.mulf %347, %348 : vector<2x18x18xf32>
    %350 = arith.addf %345, %349 : vector<2x18x18xf32>
    %c29 = arith.constant 29 : index
    %351 = memref.load %arg2[%c29] : memref<72xf32, #tpu.memory_space<smem>>
    %352 = vector.extract_strided_slice %6 {offsets = [0, 0, 0], sizes = [2, 18, 18], strides = [1, 1, 1]} : vector<2x20x18xf32> to vector<2x18x18xf32>
    %353 = vector.broadcast %351 : f32 to vector<2x18x18xf32>
    %354 = arith.mulf %352, %353 : vector<2x18x18xf32>
    %355 = arith.addf %350, %354 : vector<2x18x18xf32>
    %c32 = arith.constant 32 : index
    %356 = memref.load %arg2[%c32] : memref<72xf32, #tpu.memory_space<smem>>
    %357 = vector.extract_strided_slice %6 {offsets = [0, 1, 0], sizes = [2, 18, 18], strides = [1, 1, 1]} : vector<2x20x18xf32> to vector<2x18x18xf32>
    %358 = vector.broadcast %356 : f32 to vector<2x18x18xf32>
    %359 = arith.mulf %357, %358 : vector<2x18x18xf32>
    %360 = arith.addf %355, %359 : vector<2x18x18xf32>
    %c35 = arith.constant 35 : index
    %361 = memref.load %arg2[%c35] : memref<72xf32, #tpu.memory_space<smem>>
    %362 = vector.extract_strided_slice %6 {offsets = [0, 2, 0], sizes = [2, 18, 18], strides = [1, 1, 1]} : vector<2x20x18xf32> to vector<2x18x18xf32>
    %363 = vector.broadcast %361 : f32 to vector<2x18x18xf32>
    %364 = arith.mulf %362, %363 : vector<2x18x18xf32>
    %365 = arith.addf %360, %364 : vector<2x18x18xf32>
    %cst_58 = arith.constant 0.000000e+00 : f32
    %366 = vector.broadcast %cst_58 : f32 to vector<2x18x18xf32>
    %367 = arith.maximumf %365, %366 : vector<2x18x18xf32>
    %cst_59 = arith.constant 0.000000e+00 : f32
    %368 = vector.broadcast %cst_59 : f32 to vector<2x18x18xf32>
    %369 = arith.select %19, %367, %368 : vector<2x18x18xi1>, vector<2x18x18xf32>
    %370 = vector.extract_strided_slice %369 {offsets = [0, 0, 0], sizes = [2, 18, 16], strides = [1, 1, 1]} : vector<2x18x18xf32> to vector<2x18x16xf32>
    %c27_60 = arith.constant 27 : index
    %371 = memref.load %arg4[%c27_60] : memref<72xf32, #tpu.memory_space<smem>>
    %372 = vector.extract_strided_slice %370 {offsets = [0, 0, 0], sizes = [2, 16, 16], strides = [1, 1, 1]} : vector<2x18x16xf32> to vector<2x16x16xf32>
    %373 = vector.broadcast %371 : f32 to vector<2x16x16xf32>
    %374 = arith.mulf %372, %373 : vector<2x16x16xf32>
    %375 = arith.addf %318, %374 : vector<2x16x16xf32>
    %c30_61 = arith.constant 30 : index
    %376 = memref.load %arg4[%c30_61] : memref<72xf32, #tpu.memory_space<smem>>
    %377 = vector.extract_strided_slice %370 {offsets = [0, 1, 0], sizes = [2, 16, 16], strides = [1, 1, 1]} : vector<2x18x16xf32> to vector<2x16x16xf32>
    %378 = vector.broadcast %376 : f32 to vector<2x16x16xf32>
    %379 = arith.mulf %377, %378 : vector<2x16x16xf32>
    %380 = arith.addf %375, %379 : vector<2x16x16xf32>
    %c33_62 = arith.constant 33 : index
    %381 = memref.load %arg4[%c33_62] : memref<72xf32, #tpu.memory_space<smem>>
    %382 = vector.extract_strided_slice %370 {offsets = [0, 2, 0], sizes = [2, 16, 16], strides = [1, 1, 1]} : vector<2x18x16xf32> to vector<2x16x16xf32>
    %383 = vector.broadcast %381 : f32 to vector<2x16x16xf32>
    %384 = arith.mulf %382, %383 : vector<2x16x16xf32>
    %385 = arith.addf %380, %384 : vector<2x16x16xf32>
    %386 = vector.extract_strided_slice %369 {offsets = [0, 0, 1], sizes = [2, 18, 16], strides = [1, 1, 1]} : vector<2x18x18xf32> to vector<2x18x16xf32>
    %c28_63 = arith.constant 28 : index
    %387 = memref.load %arg4[%c28_63] : memref<72xf32, #tpu.memory_space<smem>>
    %388 = vector.extract_strided_slice %386 {offsets = [0, 0, 0], sizes = [2, 16, 16], strides = [1, 1, 1]} : vector<2x18x16xf32> to vector<2x16x16xf32>
    %389 = vector.broadcast %387 : f32 to vector<2x16x16xf32>
    %390 = arith.mulf %388, %389 : vector<2x16x16xf32>
    %391 = arith.addf %385, %390 : vector<2x16x16xf32>
    %c31_64 = arith.constant 31 : index
    %392 = memref.load %arg4[%c31_64] : memref<72xf32, #tpu.memory_space<smem>>
    %393 = vector.extract_strided_slice %386 {offsets = [0, 1, 0], sizes = [2, 16, 16], strides = [1, 1, 1]} : vector<2x18x16xf32> to vector<2x16x16xf32>
    %394 = vector.broadcast %392 : f32 to vector<2x16x16xf32>
    %395 = arith.mulf %393, %394 : vector<2x16x16xf32>
    %396 = arith.addf %391, %395 : vector<2x16x16xf32>
    %c34_65 = arith.constant 34 : index
    %397 = memref.load %arg4[%c34_65] : memref<72xf32, #tpu.memory_space<smem>>
    %398 = vector.extract_strided_slice %386 {offsets = [0, 2, 0], sizes = [2, 16, 16], strides = [1, 1, 1]} : vector<2x18x16xf32> to vector<2x16x16xf32>
    %399 = vector.broadcast %397 : f32 to vector<2x16x16xf32>
    %400 = arith.mulf %398, %399 : vector<2x16x16xf32>
    %401 = arith.addf %396, %400 : vector<2x16x16xf32>
    %402 = vector.extract_strided_slice %369 {offsets = [0, 0, 2], sizes = [2, 18, 16], strides = [1, 1, 1]} : vector<2x18x18xf32> to vector<2x18x16xf32>
    %c29_66 = arith.constant 29 : index
    %403 = memref.load %arg4[%c29_66] : memref<72xf32, #tpu.memory_space<smem>>
    %404 = vector.extract_strided_slice %402 {offsets = [0, 0, 0], sizes = [2, 16, 16], strides = [1, 1, 1]} : vector<2x18x16xf32> to vector<2x16x16xf32>
    %405 = vector.broadcast %403 : f32 to vector<2x16x16xf32>
    %406 = arith.mulf %404, %405 : vector<2x16x16xf32>
    %407 = arith.addf %401, %406 : vector<2x16x16xf32>
    %c32_67 = arith.constant 32 : index
    %408 = memref.load %arg4[%c32_67] : memref<72xf32, #tpu.memory_space<smem>>
    %409 = vector.extract_strided_slice %402 {offsets = [0, 1, 0], sizes = [2, 16, 16], strides = [1, 1, 1]} : vector<2x18x16xf32> to vector<2x16x16xf32>
    %410 = vector.broadcast %408 : f32 to vector<2x16x16xf32>
    %411 = arith.mulf %409, %410 : vector<2x16x16xf32>
    %412 = arith.addf %407, %411 : vector<2x16x16xf32>
    %c35_68 = arith.constant 35 : index
    %413 = memref.load %arg4[%c35_68] : memref<72xf32, #tpu.memory_space<smem>>
    %414 = vector.extract_strided_slice %402 {offsets = [0, 2, 0], sizes = [2, 16, 16], strides = [1, 1, 1]} : vector<2x18x16xf32> to vector<2x16x16xf32>
    %415 = vector.broadcast %413 : f32 to vector<2x16x16xf32>
    %416 = arith.mulf %414, %415 : vector<2x16x16xf32>
    %417 = arith.addf %412, %416 : vector<2x16x16xf32>
    %c4_69 = arith.constant 4 : index
    %418 = memref.load %arg3[%c4_69] : memref<8xf32, #tpu.memory_space<smem>>
    %419 = vector.broadcast %418 : f32 to vector<2x18x18xf32>
    %c36 = arith.constant 36 : index
    %420 = memref.load %arg2[%c36] : memref<72xf32, #tpu.memory_space<smem>>
    %421 = vector.extract_strided_slice %4 {offsets = [0, 0, 0], sizes = [2, 18, 18], strides = [1, 1, 1]} : vector<2x20x18xf32> to vector<2x18x18xf32>
    %422 = vector.broadcast %420 : f32 to vector<2x18x18xf32>
    %423 = arith.mulf %421, %422 : vector<2x18x18xf32>
    %424 = arith.addf %419, %423 : vector<2x18x18xf32>
    %c39 = arith.constant 39 : index
    %425 = memref.load %arg2[%c39] : memref<72xf32, #tpu.memory_space<smem>>
    %426 = vector.extract_strided_slice %4 {offsets = [0, 1, 0], sizes = [2, 18, 18], strides = [1, 1, 1]} : vector<2x20x18xf32> to vector<2x18x18xf32>
    %427 = vector.broadcast %425 : f32 to vector<2x18x18xf32>
    %428 = arith.mulf %426, %427 : vector<2x18x18xf32>
    %429 = arith.addf %424, %428 : vector<2x18x18xf32>
    %c42 = arith.constant 42 : index
    %430 = memref.load %arg2[%c42] : memref<72xf32, #tpu.memory_space<smem>>
    %431 = vector.extract_strided_slice %4 {offsets = [0, 2, 0], sizes = [2, 18, 18], strides = [1, 1, 1]} : vector<2x20x18xf32> to vector<2x18x18xf32>
    %432 = vector.broadcast %430 : f32 to vector<2x18x18xf32>
    %433 = arith.mulf %431, %432 : vector<2x18x18xf32>
    %434 = arith.addf %429, %433 : vector<2x18x18xf32>
    %c37 = arith.constant 37 : index
    %435 = memref.load %arg2[%c37] : memref<72xf32, #tpu.memory_space<smem>>
    %436 = vector.extract_strided_slice %5 {offsets = [0, 0, 0], sizes = [2, 18, 18], strides = [1, 1, 1]} : vector<2x20x18xf32> to vector<2x18x18xf32>
    %437 = vector.broadcast %435 : f32 to vector<2x18x18xf32>
    %438 = arith.mulf %436, %437 : vector<2x18x18xf32>
    %439 = arith.addf %434, %438 : vector<2x18x18xf32>
    %c40 = arith.constant 40 : index
    %440 = memref.load %arg2[%c40] : memref<72xf32, #tpu.memory_space<smem>>
    %441 = vector.extract_strided_slice %5 {offsets = [0, 1, 0], sizes = [2, 18, 18], strides = [1, 1, 1]} : vector<2x20x18xf32> to vector<2x18x18xf32>
    %442 = vector.broadcast %440 : f32 to vector<2x18x18xf32>
    %443 = arith.mulf %441, %442 : vector<2x18x18xf32>
    %444 = arith.addf %439, %443 : vector<2x18x18xf32>
    %c43 = arith.constant 43 : index
    %445 = memref.load %arg2[%c43] : memref<72xf32, #tpu.memory_space<smem>>
    %446 = vector.extract_strided_slice %5 {offsets = [0, 2, 0], sizes = [2, 18, 18], strides = [1, 1, 1]} : vector<2x20x18xf32> to vector<2x18x18xf32>
    %447 = vector.broadcast %445 : f32 to vector<2x18x18xf32>
    %448 = arith.mulf %446, %447 : vector<2x18x18xf32>
    %449 = arith.addf %444, %448 : vector<2x18x18xf32>
    %c38 = arith.constant 38 : index
    %450 = memref.load %arg2[%c38] : memref<72xf32, #tpu.memory_space<smem>>
    %451 = vector.extract_strided_slice %6 {offsets = [0, 0, 0], sizes = [2, 18, 18], strides = [1, 1, 1]} : vector<2x20x18xf32> to vector<2x18x18xf32>
    %452 = vector.broadcast %450 : f32 to vector<2x18x18xf32>
    %453 = arith.mulf %451, %452 : vector<2x18x18xf32>
    %454 = arith.addf %449, %453 : vector<2x18x18xf32>
    %c41 = arith.constant 41 : index
    %455 = memref.load %arg2[%c41] : memref<72xf32, #tpu.memory_space<smem>>
    %456 = vector.extract_strided_slice %6 {offsets = [0, 1, 0], sizes = [2, 18, 18], strides = [1, 1, 1]} : vector<2x20x18xf32> to vector<2x18x18xf32>
    %457 = vector.broadcast %455 : f32 to vector<2x18x18xf32>
    %458 = arith.mulf %456, %457 : vector<2x18x18xf32>
    %459 = arith.addf %454, %458 : vector<2x18x18xf32>
    %c44 = arith.constant 44 : index
    %460 = memref.load %arg2[%c44] : memref<72xf32, #tpu.memory_space<smem>>
    %461 = vector.extract_strided_slice %6 {offsets = [0, 2, 0], sizes = [2, 18, 18], strides = [1, 1, 1]} : vector<2x20x18xf32> to vector<2x18x18xf32>
    %462 = vector.broadcast %460 : f32 to vector<2x18x18xf32>
    %463 = arith.mulf %461, %462 : vector<2x18x18xf32>
    %464 = arith.addf %459, %463 : vector<2x18x18xf32>
    %cst_70 = arith.constant 0.000000e+00 : f32
    %465 = vector.broadcast %cst_70 : f32 to vector<2x18x18xf32>
    %466 = arith.maximumf %464, %465 : vector<2x18x18xf32>
    %cst_71 = arith.constant 0.000000e+00 : f32
    %467 = vector.broadcast %cst_71 : f32 to vector<2x18x18xf32>
    %468 = arith.select %19, %466, %467 : vector<2x18x18xi1>, vector<2x18x18xf32>
    %469 = vector.extract_strided_slice %468 {offsets = [0, 0, 0], sizes = [2, 18, 16], strides = [1, 1, 1]} : vector<2x18x18xf32> to vector<2x18x16xf32>
    %c36_72 = arith.constant 36 : index
    %470 = memref.load %arg4[%c36_72] : memref<72xf32, #tpu.memory_space<smem>>
    %471 = vector.extract_strided_slice %469 {offsets = [0, 0, 0], sizes = [2, 16, 16], strides = [1, 1, 1]} : vector<2x18x16xf32> to vector<2x16x16xf32>
    %472 = vector.broadcast %470 : f32 to vector<2x16x16xf32>
    %473 = arith.mulf %471, %472 : vector<2x16x16xf32>
    %474 = arith.addf %417, %473 : vector<2x16x16xf32>
    %c39_73 = arith.constant 39 : index
    %475 = memref.load %arg4[%c39_73] : memref<72xf32, #tpu.memory_space<smem>>
    %476 = vector.extract_strided_slice %469 {offsets = [0, 1, 0], sizes = [2, 16, 16], strides = [1, 1, 1]} : vector<2x18x16xf32> to vector<2x16x16xf32>
    %477 = vector.broadcast %475 : f32 to vector<2x16x16xf32>
    %478 = arith.mulf %476, %477 : vector<2x16x16xf32>
    %479 = arith.addf %474, %478 : vector<2x16x16xf32>
    %c42_74 = arith.constant 42 : index
    %480 = memref.load %arg4[%c42_74] : memref<72xf32, #tpu.memory_space<smem>>
    %481 = vector.extract_strided_slice %469 {offsets = [0, 2, 0], sizes = [2, 16, 16], strides = [1, 1, 1]} : vector<2x18x16xf32> to vector<2x16x16xf32>
    %482 = vector.broadcast %480 : f32 to vector<2x16x16xf32>
    %483 = arith.mulf %481, %482 : vector<2x16x16xf32>
    %484 = arith.addf %479, %483 : vector<2x16x16xf32>
    %485 = vector.extract_strided_slice %468 {offsets = [0, 0, 1], sizes = [2, 18, 16], strides = [1, 1, 1]} : vector<2x18x18xf32> to vector<2x18x16xf32>
    %c37_75 = arith.constant 37 : index
    %486 = memref.load %arg4[%c37_75] : memref<72xf32, #tpu.memory_space<smem>>
    %487 = vector.extract_strided_slice %485 {offsets = [0, 0, 0], sizes = [2, 16, 16], strides = [1, 1, 1]} : vector<2x18x16xf32> to vector<2x16x16xf32>
    %488 = vector.broadcast %486 : f32 to vector<2x16x16xf32>
    %489 = arith.mulf %487, %488 : vector<2x16x16xf32>
    %490 = arith.addf %484, %489 : vector<2x16x16xf32>
    %c40_76 = arith.constant 40 : index
    %491 = memref.load %arg4[%c40_76] : memref<72xf32, #tpu.memory_space<smem>>
    %492 = vector.extract_strided_slice %485 {offsets = [0, 1, 0], sizes = [2, 16, 16], strides = [1, 1, 1]} : vector<2x18x16xf32> to vector<2x16x16xf32>
    %493 = vector.broadcast %491 : f32 to vector<2x16x16xf32>
    %494 = arith.mulf %492, %493 : vector<2x16x16xf32>
    %495 = arith.addf %490, %494 : vector<2x16x16xf32>
    %c43_77 = arith.constant 43 : index
    %496 = memref.load %arg4[%c43_77] : memref<72xf32, #tpu.memory_space<smem>>
    %497 = vector.extract_strided_slice %485 {offsets = [0, 2, 0], sizes = [2, 16, 16], strides = [1, 1, 1]} : vector<2x18x16xf32> to vector<2x16x16xf32>
    %498 = vector.broadcast %496 : f32 to vector<2x16x16xf32>
    %499 = arith.mulf %497, %498 : vector<2x16x16xf32>
    %500 = arith.addf %495, %499 : vector<2x16x16xf32>
    %501 = vector.extract_strided_slice %468 {offsets = [0, 0, 2], sizes = [2, 18, 16], strides = [1, 1, 1]} : vector<2x18x18xf32> to vector<2x18x16xf32>
    %c38_78 = arith.constant 38 : index
    %502 = memref.load %arg4[%c38_78] : memref<72xf32, #tpu.memory_space<smem>>
    %503 = vector.extract_strided_slice %501 {offsets = [0, 0, 0], sizes = [2, 16, 16], strides = [1, 1, 1]} : vector<2x18x16xf32> to vector<2x16x16xf32>
    %504 = vector.broadcast %502 : f32 to vector<2x16x16xf32>
    %505 = arith.mulf %503, %504 : vector<2x16x16xf32>
    %506 = arith.addf %500, %505 : vector<2x16x16xf32>
    %c41_79 = arith.constant 41 : index
    %507 = memref.load %arg4[%c41_79] : memref<72xf32, #tpu.memory_space<smem>>
    %508 = vector.extract_strided_slice %501 {offsets = [0, 1, 0], sizes = [2, 16, 16], strides = [1, 1, 1]} : vector<2x18x16xf32> to vector<2x16x16xf32>
    %509 = vector.broadcast %507 : f32 to vector<2x16x16xf32>
    %510 = arith.mulf %508, %509 : vector<2x16x16xf32>
    %511 = arith.addf %506, %510 : vector<2x16x16xf32>
    %c44_80 = arith.constant 44 : index
    %512 = memref.load %arg4[%c44_80] : memref<72xf32, #tpu.memory_space<smem>>
    %513 = vector.extract_strided_slice %501 {offsets = [0, 2, 0], sizes = [2, 16, 16], strides = [1, 1, 1]} : vector<2x18x16xf32> to vector<2x16x16xf32>
    %514 = vector.broadcast %512 : f32 to vector<2x16x16xf32>
    %515 = arith.mulf %513, %514 : vector<2x16x16xf32>
    %516 = arith.addf %511, %515 : vector<2x16x16xf32>
    %c5_81 = arith.constant 5 : index
    %517 = memref.load %arg3[%c5_81] : memref<8xf32, #tpu.memory_space<smem>>
    %518 = vector.broadcast %517 : f32 to vector<2x18x18xf32>
    %c45 = arith.constant 45 : index
    %519 = memref.load %arg2[%c45] : memref<72xf32, #tpu.memory_space<smem>>
    %520 = vector.extract_strided_slice %4 {offsets = [0, 0, 0], sizes = [2, 18, 18], strides = [1, 1, 1]} : vector<2x20x18xf32> to vector<2x18x18xf32>
    %521 = vector.broadcast %519 : f32 to vector<2x18x18xf32>
    %522 = arith.mulf %520, %521 : vector<2x18x18xf32>
    %523 = arith.addf %518, %522 : vector<2x18x18xf32>
    %c48 = arith.constant 48 : index
    %524 = memref.load %arg2[%c48] : memref<72xf32, #tpu.memory_space<smem>>
    %525 = vector.extract_strided_slice %4 {offsets = [0, 1, 0], sizes = [2, 18, 18], strides = [1, 1, 1]} : vector<2x20x18xf32> to vector<2x18x18xf32>
    %526 = vector.broadcast %524 : f32 to vector<2x18x18xf32>
    %527 = arith.mulf %525, %526 : vector<2x18x18xf32>
    %528 = arith.addf %523, %527 : vector<2x18x18xf32>
    %c51 = arith.constant 51 : index
    %529 = memref.load %arg2[%c51] : memref<72xf32, #tpu.memory_space<smem>>
    %530 = vector.extract_strided_slice %4 {offsets = [0, 2, 0], sizes = [2, 18, 18], strides = [1, 1, 1]} : vector<2x20x18xf32> to vector<2x18x18xf32>
    %531 = vector.broadcast %529 : f32 to vector<2x18x18xf32>
    %532 = arith.mulf %530, %531 : vector<2x18x18xf32>
    %533 = arith.addf %528, %532 : vector<2x18x18xf32>
    %c46 = arith.constant 46 : index
    %534 = memref.load %arg2[%c46] : memref<72xf32, #tpu.memory_space<smem>>
    %535 = vector.extract_strided_slice %5 {offsets = [0, 0, 0], sizes = [2, 18, 18], strides = [1, 1, 1]} : vector<2x20x18xf32> to vector<2x18x18xf32>
    %536 = vector.broadcast %534 : f32 to vector<2x18x18xf32>
    %537 = arith.mulf %535, %536 : vector<2x18x18xf32>
    %538 = arith.addf %533, %537 : vector<2x18x18xf32>
    %c49 = arith.constant 49 : index
    %539 = memref.load %arg2[%c49] : memref<72xf32, #tpu.memory_space<smem>>
    %540 = vector.extract_strided_slice %5 {offsets = [0, 1, 0], sizes = [2, 18, 18], strides = [1, 1, 1]} : vector<2x20x18xf32> to vector<2x18x18xf32>
    %541 = vector.broadcast %539 : f32 to vector<2x18x18xf32>
    %542 = arith.mulf %540, %541 : vector<2x18x18xf32>
    %543 = arith.addf %538, %542 : vector<2x18x18xf32>
    %c52 = arith.constant 52 : index
    %544 = memref.load %arg2[%c52] : memref<72xf32, #tpu.memory_space<smem>>
    %545 = vector.extract_strided_slice %5 {offsets = [0, 2, 0], sizes = [2, 18, 18], strides = [1, 1, 1]} : vector<2x20x18xf32> to vector<2x18x18xf32>
    %546 = vector.broadcast %544 : f32 to vector<2x18x18xf32>
    %547 = arith.mulf %545, %546 : vector<2x18x18xf32>
    %548 = arith.addf %543, %547 : vector<2x18x18xf32>
    %c47 = arith.constant 47 : index
    %549 = memref.load %arg2[%c47] : memref<72xf32, #tpu.memory_space<smem>>
    %550 = vector.extract_strided_slice %6 {offsets = [0, 0, 0], sizes = [2, 18, 18], strides = [1, 1, 1]} : vector<2x20x18xf32> to vector<2x18x18xf32>
    %551 = vector.broadcast %549 : f32 to vector<2x18x18xf32>
    %552 = arith.mulf %550, %551 : vector<2x18x18xf32>
    %553 = arith.addf %548, %552 : vector<2x18x18xf32>
    %c50 = arith.constant 50 : index
    %554 = memref.load %arg2[%c50] : memref<72xf32, #tpu.memory_space<smem>>
    %555 = vector.extract_strided_slice %6 {offsets = [0, 1, 0], sizes = [2, 18, 18], strides = [1, 1, 1]} : vector<2x20x18xf32> to vector<2x18x18xf32>
    %556 = vector.broadcast %554 : f32 to vector<2x18x18xf32>
    %557 = arith.mulf %555, %556 : vector<2x18x18xf32>
    %558 = arith.addf %553, %557 : vector<2x18x18xf32>
    %c53 = arith.constant 53 : index
    %559 = memref.load %arg2[%c53] : memref<72xf32, #tpu.memory_space<smem>>
    %560 = vector.extract_strided_slice %6 {offsets = [0, 2, 0], sizes = [2, 18, 18], strides = [1, 1, 1]} : vector<2x20x18xf32> to vector<2x18x18xf32>
    %561 = vector.broadcast %559 : f32 to vector<2x18x18xf32>
    %562 = arith.mulf %560, %561 : vector<2x18x18xf32>
    %563 = arith.addf %558, %562 : vector<2x18x18xf32>
    %cst_82 = arith.constant 0.000000e+00 : f32
    %564 = vector.broadcast %cst_82 : f32 to vector<2x18x18xf32>
    %565 = arith.maximumf %563, %564 : vector<2x18x18xf32>
    %cst_83 = arith.constant 0.000000e+00 : f32
    %566 = vector.broadcast %cst_83 : f32 to vector<2x18x18xf32>
    %567 = arith.select %19, %565, %566 : vector<2x18x18xi1>, vector<2x18x18xf32>
    %568 = vector.extract_strided_slice %567 {offsets = [0, 0, 0], sizes = [2, 18, 16], strides = [1, 1, 1]} : vector<2x18x18xf32> to vector<2x18x16xf32>
    %c45_84 = arith.constant 45 : index
    %569 = memref.load %arg4[%c45_84] : memref<72xf32, #tpu.memory_space<smem>>
    %570 = vector.extract_strided_slice %568 {offsets = [0, 0, 0], sizes = [2, 16, 16], strides = [1, 1, 1]} : vector<2x18x16xf32> to vector<2x16x16xf32>
    %571 = vector.broadcast %569 : f32 to vector<2x16x16xf32>
    %572 = arith.mulf %570, %571 : vector<2x16x16xf32>
    %573 = arith.addf %516, %572 : vector<2x16x16xf32>
    %c48_85 = arith.constant 48 : index
    %574 = memref.load %arg4[%c48_85] : memref<72xf32, #tpu.memory_space<smem>>
    %575 = vector.extract_strided_slice %568 {offsets = [0, 1, 0], sizes = [2, 16, 16], strides = [1, 1, 1]} : vector<2x18x16xf32> to vector<2x16x16xf32>
    %576 = vector.broadcast %574 : f32 to vector<2x16x16xf32>
    %577 = arith.mulf %575, %576 : vector<2x16x16xf32>
    %578 = arith.addf %573, %577 : vector<2x16x16xf32>
    %c51_86 = arith.constant 51 : index
    %579 = memref.load %arg4[%c51_86] : memref<72xf32, #tpu.memory_space<smem>>
    %580 = vector.extract_strided_slice %568 {offsets = [0, 2, 0], sizes = [2, 16, 16], strides = [1, 1, 1]} : vector<2x18x16xf32> to vector<2x16x16xf32>
    %581 = vector.broadcast %579 : f32 to vector<2x16x16xf32>
    %582 = arith.mulf %580, %581 : vector<2x16x16xf32>
    %583 = arith.addf %578, %582 : vector<2x16x16xf32>
    %584 = vector.extract_strided_slice %567 {offsets = [0, 0, 1], sizes = [2, 18, 16], strides = [1, 1, 1]} : vector<2x18x18xf32> to vector<2x18x16xf32>
    %c46_87 = arith.constant 46 : index
    %585 = memref.load %arg4[%c46_87] : memref<72xf32, #tpu.memory_space<smem>>
    %586 = vector.extract_strided_slice %584 {offsets = [0, 0, 0], sizes = [2, 16, 16], strides = [1, 1, 1]} : vector<2x18x16xf32> to vector<2x16x16xf32>
    %587 = vector.broadcast %585 : f32 to vector<2x16x16xf32>
    %588 = arith.mulf %586, %587 : vector<2x16x16xf32>
    %589 = arith.addf %583, %588 : vector<2x16x16xf32>
    %c49_88 = arith.constant 49 : index
    %590 = memref.load %arg4[%c49_88] : memref<72xf32, #tpu.memory_space<smem>>
    %591 = vector.extract_strided_slice %584 {offsets = [0, 1, 0], sizes = [2, 16, 16], strides = [1, 1, 1]} : vector<2x18x16xf32> to vector<2x16x16xf32>
    %592 = vector.broadcast %590 : f32 to vector<2x16x16xf32>
    %593 = arith.mulf %591, %592 : vector<2x16x16xf32>
    %594 = arith.addf %589, %593 : vector<2x16x16xf32>
    %c52_89 = arith.constant 52 : index
    %595 = memref.load %arg4[%c52_89] : memref<72xf32, #tpu.memory_space<smem>>
    %596 = vector.extract_strided_slice %584 {offsets = [0, 2, 0], sizes = [2, 16, 16], strides = [1, 1, 1]} : vector<2x18x16xf32> to vector<2x16x16xf32>
    %597 = vector.broadcast %595 : f32 to vector<2x16x16xf32>
    %598 = arith.mulf %596, %597 : vector<2x16x16xf32>
    %599 = arith.addf %594, %598 : vector<2x16x16xf32>
    %600 = vector.extract_strided_slice %567 {offsets = [0, 0, 2], sizes = [2, 18, 16], strides = [1, 1, 1]} : vector<2x18x18xf32> to vector<2x18x16xf32>
    %c47_90 = arith.constant 47 : index
    %601 = memref.load %arg4[%c47_90] : memref<72xf32, #tpu.memory_space<smem>>
    %602 = vector.extract_strided_slice %600 {offsets = [0, 0, 0], sizes = [2, 16, 16], strides = [1, 1, 1]} : vector<2x18x16xf32> to vector<2x16x16xf32>
    %603 = vector.broadcast %601 : f32 to vector<2x16x16xf32>
    %604 = arith.mulf %602, %603 : vector<2x16x16xf32>
    %605 = arith.addf %599, %604 : vector<2x16x16xf32>
    %c50_91 = arith.constant 50 : index
    %606 = memref.load %arg4[%c50_91] : memref<72xf32, #tpu.memory_space<smem>>
    %607 = vector.extract_strided_slice %600 {offsets = [0, 1, 0], sizes = [2, 16, 16], strides = [1, 1, 1]} : vector<2x18x16xf32> to vector<2x16x16xf32>
    %608 = vector.broadcast %606 : f32 to vector<2x16x16xf32>
    %609 = arith.mulf %607, %608 : vector<2x16x16xf32>
    %610 = arith.addf %605, %609 : vector<2x16x16xf32>
    %c53_92 = arith.constant 53 : index
    %611 = memref.load %arg4[%c53_92] : memref<72xf32, #tpu.memory_space<smem>>
    %612 = vector.extract_strided_slice %600 {offsets = [0, 2, 0], sizes = [2, 16, 16], strides = [1, 1, 1]} : vector<2x18x16xf32> to vector<2x16x16xf32>
    %613 = vector.broadcast %611 : f32 to vector<2x16x16xf32>
    %614 = arith.mulf %612, %613 : vector<2x16x16xf32>
    %615 = arith.addf %610, %614 : vector<2x16x16xf32>
    %c6_93 = arith.constant 6 : index
    %616 = memref.load %arg3[%c6_93] : memref<8xf32, #tpu.memory_space<smem>>
    %617 = vector.broadcast %616 : f32 to vector<2x18x18xf32>
    %c54 = arith.constant 54 : index
    %618 = memref.load %arg2[%c54] : memref<72xf32, #tpu.memory_space<smem>>
    %619 = vector.extract_strided_slice %4 {offsets = [0, 0, 0], sizes = [2, 18, 18], strides = [1, 1, 1]} : vector<2x20x18xf32> to vector<2x18x18xf32>
    %620 = vector.broadcast %618 : f32 to vector<2x18x18xf32>
    %621 = arith.mulf %619, %620 : vector<2x18x18xf32>
    %622 = arith.addf %617, %621 : vector<2x18x18xf32>
    %c57 = arith.constant 57 : index
    %623 = memref.load %arg2[%c57] : memref<72xf32, #tpu.memory_space<smem>>
    %624 = vector.extract_strided_slice %4 {offsets = [0, 1, 0], sizes = [2, 18, 18], strides = [1, 1, 1]} : vector<2x20x18xf32> to vector<2x18x18xf32>
    %625 = vector.broadcast %623 : f32 to vector<2x18x18xf32>
    %626 = arith.mulf %624, %625 : vector<2x18x18xf32>
    %627 = arith.addf %622, %626 : vector<2x18x18xf32>
    %c60 = arith.constant 60 : index
    %628 = memref.load %arg2[%c60] : memref<72xf32, #tpu.memory_space<smem>>
    %629 = vector.extract_strided_slice %4 {offsets = [0, 2, 0], sizes = [2, 18, 18], strides = [1, 1, 1]} : vector<2x20x18xf32> to vector<2x18x18xf32>
    %630 = vector.broadcast %628 : f32 to vector<2x18x18xf32>
    %631 = arith.mulf %629, %630 : vector<2x18x18xf32>
    %632 = arith.addf %627, %631 : vector<2x18x18xf32>
    %c55 = arith.constant 55 : index
    %633 = memref.load %arg2[%c55] : memref<72xf32, #tpu.memory_space<smem>>
    %634 = vector.extract_strided_slice %5 {offsets = [0, 0, 0], sizes = [2, 18, 18], strides = [1, 1, 1]} : vector<2x20x18xf32> to vector<2x18x18xf32>
    %635 = vector.broadcast %633 : f32 to vector<2x18x18xf32>
    %636 = arith.mulf %634, %635 : vector<2x18x18xf32>
    %637 = arith.addf %632, %636 : vector<2x18x18xf32>
    %c58 = arith.constant 58 : index
    %638 = memref.load %arg2[%c58] : memref<72xf32, #tpu.memory_space<smem>>
    %639 = vector.extract_strided_slice %5 {offsets = [0, 1, 0], sizes = [2, 18, 18], strides = [1, 1, 1]} : vector<2x20x18xf32> to vector<2x18x18xf32>
    %640 = vector.broadcast %638 : f32 to vector<2x18x18xf32>
    %641 = arith.mulf %639, %640 : vector<2x18x18xf32>
    %642 = arith.addf %637, %641 : vector<2x18x18xf32>
    %c61 = arith.constant 61 : index
    %643 = memref.load %arg2[%c61] : memref<72xf32, #tpu.memory_space<smem>>
    %644 = vector.extract_strided_slice %5 {offsets = [0, 2, 0], sizes = [2, 18, 18], strides = [1, 1, 1]} : vector<2x20x18xf32> to vector<2x18x18xf32>
    %645 = vector.broadcast %643 : f32 to vector<2x18x18xf32>
    %646 = arith.mulf %644, %645 : vector<2x18x18xf32>
    %647 = arith.addf %642, %646 : vector<2x18x18xf32>
    %c56 = arith.constant 56 : index
    %648 = memref.load %arg2[%c56] : memref<72xf32, #tpu.memory_space<smem>>
    %649 = vector.extract_strided_slice %6 {offsets = [0, 0, 0], sizes = [2, 18, 18], strides = [1, 1, 1]} : vector<2x20x18xf32> to vector<2x18x18xf32>
    %650 = vector.broadcast %648 : f32 to vector<2x18x18xf32>
    %651 = arith.mulf %649, %650 : vector<2x18x18xf32>
    %652 = arith.addf %647, %651 : vector<2x18x18xf32>
    %c59 = arith.constant 59 : index
    %653 = memref.load %arg2[%c59] : memref<72xf32, #tpu.memory_space<smem>>
    %654 = vector.extract_strided_slice %6 {offsets = [0, 1, 0], sizes = [2, 18, 18], strides = [1, 1, 1]} : vector<2x20x18xf32> to vector<2x18x18xf32>
    %655 = vector.broadcast %653 : f32 to vector<2x18x18xf32>
    %656 = arith.mulf %654, %655 : vector<2x18x18xf32>
    %657 = arith.addf %652, %656 : vector<2x18x18xf32>
    %c62 = arith.constant 62 : index
    %658 = memref.load %arg2[%c62] : memref<72xf32, #tpu.memory_space<smem>>
    %659 = vector.extract_strided_slice %6 {offsets = [0, 2, 0], sizes = [2, 18, 18], strides = [1, 1, 1]} : vector<2x20x18xf32> to vector<2x18x18xf32>
    %660 = vector.broadcast %658 : f32 to vector<2x18x18xf32>
    %661 = arith.mulf %659, %660 : vector<2x18x18xf32>
    %662 = arith.addf %657, %661 : vector<2x18x18xf32>
    %cst_94 = arith.constant 0.000000e+00 : f32
    %663 = vector.broadcast %cst_94 : f32 to vector<2x18x18xf32>
    %664 = arith.maximumf %662, %663 : vector<2x18x18xf32>
    %cst_95 = arith.constant 0.000000e+00 : f32
    %665 = vector.broadcast %cst_95 : f32 to vector<2x18x18xf32>
    %666 = arith.select %19, %664, %665 : vector<2x18x18xi1>, vector<2x18x18xf32>
    %667 = vector.extract_strided_slice %666 {offsets = [0, 0, 0], sizes = [2, 18, 16], strides = [1, 1, 1]} : vector<2x18x18xf32> to vector<2x18x16xf32>
    %c54_96 = arith.constant 54 : index
    %668 = memref.load %arg4[%c54_96] : memref<72xf32, #tpu.memory_space<smem>>
    %669 = vector.extract_strided_slice %667 {offsets = [0, 0, 0], sizes = [2, 16, 16], strides = [1, 1, 1]} : vector<2x18x16xf32> to vector<2x16x16xf32>
    %670 = vector.broadcast %668 : f32 to vector<2x16x16xf32>
    %671 = arith.mulf %669, %670 : vector<2x16x16xf32>
    %672 = arith.addf %615, %671 : vector<2x16x16xf32>
    %c57_97 = arith.constant 57 : index
    %673 = memref.load %arg4[%c57_97] : memref<72xf32, #tpu.memory_space<smem>>
    %674 = vector.extract_strided_slice %667 {offsets = [0, 1, 0], sizes = [2, 16, 16], strides = [1, 1, 1]} : vector<2x18x16xf32> to vector<2x16x16xf32>
    %675 = vector.broadcast %673 : f32 to vector<2x16x16xf32>
    %676 = arith.mulf %674, %675 : vector<2x16x16xf32>
    %677 = arith.addf %672, %676 : vector<2x16x16xf32>
    %c60_98 = arith.constant 60 : index
    %678 = memref.load %arg4[%c60_98] : memref<72xf32, #tpu.memory_space<smem>>
    %679 = vector.extract_strided_slice %667 {offsets = [0, 2, 0], sizes = [2, 16, 16], strides = [1, 1, 1]} : vector<2x18x16xf32> to vector<2x16x16xf32>
    %680 = vector.broadcast %678 : f32 to vector<2x16x16xf32>
    %681 = arith.mulf %679, %680 : vector<2x16x16xf32>
    %682 = arith.addf %677, %681 : vector<2x16x16xf32>
    %683 = vector.extract_strided_slice %666 {offsets = [0, 0, 1], sizes = [2, 18, 16], strides = [1, 1, 1]} : vector<2x18x18xf32> to vector<2x18x16xf32>
    %c55_99 = arith.constant 55 : index
    %684 = memref.load %arg4[%c55_99] : memref<72xf32, #tpu.memory_space<smem>>
    %685 = vector.extract_strided_slice %683 {offsets = [0, 0, 0], sizes = [2, 16, 16], strides = [1, 1, 1]} : vector<2x18x16xf32> to vector<2x16x16xf32>
    %686 = vector.broadcast %684 : f32 to vector<2x16x16xf32>
    %687 = arith.mulf %685, %686 : vector<2x16x16xf32>
    %688 = arith.addf %682, %687 : vector<2x16x16xf32>
    %c58_100 = arith.constant 58 : index
    %689 = memref.load %arg4[%c58_100] : memref<72xf32, #tpu.memory_space<smem>>
    %690 = vector.extract_strided_slice %683 {offsets = [0, 1, 0], sizes = [2, 16, 16], strides = [1, 1, 1]} : vector<2x18x16xf32> to vector<2x16x16xf32>
    %691 = vector.broadcast %689 : f32 to vector<2x16x16xf32>
    %692 = arith.mulf %690, %691 : vector<2x16x16xf32>
    %693 = arith.addf %688, %692 : vector<2x16x16xf32>
    %c61_101 = arith.constant 61 : index
    %694 = memref.load %arg4[%c61_101] : memref<72xf32, #tpu.memory_space<smem>>
    %695 = vector.extract_strided_slice %683 {offsets = [0, 2, 0], sizes = [2, 16, 16], strides = [1, 1, 1]} : vector<2x18x16xf32> to vector<2x16x16xf32>
    %696 = vector.broadcast %694 : f32 to vector<2x16x16xf32>
    %697 = arith.mulf %695, %696 : vector<2x16x16xf32>
    %698 = arith.addf %693, %697 : vector<2x16x16xf32>
    %699 = vector.extract_strided_slice %666 {offsets = [0, 0, 2], sizes = [2, 18, 16], strides = [1, 1, 1]} : vector<2x18x18xf32> to vector<2x18x16xf32>
    %c56_102 = arith.constant 56 : index
    %700 = memref.load %arg4[%c56_102] : memref<72xf32, #tpu.memory_space<smem>>
    %701 = vector.extract_strided_slice %699 {offsets = [0, 0, 0], sizes = [2, 16, 16], strides = [1, 1, 1]} : vector<2x18x16xf32> to vector<2x16x16xf32>
    %702 = vector.broadcast %700 : f32 to vector<2x16x16xf32>
    %703 = arith.mulf %701, %702 : vector<2x16x16xf32>
    %704 = arith.addf %698, %703 : vector<2x16x16xf32>
    %c59_103 = arith.constant 59 : index
    %705 = memref.load %arg4[%c59_103] : memref<72xf32, #tpu.memory_space<smem>>
    %706 = vector.extract_strided_slice %699 {offsets = [0, 1, 0], sizes = [2, 16, 16], strides = [1, 1, 1]} : vector<2x18x16xf32> to vector<2x16x16xf32>
    %707 = vector.broadcast %705 : f32 to vector<2x16x16xf32>
    %708 = arith.mulf %706, %707 : vector<2x16x16xf32>
    %709 = arith.addf %704, %708 : vector<2x16x16xf32>
    %c62_104 = arith.constant 62 : index
    %710 = memref.load %arg4[%c62_104] : memref<72xf32, #tpu.memory_space<smem>>
    %711 = vector.extract_strided_slice %699 {offsets = [0, 2, 0], sizes = [2, 16, 16], strides = [1, 1, 1]} : vector<2x18x16xf32> to vector<2x16x16xf32>
    %712 = vector.broadcast %710 : f32 to vector<2x16x16xf32>
    %713 = arith.mulf %711, %712 : vector<2x16x16xf32>
    %714 = arith.addf %709, %713 : vector<2x16x16xf32>
    %c7_105 = arith.constant 7 : index
    %715 = memref.load %arg3[%c7_105] : memref<8xf32, #tpu.memory_space<smem>>
    %716 = vector.broadcast %715 : f32 to vector<2x18x18xf32>
    %c63 = arith.constant 63 : index
    %717 = memref.load %arg2[%c63] : memref<72xf32, #tpu.memory_space<smem>>
    %718 = vector.extract_strided_slice %4 {offsets = [0, 0, 0], sizes = [2, 18, 18], strides = [1, 1, 1]} : vector<2x20x18xf32> to vector<2x18x18xf32>
    %719 = vector.broadcast %717 : f32 to vector<2x18x18xf32>
    %720 = arith.mulf %718, %719 : vector<2x18x18xf32>
    %721 = arith.addf %716, %720 : vector<2x18x18xf32>
    %c66 = arith.constant 66 : index
    %722 = memref.load %arg2[%c66] : memref<72xf32, #tpu.memory_space<smem>>
    %723 = vector.extract_strided_slice %4 {offsets = [0, 1, 0], sizes = [2, 18, 18], strides = [1, 1, 1]} : vector<2x20x18xf32> to vector<2x18x18xf32>
    %724 = vector.broadcast %722 : f32 to vector<2x18x18xf32>
    %725 = arith.mulf %723, %724 : vector<2x18x18xf32>
    %726 = arith.addf %721, %725 : vector<2x18x18xf32>
    %c69 = arith.constant 69 : index
    %727 = memref.load %arg2[%c69] : memref<72xf32, #tpu.memory_space<smem>>
    %728 = vector.extract_strided_slice %4 {offsets = [0, 2, 0], sizes = [2, 18, 18], strides = [1, 1, 1]} : vector<2x20x18xf32> to vector<2x18x18xf32>
    %729 = vector.broadcast %727 : f32 to vector<2x18x18xf32>
    %730 = arith.mulf %728, %729 : vector<2x18x18xf32>
    %731 = arith.addf %726, %730 : vector<2x18x18xf32>
    %c64 = arith.constant 64 : index
    %732 = memref.load %arg2[%c64] : memref<72xf32, #tpu.memory_space<smem>>
    %733 = vector.extract_strided_slice %5 {offsets = [0, 0, 0], sizes = [2, 18, 18], strides = [1, 1, 1]} : vector<2x20x18xf32> to vector<2x18x18xf32>
    %734 = vector.broadcast %732 : f32 to vector<2x18x18xf32>
    %735 = arith.mulf %733, %734 : vector<2x18x18xf32>
    %736 = arith.addf %731, %735 : vector<2x18x18xf32>
    %c67 = arith.constant 67 : index
    %737 = memref.load %arg2[%c67] : memref<72xf32, #tpu.memory_space<smem>>
    %738 = vector.extract_strided_slice %5 {offsets = [0, 1, 0], sizes = [2, 18, 18], strides = [1, 1, 1]} : vector<2x20x18xf32> to vector<2x18x18xf32>
    %739 = vector.broadcast %737 : f32 to vector<2x18x18xf32>
    %740 = arith.mulf %738, %739 : vector<2x18x18xf32>
    %741 = arith.addf %736, %740 : vector<2x18x18xf32>
    %c70 = arith.constant 70 : index
    %742 = memref.load %arg2[%c70] : memref<72xf32, #tpu.memory_space<smem>>
    %743 = vector.extract_strided_slice %5 {offsets = [0, 2, 0], sizes = [2, 18, 18], strides = [1, 1, 1]} : vector<2x20x18xf32> to vector<2x18x18xf32>
    %744 = vector.broadcast %742 : f32 to vector<2x18x18xf32>
    %745 = arith.mulf %743, %744 : vector<2x18x18xf32>
    %746 = arith.addf %741, %745 : vector<2x18x18xf32>
    %c65 = arith.constant 65 : index
    %747 = memref.load %arg2[%c65] : memref<72xf32, #tpu.memory_space<smem>>
    %748 = vector.extract_strided_slice %6 {offsets = [0, 0, 0], sizes = [2, 18, 18], strides = [1, 1, 1]} : vector<2x20x18xf32> to vector<2x18x18xf32>
    %749 = vector.broadcast %747 : f32 to vector<2x18x18xf32>
    %750 = arith.mulf %748, %749 : vector<2x18x18xf32>
    %751 = arith.addf %746, %750 : vector<2x18x18xf32>
    %c68 = arith.constant 68 : index
    %752 = memref.load %arg2[%c68] : memref<72xf32, #tpu.memory_space<smem>>
    %753 = vector.extract_strided_slice %6 {offsets = [0, 1, 0], sizes = [2, 18, 18], strides = [1, 1, 1]} : vector<2x20x18xf32> to vector<2x18x18xf32>
    %754 = vector.broadcast %752 : f32 to vector<2x18x18xf32>
    %755 = arith.mulf %753, %754 : vector<2x18x18xf32>
    %756 = arith.addf %751, %755 : vector<2x18x18xf32>
    %c71 = arith.constant 71 : index
    %757 = memref.load %arg2[%c71] : memref<72xf32, #tpu.memory_space<smem>>
    %758 = vector.extract_strided_slice %6 {offsets = [0, 2, 0], sizes = [2, 18, 18], strides = [1, 1, 1]} : vector<2x20x18xf32> to vector<2x18x18xf32>
    %759 = vector.broadcast %757 : f32 to vector<2x18x18xf32>
    %760 = arith.mulf %758, %759 : vector<2x18x18xf32>
    %761 = arith.addf %756, %760 : vector<2x18x18xf32>
    %cst_106 = arith.constant 0.000000e+00 : f32
    %762 = vector.broadcast %cst_106 : f32 to vector<2x18x18xf32>
    %763 = arith.maximumf %761, %762 : vector<2x18x18xf32>
    %cst_107 = arith.constant 0.000000e+00 : f32
    %764 = vector.broadcast %cst_107 : f32 to vector<2x18x18xf32>
    %765 = arith.select %19, %763, %764 : vector<2x18x18xi1>, vector<2x18x18xf32>
    %766 = vector.extract_strided_slice %765 {offsets = [0, 0, 0], sizes = [2, 18, 16], strides = [1, 1, 1]} : vector<2x18x18xf32> to vector<2x18x16xf32>
    %c63_108 = arith.constant 63 : index
    %767 = memref.load %arg4[%c63_108] : memref<72xf32, #tpu.memory_space<smem>>
    %768 = vector.extract_strided_slice %766 {offsets = [0, 0, 0], sizes = [2, 16, 16], strides = [1, 1, 1]} : vector<2x18x16xf32> to vector<2x16x16xf32>
    %769 = vector.broadcast %767 : f32 to vector<2x16x16xf32>
    %770 = arith.mulf %768, %769 : vector<2x16x16xf32>
    %771 = arith.addf %714, %770 : vector<2x16x16xf32>
    %c66_109 = arith.constant 66 : index
    %772 = memref.load %arg4[%c66_109] : memref<72xf32, #tpu.memory_space<smem>>
    %773 = vector.extract_strided_slice %766 {offsets = [0, 1, 0], sizes = [2, 16, 16], strides = [1, 1, 1]} : vector<2x18x16xf32> to vector<2x16x16xf32>
    %774 = vector.broadcast %772 : f32 to vector<2x16x16xf32>
    %775 = arith.mulf %773, %774 : vector<2x16x16xf32>
    %776 = arith.addf %771, %775 : vector<2x16x16xf32>
    %c69_110 = arith.constant 69 : index
    %777 = memref.load %arg4[%c69_110] : memref<72xf32, #tpu.memory_space<smem>>
    %778 = vector.extract_strided_slice %766 {offsets = [0, 2, 0], sizes = [2, 16, 16], strides = [1, 1, 1]} : vector<2x18x16xf32> to vector<2x16x16xf32>
    %779 = vector.broadcast %777 : f32 to vector<2x16x16xf32>
    %780 = arith.mulf %778, %779 : vector<2x16x16xf32>
    %781 = arith.addf %776, %780 : vector<2x16x16xf32>
    %782 = vector.extract_strided_slice %765 {offsets = [0, 0, 1], sizes = [2, 18, 16], strides = [1, 1, 1]} : vector<2x18x18xf32> to vector<2x18x16xf32>
    %c64_111 = arith.constant 64 : index
    %783 = memref.load %arg4[%c64_111] : memref<72xf32, #tpu.memory_space<smem>>
    %784 = vector.extract_strided_slice %782 {offsets = [0, 0, 0], sizes = [2, 16, 16], strides = [1, 1, 1]} : vector<2x18x16xf32> to vector<2x16x16xf32>
    %785 = vector.broadcast %783 : f32 to vector<2x16x16xf32>
    %786 = arith.mulf %784, %785 : vector<2x16x16xf32>
    %787 = arith.addf %781, %786 : vector<2x16x16xf32>
    %c67_112 = arith.constant 67 : index
    %788 = memref.load %arg4[%c67_112] : memref<72xf32, #tpu.memory_space<smem>>
    %789 = vector.extract_strided_slice %782 {offsets = [0, 1, 0], sizes = [2, 16, 16], strides = [1, 1, 1]} : vector<2x18x16xf32> to vector<2x16x16xf32>
    %790 = vector.broadcast %788 : f32 to vector<2x16x16xf32>
    %791 = arith.mulf %789, %790 : vector<2x16x16xf32>
    %792 = arith.addf %787, %791 : vector<2x16x16xf32>
    %c70_113 = arith.constant 70 : index
    %793 = memref.load %arg4[%c70_113] : memref<72xf32, #tpu.memory_space<smem>>
    %794 = vector.extract_strided_slice %782 {offsets = [0, 2, 0], sizes = [2, 16, 16], strides = [1, 1, 1]} : vector<2x18x16xf32> to vector<2x16x16xf32>
    %795 = vector.broadcast %793 : f32 to vector<2x16x16xf32>
    %796 = arith.mulf %794, %795 : vector<2x16x16xf32>
    %797 = arith.addf %792, %796 : vector<2x16x16xf32>
    %798 = vector.extract_strided_slice %765 {offsets = [0, 0, 2], sizes = [2, 18, 16], strides = [1, 1, 1]} : vector<2x18x18xf32> to vector<2x18x16xf32>
    %c65_114 = arith.constant 65 : index
    %799 = memref.load %arg4[%c65_114] : memref<72xf32, #tpu.memory_space<smem>>
    %800 = vector.extract_strided_slice %798 {offsets = [0, 0, 0], sizes = [2, 16, 16], strides = [1, 1, 1]} : vector<2x18x16xf32> to vector<2x16x16xf32>
    %801 = vector.broadcast %799 : f32 to vector<2x16x16xf32>
    %802 = arith.mulf %800, %801 : vector<2x16x16xf32>
    %803 = arith.addf %797, %802 : vector<2x16x16xf32>
    %c68_115 = arith.constant 68 : index
    %804 = memref.load %arg4[%c68_115] : memref<72xf32, #tpu.memory_space<smem>>
    %805 = vector.extract_strided_slice %798 {offsets = [0, 1, 0], sizes = [2, 16, 16], strides = [1, 1, 1]} : vector<2x18x16xf32> to vector<2x16x16xf32>
    %806 = vector.broadcast %804 : f32 to vector<2x16x16xf32>
    %807 = arith.mulf %805, %806 : vector<2x16x16xf32>
    %808 = arith.addf %803, %807 : vector<2x16x16xf32>
    %c71_116 = arith.constant 71 : index
    %809 = memref.load %arg4[%c71_116] : memref<72xf32, #tpu.memory_space<smem>>
    %810 = vector.extract_strided_slice %798 {offsets = [0, 2, 0], sizes = [2, 16, 16], strides = [1, 1, 1]} : vector<2x18x16xf32> to vector<2x16x16xf32>
    %811 = vector.broadcast %809 : f32 to vector<2x16x16xf32>
    %812 = arith.mulf %810, %811 : vector<2x16x16xf32>
    %813 = arith.addf %808, %812 : vector<2x16x16xf32>
    %c0_117 = arith.constant 0 : index
    %c0_118 = arith.constant 0 : index
    %c0_119 = arith.constant 0 : index
    %814 = vector.load %arg6[%c0_117, %c0_118, %c0_119] : memref<2x16x16xf32, #tpu.memory_space<vmem>>, vector<2x16x16xf32>
    tpu.vector_store %arg6[%c0_117, %c0_118, %c0_119], %813 {strides = array<i32>} : memref<2x16x16xf32, #tpu.memory_space<vmem>>, vector<2x16x16xf32>,
    return
  }
  func.func @transform_0(%arg0: i32) -> (i32, i32, i32) {
    %c0_i32 = arith.constant 0 : i32
    %c0_i32_0 = arith.constant 0 : i32
    %c0_i32_1 = arith.constant 0 : i32
    return %arg0, %c0_i32, %c0_i32_0 : i32, i32, i32
  }
  func.func @transform_1(%arg0: i32) -> i32 {
    %c0_i32 = arith.constant 0 : i32
    %c0_i32_0 = arith.constant 0 : i32
    return %c0_i32 : i32
  }
  func.func @transform_2(%arg0: i32) -> i32 {
    %c0_i32 = arith.constant 0 : i32
    %c0_i32_0 = arith.constant 0 : i32
    return %c0_i32 : i32
  }
  func.func @transform_3(%arg0: i32) -> i32 {
    %c0_i32 = arith.constant 0 : i32
    %c0_i32_0 = arith.constant 0 : i32
    return %c0_i32 : i32
  }
  func.func @transform_4(%arg0: i32) -> i32 {
    %c0_i32 = arith.constant 0 : i32
    %c0_i32_0 = arith.constant 0 : i32
    return %c0_i32 : i32
  }
  func.func @transform_5(%arg0: i32) -> (i32, i32, i32) {
    %c0_i32 = arith.constant 0 : i32
    %c0_i32_0 = arith.constant 0 : i32
    %c0_i32_1 = arith.constant 0 : i32
    return %arg0, %c0_i32, %c0_i32_0 : i32, i32, i32
  }
}

</mosaic_0001>

<bundles_post_ra>
// kernel: tpu_custom_call.1
= control target key start
LH: loop header
LB: loop body
LE: loop exit
PB: predicated region body
PF: predicated region fallthrough
CT: control target
= control target key end

     0   :  { %11 = vsyncpa [#allocation5], 0  ;;  %s9742_s0 = inlined_call_operand.hbm [shape: f32[2,16,16], index: 0, kind: input, shape index: {}]   ;;  %s9743_s1 = inlined_call_operand.vmem [shape: f32[72], index: 1, kind: input, shape index: {}]   ;;  %s9744_s2 = inlined_call_operand.vmem [shape: f32[8], index: 2, kind: input, shape index: {}]   ;;  %s9745_s3 = inlined_call_operand.vmem [shape: f32[72], index: 3, kind: input, shape index: {}]   ;;  %s9746_s4 = inlined_call_operand.<no memory space> [shape: f32[1], index: 4, kind: input, shape index: {}]   ;;  %s9747_s5 = inlined_call_operand.hbm [shape: f32[2,16,16], index: 5, kind: output, shape index: {}]  }
   0x1   :  { %12 = vsyncpa [#allocation7], 0 }
   0x2   :  { %13 = vsyncpa [#allocation10], 0  ;;  %s43_s20 = sshll.u32 %s9744_s2, 4  ;;  %s44_s20 = int_to_ptr.vmem [resolvable:$true] %s43_s20 }
   0x3   :  { %14 = vsyncpa [#allocation6], 0  ;;  %s5587_s21 = scalar_lea.vmem %s44_s20, 16  ;;  %p5592_p1 = scmp.lt.s32.totalorder %s44_s20, %s44_s20 }
   0x4   :  { %p5588_p0 = scmp.ne.s32.totalorder %s44_s20, %s5587_s21  ;;  %p5593_p2 = scmp.lt.s32.totalorder %s5587_s21, %s5587_s21 }
   0x6   :  { %p5594_p3 = por %p5593_p2, %p5592_p1 }
   0x8   :  { %p5595_p4 = pnand %p5594_p3, %p5588_p0 }
   0xa   :  { %5598 = shalt.err (!%p5595_p4)
}
   0xb   :  { %s5675_s22 = smov [#allocation9]   ;;  %s5676_s23 = smov [#allocation4]  }
   0xc   :  { %46 = dma.vmem_to_smem %s44_s20, 16, %s5675_s22, [#allocation10]  }
   0xd   :  { %s20_s24 = sshll.u32 %s5676_s23, 4  ;;  %s5599_s27 = scalar_lea.hbm %s9742_s0, 512  ;;  %s21_s24 = int_to_ptr.vmem [resolvable:$true] %s20_s24 }
   0xe   :  { %p5600_p5 = scmp.ne.s32.totalorder %s9742_s0, %s5599_s27  ;;  %p5603_p6 = scmp.lt.u32.totalorder %s5599_s27, %s9742_s0 }
  0x10   :  { %p5605_p7 = pnand %p5603_p6, %p5600_p5 }
  0x12   :  { %5608 = shalt.err (!%p5605_p7)
}
  0x13   :  { %s5609_s6 = scalar_lea.vmem %s21_s24, 512  ;;  %p5614_p9 = scmp.lt.s32.totalorder %s21_s24, %s21_s24 }
  0x14   :  { %p5610_p8 = scmp.ne.s32.totalorder %s21_s24, %s5609_s6  ;;  %p5615_p10 = scmp.lt.s32.totalorder %s5609_s6, %s5609_s6 }
  0x16   :  { %p5616_p11 = por %p5615_p10, %p5614_p9 }
  0x18   :  { %p5617_p12 = pnand %p5616_p11, %p5610_p8 }
  0x1a   :  { %5620 = shalt.err (!%p5617_p12)
}
  0x1b   :  { %s5677_s7 = smov 128   ;;  %s5678_s8 = smov 8  }
  0x1c   :  { %26 = dma.hbm_to_vmem [thread:$0]  %s9742_s0, 512, %s21_s24, [#allocation5], %s5677_s7, %s5677_s7, %s5678_s8  }
  0x1d   :  { %s33_s13 = sshll.u32 %s9743_s1, 4  ;;  %s53_s16 = sshll.u32 %s9745_s3, 4  ;;  %s34_s13 = int_to_ptr.vmem [resolvable:$true] %s33_s13  ;;  %s54_s16 = int_to_ptr.vmem [resolvable:$true] %s53_s16 }
  0x1e   :  { %s5621_s17 = scalar_lea.vmem %s34_s13, 16  ;;  %p5626_p0 = scmp.lt.s32.totalorder %s34_s13, %s34_s13 }
  0x1f   :  { %p5622_p13 = scmp.ne.s32.totalorder %s34_s13, %s5621_s17  ;;  %p5627_p1 = scmp.lt.s32.totalorder %s5621_s17, %s5621_s17 }
  0x21   :  { %p5628_p2 = por %p5627_p1, %p5626_p0 }
  0x23   :  { %p5629_p3 = pnand %p5628_p2, %p5622_p13 }
  0x25   :  { %5632 = shalt.err (!%p5629_p3)
}
  0x26   :  { %s5679_s18 = smov [#allocation8]   ;;  %s5633_s0 = scalar_lea.vmem %s54_s16, 16 }
  0x27   :  { %36 = dma.vmem_to_smem %s34_s13, 16, %s5679_s18, [#allocation7]  }
  0x28   :  { %p5634_p4 = scmp.ne.s32.totalorder %s54_s16, %s5633_s0  ;;  %p5638_p5 = scmp.lt.s32.totalorder %s54_s16, %s54_s16 }
  0x29   :  { %p5639_p6 = scmp.lt.s32.totalorder %s5633_s0, %s5633_s0 }
  0x2b   :  { %p5640_p7 = por %p5639_p6, %p5638_p5 }
  0x2d   :  { %p5641_p8 = pnand %p5640_p7, %p5634_p4 }
  0x2f   :  { %5644 = shalt.err (!%p5641_p8)
}
  0x30   :  { %s5680_s1 = smov [#allocation11]  }
  0x31   :  { %56 = dma.vmem_to_smem %s54_s16, 16, %s5680_s1, [#allocation10]  }
  0x32   :  { %5667 = dma.done.wait [#allocation5], 512  }
  0x33   :  { %5668 = vsyncadd [#allocation5], 4294966784 }
  0x34   :  { %5669 = dma.done.wait [#allocation7], 16  }
  0x35   :  { %5670 = vsyncadd [#allocation7], 4294967280 }
  0x36   :  { %5671 = dma.done.wait [#allocation10], 32  }
  0x37   :  { %5672 = vsyncadd [#allocation10], 4294967264 }
  0x38   :  { %71 = sfence }
  0x39   :  { %v80_v0 = vld [vmem:[#allocation4] sm:$0xff]  ;;  %v82_v1 = vld [vmem:[#allocation4 + $0x10] sm:$0xff]  ;;  %vm72_vm0 = vcmask 162816   ;;  %s5681_s3 = smov 2   ;;  %vm75_vm1 = vcmask 158720   ;;  %v81_v2 = vld [vmem:[#allocation4 + $0x8] sm:$0xff] }
  0x3a   :  { %88 = vrot.lane.b32.xlu0 %v80_v0, %s5681_s3  ;;  %92 = vrot.lane.b32.xlu1 %v82_v1, %s5681_s3  ;;  %v83_v3 = vld [vmem:[#allocation4 + $0x18] sm:$0xff]  ;;  %v5682_v4 = vmov 0.0   ;;  %vm100_vm2 = vcmask 146448   ;;  %s5396_s19 = sld [smem:[#allocation8 + $0x1]]  ;;  %s5399_s20 = sld [smem:[#allocation8 + $0x2]]  ;;  %vm166_vm3 = vcmask 1046528  }
  0x3b   :  { %73 = vst.msk [vmem:[#allocation2] sm:$0xff] %vm72_vm0, %v5682_v4  ;;  %74 = vst.msk [vmem:[#allocation2 + $0x8] sm:$0xff] %vm72_vm0, %v5682_v4  ;;  %s5683_s21 = smov 127   ;;  %s5414_s22 = sld [smem:[#allocation8 + $0xa]]  ;;  %vm203_vm4 = vcmask 1045504   ;;  %vm5370_vm14 = vcmask 130048  }
  0x3c   :  { %77 = vst.msk [vmem:[#allocation2 + $0x18] sm:$0xff] %vm72_vm0, %v5682_v4  ;;  %78 = vst.msk [vmem:[#allocation2 + $0x20] sm:$0xff] %vm72_vm0, %v5682_v4  ;;  %s5684_s23 = smov 126   ;;  %s5417_s24 = sld [smem:[#allocation8 + $0xb]] }
  0x3d   :  { %76 = vst.msk [vmem:[#allocation2 + $0x10] sm:$0xf] %vm75_vm1, %v5682_v4  ;;  %79 = vst.msk [vmem:[#allocation2 + $0x28] sm:$0xf] %vm75_vm1, %v5682_v4  ;;  %s5397_s25 = sld [smem:[#allocation8 + $0x4]]  ;;  %s5398_s26 = sld [smem:[#allocation8 + $0x7]] }
  0x3e   :  { %90 = vrot.lane.b32.xlu0 %v81_v2, %s5681_s3  ;;  %94 = vrot.lane.b32.xlu1 %v83_v3, %s5681_s3  ;;  %s5400_s27 = sld [smem:[#allocation8 + $0x5]]  ;;  %s5401_s28 = sld [smem:[#allocation8 + $0x8]] }
  0x3f   :  { %s5415_s2 = sld [smem:[#allocation8 + $0xd]]  ;;  %s5416_s29 = sld [smem:[#allocation8 + $0x10]] }
  0x40   :  { %v227_v9 = vstv %s5396_s19  ;;  %v361_v21 = vstv %s5399_s20  ;;  %s5418_s30 = sld [smem:[#allocation8 + $0xe]]  ;;  %s5419_s6 = sld [smem:[#allocation8 + $0x11]] }
  0x41   :  { %v881_v28 = vstv %s5414_s22  ;;  %s5433_s9 = sld [smem:[#allocation8 + $0x13]]  ;;  %s5434_s10 = sld [smem:[#allocation8 + $0x16]] }
  0x42   :  { %v1015_v35 = vstv %s5417_s24  ;;  %s138_s11 = sld [smem:[#allocation8]]  ;;  %s5394_s12 = sld [smem:[#allocation8 + $0x3]] }
  0x43   :  { %v265_v40 = vstv %s5397_s25  ;;  %v5801_v44 = vstv %s5398_s26  ;;  %s136_s13 = sld [smem:[#allocation9]]  ;;  %s5395_s14 = sld [smem:[#allocation8 + $0x6]] }
  0x44   :  { %v5812_v49 = vstv %s5400_s27  ;;  %v5827_v54 = vstv %s5401_s28  ;;  %s5411_s15 = sld [smem:[#allocation8 + $0x9]]  ;;  %s5412_s17 = sld [smem:[#allocation8 + $0xc]] }
  0x45   :  { %v5843_v59 = vstv %s5415_s2  ;;  %v5861_v0 = vstv %s5416_s29  ;;  %s5410_s16 = sld [smem:[#allocation9 + $0x1]]  ;;  %s6157_s18 = sld [smem:[#allocation8 + $0xf]] }
  0x46   :  { %s6230_s0 = sld [smem:[#allocation11 + $0x3]]  ;;  %s6245_s1 = sld [smem:[#allocation11 + $0x6]] }
  0x47   :  { %s6269_s3 = sld [smem:[#allocation11 + $0x1]]  ;;  %s6291_s19 = sld [smem:[#allocation11]] }
  0x48   :  { %s6449_s24 = sld [smem:[#allocation11 + $0x5]]  ;;  %s6474_s25 = sld [smem:[#allocation11 + $0x8]] }
  0x49   :  { %s6511_s26 = sld [smem:[#allocation11 + $0xc]]  ;;  %s6519_s27 = sld [smem:[#allocation11 + $0xa]] }
  0x4a   :  { %s6529_s28 = sld [smem:[#allocation11 + $0xf]]  ;;  %s5426_s2 = sld [smem:[#allocation11 + $0xb]] }
  0x4b   :  { %s5405_s29 = sld [smem:[#allocation11 + $0x4]]  ;;  %s7068_s20 = sld [smem:[#allocation11 + $0x18]] }
  0x4c   :  { %s7075_s22 = sld [smem:[#allocation11 + $0x13]] }
  0xac   :  { %v89_v5 = vpop.permute.xlu0 %88  ;;  %v93_v6 = vpop.permute.xlu1 %92 }
  0xad   :  { %101 = vst.msk [vmem:[#allocation2 + $0x2] sm:$0xff] %vm100_vm2, %v89_v5  ;;  %103 = vst.msk [vmem:[#allocation2 + $0x1a] sm:$0xff] %vm100_vm2, %v93_v6 }
  0xb0   :  { %v91_v7 = vpop.permute.xlu0 %90  ;;  %v95_v8 = vpop.permute.xlu1 %94 }
  0xb1   :  { %102 = vst.msk [vmem:[#allocation2 + $0xa] sm:$0xff] %vm100_vm2, %v91_v7  ;;  %104 = vst.msk [vmem:[#allocation2 + $0x22] sm:$0xff] %vm100_vm2, %v95_v8 }
  0xb4   :  { %v5740_v10 = vld [vmem:[#allocation2] sm:$0xff]  ;;  %v5750_v16 = vld [vmem:[#allocation2 + $0x18] sm:$0xff] }
  0xb5   :  { %v228_v11 = vmul.f32 %v227_v9, %v5740_v10  ;;  %v231_v18 = vmul.f32 %v227_v9, %v5750_v16  ;;  %v362_v23 = vmul.f32 %v361_v21, %v5740_v10  ;;  %v365_v26 = vmul.f32 %v361_v21, %v5750_v16 }
  0xb6   :  { %v882_v30 = vmul.f32 %v881_v28, %v5740_v10  ;;  %v885_v33 = vmul.f32 %v881_v28, %v5750_v16  ;;  %v1016_v37 = vmul.f32 %v1015_v35, %v5740_v10  ;;  %v1019_v41 = vmul.f32 %v1015_v35, %v5750_v16 }
  0xb7   :  { %240 = vrot.lane.b32.xlu0 %v228_v11, %s5683_s21  ;;  %v266_v6 = vmul.f32 %v265_v40, %v5740_v10 }
  0xb8   :  { %v5744_v12 = vld [vmem:[#allocation2 + $0x8] sm:$0xff]  ;;  %v5746_v13 = vld [vmem:[#allocation2 + $0x10] sm:$0xf]  ;;  %v5752_v17 = vld [vmem:[#allocation2 + $0x20] sm:$0xff] }
  0xb9   :  { %v229_v14 = vmul.f32 %v227_v9, %v5744_v12  ;;  %v230_v15 = vmul.f32 %v227_v9, %v5746_v13  ;;  %v232_v19 = vmul.f32 %v227_v9, %v5752_v17  ;;  %v5758_v20 = vld [vmem:[#allocation2 + $0x28] sm:$0xf]  ;;  %v363_v24 = vmul.f32 %v361_v21, %v5744_v12 }
  0xba   :  { %v233_v22 = vmul.f32 %v227_v9, %v5758_v20  ;;  %v364_v25 = vmul.f32 %v361_v21, %v5746_v13  ;;  %v366_v27 = vmul.f32 %v361_v21, %v5752_v17  ;;  %v367_v29 = vmul.f32 %v361_v21, %v5758_v20 }
  0xbb   :  { %242 = vrot.lane.b32.xlu1 %v229_v14, %s5683_s21  ;;  %244 = vrot.lane.b32.xlu0 %v230_v15, %s5683_s21  ;;  %v883_v31 = vmul.f32 %v881_v28, %v5744_v12  ;;  %v884_v32 = vmul.f32 %v881_v28, %v5746_v13  ;;  %v886_v34 = vmul.f32 %v881_v28, %v5752_v17  ;;  %v278_v15 = vrot.slane %v266_v6, 1 }
  0xbc   :  { %v887_v36 = vmul.f32 %v881_v28, %v5758_v20  ;;  %v1017_v38 = vmul.f32 %v1015_v35, %v5744_v12  ;;  %v1018_v39 = vmul.f32 %v1015_v35, %v5746_v13  ;;  %v1020_v42 = vmul.f32 %v1015_v35, %v5752_v17 }
  0xbd   :  { %v5797_v43 = vmul.f32 %v265_v40, %v5746_v13  ;;  %v1021_v45 = vmul.f32 %v1015_v35, %v5758_v20  ;;  %v271_v47 = vmul.f32 %v265_v40, %v5758_v20  ;;  %v5808_v48 = vmul.f32 %v5801_v44, %v5746_v13 }
  0xbe   :  { %v5817_v52 = vmul.f32 %v5801_v44, %v5758_v20  ;;  %v5821_v53 = vmul.f32 %v5812_v49, %v5746_v13  ;;  %v5833_v57 = vmul.f32 %v5812_v49, %v5758_v20  ;;  %v5837_v58 = vmul.f32 %v5827_v54, %v5746_v13 }
  0xbf   :  { %246 = vrot.lane.b32.xlu1 %v231_v18, %s5683_s21  ;;  %248 = vrot.lane.b32.xlu0 %v232_v19, %s5683_s21  ;;  %v281_v46 = vrot.slane %v5797_v43, 1  ;;  %v286_v50 = vrot.slane %v271_v47, 1  ;;  %v329_v51 = vrot.slane %v5808_v48, 2  ;;  %v5849_v62 = vmul.f32 %v5827_v54, %v5758_v20 }
  0xc0   :  { %v334_v55 = vrot.slane %v5817_v52, 2  ;;  %v415_v56 = vrot.slane %v5821_v53, 1  ;;  %v420_v60 = vrot.slane %v5833_v57, 1  ;;  %v463_v61 = vrot.slane %v5837_v58, 2 }
  0xc1   :  { %v5853_v63 = vmul.f32 %v5843_v59, %v5746_v13  ;;  %v468_v1 = vrot.slane %v5849_v62, 2  ;;  %v5867_v3 = vmul.f32 %v5843_v59, %v5758_v20  ;;  %v5871_v4 = vmul.f32 %v5861_v0, %v5746_v13 }
  0xc2   :  { %v267_v5 = vmul.f32 %v265_v40, %v5744_v12  ;;  %v5885_v9 = vmul.f32 %v5861_v0, %v5758_v20  ;;  %v270_v14 = vmul.f32 %v265_v40, %v5752_v17  ;;  %v269_v19 = vmul.f32 %v265_v40, %v5750_v16 }
  0xc3   :  { %250 = vrot.lane.b32.xlu1 %v233_v22, %s5683_s21  ;;  %374 = vrot.lane.b32.xlu0 %v362_v23, %s5684_s23  ;;  %v935_v2 = vrot.slane %v5853_v63, 1  ;;  %v940_v7 = vrot.slane %v5867_v3, 1  ;;  %v983_v8 = vrot.slane %v5871_v4, 2  ;;  %v315_v23 = vmul.f32 %v5801_v44, %v5744_v12 }
  0xc4   :  { %v279_v11 = vrot.slane %v267_v5, 1  ;;  %v988_v18 = vrot.slane %v5885_v9, 2  ;;  %v284_v22 = vrot.slane %v270_v14, 1  ;;  %v401_v35 = vmul.f32 %v5812_v49, %v5744_v12 }
  0xc5   :  { %v327_v28 = vrot.slane %v315_v23, 2  ;;  %v403_v43 = vmul.f32 %v5812_v49, %v5750_v16  ;;  %v449_v47 = vmul.f32 %v5827_v54, %v5744_v12  ;;  %v448_v48 = vmul.f32 %v5827_v54, %v5740_v10 }
  0xc6   :  { %v280_v21 = vsel %vm166_vm3, %v278_v15, %v279_v11  ;;  %v413_v40 = vrot.slane %v401_v35, 1  ;;  %v451_v6 = vmul.f32 %v5827_v54, %v5750_v16  ;;  %v921_v57 = vmul.f32 %v5843_v59, %v5744_v12 }
  0xc7   :  { %376 = vrot.lane.b32.xlu1 %v363_v24, %s5684_s23  ;;  %378 = vrot.lane.b32.xlu0 %v364_v25, %s5684_s23  ;;  %v314_v24 = vmul.f32 %v5801_v44, %v5740_v10  ;;  %v283_v25 = vrot.slane %v269_v19, 1  ;;  %v461_v52 = vrot.slane %v449_v47, 2  ;;  %v460_v5 = vrot.slane %v448_v48, 2 }
  0xc8   :  { %v465_v14 = vrot.slane %v451_v6, 2  ;;  %v933_v19 = vrot.slane %v921_v57, 1  ;;  %v969_v62 = vmul.f32 %v5861_v0, %v5744_v12  ;;  %v1053_v63 = vstv %s5418_s30  ;;  %s5406_s30 = sld [smem:[#allocation11 + $0x7]] }
  0xc9   :  { %v1056_v35 = vmul.f32 %v1053_v63, %v5746_v13  ;;  %v1058_v9 = vmul.f32 %v1053_v63, %v5752_v17 }
  0xcb   :  { %380 = vrot.lane.b32.xlu1 %v365_v26, %s5684_s23  ;;  %382 = vrot.lane.b32.xlu0 %v366_v27, %s5684_s23  ;;  %v282_v26 = vsel %vm166_vm3, %v279_v11, %v281_v46  ;;  %v287_v27 = vsel %vm166_vm3, %v284_v22, %v286_v50  ;;  %v1072_v48 = vrot.slane %v1058_v9, 1 }
  0xcf   :  { %384 = vrot.lane.b32.xlu1 %v367_v29, %s5684_s23  ;;  %894 = vrot.lane.b32.xlu0 %v882_v30, %s5683_s21  ;;  %v318_v29 = vmul.f32 %v5801_v44, %v5752_v17  ;;  %v326_v30 = vrot.slane %v314_v24, 2 }
  0xd3   :  { %896 = vrot.lane.b32.xlu1 %v883_v31, %s5683_s21  ;;  %898 = vrot.lane.b32.xlu0 %v884_v32, %s5683_s21  ;;  %v317_v31 = vmul.f32 %v5801_v44, %v5750_v16  ;;  %v285_v32 = vsel %vm166_vm3, %v283_v25, %v284_v22  ;;  %v936_v25 = vsel %vm166_vm3, %v933_v19, %v935_v2 }
  0xd7   :  { %900 = vrot.lane.b32.xlu1 %v885_v33, %s5683_s21  ;;  %902 = vrot.lane.b32.xlu0 %v886_v34, %s5683_s21  ;;  %v328_v33 = vsel %vm203_vm4, %v326_v30, %v327_v28  ;;  %v332_v34 = vrot.slane %v318_v29, 2  ;;  %v971_v30 = vmul.f32 %v5861_v0, %v5750_v16 }
  0xdb   :  { %904 = vrot.lane.b32.xlu1 %v887_v36, %s5683_s21  ;;  %1028 = vrot.lane.b32.xlu0 %v1016_v37, %s5684_s23  ;;  %v400_v36 = vmul.f32 %v5812_v49, %v5740_v10  ;;  %v331_v37 = vrot.slane %v317_v31, 2 }
  0xdd   :  { %v333_v44 = vsel %vm203_vm4, %v331_v37, %v332_v34 }
  0xdf   :  { %1030 = vrot.lane.b32.xlu1 %v1017_v38, %s5684_s23  ;;  %1032 = vrot.lane.b32.xlu0 %v1018_v39, %s5684_s23  ;;  %v330_v38 = vsel %vm203_vm4, %v327_v28, %v329_v51  ;;  %v335_v39 = vsel %vm203_vm4, %v332_v34, %v334_v55  ;;  %v972_v28 = vmul.f32 %v5861_v0, %v5752_v17  ;;  %v985_v34 = vrot.slane %v971_v30, 2 }
  0xe1   :  { %v986_v31 = vrot.slane %v972_v28, 2 }
  0xe3   :  { %1034 = vrot.lane.b32.xlu1 %v1019_v41, %s5684_s23  ;;  %1036 = vrot.lane.b32.xlu0 %v1020_v42, %s5684_s23  ;;  %v404_v41 = vmul.f32 %v5812_v49, %v5752_v17  ;;  %v412_v42 = vrot.slane %v400_v36, 1  ;;  %v416_v49 = vsel %vm166_vm3, %v413_v40, %v415_v56  ;;  %v989_v36 = vsel %vm203_vm4, %v986_v31, %v988_v18 }
  0xe7   :  { %1038 = vrot.lane.b32.xlu1 %v1021_v45, %s5684_s23  ;;  %292 = vrot.lane.b32.xlu0 %v281_v46, %s5683_s21  ;;  %v414_v45 = vsel %vm166_vm3, %v412_v42, %v413_v40  ;;  %v418_v46 = vrot.slane %v404_v41, 1  ;;  %v987_v41 = vsel %vm203_vm4, %v985_v34, %v986_v31  ;;  %v1069_v42 = vrot.slane %v1056_v35, 1 }
  0xeb   :  { %298 = vrot.lane.b32.xlu1 %v286_v50, %s5683_s21  ;;  %340 = vrot.lane.b32.xlu0 %v329_v51, %s5683_s21  ;;  %v417_v50 = vrot.slane %v403_v43, 1  ;;  %v421_v51 = vsel %vm166_vm3, %v418_v46, %v420_v60 }
  0xed   :  { %v419_v53 = vsel %vm166_vm3, %v417_v50, %v418_v46  ;;  %v1101_v46 = vstv %s5419_s6  ;;  %s5428_s6 = sld [smem:[#allocation11 + $0x11]] }
  0xef   :  { %346 = vrot.lane.b32.xlu1 %v334_v55, %s5683_s21  ;;  %426 = vrot.lane.b32.xlu0 %v415_v56, %s5684_s23  ;;  %v452_v55 = vmul.f32 %v5827_v54, %v5752_v17  ;;  %v462_v56 = vsel %vm203_vm4, %v460_v5, %v461_v52  ;;  %v464_v54 = vsel %vm203_vm4, %v461_v52, %v463_v61 }
  0xf0   :  { %v1104_v5 = vmul.f32 %v1101_v46, %v5746_v13 }
  0xf1   :  { %v466_v11 = vrot.slane %v452_v55, 2 }
  0xf3   :  { %432 = vrot.lane.b32.xlu1 %v420_v60, %s5684_s23  ;;  %474 = vrot.lane.b32.xlu0 %v463_v61, %s5684_s23  ;;  %v920_v60 = vmul.f32 %v5843_v59, %v5740_v10  ;;  %v469_v15 = vsel %vm203_vm4, %v466_v11, %v468_v1  ;;  %v467_v23 = vsel %vm203_vm4, %v465_v14, %v466_v11  ;;  %v1117_v14 = vrot.slane %v1104_v5, 2 }
  0xf4   :  { %v923_v61 = vmul.f32 %v5843_v59, %v5750_v16 }
  0xf5   :  { %v932_v22 = vrot.slane %v920_v60, 1 }
  0xf7   :  { %480 = vrot.lane.b32.xlu1 %v468_v1, %s5684_s23  ;;  %946 = vrot.lane.b32.xlu0 %v935_v2, %s5683_s21  ;;  %v934_v58 = vsel %vm166_vm3, %v932_v22, %v933_v19  ;;  %v968_v1 = vmul.f32 %v5861_v0, %v5740_v10  ;;  %v1106_v19 = vmul.f32 %v1101_v46, %v5752_v17 }
  0xf9   :  { %v980_v29 = vrot.slane %v968_v1, 2 }
  0xfb   :  { %952 = vrot.lane.b32.xlu1 %v940_v7, %s5683_s21  ;;  %994 = vrot.lane.b32.xlu0 %v983_v8, %s5683_s21 }
  0xff   :  { %1000 = vrot.lane.b32.xlu1 %v988_v18, %s5683_s21  ;;  %288 = vrot.lane.b32.xlu0 %v280_v21, %s5683_s21  ;;  %v924_v21 = vmul.f32 %v5843_v59, %v5752_v17  ;;  %v981_v59 = vrot.slane %v969_v62, 2  ;;  %v1059_v18 = vmul.f32 %v1053_v63, %v5758_v20 }
 0x101   :  { %v938_v24 = vrot.slane %v924_v21, 1  ;;  %v982_v3 = vsel %vm203_vm4, %v980_v29, %v981_v59  ;;  %v984_v0 = vsel %vm203_vm4, %v981_v59, %v983_v8  ;;  %v1057_v8 = vmul.f32 %v1053_v63, %v5750_v16 }
 0x102   :  { %v1074_v50 = vrot.slane %v1059_v18, 1  ;;  %v1107_v21 = vmul.f32 %v1101_v46, %v5758_v20  ;;  %v1535_v59 = vstv %s5433_s9  ;;  %s5424_s9 = sld [smem:[#allocation11 + $0xd]] }
 0x103   :  { %290 = vrot.lane.b32.xlu1 %v282_v26, %s5683_s21  ;;  %296 = vrot.lane.b32.xlu0 %v287_v27, %s5683_s21  ;;  %v941_v26 = vsel %vm166_vm3, %v938_v24, %v940_v7  ;;  %v937_v27 = vrot.slane %v923_v61, 1  ;;  %v1055_v7 = vmul.f32 %v1053_v63, %v5744_v12  ;;  %v1071_v47 = vrot.slane %v1057_v8, 1 }
 0x104   :  { %v1120_v61 = vrot.slane %v1106_v19, 2  ;;  %v1122_v62 = vrot.slane %v1107_v21, 2  ;;  %v1536_v30 = vmul.f32 %v1535_v59, %v5740_v10  ;;  %v1538_v31 = vmul.f32 %v1535_v59, %v5746_v13 }
 0x105   :  { %v939_v2 = vsel %vm166_vm3, %v937_v27, %v938_v24  ;;  %v1067_v37 = vrot.slane %v1055_v7, 1  ;;  %v1073_v6 = vsel %vm166_vm3, %v1071_v47, %v1072_v48  ;;  %v6075_v7 = vstv %s5434_s10  ;;  %s5425_s10 = sld [smem:[#allocation11 + $0x10]] }
 0x106   :  { %v1123_v27 = vsel %vm203_vm4, %v1120_v61, %v1122_v62  ;;  %9811 = vst [vmem:[#allocation20_spill] sm:$0xff] %v6075_v7  ;;  %v1574_v34 = vmul.f32 %v6075_v7, %v5740_v10  ;;  %v1541_v9 = vmul.f32 %v1535_v59, %v5758_v20 }
 0x107   :  { %294 = vrot.lane.b32.xlu1 %v285_v32, %s5683_s21  ;;  %336 = vrot.lane.b32.xlu0 %v328_v33, %s5683_s21  ;;  %v1054_v32 = vmul.f32 %v1053_v63, %v5740_v10 }
 0x10b   :  { %338 = vrot.lane.b32.xlu1 %v330_v38, %s5683_s21  ;;  %344 = vrot.lane.b32.xlu0 %v335_v39, %s5683_s21  ;;  %v1066_v38 = vrot.slane %v1054_v32, 1  ;;  %v1575_v32 = vmul.f32 %v6075_v7, %v5744_v12 }
 0x10d   :  { %v1068_v4 = vsel %vm166_vm3, %v1066_v38, %v1067_v37  ;;  %v1587_v38 = vrot.slane %v1575_v32, 1 }
 0x10f   :  { %342 = vrot.lane.b32.xlu1 %v333_v44, %s5683_s21  ;;  %422 = vrot.lane.b32.xlu0 %v414_v45, %s5684_s23  ;;  %v1070_v45 = vsel %vm166_vm3, %v1067_v37, %v1069_v42  ;;  %v1540_v37 = vmul.f32 %v1535_v59, %v5752_v17 }
 0x113   :  { %424 = vrot.lane.b32.xlu1 %v416_v49, %s5684_s23  ;;  %430 = vrot.lane.b32.xlu0 %v421_v51, %s5684_s23  ;;  %v1103_v49 = vmul.f32 %v1101_v46, %v5744_v12  ;;  %v1102_v51 = vmul.f32 %v1101_v46, %v5740_v10 }
 0x115   :  { %v1114_v11 = vrot.slane %v1102_v51, 2 }
 0x117   :  { %428 = vrot.lane.b32.xlu1 %v419_v53, %s5684_s23  ;;  %470 = vrot.lane.b32.xlu0 %v462_v56, %s5684_s23  ;;  %v1075_v53 = vsel %vm166_vm3, %v1072_v48, %v1074_v50  ;;  %v1115_v56 = vrot.slane %v1103_v49, 2 }
 0x11b   :  { %472 = vrot.lane.b32.xlu1 %v464_v54, %s5684_s23  ;;  %478 = vrot.lane.b32.xlu0 %v469_v15, %s5684_s23  ;;  %v1116_v54 = vsel %vm203_vm4, %v1114_v11, %v1115_v56  ;;  %v1105_v15 = vmul.f32 %v1101_v46, %v5750_v16  ;;  %v153_v11 = vstv %s5394_s12  ;;  %s5435_s12 = sld [smem:[#allocation8 + $0x19]] }
 0x11c   :  { %v154_v32 = vmul.f32 %v153_v11, %v5740_v10 }
 0x11d   :  { %v1119_v24 = vrot.slane %v1105_v15, 2 }
 0x11f   :  { %476 = vrot.lane.b32.xlu1 %v467_v23, %s5684_s23  ;;  %942 = vrot.lane.b32.xlu0 %v934_v58, %s5683_s21  ;;  %v1118_v58 = vsel %vm203_vm4, %v1115_v56, %v1117_v14  ;;  %v139_v56 = vstv %s138_s11  ;;  %s5427_s11 = sld [smem:[#allocation11 + $0xe]] }
 0x120   :  { %v145_v15 = vmul.f32 %v139_v56, %v5758_v20 }
 0x123   :  { %944 = vrot.lane.b32.xlu1 %v936_v25, %s5683_s21  ;;  %950 = vrot.lane.b32.xlu0 %v941_v26, %s5683_s21  ;;  %v1121_v26 = vsel %vm203_vm4, %v1119_v24, %v1120_v61  ;;  %v159_v24 = vmul.f32 %v153_v11, %v5758_v20 }
 0x127   :  { %948 = vrot.lane.b32.xlu1 %v939_v2, %s5683_s21  ;;  %990 = vrot.lane.b32.xlu0 %v982_v3, %s5683_s21  ;;  %v1537_v3 = vmul.f32 %v1535_v59, %v5744_v12 }
 0x129   :  { %v5997_v33 = vpop.permute.xlu0 %240 }
 0x12b   :  { %992 = vrot.lane.b32.xlu1 %v984_v0, %s5683_s21  ;;  %998 = vrot.lane.b32.xlu0 %v989_v36, %s5683_s21  ;;  %v1539_v36 = vmul.f32 %v1535_v59, %v5750_v16 }
 0x12d   :  { %v6008_v39 = vpop.permute.xlu1 %242  ;;  %v6010_v40 = vpop.permute.xlu0 %244 }
 0x12f   :  { %996 = vrot.lane.b32.xlu1 %v987_v41, %s5683_s21  ;;  %1076 = vrot.lane.b32.xlu0 %v1068_v4, %s5684_s23  ;;  %v6091_v41 = vmul.f32 %v6075_v7, %v5746_v13 }
 0x131   :  { %v6019_v43 = vpop.permute.xlu1 %246  ;;  %v6021_v44 = vpop.permute.xlu0 %248  ;;  %9814 = vst [vmem:[#allocation23_spill] sm:$0xff] %v6091_v41 }
 0x133   :  { %1078 = vrot.lane.b32.xlu1 %v1070_v45, %s5684_s23  ;;  %1080 = vrot.lane.b32.xlu0 %v1069_v42, %s5684_s23  ;;  %v1586_v42 = vrot.slane %v1574_v34, 1  ;;  %v9748_v45 = vrot.slane %v6091_v41, 1  ;;  %v175_v34 = vrot.slane %v159_v24, 1 }
 0x135   :  { %v6028_v52 = vpop.permute.xlu1 %250  ;;  %v6030_v55 = vpop.permute.xlu0 %374  ;;  %v1588_v18 = vsel %vm166_vm3, %v1586_v42, %v1587_v38  ;;  %v1590_v48 = vsel %vm166_vm3, %v1587_v38, %v9748_v45  ;;  %v157_v38 = vmul.f32 %v153_v11, %v5750_v16  ;;  %v6143_v42 = vstv %s5411_s15  ;;  %s5438_s15 = sld [smem:[#allocation8 + $0x1a]] }
 0x136   :  { %v140_v45 = vmul.f32 %v139_v56, %v5740_v10 }
 0x137   :  { %1082 = vrot.lane.b32.xlu1 %v1073_v6, %s5684_s23  ;;  %1084 = vrot.lane.b32.xlu0 %v1075_v53, %s5684_s23 }
 0x139   :  { %v6037_v57 = vpop.permute.xlu1 %376  ;;  %v6039_v60 = vpop.permute.xlu0 %378 }
 0x13b   :  { %1086 = vrot.lane.b32.xlu1 %v1074_v50, %s5684_s23  ;;  %1124 = vrot.lane.b32.xlu0 %v1116_v54, %s5684_s23  ;;  %v142_v54 = vmul.f32 %v139_v56, %v5746_v13 }
 0x13d   :  { %v6047_v22 = vpop.permute.xlu1 %380  ;;  %v6049_v23 = vpop.permute.xlu0 %382 }
 0x13f   :  { %1126 = vrot.lane.b32.xlu1 %v1118_v58, %s5684_s23  ;;  %1128 = vrot.lane.b32.xlu0 %v1117_v14, %s5684_s23  ;;  %v156_v14 = vmul.f32 %v153_v11, %v5746_v13  ;;  %v137_v58 = vstv %s136_s13  ;;  %s5436_s13 = sld [smem:[#allocation8 + $0x14]] }
 0x141   :  { %v6054_v1 = vpop.permute.xlu1 %384  ;;  %v6056_v25 = vpop.permute.xlu0 %894  ;;  %v170_v61 = vrot.slane %v156_v14, 1  ;;  %v6148_v14 = vstv %s5412_s17  ;;  %s5431_s17 = sld [smem:[#allocation8 + $0x15]] }
 0x143   :  { %1130 = vrot.lane.b32.xlu1 %v1121_v26, %s5684_s23  ;;  %1132 = vrot.lane.b32.xlu0 %v1123_v27, %s5684_s23  ;;  %v190_v26 = vstv %s5395_s14  ;;  %v151_v27 = vadd.f32 %v145_v15, %v137_v58  ;;  %s5437_s14 = sld [smem:[#allocation8 + $0x17]] }
 0x144   :  { %v192_v24 = vmul.f32 %v190_v26, %v5744_v12 }
 0x145   :  { %v6062_v28 = vpop.permute.xlu1 %896  ;;  %v6064_v29 = vpop.permute.xlu0 %898 }
 0x146   :  { %9808 = vst [vmem:[#allocation17_spill] sm:$0xff] %v6064_v29 }
 0x147   :  { %1134 = vrot.lane.b32.xlu1 %v1122_v62, %s5684_s23  ;;  %1548 = vrot.lane.b32.xlu0 %v1536_v30, %s5683_s21  ;;  %v148_v62 = vadd.f32 %v142_v54, %v137_v58 }
 0x149   :  { %v6069_v63 = vpop.permute.xlu1 %900  ;;  %v6071_v2 = vpop.permute.xlu0 %902 }
 0x14a   :  { %9809 = vst [vmem:[#allocation18_spill] sm:$0xff] %v6069_v63  ;;  %9810 = vst [vmem:[#allocation19_spill] sm:$0xff] %v6071_v2  ;;  %v146_v2 = vadd.f32 %v140_v45, %v137_v58  ;;  %v111_v63 = vlaneseq }
 0x14b   :  { %1550 = vrot.lane.b32.xlu1 %v1537_v3, %s5683_s21  ;;  %1552 = vrot.lane.b32.xlu0 %v1538_v31, %s5683_s21  ;;  %v193_v3 = vmul.f32 %v190_v26, %v5746_v13  ;;  %v155_v31 = vmul.f32 %v153_v11, %v5744_v12 }
 0x14d   :  { %v6083_v35 = vpop.permute.xlu1 %904  ;;  %v6085_v0 = vpop.permute.xlu0 %1028  ;;  %v207_v41 = vrot.slane %v193_v3, 2  ;;  %v168_v7 = vrot.slane %v155_v31, 1 }
 0x14e   :  { %9812 = vst [vmem:[#allocation21_spill] sm:$0xff] %v6083_v35  ;;  %9813 = vst [vmem:[#allocation22_spill] sm:$0xff] %v6085_v0  ;;  %v195_v0 = vmul.f32 %v190_v26, %v5752_v17 }
 0x14f   :  { %1554 = vrot.lane.b32.xlu1 %v1539_v36, %s5683_s21  ;;  %1556 = vrot.lane.b32.xlu0 %v1540_v37, %s5683_s21  ;;  %v6140_v36 = vmul.f32 %v190_v26, %v5758_v20  ;;  %v185_v37 = vadd.f32 %v170_v61, %v148_v62  ;;  %v191_v62 = vmul.f32 %v190_v26, %v5740_v10 }
 0x151   :  { %v6095_v4 = vpop.permute.xlu1 %1030  ;;  %v6097_v8 = vpop.permute.xlu0 %1032 }
 0x152   :  { %9815 = vst [vmem:[#allocation24_spill] sm:$0xff] %v6095_v4  ;;  %9816 = vst [vmem:[#allocation25_spill] sm:$0xff] %v6097_v8  ;;  %v172_v8 = vrot.slane %v157_v38, 1  ;;  %v194_v4 = vmul.f32 %v190_v26, %v5750_v16  ;;  %v171_v26 = vsel %vm166_vm3, %v168_v7, %v170_v61 }
 0x153   :  { %1558 = vrot.lane.b32.xlu1 %v1541_v9, %s5683_s21  ;;  %1596 = vrot.lane.b32.xlu0 %v1588_v18, %s5683_s21  ;;  %v158_v9 = vmul.f32 %v153_v11, %v5752_v17  ;;  %v188_v18 = vadd.f32 %v175_v34, %v151_v27  ;;  %v167_v11 = vrot.slane %v154_v32, 1  ;;  %v141_v27 = vmul.f32 %v139_v56, %v5744_v12 }
 0x154   :  { %v205_v32 = vrot.slane %v192_v24, 2  ;;  %v210_v24 = vrot.slane %v195_v0, 2 }
 0x155   :  { %v6104_v46 = vpop.permute.xlu1 %1034  ;;  %v6106_v47 = vpop.permute.xlu0 %1036  ;;  %v147_v38 = vadd.f32 %v141_v27, %v137_v58 }
 0x156   :  { %9817 = vst [vmem:[#allocation26_spill] sm:$0xff] %v6104_v46  ;;  %9818 = vst [vmem:[#allocation27_spill] sm:$0xff] %v6106_v47  ;;  %v222_v46 = vadd.f32 %v207_v41, %v185_v37  ;;  %v143_v47 = vmul.f32 %v139_v56, %v5750_v16  ;;  %v169_v37 = vsel %vm166_vm3, %v167_v11, %v168_v7  ;;  %v6184_v7 = vstv %s6157_s18  ;;  %s5430_s18 = sld [smem:[#allocation8 + $0x12]] }
 0x157   :  { %1598 = vrot.lane.b32.xlu1 %v1590_v48, %s5683_s21  ;;  %v6146_v48 = vstv %s5410_s16  ;;  %s5420_s16 = sld [smem:[#allocation11 + $0x9]] }
 0x159   :  { %v6112_v50 = vpop.permute.xlu1 %1038  ;;  %v6114_v49 = vpop.permute.xlu0 %292 }
 0x15a   :  { %9819 = vst [vmem:[#allocation28_spill] sm:$0xff] %v6112_v50  ;;  %v212_v50 = vrot.slane %v6140_v36, 2  ;;  %v260_v36 = vadd.f32 %v6010_v40, %v222_v46 }
 0x15c   :  { %v225_v3 = vadd.f32 %v212_v50, %v188_v18  ;;  %v209_v18 = vrot.slane %v194_v4, 2 }
 0x15d   :  { %v6116_v51 = vpop.permute.xlu1 %298  ;;  %v6118_v5 = vpop.permute.xlu0 %340 }
 0x161   :  { %v6120_v6 = vpop.permute.xlu1 %346  ;;  %v6122_v53 = vpop.permute.xlu0 %426 }
 0x165   :  { %v6127_v19 = vpop.permute.xlu1 %432  ;;  %v6129_v21 = vpop.permute.xlu0 %474 }
 0x169   :  { %v6132_v59 = vpop.permute.xlu1 %480  ;;  %v6134_v30 = vpop.permute.xlu0 %946 }
 0x16a   :  { %9820 = vst [vmem:[#allocation29_spill] sm:$0xff] %v6134_v30  ;;  %v204_v30 = vrot.slane %v191_v62, 2 }
 0x16d   :  { %v6150_v54 = vpop.permute.xlu1 %952  ;;  %v6152_v15 = vpop.permute.xlu0 %994 }
 0x16e   :  { %9821 = vst [vmem:[#allocation30_spill] sm:$0xff] %v6150_v54  ;;  %9822 = vst [vmem:[#allocation31_spill] sm:$0xff] %v6152_v15  ;;  %v173_v54 = vrot.slane %v158_v9, 1  ;;  %v144_v15 = vmul.f32 %v139_v56, %v5752_v17  ;;  %v263_v9 = vadd.f32 %v6028_v52, %v225_v3  ;;  %v149_v56 = vadd.f32 %v143_v47, %v137_v58 }
 0x16f   :  { %v811_v52 = vmul.f32 %v6148_v14, %v5744_v12  ;;  %v183_v47 = vadd.f32 %v169_v37, %v146_v2  ;;  %v6199_v2 = vmul.f32 %v6184_v7, %v5744_v12  ;;  %v6209_v3 = vmul.f32 %v6148_v14, %v5746_v13 }
 0x170   :  { %v174_v29 = vsel %vm166_vm3, %v172_v8, %v173_v54  ;;  %v150_v45 = vadd.f32 %v144_v15, %v137_v58  ;;  %v311_v62 = vadd.f32 %v6116_v51, %v263_v9  ;;  %v176_v11 = vsel %vm166_vm3, %v173_v54, %v175_v34 }
 0x171   :  { %v6165_v35 = vpop.permute.xlu1 %1000  ;;  %v6167_v31 = vpop.permute.xlu0 %288  ;;  %v206_v8 = vsel %vm203_vm4, %v204_v30, %v205_v32  ;;  %v184_v51 = vadd.f32 %v171_v26, %v147_v38  ;;  %v208_v58 = vsel %vm203_vm4, %v205_v32, %v207_v41  ;;  %v186_v61 = vadd.f32 %v174_v29, %v149_v56 }
 0x172   :  { %9823 = vst [vmem:[#allocation32_spill] sm:$0xff] %v6165_v35  ;;  %v308_v35 = vadd.f32 %v6114_v49, %v260_v36  ;;  %v359_v0 = vadd.f32 %v6120_v6, %v311_v62  ;;  %v6189_v49 = vshrl.u32 %v111_v63, 7  ;;  %v810_v34 = vmul.f32 %v6148_v14, %v5740_v10 }
 0x173   :  { %v211_v54 = vsel %vm203_vm4, %v209_v18, %v210_v24  ;;  %v187_v15 = vadd.f32 %v176_v11, %v150_v45  ;;  %v213_v30 = vsel %vm203_vm4, %v210_v24, %v212_v50  ;;  %v823_v41 = vrot.slane %v811_v52, 1 }
 0x174   :  { %v356_v4 = vadd.f32 %v6118_v5, %v308_v35  ;;  %v796_v35 = vmul.f32 %v6143_v42, %v5740_v10  ;;  %v846_v29 = vmul.f32 %v6184_v7, %v5740_v10  ;;  %v397_v32 = vadd.f32 %v6054_v1, %v359_v0 }
 0x175   :  { %v6176_v40 = vpop.permute.xlu1 %290  ;;  %v6178_v46 = vpop.permute.xlu0 %296  ;;  %v114_v36 = vadd.s32 16, %v6189_v49  ;;  %v6213_v37 = vand.u32 127, %v111_v63  ;;  %v220_v38 = vadd.f32 %v206_v8, %v183_v47  ;;  %v221_v9 = vadd.f32 %v208_v58, %v184_v51 }
 0x176   :  { %v394_v27 = vadd.f32 %v6039_v60, %v356_v4  ;;  %v822_v26 = vrot.slane %v810_v34, 1  ;;  %v797_v50 = vmul.f32 %v6143_v42, %v5744_v12  ;;  %v223_v56 = vadd.f32 %v211_v54, %v186_v61 }
 0x177   :  { %v224_v10 = vadd.f32 %v213_v30, %v187_v15  ;;  %v802_v60 = vadd.f32 %v796_v35, %v6146_v48  ;;  %v9752_v18 = vrot.slane %v6199_v2, 2  ;;  %v258_v1 = vadd.f32 %v5997_v33, %v220_v38 }
 0x178   :  { %v824_v62 = vsel %vm166_vm3, %v822_v26, %v823_v41  ;;  %v858_v63 = vrot.slane %v846_v29, 2  ;;  %v442_v11 = vadd.f32 %v6122_v53, %v394_v27  ;;  %v825_v52 = vrot.slane %v6209_v3, 1 }
 0x179   :  { %v6201_v5 = vpop.permute.xlu1 %294  ;;  %v337_v6 = vpop.permute.xlu0 %336  ;;  %v445_v4 = vadd.f32 %v6127_v19, %v397_v32  ;;  %vm122_vm5 = vcmp.lt.s32.totalorder %v114_v36, 17  ;;  %vm126_vm6 = vcmp.ge.s32.totalorder %v6213_v37, 1  ;;  %v6226_v12 = vadd.f32 %v797_v50, %v6146_v48 }
 0x17a   :  { %v798_v47 = vmul.f32 %v6143_v42, %v5746_v13  ;;  %v490_v33 = vadd.f32 %v6129_v21, %v442_v11  ;;  %v306_v8 = vadd.f32 %v6167_v31, %v258_v1  ;;  %v6234_v53 = vadd.f32 %v824_v62, %v802_v60  ;;  %vm129_vm7 = vmand %vm122_vm5, %vm126_vm6 }
 0x17b   :  { %v6239_v19 = vsel %vm203_vm4, %v858_v63, %v9752_v18  ;;  %v6243_v0 = vmul.f32 %v6184_v7, %v5746_v13  ;;  %v493_v51 = vadd.f32 %v6132_v59, %v445_v4  ;;  %v259_v21 = vadd.f32 %v6008_v39, %v221_v9 }
 0x17c   :  { %v262_v31 = vadd.f32 %v6021_v44, %v224_v10  ;;  %vm130_vm8 = vcmp.lt.s32.totalorder %v6213_v37, 17  ;;  %v354_v34 = vadd.f32 %v337_v6, %v306_v8  ;;  %v6257_v13 = vsel %vm166_vm3, %v823_v41, %v825_v52 }
 0x17d   :  { %v339_v24 = vpop.permute.xlu1 %338  ;;  %v345_v45 = vpop.permute.xlu0 %344  ;;  %v799_v59 = vmul.f32 %v6143_v42, %v5750_v16  ;;  %v6263_v39 = vmul.f32 %v6148_v14, %v5750_v16  ;;  %v6267_v44 = vmul.f32 %v6148_v14, %v5752_v17  ;;  %v6272_v54 = vadd.f32 %v798_v47, %v6146_v48  ;;  %vm6286_vm9 = vmand %vm129_vm7, %vm130_vm8 }
 0x17e   :  { %v496_v15 = vmax.f32 %v490_v33, 0.0  ;;  %v307_v35 = vadd.f32 %v6176_v40, %v259_v21  ;;  %v310_v6 = vadd.f32 %v6178_v46, %v262_v31  ;;  %v6278_v30 = vmul.f32 %v6184_v7, %v5750_v16  ;;  %vm6369_vm13 = vmand %vm126_vm6, %vm130_vm8 }
 0x17f   :  { %v6282_v41 = vmul.f32 %v6184_v7, %v5752_v17  ;;  %v9824_v29 = vmov 0  ;;  %v499_v27 = vmax.f32 %v493_v51, 0.0  ;;  %vm117_vm10 = vcmp.ge.s32.totalorder %v6189_v49, 1 }
 0x180   :  { %v9825_v29 = vsel %vm6286_vm9, 4294967295, %v9824_v29  ;;  %v261_v16 = vadd.f32 %v6019_v43, %v223_v56  ;;  %v355_v46 = vadd.f32 %v339_v24, %v307_v35  ;;  %v358_v36 = vadd.f32 %v345_v45, %v310_v6  ;;  %vm127_vm11 = vmand %vm117_vm10, %vm126_vm6 }
 0x181   :  { %v343_v58 = vpop.permute.xlu1 %342  ;;  %v423_v61 = vpop.permute.xlu0 %422  ;;  %9826 = vst [vmem:[#allocation33_spill] sm:$0xff] %v9825_v29  ;;  %v392_v38 = vadd.f32 %v6030_v55, %v354_v34  ;;  %v6296_v9 = vadd.f32 %v799_v59, %v6146_v48  ;;  %v827_v26 = vrot.slane %v6263_v39, 1  ;;  %v828_v50 = vrot.slane %v6267_v44, 1  ;;  %vm6337_vm12 = vmand %vm127_vm11, %vm130_vm8 }
 0x182   :  { %v6302_v10 = vmul.f32 %v6143_v42, %v5752_v17  ;;  %v6305_v49 = vstv %s6230_s0  ;;  %v6309_v43 = vsel %vm6286_vm9, %v496_v15, 0.0  ;;  %v309_v56 = vadd.f32 %v6201_v5, %v261_v16  ;;  %s5432_s0 = sld [smem:[#allocation8 + $0x18]] }
 0x183   :  { %v440_v55 = vadd.f32 %v423_v61, %v392_v38  ;;  %v6317_v45 = vstv %s6245_s1  ;;  %v6321_v17 = vsel %vm6286_vm9, %v499_v27, 0.0  ;;  %v393_v5 = vadd.f32 %v6037_v57, %v355_v46  ;;  %s5429_s1 = sld [smem:[#allocation9 + $0x2]] }
 0x184   :  { %v357_v63 = vadd.f32 %v343_v58, %v309_v56  ;;  %v396_v11 = vadd.f32 %v6049_v23, %v358_v36  ;;  %v6327_v47 = vmul.f32 %v6148_v14, %v5758_v20  ;;  %v6331_v33 = vmul.f32 %v6143_v42, %v5758_v20 }
 0x185   :  { %v425_v32 = vpop.permute.xlu1 %424  ;;  %v431_v40 = vpop.permute.xlu0 %430  ;;  %v520_v8 = vmul.f32 %v6305_v49, %v6309_v43  ;;  %v9827_v51 = vmov 0  ;;  %v6342_v57 = vstv %s6269_s3  ;;  %v552_v23 = vmul.f32 %v6317_v45, %v6309_v43  ;;  %s7060_s3 = sld [smem:[#allocation11 + $0x12]] }
 0x186   :  { %v9828_v51 = vsel %vm6337_vm12, 4294967295, %v9827_v51  ;;  %v441_v14 = vadd.f32 %v425_v32, %v393_v5  ;;  %v444_v58 = vadd.f32 %v431_v40, %v396_v11  ;;  %v523_v20 = vmul.f32 %v6305_v49, %v6321_v17 }
 0x187   :  { %9829 = vst [vmem:[#allocation34_spill] sm:$0xff] %v9828_v51  ;;  %v555_v42 = vmul.f32 %v6317_v45, %v6321_v17  ;;  %v6353_v21 = vstv %s9746_s4  ;;  %v507_v31 = vstv %s6291_s19  ;;  %v395_v15 = vadd.f32 %v6047_v22, %v357_v63  ;;  %s6405_s4 = sld [smem:[#allocation11 + $0x2]]  ;;  %s7066_s19 = sld [smem:[#allocation11 + $0x15]] }
 0x188   :  { %v533_v32 = vrot.slane %v520_v8, 1  ;;  %v9830_v46 = vmov 0  ;;  %v565_v36 = vrot.slane %v552_v23, 2 }
 0x189   :  { %v429_v1 = vpop.permute.xlu1 %428  ;;  %v471_v62 = vpop.permute.xlu0 %470  ;;  %v9831_v46 = vsel %vm6369_vm13, 4294967295, %v9830_v46  ;;  %v570_v63 = vrot.slane %v555_v42, 2 }
 0x18a   :  { %v488_v4 = vadd.f32 %v471_v62, %v440_v55  ;;  %9832 = vst [vmem:[#allocation35_spill] sm:$0xff] %v9831_v46  ;;  %v443_v38 = vadd.f32 %v429_v1, %v395_v15  ;;  %v538_v62 = vrot.slane %v523_v20, 1 }
 0x18c   :  { %v494_v61 = vmax.f32 %v488_v4, 0.0 }
 0x18d   :  { %v473_v34 = vpop.permute.xlu1 %472  ;;  %v479_v59 = vpop.permute.xlu0 %478 }
 0x18e   :  { %v6359_v35 = vsel %vm6337_vm12, %v494_v61, 0.0  ;;  %v489_v6 = vadd.f32 %v473_v34, %v441_v14  ;;  %v492_v27 = vadd.f32 %v479_v59, %v444_v58 }
 0x18f   :  { %v518_v40 = vmul.f32 %v6305_v49, %v6359_v35  ;;  %v550_v16 = vmul.f32 %v6317_v45, %v6359_v35  ;;  %v582_v22 = vmul.f32 %v6342_v57, %v6359_v35  ;;  %v508_v5 = vmul.f32 %v507_v31, %v6359_v35 }
 0x190   :  { %v495_v56 = vmax.f32 %v489_v6, 0.0  ;;  %v498_v55 = vmax.f32 %v492_v27, 0.0 }
 0x191   :  { %v530_v11 = vrot.slane %v518_v40, 1  ;;  %v477_v4 = vpop.permute.xlu1 %476  ;;  %v6376_v8 = vpop.permute.xlu0 %942  ;;  %590 = vrot.lane.b32.xlu0 %v582_v22, %s5683_s21  ;;  %v562_v37 = vrot.slane %v550_v16, 2 }
 0x192   :  { %v6381_v14 = vsel %vm6369_vm13, %v495_v56, 0.0  ;;  %v6385_v1 = vsel %vm6369_vm13, %v498_v55, 0.0  ;;  %v491_v23 = vadd.f32 %v477_v4, %v443_v38  ;;  %v512_v55 = vadd.f32 %v508_v5, %v6353_v21 }
 0x193   :  { %v509_v58 = vmul.f32 %v507_v31, %v6381_v14  ;;  %v519_v61 = vmul.f32 %v6305_v49, %v6381_v14  ;;  %v551_v20 = vmul.f32 %v6317_v45, %v6381_v14  ;;  %v511_v42 = vmul.f32 %v507_v31, %v6385_v1 }
 0x194   :  { %v522_v34 = vmul.f32 %v6305_v49, %v6385_v1  ;;  %v554_v59 = vmul.f32 %v6317_v45, %v6385_v1  ;;  %v497_v15 = vmax.f32 %v491_v23, 0.0  ;;  %v583_v6 = vmul.f32 %v6342_v57, %v6381_v14 }
 0x195   :  { %v513_v27 = vadd.f32 %v509_v58, %v6353_v21  ;;  %v531_v40 = vrot.slane %v519_v61, 1  ;;  %v563_v16 = vrot.slane %v551_v20, 2  ;;  %v515_v22 = vadd.f32 %v511_v42, %v6353_v21  ;;  %v6401_v38 = vpop.permute.xlu1 %944  ;;  %v6403_v56 = vpop.permute.xlu0 %950 }
 0x196   :  { %v536_v4 = vrot.slane %v522_v34, 1  ;;  %v568_v18 = vrot.slane %v554_v59, 2  ;;  %v6410_v23 = vsel %vm6337_vm12, %v497_v15, 0.0  ;;  %592 = vrot.lane.b32.xlu1 %v583_v6, %s5683_s21 }
 0x197   :  { %v532_v58 = vsel %vm166_vm3, %v530_v11, %v531_v40  ;;  %v534_v61 = vsel %vm166_vm3, %v531_v40, %v533_v32  ;;  %v564_v20 = vsel %vm203_vm4, %v562_v37, %v563_v16  ;;  %v566_v42 = vsel %vm203_vm4, %v563_v16, %v565_v36  ;;  %v6427_v40 = vld [vmem:[#allocation2 + $0x28] sm:$0xf] }
 0x198   :  { %v544_v60 = vadd.f32 %v532_v58, %v512_v55  ;;  %v545_v24 = vadd.f32 %v534_v61, %v513_v27  ;;  %v539_v5 = vsel %vm166_vm3, %v536_v4, %v538_v62  ;;  %v571_v34 = vsel %vm203_vm4, %v568_v18, %v570_v63 }
 0x199   :  { %v547_v59 = vadd.f32 %v539_v5, %v515_v22  ;;  %v510_v15 = vmul.f32 %v507_v31, %v6410_v23  ;;  %v521_v6 = vmul.f32 %v6305_v49, %v6410_v23  ;;  %v553_v11 = vmul.f32 %v6317_v45, %v6410_v23  ;;  %v6424_v32 = vpop.permute.xlu1 %948  ;;  %v991_v37 = vpop.permute.xlu0 %990 }
 0x19a   :  { %v830_v36 = vrot.slane %v6327_v47, 1  ;;  %v851_v62 = vmul.f32 %v6427_v40, %v6184_v7  ;;  %v6431_v63 = vadd.f32 %v564_v20, %v544_v60  ;;  %v6433_v31 = vadd.f32 %v566_v42, %v545_v24 }
 0x19b   :  { %v6435_v27 = vadd.f32 %v571_v34, %v547_v59  ;;  %v514_v49 = vadd.f32 %v510_v15, %v6353_v21  ;;  %v535_v45 = vrot.slane %v521_v6, 1  ;;  %v567_v16 = vrot.slane %v553_v11, 2 }
 0x19c   :  { %v829_v47 = vsel %vm166_vm3, %v827_v26, %v828_v50  ;;  %v806_v7 = vadd.f32 %v6302_v10, %v6146_v48  ;;  %v585_v60 = vmul.f32 %v6342_v57, %v6385_v1  ;;  %v584_v24 = vmul.f32 %v6342_v57, %v6410_v23 }
 0x19d   :  { %v807_v21 = vadd.f32 %v6331_v33, %v6146_v48  ;;  %v537_v22 = vsel %vm166_vm3, %v535_v45, %v536_v4  ;;  %v569_v39 = vsel %vm203_vm4, %v567_v16, %v568_v18  ;;  %v6455_v55 = vpop.permute.xlu1 %992  ;;  %v687_v26 = vstv %s6405_s4  ;;  %v6458_v58 = vpop.permute.xlu0 %998  ;;  %s7077_s4 = sld [smem:[#allocation11 + $0x16]] }
 0x19e   :  { %v861_v10 = vrot.slane %v6243_v0, 2  ;;  %v831_v57 = vsel %vm166_vm3, %v828_v50, %v830_v36  ;;  %v866_v61 = vrot.slane %v851_v62, 2  ;;  %v546_v20 = vadd.f32 %v537_v22, %v514_v49  ;;  %596 = vrot.lane.b32.xlu1 %v585_v60, %s5683_s21  ;;  %594 = vrot.lane.b32.xlu0 %v584_v24, %s5683_s21 }
 0x19f   :  { %v874_v48 = vadd.f32 %v6239_v19, %v6234_v53  ;;  %v839_v18 = vadd.f32 %v6257_v13, %v6226_v12  ;;  %v840_v0 = vadd.f32 %v825_v52, %v6272_v54  ;;  %v841_v44 = vadd.f32 %v829_v47, %v6296_v9 }
 0x1a0   :  { %v9833_v50 = vrot.slane %v6282_v41, 2  ;;  %v9834_v33 = vrot.slane %v6278_v30, 2  ;;  %v6481_v42 = vadd.f32 %v569_v39, %v546_v20  ;;  %v689_v53 = vmul.f32 %v687_v26, %v6381_v14 }
 0x1a1   :  { %v688_v12 = vmul.f32 %v687_v26, %v6359_v35  ;;  %v842_v19 = vadd.f32 %v831_v57, %v806_v7  ;;  %v843_v3 = vadd.f32 %v830_v36, %v807_v21  ;;  %v997_v52 = vpop.permute.xlu1 %996  ;;  %v1077_v13 = vpop.permute.xlu0 %1076  ;;  %v912_v54 = vadd.f32 %v6056_v25, %v874_v48  ;;  %v9837_v7 = vld [vmem:[#allocation17_spill] sm:$0xff]  ;;  %v9838_v21 = vld [vmem:[#allocation18_spill] sm:$0xff]  ;;  %v9840_v48 = vld [vmem:[#allocation19_spill] sm:$0xff] }
 0x1a2   :  { %v865_v4 = vsel %vm203_vm4, %v9834_v33, %v9833_v50  ;;  %v9835_v9 = vrot.slane %v6199_v2, 2  ;;  %v9836_v30 = vmov %v9833_v50  ;;  %698 = vrot.lane.b32.xlu1 %v689_v53, %s5684_s23  ;;  %v876_v15 = vadd.f32 %v861_v10, %v840_v0  ;;  %v9839_v57 = vld [vmem:[#allocation29_spill] sm:$0xff]  ;;  %v9842_v53 = vld [vmem:[#allocation31_spill] sm:$0xff] }
 0x1a3   :  { %v867_v34 = vsel %vm203_vm4, %v9836_v30, %v866_v61  ;;  %696 = vrot.lane.b32.xlu0 %v688_v12, %s5684_s23  ;;  %v877_v6 = vadd.f32 %v865_v4, %v841_v44  ;;  %v960_v11 = vadd.f32 %v6376_v8, %v912_v54  ;;  %v691_v36 = vmul.f32 %v687_v26, %v6385_v1  ;;  %v9841_v0 = vld [vmem:[#allocation21_spill] sm:$0xff] }
 0x1a4   :  { %v862_v5 = vsel %vm203_vm4, %v9835_v9, %v861_v10  ;;  %v690_v25 = vmul.f32 %v687_v26, %v6410_v23  ;;  %v6498_v2 = vstv %s6449_s24  ;;  %v878_v62 = vadd.f32 %v867_v34, %v842_v19  ;;  %s7171_s24 = sld [smem:[#allocation11 + $0x19]] }
 0x1a5   :  { %v875_v59 = vadd.f32 %v862_v5, %v839_v18  ;;  %v879_v41 = vadd.f32 %v866_v61, %v843_v3  ;;  %v1079_v49 = vpop.permute.xlu1 %1078  ;;  %v1081_v45 = vpop.permute.xlu0 %1080  ;;  %v6502_v16 = vmul.f32 %v6498_v2, %v6381_v14  ;;  %v714_v47 = vmul.f32 %v6498_v2, %v6359_v35  ;;  %v9843_v3 = vld [vmem:[#allocation22_spill] sm:$0xff] }
 0x1a6   :  { %v914_v60 = vadd.f32 %v9837_v7, %v876_v15  ;;  %v1008_v24 = vadd.f32 %v991_v37, %v960_v11  ;;  %702 = vrot.lane.b32.xlu1 %v691_v36, %s5684_s23  ;;  %v915_v22 = vadd.f32 %v9838_v21, %v877_v6  ;;  %v6515_v10 = vstv %s6474_s25  ;;  %s7236_s25 = sld [smem:[#allocation11 + $0x14]] }
 0x1a7   :  { %v913_v8 = vadd.f32 %v6062_v28, %v875_v59  ;;  %700 = vrot.lane.b32.xlu0 %v690_v25, %s5684_s23  ;;  %v727_v39 = vrot.slane %v6502_v16, 1  ;;  %v726_v26 = vrot.slane %v714_v47, 1  ;;  %v6523_v37 = vmul.f32 %v6515_v10, %v6381_v14  ;;  %v9844_v59 = vld [vmem:[#allocation30_spill] sm:$0xff] }
 0x1a8   :  { %v962_v61 = vadd.f32 %v9839_v57, %v914_v60  ;;  %v754_v20 = vmul.f32 %v6515_v10, %v6359_v35  ;;  %v916_v18 = vadd.f32 %v9840_v48, %v878_v62  ;;  %v917_v44 = vadd.f32 %v9841_v0, %v879_v41  ;;  %v9846_v60 = vld [vmem:[#allocation25_spill] sm:$0xff] }
 0x1a9   :  { %v961_v28 = vadd.f32 %v6401_v38, %v913_v8  ;;  %v1083_v50 = vpop.permute.xlu1 %1082  ;;  %v1085_v33 = vpop.permute.xlu0 %1084  ;;  %v6534_v38 = vsel %vm166_vm3, %v726_v26, %v727_v39  ;;  %v6538_v4 = vmul.f32 %v6515_v10, %v6385_v1  ;;  %v1046_v54 = vadd.f32 %v9843_v3, %v1008_v24  ;;  %v9845_v8 = vld [vmem:[#allocation24_spill] sm:$0xff] }
 0x1aa   :  { %v1010_v12 = vadd.f32 %v9842_v53, %v962_v61  ;;  %v767_v9 = vrot.slane %v6523_v37, 2  ;;  %v964_v5 = vadd.f32 %v6403_v56, %v916_v18  ;;  %v766_v30 = vrot.slane %v754_v20, 2  ;;  %v9847_v24 = vld [vmem:[#allocation32_spill] sm:$0xff] }
 0x1ab   :  { %v1009_v19 = vadd.f32 %v6455_v55, %v961_v28  ;;  %v757_v34 = vmul.f32 %v6515_v10, %v6410_v23  ;;  %v965_v15 = vadd.f32 %v9844_v59, %v917_v44  ;;  %v963_v6 = vadd.f32 %v6424_v32, %v915_v22  ;;  %v9849_v44 = vld [vmem:[#allocation26_spill] sm:$0xff] }
 0x1ac   :  { %v1094_v11 = vadd.f32 %v1077_v13, %v1046_v54  ;;  %v1012_v36 = vadd.f32 %v6458_v58, %v964_v5  ;;  %v6553_v56 = vsel %vm203_vm4, %v766_v30, %v767_v9  ;;  %v772_v62 = vrot.slane %v6538_v4, 2  ;;  %v9850_v54 = vld [vmem:[#allocation28_spill] sm:$0xff] }
 0x1ad   :  { %v1087_v55 = vpop.permute.xlu1 %1086  ;;  %v1125_v25 = vpop.permute.xlu0 %1124  ;;  %v771_v41 = vrot.slane %v757_v34, 2  ;;  %v1011_v47 = vadd.f32 %v997_v52, %v963_v6  ;;  %v1047_v7 = vadd.f32 %v9845_v8, %v1009_v19  ;;  %v1048_v32 = vadd.f32 %v9846_v60, %v1010_v12  ;;  %v9848_v52 = vld [vmem:[#allocation27_spill] sm:$0xff] }
 0x1ae   :  { %v1142_v13 = vadd.f32 %v1125_v25, %v1094_v11  ;;  %v1013_v58 = vadd.f32 %v9847_v24, %v965_v15  ;;  %v6560_v21 = vstv %s6511_s26  ;;  %v6568_v28 = vstv %s6519_s27  ;;  %s5446_s26 = sld [smem:[#allocation11 + $0x17]]  ;;  %s5447_s27 = sld [smem:[#allocation11 + $0x1a]] }
 0x1af   :  { %v6565_v22 = vsel %vm203_vm4, %v771_v41, %v772_v62  ;;  %v1095_v26 = vadd.f32 %v1079_v49, %v1047_v7  ;;  %v1096_v57 = vadd.f32 %v1081_v45, %v1048_v32  ;;  %v1050_v20 = vadd.f32 %v9848_v52, %v1012_v36 }
 0x1b0   :  { %v1148_v61 = vmax.f32 %v1142_v13, 0.0  ;;  %v1203_v48 = vstv %s6529_s28  ;;  %v1049_v53 = vadd.f32 %v9849_v44, %v1011_v47  ;;  %v1051_v5 = vadd.f32 %v9850_v54, %v1013_v58  ;;  %s5452_s28 = sld [smem:[#allocation8 + $0x1c]] }
 0x1b1   :  { %v1127_v18 = vpop.permute.xlu1 %1126  ;;  %v1129_v0 = vpop.permute.xlu0 %1128  ;;  %v1098_v34 = vadd.f32 %v1085_v33, %v1050_v20 }
 0x1b2   :  { %v6575_v12 = vsel %vm6337_vm12, %v1148_v61, 0.0  ;;  %v1143_v19 = vadd.f32 %v1127_v18, %v1095_v26  ;;  %v1144_v3 = vadd.f32 %v1129_v0, %v1096_v57  ;;  %v1097_v30 = vadd.f32 %v1083_v50, %v1049_v53 }
 0x1b3   :  { %v1172_v49 = vmul.f32 %v6560_v21, %v6575_v12  ;;  %v1236_v45 = vmul.f32 %v6568_v28, %v6575_v12  ;;  %v1099_v6 = vadd.f32 %v1087_v55, %v1051_v5  ;;  %v1204_v11 = vmul.f32 %v1203_v48, %v6575_v12 }
 0x1b4   :  { %v1149_v59 = vmax.f32 %v1143_v19, 0.0  ;;  %v1150_v15 = vmax.f32 %v1144_v3, 0.0 }
 0x1b5   :  { %v1131_v36 = vpop.permute.xlu1 %1130  ;;  %v1133_v25 = vpop.permute.xlu0 %1132  ;;  %1244 = vrot.lane.b32.xlu0 %v1236_v45, %s5683_s21  ;;  %v1184_v33 = vrot.slane %v1172_v49, 1  ;;  %v1216_v26 = vrot.slane %v1204_v11, 2 }
 0x1b6   :  { %v6586_v41 = vsel %vm6369_vm13, %v1149_v59, 0.0  ;;  %v6590_v47 = vsel %vm6286_vm9, %v1150_v15, 0.0  ;;  %v1145_v8 = vadd.f32 %v1131_v36, %v1097_v30  ;;  %v1146_v50 = vadd.f32 %v1133_v25, %v1098_v34 }
 0x1b7   :  { %v1173_v55 = vmul.f32 %v6560_v21, %v6586_v41  ;;  %v1205_v7 = vmul.f32 %v1203_v48, %v6586_v41  ;;  %v1174_v60 = vmul.f32 %v6560_v21, %v6590_v47  ;;  %v1206_v32 = vmul.f32 %v1203_v48, %v6590_v47 }
 0x1b8   :  { %v1151_v13 = vmax.f32 %v1145_v8, 0.0  ;;  %v1152_v24 = vmax.f32 %v1146_v50, 0.0  ;;  %v1237_v58 = vmul.f32 %v6568_v28, %v6586_v41 }
 0x1b9   :  { %v1185_v57 = vrot.slane %v1173_v55, 1  ;;  %v1217_v61 = vrot.slane %v1205_v7, 2  ;;  %v1187_v52 = vrot.slane %v1174_v60, 1  ;;  %v1135_v20 = vpop.permute.xlu1 %1134  ;;  %v1219_v18 = vrot.slane %v1206_v32, 2 }
 0x1ba   :  { %v6602_v0 = vsel %vm6337_vm12, %v1151_v13, 0.0  ;;  %v6606_v44 = vsel %vm6369_vm13, %v1152_v24, 0.0  ;;  %v1147_v53 = vadd.f32 %v1135_v20, %v1099_v6  ;;  %1246 = vrot.lane.b32.xlu1 %v1237_v58, %s5683_s21  ;;  %v1341_v32 = vstv %s5426_s2  ;;  %s5453_s2 = sld [smem:[#allocation8 + $0x1f]] }
 0x1bb   :  { %v6610_v19 = vsel %vm166_vm3, %v1184_v33, %v1185_v57  ;;  %v6613_v3 = vsel %vm203_vm4, %v1216_v26, %v1217_v61  ;;  %v6616_v54 = vsel %vm166_vm3, %v1185_v57, %v1187_v52  ;;  %v6619_v5 = vsel %vm203_vm4, %v1217_v61, %v1219_v18 }
 0x1bc   :  { %v1175_v49 = vmul.f32 %v6560_v21, %v6602_v0  ;;  %v1207_v45 = vmul.f32 %v1203_v48, %v6602_v0  ;;  %v1176_v30 = vmul.f32 %v6560_v21, %v6606_v44  ;;  %v1208_v34 = vmul.f32 %v1203_v48, %v6606_v44 }
 0x1bd   :  { %v1153_v59 = vmax.f32 %v1147_v53, 0.0  ;;  %v1239_v11 = vmul.f32 %v6568_v28, %v6606_v44  ;;  %v1238_v55 = vmul.f32 %v6568_v28, %v6602_v0  ;;  %v1342_v57 = vmul.f32 %v1341_v32, %v6575_v12 }
 0x1be   :  { %v1189_v15 = vrot.slane %v1175_v49, 1  ;;  %v1221_v6 = vrot.slane %v1207_v45, 2  ;;  %v1190_v36 = vrot.slane %v1176_v30, 1  ;;  %v1222_v25 = vrot.slane %v1208_v34, 2 }
 0x1bf   :  { %v6631_v8 = vsel %vm6286_vm9, %v1153_v59, 0.0  ;;  %1250 = vrot.lane.b32.xlu1 %v1239_v11, %s5683_s21  ;;  %1248 = vrot.lane.b32.xlu0 %v1238_v55, %s5683_s21  ;;  %v1345_v52 = vmul.f32 %v1341_v32, %v6606_v44  ;;  %v1344_v49 = vmul.f32 %v1341_v32, %v6602_v0  ;;  %v647_v59 = vstv %s5406_s30  ;;  %s5455_s30 = sld [smem:[#allocation8 + $0x1d]] }
 0x1c0   :  { %v1177_v50 = vmul.f32 %v6560_v21, %v6631_v8  ;;  %v1209_v33 = vmul.f32 %v1203_v48, %v6631_v8  ;;  %v6640_v7 = vsel %vm166_vm3, %v1189_v15, %v1190_v36  ;;  %v6643_v60 = vsel %vm203_vm4, %v1221_v6, %v1222_v25 }
 0x1c1   :  { %v1343_v21 = vmul.f32 %v1341_v32, %v6586_v41  ;;  %v607_v48 = vstv %s5405_s29  ;;  %v649_v15 = vmul.f32 %v647_v59, %v6381_v14  ;;  %s5454_s29 = sld [smem:[#allocation8 + $0x22]] }
 0x1c2   :  { %v1192_v13 = vrot.slane %v1177_v50, 1  ;;  %v1224_v24 = vrot.slane %v1209_v33, 2  ;;  %v609_v58 = vmul.f32 %v607_v48, %v6381_v14  ;;  %v610_v61 = vmul.f32 %v607_v48, %v6309_v43 }
 0x1c3   :  { %1352 = vrot.lane.b32.xlu1 %v1343_v21, %s5684_s23  ;;  %1350 = vrot.lane.b32.xlu0 %v1342_v57, %s5684_s23  ;;  %v608_v18 = vmul.f32 %v607_v48, %v6359_v35  ;;  %v612_v53 = vmul.f32 %v607_v48, %v6385_v1  ;;  %v613_v30 = vmul.f32 %v607_v48, %v6321_v17  ;;  %v6670_v50 = vstv %s5428_s6  ;;  %s5456_s6 = sld [smem:[#allocation8 + $0x20]] }
 0x1c4   :  { %v6649_v26 = vsel %vm166_vm3, %v1190_v36, %v1192_v13  ;;  %v6652_v28 = vsel %vm203_vm4, %v1222_v25, %v1224_v24  ;;  %v621_v20 = vrot.slane %v609_v58, 1  ;;  %v623_v45 = vrot.slane %v610_v61, 1 }
 0x1c5   :  { %v611_v34 = vmul.f32 %v607_v48, %v6410_v23  ;;  %v620_v11 = vrot.slane %v608_v18, 1  ;;  %v626_v36 = vrot.slane %v612_v53, 1  ;;  %v650_v25 = vmul.f32 %v647_v59, %v6309_v43 }
 0x1c6   :  { %v624_v6 = vsel %vm166_vm3, %v621_v20, %v623_v45  ;;  %v628_v55 = vrot.slane %v613_v30, 1  ;;  %v6675_v13 = vmul.f32 %v6670_v50, %v6586_v41  ;;  %v661_v14 = vrot.slane %v649_v15, 2 }
 0x1c7   :  { %1356 = vrot.lane.b32.xlu1 %v1345_v52, %s5684_s23  ;;  %1354 = vrot.lane.b32.xlu0 %v1344_v49, %s5684_s23  ;;  %v622_v33 = vsel %vm166_vm3, %v620_v11, %v621_v20  ;;  %v625_v32 = vrot.slane %v611_v34, 1  ;;  %v648_v24 = vmul.f32 %v647_v59, %v6359_v35  ;;  %v652_v21 = vmul.f32 %v647_v59, %v6385_v1 }
 0x1c8   :  { %v629_v48 = vsel %vm166_vm3, %v626_v36, %v628_v55  ;;  %v1421_v58 = vrot.slane %v6675_v13, 2  ;;  %v1408_v57 = vmul.f32 %v6670_v50, %v6575_v12  ;;  %v6686_v61 = vmul.f32 %v6670_v50, %v6606_v44 }
 0x1c9   :  { %v663_v52 = vrot.slane %v650_v25, 2  ;;  %v653_v20 = vmul.f32 %v647_v59, %v6321_v17  ;;  %v1411_v35 = vmul.f32 %v6670_v50, %v6602_v0  ;;  %v627_v18 = vsel %vm166_vm3, %v625_v32, %v626_v36 }
 0x1ca   :  { %v651_v53 = vmul.f32 %v647_v59, %v6410_v23  ;;  %v1420_v49 = vrot.slane %v1408_v57, 2  ;;  %v1426_v45 = vrot.slane %v6686_v61, 2  ;;  %v660_v15 = vrot.slane %v648_v24, 2  ;;  %v6826_v61 = vld [vmem:[#allocation2 + $0x10] sm:$0xf] }
 0x1cb   :  { %632 = vrot.lane.b32.xlu1 %v624_v6, %s5683_s21  ;;  %630 = vrot.lane.b32.xlu0 %v622_v33, %s5683_s21  ;;  %v1425_v30 = vrot.slane %v1411_v35, 2  ;;  %v664_v34 = vsel %vm203_vm4, %v661_v14, %v663_v52  ;;  %v666_v6 = vrot.slane %v652_v21, 2  ;;  %v668_v25 = vrot.slane %v653_v20, 2 }
 0x1cc   :  { %v6700_v11 = vsel %vm203_vm4, %v1420_v49, %v1421_v58  ;;  %v662_v36 = vsel %vm203_vm4, %v660_v15, %v661_v14  ;;  %v665_v33 = vrot.slane %v651_v53, 2  ;;  %v716_v55 = vmul.f32 %v6498_v2, %v6309_v43 }
 0x1cd   :  { %v6706_v59 = vsel %vm203_vm4, %v1425_v30, %v1426_v45  ;;  %v669_v32 = vsel %vm203_vm4, %v666_v6, %v668_v25  ;;  %v718_v24 = vmul.f32 %v6498_v2, %v6385_v1  ;;  %v719_v14 = vmul.f32 %v6498_v2, %v6321_v17 }
 0x1ce   :  { %v667_v21 = vsel %vm203_vm4, %v665_v33, %v666_v6  ;;  %v717_v57 = vmul.f32 %v6498_v2, %v6410_v23  ;;  %v1261_v53 = vstv %s5424_s9  ;;  %s5457_s9 = sld [smem:[#allocation8 + $0x23]] }
 0x1cf   :  { %636 = vrot.lane.b32.xlu1 %v629_v48, %s5683_s21  ;;  %634 = vrot.lane.b32.xlu0 %v627_v18, %s5683_s21  ;;  %v729_v48 = vrot.slane %v716_v55, 1  ;;  %v732_v20 = vrot.slane %v718_v24, 1  ;;  %v734_v1 = vrot.slane %v719_v14, 1  ;;  %v756_v18 = vmul.f32 %v6515_v10, %v6309_v43 }
 0x1d0   :  { %v731_v35 = vrot.slane %v717_v57, 1  ;;  %v1264_v49 = vmul.f32 %v1261_v53, %v6590_v47  ;;  %v1266_v15 = vmul.f32 %v1261_v53, %v6606_v44  ;;  %v1265_v6 = vmul.f32 %v1261_v53, %v6602_v0 }
 0x1d1   :  { %v730_v52 = vsel %vm166_vm3, %v727_v39, %v729_v48  ;;  %v735_v23 = vsel %vm166_vm3, %v732_v20, %v734_v1  ;;  %v769_v16 = vrot.slane %v756_v18, 2  ;;  %v759_v39 = vmul.f32 %v6515_v10, %v6321_v17 }
 0x1d2   :  { %v733_v2 = vsel %vm166_vm3, %v731_v35, %v732_v20  ;;  %v1262_v17 = vmul.f32 %v1261_v53, %v6575_v12  ;;  %v1277_v37 = vrot.slane %v1264_v49, 1  ;;  %v1279_v24 = vrot.slane %v1265_v6, 1 }
 0x1d3   :  { %672 = vrot.lane.b32.xlu1 %v664_v34, %s5683_s21  ;;  %670 = vrot.lane.b32.xlu0 %v662_v36, %s5683_s21  ;;  %v770_v43 = vsel %vm203_vm4, %v767_v9, %v769_v16  ;;  %v774_v30 = vrot.slane %v759_v39, 2  ;;  %v1267_v9 = vmul.f32 %v1261_v53, %v6631_v8  ;;  %v1301_v36 = vstv %s5425_s10  ;;  %s5450_s10 = sld [smem:[#allocation8 + $0x1e]] }
 0x1d4   :  { %v1304_v33 = vmul.f32 %v1301_v36, %v6590_v47  ;;  %v1307_v57 = vmul.f32 %v1301_v36, %v6631_v8  ;;  %v1306_v20 = vmul.f32 %v1301_v36, %v6606_v44  ;;  %v1305_v1 = vmul.f32 %v1301_v36, %v6602_v0 }
 0x1d5   :  { %v775_v10 = vsel %vm203_vm4, %v772_v62, %v774_v30  ;;  %v1282_v25 = vrot.slane %v1267_v9, 1  ;;  %v1303_v62 = vmul.f32 %v1301_v36, %v6586_v41  ;;  %v1367_v18 = vstv %s5427_s11  ;;  %s5449_s11 = sld [smem:[#allocation8 + $0x1b]] }
 0x1d6   :  { %v1317_v14 = vrot.slane %v1304_v33, 2  ;;  %v1369_v16 = vmul.f32 %v1367_v18, %v6586_v41  ;;  %v1370_v39 = vmul.f32 %v1367_v18, %v6590_v47  ;;  %v1368_v49 = vmul.f32 %v1367_v18, %v6575_v12 }
 0x1d7   :  { %676 = vrot.lane.b32.xlu1 %v669_v32, %s5683_s21  ;;  %674 = vrot.lane.b32.xlu0 %v667_v21, %s5683_s21  ;;  %v1280_v32 = vrot.slane %v1266_v15, 1  ;;  %v1315_v48 = vrot.slane %v1303_v62, 2  ;;  %v1372_v9 = vmul.f32 %v1367_v18, %v6606_v44  ;;  %v1371_v15 = vmul.f32 %v1367_v18, %v6602_v0 }
 0x1d9   :  { %v1283_v21 = vsel %vm166_vm3, %v1280_v32, %v1282_v25  ;;  %v1386_v62 = vrot.slane %v1372_v9, 1  ;;  %v1385_v33 = vrot.slane %v1371_v15, 1 }
 0x1db   :  { %738 = vrot.lane.b32.xlu1 %v730_v52, %s5684_s23  ;;  %736 = vrot.lane.b32.xlu0 %v6534_v38, %s5684_s23  ;;  %v1263_v38 = vmul.f32 %v1261_v53, %v6586_v41  ;;  %v1281_v52 = vsel %vm166_vm3, %v1279_v24, %v1280_v32  ;;  %v1413_v24 = vmul.f32 %v6670_v50, %v6631_v8 }
 0x1dd   :  { %v1275_v34 = vrot.slane %v1263_v38, 1  ;;  %v1319_v38 = vrot.slane %v1305_v1, 2 }
 0x1df   :  { %742 = vrot.lane.b32.xlu1 %v735_v23, %s5684_s23  ;;  %740 = vrot.lane.b32.xlu0 %v733_v2, %s5684_s23  ;;  %v1278_v4 = vsel %vm166_vm3, %v1275_v34, %v1277_v37  ;;  %v1318_v23 = vsel %vm203_vm4, %v1315_v48, %v1317_v14  ;;  %v1322_v2 = vrot.slane %v1307_v57, 2  ;;  %v6799_v14 = vld [vmem:[#allocation2 + $0x18] sm:$0xff]  ;;  %v9851_v57 = vld [vmem:[#allocation20_spill] sm:$0xff] }
 0x1e3   :  { %778 = vrot.lane.b32.xlu1 %v770_v43, %s5684_s23  ;;  %776 = vrot.lane.b32.xlu0 %v6553_v56, %s5684_s23  ;;  %v1274_v56 = vrot.slane %v1262_v17, 1  ;;  %v1320_v43 = vrot.slane %v1306_v20, 2  ;;  %v1381_v17 = vrot.slane %v1369_v16, 1  ;;  %v6808_v20 = vpop.permute.xlu0 %1548  ;;  %v6823_v16 = vld [vmem:[#allocation2 + $0x8] sm:$0xff] }
 0x1e5   :  { %v1276_v55 = vsel %vm166_vm3, %v1274_v56, %v1275_v34  ;;  %v1323_v30 = vsel %vm203_vm4, %v1320_v43, %v1322_v2  ;;  %v1373_v34 = vmul.f32 %v1367_v18, %v6631_v8  ;;  %v1321_v37 = vsel %vm203_vm4, %v1319_v38, %v1320_v43  ;;  %v6803_v8 = vld [vmem:[#allocation2 + $0x20] sm:$0xff] }
 0x1e6   :  { %v1380_v56 = vrot.slane %v1368_v49, 1  ;;  %v1579_v18 = vmul.f32 %v6427_v40, %v9851_v57  ;;  %v6837_v49 = vld [vmem:[#allocation2] sm:$0xff] }
 0x1e7   :  { %782 = vrot.lane.b32.xlu1 %v775_v10, %s5684_s23  ;;  %780 = vrot.lane.b32.xlu0 %v6565_v22, %s5684_s23  ;;  %v1302_v22 = vmul.f32 %v1301_v36, %v6575_v12  ;;  %v1383_v10 = vrot.slane %v1370_v39, 1  ;;  %v1388_v36 = vrot.slane %v1373_v34, 1  ;;  %v6829_v39 = vpop.permute.xlu0 %1552 }
 0x1e8   :  { %v1382_v25 = vsel %vm166_vm3, %v1380_v56, %v1381_v17  ;;  %v1594_v43 = vrot.slane %v1579_v18, 1 }
 0x1e9   :  { %v1314_v35 = vrot.slane %v1302_v22, 2  ;;  %v1384_v6 = vsel %vm166_vm3, %v1381_v17, %v1383_v10  ;;  %v6791_v22 = vpop.permute.xlu1 %1550 }
 0x1eb   :  { %1286 = vrot.lane.b32.xlu1 %v1278_v4, %s5683_s21  ;;  %1284 = vrot.lane.b32.xlu0 %v1276_v55, %s5683_s21  ;;  %v1316_v53 = vsel %vm203_vm4, %v1314_v35, %v1315_v48  ;;  %v1410_v4 = vmul.f32 %v6670_v50, %v6590_v47  ;;  %v1389_v55 = vsel %vm166_vm3, %v1386_v62, %v1388_v36  ;;  %v1428_v48 = vrot.slane %v1413_v24, 2  ;;  %v6844_v15 = vpop.permute.xlu0 %1556 }
 0x1ec   :  { %v1387_v47 = vsel %vm166_vm3, %v1385_v33, %v1386_v62  ;;  %v1578_v50 = vmul.f32 %v6803_v8, %v9851_v57 }
 0x1ed   :  { %v1423_v32 = vrot.slane %v1410_v4, 2  ;;  %v6810_v1 = vpop.permute.xlu1 %1554  ;;  %v1429_v13 = vsel %vm203_vm4, %v1426_v45, %v1428_v48 }
 0x1ee   :  { %v1592_v35 = vrot.slane %v1578_v50, 1 }
 0x1ef   :  { %1290 = vrot.lane.b32.xlu1 %v1283_v21, %s5683_s21  ;;  %1288 = vrot.lane.b32.xlu0 %v1281_v52, %s5683_s21  ;;  %v1424_v21 = vsel %vm203_vm4, %v1421_v58, %v1423_v32  ;;  %v1577_v52 = vmul.f32 %v6799_v14, %v9851_v57  ;;  %v6857_v24 = vpop.permute.xlu0 %1596 }
 0x1f0   :  { %v1595_v9 = vsel %vm166_vm3, %v1592_v35, %v1594_v43 }
 0x1f1   :  { %v1591_v58 = vrot.slane %v1577_v52, 1  ;;  %v1669_v52 = vstv %s5436_s13  ;;  %s5448_s13 = sld [smem:[#allocation9 + $0x3]] }
 0x1f2   :  { %v1671_v50 = vmul.f32 %v6823_v16, %v1669_v52  ;;  %v1673_v18 = vmul.f32 %v6799_v14, %v1669_v52 }
 0x1f3   :  { %1326 = vrot.lane.b32.xlu1 %v1318_v23, %s5683_s21  ;;  %1324 = vrot.lane.b32.xlu0 %v1316_v53, %s5683_s21  ;;  %v1621_v23 = vstv %s5435_s12  ;;  %v1593_v2 = vsel %vm166_vm3, %v1591_v58, %v1592_v35  ;;  %v6831_v53 = vpop.permute.xlu1 %1558  ;;  %v1670_v58 = vmul.f32 %v6837_v49, %v1669_v52  ;;  %s5451_s12 = sld [smem:[#allocation8 + $0x21]] }
 0x1f4   :  { %v1624_v45 = vmul.f32 %v6826_v61, %v1621_v23  ;;  %v1625_v34 = vmul.f32 %v6799_v14, %v1621_v23  ;;  %v1627_v33 = vmul.f32 %v6427_v40, %v1621_v23 }
 0x1f6   :  { %v1637_v10 = vrot.slane %v1624_v45, 2  ;;  %v1639_v4 = vrot.slane %v1625_v34, 2  ;;  %v1672_v45 = vmul.f32 %v6826_v61, %v1669_v52 }
 0x1f7   :  { %1330 = vrot.lane.b32.xlu1 %v1323_v30, %s5683_s21  ;;  %1328 = vrot.lane.b32.xlu0 %v1321_v37, %s5683_s21  ;;  %v1622_v30 = vmul.f32 %v6837_v49, %v1621_v23  ;;  %v1626_v37 = vmul.f32 %v6803_v8, %v1621_v23 }
 0x1f9   :  { %v1634_v36 = vrot.slane %v1622_v30, 2 }
 0x1fb   :  { %1392 = vrot.lane.b32.xlu1 %v1384_v6, %s5684_s23  ;;  %1390 = vrot.lane.b32.xlu0 %v1382_v25, %s5684_s23  ;;  %v6846_v6 = vpop.permute.xlu1 %1598  ;;  %v1640_v25 = vrot.slane %v1626_v37, 2 }
 0x1fd   :  { %v1641_v32 = vsel %vm203_vm4, %v1639_v4, %v1640_v25 }
 0x1ff   :  { %1396 = vrot.lane.b32.xlu1 %v1389_v55, %s5684_s23  ;;  %1394 = vrot.lane.b32.xlu0 %v1387_v47, %s5684_s23  ;;  %v1642_v47 = vrot.slane %v1627_v33, 2 }
 0x201   :  { %v1643_v57 = vsel %vm203_vm4, %v1640_v25, %v1642_v47 }
 0x203   :  { %1432 = vrot.lane.b32.xlu1 %v1424_v21, %s5684_s23  ;;  %1430 = vrot.lane.b32.xlu0 %v6700_v11, %s5684_s23  ;;  %v1623_v11 = vmul.f32 %v6823_v16, %v1621_v23  ;;  %v6861_v21 = vpop.permute.xlu0 %590  ;;  %v1707_v23 = vstv %s5437_s14  ;;  %s5459_s14 = sld [smem:[#allocation11 + $0x1e]] }
 0x204   :  { %v1712_v34 = vmul.f32 %v6803_v8, %v1707_v23 }
 0x205   :  { %v1635_v17 = vrot.slane %v1623_v11, 2  ;;  %v1710_v11 = vmul.f32 %v6826_v61, %v1707_v23 }
 0x206   :  { %v1726_v25 = vrot.slane %v1712_v34, 1 }
 0x207   :  { %1436 = vrot.lane.b32.xlu1 %v1429_v13, %s5684_s23  ;;  %1434 = vrot.lane.b32.xlu0 %v6706_v59, %s5684_s23  ;;  %v9852_v59 = vld [vmem:[#allocation23_spill] sm:$0xff]  ;;  %v1638_v56 = vsel %vm203_vm4, %v1635_v17, %v1637_v10  ;;  %v1636_v62 = vsel %vm203_vm4, %v1634_v36, %v1635_v17  ;;  %v1723_v17 = vrot.slane %v1710_v11, 1 }
 0x208   :  { %v9853_v38 = vrot.slane %v9852_v59, 1  ;;  %v6853_v55 = vpop.permute.xlu1 %592  ;;  %v1675_v59 = vmul.f32 %v6427_v40, %v1669_v52 }
 0x20b   :  { %1602 = vrot.lane.b32.xlu1 %v1593_v2, %s5683_s21  ;;  %1600 = vrot.lane.b32.xlu0 %v9853_v38, %s5683_s21  ;;  %v1709_v2 = vmul.f32 %v6823_v16, %v1707_v23  ;;  %v1708_v38 = vmul.f32 %v6837_v49, %v1707_v23 }
 0x20d   :  { %v1721_v30 = vrot.slane %v1709_v2, 1  ;;  %v1720_v36 = vrot.slane %v1708_v38, 1 }
 0x20f   :  { %1606 = vrot.lane.b32.xlu1 %v1594_v43, %s5683_s21  ;;  %1604 = vrot.lane.b32.xlu0 %v1595_v9, %s5683_s21  ;;  %v1674_v9 = vmul.f32 %v6803_v8, %v1669_v52 }
 0x210   :  { %v6863_v48 = vpop.permute.xlu1 %596  ;;  %v6869_v13 = vpop.permute.xlu0 %594 }
 0x213   :  { %1646 = vrot.lane.b32.xlu1 %v1638_v56, %s5683_s21  ;;  %1644 = vrot.lane.b32.xlu0 %v1636_v62, %s5683_s21  ;;  %v1724_v56 = vsel %vm166_vm3, %v1721_v30, %v1723_v17 }
 0x214   :  { %v6873_v35 = vpop.permute.xlu1 %698 }
 0x215   :  { %v6881_v43 = vpop.permute.xlu0 %696 }
 0x217   :  { %1650 = vrot.lane.b32.xlu1 %v1641_v32, %s5683_s21  ;;  %1648 = vrot.lane.b32.xlu0 %v1637_v10, %s5683_s21  ;;  %v1711_v10 = vmul.f32 %v6799_v14, %v1707_v23  ;;  %v1722_v32 = vsel %vm166_vm3, %v1720_v36, %v1721_v30 }
 0x218   :  { %v6888_v37 = vpop.permute.xlu1 %702 }
 0x219   :  { %v1725_v4 = vrot.slane %v1711_v10, 1  ;;  %v6894_v62 = vpop.permute.xlu0 %700 }
 0x21b   :  { %1654 = vrot.lane.b32.xlu1 %v1642_v47, %s5683_s21  ;;  %1652 = vrot.lane.b32.xlu0 %v1643_v57, %s5683_s21  ;;  %v1713_v47 = vmul.f32 %v6427_v40, %v1707_v23  ;;  %v1755_v57 = vstv %s5438_s15  ;;  %s5460_s15 = sld [smem:[#allocation11 + $0x21]] }
 0x21c   :  { %v1757_v52 = vmul.f32 %v6823_v16, %v1755_v57  ;;  %v1759_v38 = vmul.f32 %v6799_v14, %v1755_v57  ;;  %v1760_v30 = vmul.f32 %v6803_v8, %v1755_v57 }
 0x21d   :  { %v1728_v2 = vrot.slane %v1713_v47, 1 }
 0x21e   :  { %v1773_v36 = vrot.slane %v1759_v38, 2 }
 0x21f   :  { %1684 = vrot.lane.b32.xlu1 %v1671_v50, %s5684_s23  ;;  %1682 = vrot.lane.b32.xlu0 %v1670_v58, %s5684_s23  ;;  %v1727_v50 = vsel %vm166_vm3, %v1725_v4, %v1726_v25  ;;  %v1758_v58 = vmul.f32 %v6826_v61, %v1755_v57  ;;  %v1729_v34 = vsel %vm166_vm3, %v1726_v25, %v1728_v2  ;;  %v1774_v4 = vrot.slane %v1760_v30, 2 }
 0x221   :  { %v1771_v23 = vrot.slane %v1758_v58, 2 }
 0x223   :  { %1688 = vrot.lane.b32.xlu1 %v1673_v18, %s5684_s23  ;;  %1686 = vrot.lane.b32.xlu0 %v1672_v45, %s5684_s23  ;;  %v1769_v45 = vrot.slane %v1757_v52, 2  ;;  %v1761_v52 = vmul.f32 %v6427_v40, %v1755_v57 }
 0x227   :  { %1692 = vrot.lane.b32.xlu1 %v1675_v59, %s5684_s23  ;;  %1690 = vrot.lane.b32.xlu0 %v1674_v9, %s5684_s23  ;;  %v6905_v18 = vpop.permute.xlu0 %1244  ;;  %v1756_v59 = vmul.f32 %v6837_v49, %v1755_v57 }
 0x22b   :  { %1732 = vrot.lane.b32.xlu1 %v1724_v56, %s5684_s23  ;;  %1730 = vrot.lane.b32.xlu0 %v1722_v32, %s5684_s23  ;;  %v1768_v56 = vrot.slane %v1756_v59, 2 }
 0x22c   :  { %v6897_v33 = vpop.permute.xlu1 %1246 }
 0x22d   :  { %v1770_v47 = vsel %vm203_vm4, %v1768_v56, %v1769_v45  ;;  %v603_v56 = vadd.f32 %v6853_v55, %v6433_v31 }
 0x22f   :  { %1736 = vrot.lane.b32.xlu1 %v1727_v50, %s5684_s23  ;;  %1734 = vrot.lane.b32.xlu0 %v1723_v17, %s5684_s23  ;;  %v1772_v17 = vsel %vm203_vm4, %v1769_v45, %v1771_v23  ;;  %v1775_v50 = vsel %vm203_vm4, %v1773_v36, %v1774_v4 }
 0x231   :  { %v6909_v11 = vpop.permute.xlu1 %1250  ;;  %v6914_v10 = vpop.permute.xlu0 %1248 }
 0x233   :  { %1740 = vrot.lane.b32.xlu1 %v1728_v2, %s5684_s23  ;;  %1738 = vrot.lane.b32.xlu0 %v1729_v34, %s5684_s23  ;;  %v1776_v2 = vrot.slane %v1761_v52, 2 }
 0x235   :  { %v6919_v9 = vpop.permute.xlu1 %1352  ;;  %v6922_v32 = vpop.permute.xlu0 %1350  ;;  %v1777_v45 = vsel %vm203_vm4, %v1774_v4, %v1776_v2  ;;  %v605_v4 = vadd.f32 %v6863_v48, %v6435_v27 }
 0x236   :  { %9854 = vst [vmem:[#allocation17_spill] sm:$0xff] %v6919_v9  ;;  %9855 = vst [vmem:[#allocation18_spill] sm:$0xff] %v6922_v32 }
 0x237   :  { %1780 = vrot.lane.b32.xlu1 %v1772_v17, %s5684_s23  ;;  %1778 = vrot.lane.b32.xlu0 %v1770_v47, %s5684_s23 }
 0x239   :  { %v6928_v25 = vpop.permute.xlu1 %1356  ;;  %v6931_v58 = vpop.permute.xlu0 %1354 }
 0x23a   :  { %9856 = vst [vmem:[#allocation29_spill] sm:$0xff] %v6928_v25  ;;  %9857 = vst [vmem:[#allocation19_spill] sm:$0xff] %v6931_v58  ;;  %v604_v25 = vadd.f32 %v6869_v13, %v6481_v42 }
 0x23b   :  { %1784 = vrot.lane.b32.xlu1 %v1775_v50, %s5684_s23  ;;  %1782 = vrot.lane.b32.xlu0 %v1771_v23, %s5684_s23  ;;  %v602_v23 = vadd.f32 %v6861_v21, %v6431_v63  ;;  %v1161_v63 = vstv %s5420_s16  ;;  %s7545_s16 = sld [smem:[#allocation11 + $0x1c]] }
 0x23c   :  { %v1163_v48 = vmul.f32 %v1161_v63, %v6586_v41  ;;  %v1162_v13 = vmul.f32 %v1161_v63, %v6575_v12 }
 0x23d   :  { %v633_v59 = vpop.permute.xlu1 %632  ;;  %v631_v38 = vpop.permute.xlu0 %630 }
 0x23e   :  { %v643_v47 = vadd.f32 %v633_v59, %v603_v56  ;;  %v642_v50 = vadd.f32 %v631_v38, %v602_v23 }
 0x23f   :  { %1788 = vrot.lane.b32.xlu1 %v1776_v2, %s5684_s23  ;;  %1786 = vrot.lane.b32.xlu0 %v1777_v45, %s5684_s23 }
 0x241   :  { %v637_v40 = vpop.permute.xlu1 %636  ;;  %v635_v57 = vpop.permute.xlu0 %634 }
 0x242   :  { %v645_v29 = vadd.f32 %v637_v40, %v605_v4  ;;  %v644_v31 = vadd.f32 %v635_v57, %v604_v25 }
 0x245   :  { %v673_v30 = vpop.permute.xlu1 %672  ;;  %v671_v34 = vpop.permute.xlu0 %670 }
 0x246   :  { %v683_v2 = vadd.f32 %v673_v30, %v643_v47  ;;  %v682_v51 = vadd.f32 %v671_v34, %v642_v50  ;;  %v1165_v34 = vmul.f32 %v1161_v63, %v6606_v44 }
 0x248   :  { %v709_v55 = vadd.f32 %v6873_v35, %v683_v2  ;;  %v708_v21 = vadd.f32 %v6881_v43, %v682_v51 }
 0x249   :  { %v677_v17 = vpop.permute.xlu1 %676  ;;  %v675_v36 = vpop.permute.xlu0 %674 }
 0x24a   :  { %v685_v58 = vadd.f32 %v677_v17, %v645_v29  ;;  %v684_v59 = vadd.f32 %v675_v36, %v644_v31 }
 0x24c   :  { %v711_v38 = vadd.f32 %v6888_v37, %v685_v58  ;;  %v710_v25 = vadd.f32 %v6894_v62, %v684_v59  ;;  %v1164_v37 = vmul.f32 %v1161_v63, %v6602_v0 }
 0x24d   :  { %v739_v52 = vpop.permute.xlu1 %738  ;;  %v737_v45 = vpop.permute.xlu0 %736 }
 0x24e   :  { %v749_v56 = vadd.f32 %v739_v52, %v709_v55  ;;  %v748_v30 = vadd.f32 %v737_v45, %v708_v21 }
 0x251   :  { %v743_v46 = vpop.permute.xlu1 %742  ;;  %v741_v32 = vpop.permute.xlu0 %740 }
 0x252   :  { %v751_v35 = vadd.f32 %v743_v46, %v711_v38  ;;  %v750_v43 = vadd.f32 %v741_v32, %v710_v25  ;;  %v1463_v25 = vstv %s5431_s17  ;;  %s7550_s17 = sld [smem:[#allocation11 + $0x1f]] }
 0x255   :  { %v779_v27 = vpop.permute.xlu1 %778  ;;  %v777_v40 = vpop.permute.xlu0 %776 }
 0x256   :  { %v789_v42 = vadd.f32 %v779_v27, %v749_v56  ;;  %v788_v57 = vadd.f32 %v777_v40, %v748_v30 }
 0x258   :  { %v1167_v29 = vadd.f32 %v1163_v48, %v789_v42  ;;  %v1166_v36 = vadd.f32 %v1162_v13, %v788_v57 }
 0x259   :  { %v783_v51 = vpop.permute.xlu1 %782  ;;  %v781_v58 = vpop.permute.xlu0 %780 }
 0x25a   :  { %v1199_v17 = vadd.f32 %v6616_v54, %v1167_v29  ;;  %v791_v41 = vadd.f32 %v783_v51, %v751_v35  ;;  %v1198_v12 = vadd.f32 %v6610_v19, %v1166_v36  ;;  %v790_v46 = vadd.f32 %v781_v58, %v750_v43 }
 0x25b   :  { %v1465_v35 = vmul.f32 %v6823_v16, %v1463_v25  ;;  %v1466_v29 = vmul.f32 %v6826_v61, %v1463_v25  ;;  %v1464_v43 = vmul.f32 %v6837_v49, %v1463_v25 }
 0x25c   :  { %v6956_v23 = vadd.f32 %v6619_v5, %v1199_v17  ;;  %v1169_v62 = vadd.f32 %v1165_v34, %v791_v41  ;;  %v6962_v44 = vadd.f32 %v6613_v3, %v1198_v12  ;;  %v1168_v54 = vadd.f32 %v1164_v37, %v790_v46 }
 0x25d   :  { %v6959_v47 = vpop.permute.xlu1 %1286  ;;  %v6965_v52 = vpop.permute.xlu0 %1284  ;;  %v1449_v34 = vstv %s5430_s18  ;;  %v1477_v36 = vrot.slane %v1465_v35, 1  ;;  %v1479_v41 = vrot.slane %v1466_v29, 1  ;;  %v1467_v37 = vmul.f32 %v6799_v14, %v1463_v25  ;;  %s7566_s18 = sld [smem:[#allocation11 + $0x22]] }
 0x25e   :  { %v1201_v32 = vadd.f32 %v6649_v26, %v1169_v62  ;;  %v1200_v5 = vadd.f32 %v6640_v7, %v1168_v54  ;;  %v1451_v17 = vmul.f32 %v6823_v16, %v1449_v34  ;;  %v1499_v12 = vstv %s5432_s0  ;;  %s7581_s0 = sld [smem:[#allocation11 + $0x1d]] }
 0x25f   :  { %v1468_v62 = vmul.f32 %v6803_v8, %v1463_v25  ;;  %v1447_v46 = vstv %s5429_s1  ;;  %v1501_v54 = vmul.f32 %v6823_v16, %v1499_v12  ;;  %v1476_v35 = vrot.slane %v1464_v43, 1  ;;  %s7603_s1 = sld [smem:[#allocation11 + $0x20]] }
 0x260   :  { %v6968_v0 = vadd.f32 %v6652_v28, %v1201_v32  ;;  %v6974_v19 = vadd.f32 %v6643_v60, %v1200_v5  ;;  %v1450_v32 = vmul.f32 %v6837_v49, %v1449_v34  ;;  %v7032_v5 = vld [vmem:[#allocation2 + $0x28] sm:$0xf]  ;;  %v1457_v29 = vadd.f32 %v1451_v17, %v1447_v46 }
 0x261   :  { %v6971_v4 = vpop.permute.xlu1 %1290  ;;  %v6976_v50 = vpop.permute.xlu0 %1288  ;;  %9874 = vst [vmem:[#allocation40_spill] sm:$0xff] %v7032_v5  ;;  %v1455_v43 = vmul.f32 %v7032_v5, %v1449_v34 }
 0x262   :  { %9858 = vst [vmem:[#allocation21_spill] sm:$0xff] %v6971_v4  ;;  %v1456_v17 = vadd.f32 %v1450_v32, %v1447_v46 }
 0x263   :  { %v1461_v32 = vadd.f32 %v1455_v43, %v1447_v46 }
 0x265   :  { %v6978_v2 = vpop.permute.xlu1 %1326  ;;  %v6980_v3 = vpop.permute.xlu0 %1324 }
 0x269   :  { %v6982_v26 = vpop.permute.xlu1 %1330  ;;  %v6984_v45 = vpop.permute.xlu0 %1328 }
 0x26a   :  { %9859 = vst [vmem:[#allocation31_spill] sm:$0xff] %v6982_v26  ;;  %v1478_v26 = vsel %vm166_vm3, %v1476_v35, %v1477_v36 }
 0x26d   :  { %v6986_v31 = vpop.permute.xlu1 %1392  ;;  %v6988_v28 = vpop.permute.xlu0 %1390 }
 0x26e   :  { %9860 = vst [vmem:[#allocation22_spill] sm:$0xff] %v6986_v31  ;;  %9861 = vst [vmem:[#allocation30_spill] sm:$0xff] %v6988_v28  ;;  %v1454_v28 = vmul.f32 %v6803_v8, %v1449_v34 }
 0x271   :  { %v6990_v7 = vpop.permute.xlu1 %1396  ;;  %v6992_v55 = vpop.permute.xlu0 %1394 }
 0x272   :  { %9862 = vst [vmem:[#allocation24_spill] sm:$0xff] %v6990_v7  ;;  %9863 = vst [vmem:[#allocation25_spill] sm:$0xff] %v6992_v55  ;;  %v1480_v55 = vsel %vm166_vm3, %v1477_v36, %v1479_v41  ;;  %v1492_v36 = vadd.f32 %v1478_v26, %v1456_v17  ;;  %v1257_v26 = vadd.f32 %v6897_v33, %v6956_v23 }
 0x275   :  { %v6994_v60 = vpop.permute.xlu1 %1432  ;;  %v6996_v63 = vpop.permute.xlu0 %1430 }
 0x276   :  { %9864 = vst [vmem:[#allocation32_spill] sm:$0xff] %v6994_v60  ;;  %9865 = vst [vmem:[#allocation27_spill] sm:$0xff] %v6996_v63  ;;  %v1452_v63 = vmul.f32 %v6826_v61, %v1449_v34  ;;  %v1481_v60 = vrot.slane %v1467_v37, 1  ;;  %v1500_v37 = vmul.f32 %v6837_v49, %v1499_v12 }
 0x279   :  { %v6998_v21 = vpop.permute.xlu1 %1436  ;;  %v7000_v59 = vpop.permute.xlu0 %1434 }
 0x27a   :  { %9866 = vst [vmem:[#allocation26_spill] sm:$0xff] %v6998_v21  ;;  %9867 = vst [vmem:[#allocation28_spill] sm:$0xff] %v7000_v59  ;;  %v1469_v21 = vmul.f32 %v7032_v5, %v1463_v25  ;;  %v1502_v59 = vmul.f32 %v6826_v61, %v1499_v12  ;;  %v1504_v25 = vmul.f32 %v6803_v8, %v1499_v12 }
 0x27b   :  { %v1505_v61 = vmul.f32 %v7032_v5, %v1499_v12 }
 0x27c   :  { %v1484_v31 = vrot.slane %v1469_v21, 1  ;;  %v1460_v21 = vadd.f32 %v1454_v28, %v1447_v46 }
 0x27d   :  { %v7002_v56 = vpop.permute.xlu1 %1602  ;;  %v7004_v27 = vpop.permute.xlu0 %1600 }
 0x281   :  { %v7006_v48 = vpop.permute.xlu1 %1606  ;;  %v7008_v38 = vpop.permute.xlu0 %1604 }
 0x282   :  { %9868 = vst [vmem:[#allocation20_spill] sm:$0xff] %v7006_v48  ;;  %9869 = vst [vmem:[#allocation23_spill] sm:$0xff] %v7008_v38  ;;  %v1482_v38 = vrot.slane %v1468_v62, 1  ;;  %v1458_v62 = vadd.f32 %v1452_v63, %v1447_v46 }
 0x284   :  { %v1483_v8 = vsel %vm166_vm3, %v1481_v60, %v1482_v38  ;;  %v1485_v5 = vsel %vm166_vm3, %v1482_v38, %v1484_v31  ;;  %v1497_v60 = vadd.f32 %v1484_v31, %v1461_v32  ;;  %v1256_v31 = vadd.f32 %v6905_v18, %v6962_v44 }
 0x285   :  { %v7010_v30 = vpop.permute.xlu1 %1646  ;;  %v7012_v42 = vpop.permute.xlu0 %1644  ;;  %v1496_v35 = vadd.f32 %v1485_v5, %v1460_v21  ;;  %v1297_v18 = vadd.f32 %v6959_v47, %v1257_v26 }
 0x287   :  { %v1337_v47 = vadd.f32 %v6978_v2, %v1297_v18 }
 0x289   :  { %v7014_v13 = vpop.permute.xlu1 %1650  ;;  %v7016_v40 = vpop.permute.xlu0 %1648 }
 0x28a   :  { %9870 = vst [vmem:[#allocation36_spill] sm:$0xff] %v7014_v13  ;;  %9871 = vst [vmem:[#allocation37_spill] sm:$0xff] %v7016_v40  ;;  %v1515_v40 = vrot.slane %v1502_v59, 2 }
 0x28d   :  { %v7020_v57 = vpop.permute.xlu1 %1654  ;;  %v7022_v51 = vpop.permute.xlu0 %1652 }
 0x28e   :  { %9872 = vst [vmem:[#allocation38_spill] sm:$0xff] %v7020_v57  ;;  %9873 = vst [vmem:[#allocation39_spill] sm:$0xff] %v7022_v51  ;;  %v1453_v51 = vmul.f32 %v6799_v14, %v1449_v34  ;;  %v1503_v57 = vmul.f32 %v6799_v14, %v1499_v12  ;;  %v1513_v14 = vrot.slane %v1501_v54, 2  ;;  %v1518_v34 = vrot.slane %v1504_v25, 2 }
 0x28f   :  { %v1512_v12 = vrot.slane %v1500_v37, 2 }
 0x290   :  { %v1459_v9 = vadd.f32 %v1453_v51, %v1447_v46  ;;  %v1517_v4 = vrot.slane %v1503_v57, 2  ;;  %v1516_v59 = vsel %vm203_vm4, %v1513_v14, %v1515_v40 }
 0x291   :  { %v7027_v58 = vpop.permute.xlu1 %1684  ;;  %v7035_v7 = vpop.permute.xlu0 %1682  ;;  %v1514_v28 = vsel %vm203_vm4, %v1512_v12, %v1513_v14 }
 0x292   :  { %9875 = vst [vmem:[#allocation41_spill] sm:$0xff] %v7035_v7  ;;  %v1495_v63 = vadd.f32 %v1483_v8, %v1459_v9  ;;  %v1519_v54 = vsel %vm203_vm4, %v1517_v4, %v1518_v34  ;;  %v1528_v9 = vadd.f32 %v1514_v28, %v1492_v36  ;;  %v9880_v8 = vld [vmem:[#allocation21_spill] sm:$0xff] }
 0x293   :  { %v9882_v36 = vld [vmem:[#allocation37_spill] sm:$0xff] }
 0x294   :  { %v1531_v5 = vadd.f32 %v1519_v54, %v1495_v63  ;;  %v1566_v33 = vadd.f32 %v6808_v20, %v1528_v9 }
 0x295   :  { %v7042_v16 = vpop.permute.xlu1 %1688  ;;  %v7048_v48 = vpop.permute.xlu0 %1686 }
 0x296   :  { %9876 = vst [vmem:[#allocation42_spill] sm:$0xff] %v7042_v16  ;;  %9877 = vst [vmem:[#allocation43_spill] sm:$0xff] %v7048_v48  ;;  %v1493_v16 = vadd.f32 %v1480_v55, %v1457_v29  ;;  %v1520_v48 = vrot.slane %v1505_v61, 2  ;;  %v1494_v55 = vadd.f32 %v1479_v41, %v1458_v62  ;;  %v1258_v29 = vadd.f32 %v6914_v10, %v6974_v19 }
 0x297   :  { %v1614_v20 = vadd.f32 %v6857_v24, %v1566_v33  ;;  %v7097_v61 = vstv %s7060_s3  ;;  %v9889_v33 = vld [vmem:[#allocation22_spill] sm:$0xff]  ;;  %s7636_s3 = sld [smem:[#allocation11 + $0x1b]] }
 0x298   :  { %v1529_v57 = vadd.f32 %v1516_v59, %v1493_v16  ;;  %v1521_v38 = vsel %vm203_vm4, %v1518_v34, %v1520_v48  ;;  %v1530_v4 = vadd.f32 %v1515_v40, %v1494_v55  ;;  %v1533_v25 = vadd.f32 %v1520_v48, %v1497_v60  ;;  %v9881_v34 = vld [vmem:[#allocation17_spill] sm:$0xff] }
 0x299   :  { %v7052_v7 = vpop.permute.xlu1 %1692  ;;  %v7056_v13 = vpop.permute.xlu0 %1690  ;;  %v1532_v23 = vadd.f32 %v1521_v38, %v1496_v35  ;;  %v1569_v40 = vadd.f32 %v6810_v1, %v1531_v5  ;;  %v1298_v1 = vadd.f32 %v6976_v50, %v1258_v29  ;;  %v7105_v50 = vstv %s7068_s20  ;;  %v9879_v14 = vld [vmem:[#allocation41_spill] sm:$0xff]  ;;  %v9885_v35 = vld [vmem:[#allocation31_spill] sm:$0xff]  ;;  %v9887_v38 = vld [vmem:[#allocation20_spill] sm:$0xff]  ;;  %s5471_s20 = sld [smem:[#allocation8 + $0x25]] }
 0x29a   :  { %v1567_v41 = vadd.f32 %v6791_v22, %v1529_v57  ;;  %v1568_v22 = vadd.f32 %v6829_v39, %v1530_v4  ;;  %v1571_v19 = vadd.f32 %v6831_v53, %v1533_v25  ;;  %v1296_v39 = vadd.f32 %v6965_v52, %v1256_v31  ;;  %v9884_v57 = vld [vmem:[#allocation18_spill] sm:$0xff] }
 0x29b   :  { %v1570_v10 = vadd.f32 %v6844_v15, %v1532_v23  ;;  %v1617_v15 = vadd.f32 %v7002_v56, %v1569_v40  ;;  %v1662_v53 = vadd.f32 %v7012_v42, %v1614_v20  ;;  %v9878_v56 = vld [vmem:[#allocation36_spill] sm:$0xff]  ;;  %v1363_v21 = vadd.f32 %v9881_v34, %v1337_v47  ;;  %v9890_v25 = vld [vmem:[#allocation30_spill] sm:$0xff] }
 0x29c   :  { %v1615_v43 = vadd.f32 %v6846_v6, %v1567_v41  ;;  %v1259_v6 = vadd.f32 %v6909_v11, %v6968_v0  ;;  %v1338_v11 = vadd.f32 %v6984_v45, %v1298_v1  ;;  %v7102_v0 = vstv %s7066_s19  ;;  %v9892_v40 = vld [vmem:[#allocation38_spill] sm:$0xff]  ;;  %v9894_v47 = vld [vmem:[#allocation32_spill] sm:$0xff]  ;;  %s7735_s19 = sld [smem:[#allocation11 + $0x23]] }
 0x29d   :  { %v1733_v51 = vpop.permute.xlu1 %1732  ;;  %v1731_v46 = vpop.permute.xlu0 %1730  ;;  %v1616_v2 = vadd.f32 %v7004_v27, %v1568_v22  ;;  %v1665_v37 = vadd.f32 %v9878_v56, %v1617_v15  ;;  %v1700_v42 = vadd.f32 %v9879_v14, %v1662_v53  ;;  %v7116_v45 = vstv %s7077_s4  ;;  %v9883_v59 = vld [vmem:[#allocation42_spill] sm:$0xff]  ;;  %v9888_v41 = vld [vmem:[#allocation43_spill] sm:$0xff]  ;;  %v9897_v14 = vld [vmem:[#allocation25_spill] sm:$0xff]  ;;  %s5473_s4 = sld [smem:[#allocation8 + $0x2b]] }
 0x29e   :  { %v1663_v48 = vadd.f32 %v7010_v30, %v1615_v43  ;;  %v1336_v30 = vadd.f32 %v6980_v3, %v1296_v39  ;;  %v7113_v3 = vstv %s7075_s22  ;;  %v1619_v26 = vadd.f32 %v9887_v38, %v1571_v19  ;;  %v9895_v15 = vld [vmem:[#allocation39_spill] sm:$0xff]  ;;  %s5472_s22 = sld [smem:[#allocation8 + $0x28]] }
 0x29f   :  { %v1664_v12 = vadd.f32 %v9882_v36, %v1616_v2  ;;  %v1703_v55 = vadd.f32 %v9883_v59, %v1665_v37  ;;  %v1748_v63 = vadd.f32 %v1731_v46, %v1700_v42  ;;  %v1403_v23 = vadd.f32 %v9889_v33, %v1363_v21  ;;  %v9891_v46 = vld [vmem:[#allocation23_spill] sm:$0xff]  ;;  %v9899_v59 = vld [vmem:[#allocation28_spill] sm:$0xff] }
 0x2a0   :  { %v1701_v24 = vadd.f32 %v7027_v58, %v1663_v48  ;;  %v1299_v58 = vadd.f32 %v9880_v8, %v1259_v6  ;;  %v1362_v54 = vadd.f32 %v9884_v57, %v1336_v30  ;;  %v1618_v22 = vadd.f32 %v9891_v46, %v1570_v10 }
 0x2a1   :  { %v1737_v16 = vpop.permute.xlu1 %1736  ;;  %v1735_v44 = vpop.permute.xlu0 %1734  ;;  %v1702_v4 = vadd.f32 %v9888_v41, %v1664_v12  ;;  %v1667_v18 = vadd.f32 %v9892_v40, %v1619_v26  ;;  %v9902_v40 = vld [vmem:[#allocation24_spill] sm:$0xff] }
 0x2a2   :  { %v1749_v62 = vadd.f32 %v1733_v51, %v1701_v24  ;;  %v1339_v60 = vadd.f32 %v9885_v35, %v1299_v58  ;;  %v9886_v51 = vld [vmem:[#allocation19_spill] sm:$0xff]  ;;  %v1751_v5 = vadd.f32 %v1737_v16, %v1703_v55  ;;  %v1402_v43 = vadd.f32 %v9890_v25, %v1362_v54 }
 0x2a3   :  { %v1364_v28 = vadd.f32 %v9886_v51, %v1338_v11  ;;  %v1750_v48 = vadd.f32 %v1735_v44, %v1702_v4  ;;  %v1443_v16 = vadd.f32 %v9894_v47, %v1403_v23  ;;  %v1666_v53 = vadd.f32 %v9895_v15, %v1618_v22 }
 0x2a4   :  { %v1705_v11 = vadd.f32 %v7052_v7, %v1667_v18 }
 0x2a5   :  { %v1741_v17 = vpop.permute.xlu1 %1740  ;;  %v1739_v52 = vpop.permute.xlu0 %1738  ;;  %v1404_v42 = vadd.f32 %v9897_v14, %v1364_v28 }
 0x2a6   :  { %v1753_v7 = vadd.f32 %v1741_v17, %v1705_v11 }
 0x2a7   :  { %v1444_v55 = vadd.f32 %v9899_v59, %v1404_v42 }
 0x2a9   :  { %v1781_v32 = vpop.permute.xlu1 %1780  ;;  %v1779_v9 = vpop.permute.xlu0 %1778 }
 0x2aa   :  { %v1797_v27 = vadd.f32 %v1781_v32, %v1749_v62  ;;  %v1796_v29 = vadd.f32 %v1779_v9, %v1748_v63  ;;  %v9898_v62 = vld [vmem:[#allocation27_spill] sm:$0xff]  ;;  %v1704_v32 = vadd.f32 %v7056_v13, %v1666_v53  ;;  %v9903_v53 = vld [vmem:[#allocation26_spill] sm:$0xff] }
 0x2ab   :  { %v1442_v8 = vadd.f32 %v9898_v62, %v1402_v43 }
 0x2ac   :  { %v1803_v31 = vmax.f32 %v1797_v27, 0.0  ;;  %v1802_v19 = vmax.f32 %v1796_v29, 0.0  ;;  %v1752_v35 = vadd.f32 %v1739_v52, %v1704_v32  ;;  %v9901_v52 = vld [vmem:[#allocation29_spill] sm:$0xff] }
 0x2ad   :  { %v1785_v20 = vpop.permute.xlu1 %1784  ;;  %v1783_v30 = vpop.permute.xlu0 %1782  ;;  %v1365_v41 = vadd.f32 %v9901_v52, %v1339_v60 }
 0x2ae   :  { %v7131_v39 = vsel %vm6369_vm13, %v1803_v31, 0.0  ;;  %v1799_v1 = vadd.f32 %v1785_v20, %v1751_v5  ;;  %v7142_v2 = vsel %vm6337_vm12, %v1802_v19, 0.0  ;;  %v1798_v37 = vadd.f32 %v1783_v30, %v1750_v48 }
 0x2af   :  { %v1817_v24 = vmul.f32 %v7097_v61, %v7131_v39  ;;  %v1891_v10 = vmul.f32 %v7113_v3, %v7131_v39  ;;  %v1816_v34 = vmul.f32 %v7097_v61, %v7142_v2  ;;  %v7157_v63 = vmul.f32 %v7102_v0, %v7131_v39 }
 0x2b0   :  { %v1805_v56 = vmax.f32 %v1799_v1, 0.0  ;;  %v1804_v12 = vmax.f32 %v1798_v37, 0.0  ;;  %v7165_v13 = vmul.f32 %v7105_v50, %v7131_v39  ;;  %v1917_v9 = vmul.f32 %v7116_v45, %v7131_v39 }
 0x2b1   :  { %v1821_v58 = vadd.f32 %v1817_v24, %v1443_v16  ;;  %1900 = vrot.lane.b32.xlu1 %v1891_v10, %s5683_s21  ;;  %v1789_v21 = vpop.permute.xlu1 %1788  ;;  %v7159_v27 = vadd.f32 %v1816_v34, %v1442_v8  ;;  %v1787_v54 = vpop.permute.xlu0 %1786  ;;  %v1890_v5 = vmul.f32 %v7113_v3, %v7142_v2  ;;  %v1839_v29 = vrot.slane %v7157_v63, 1 }
 0x2b2   :  { %v7152_v36 = vsel %vm6337_vm12, %v1805_v56, 0.0  ;;  %v7169_v51 = vsel %vm6286_vm9, %v1804_v12, 0.0  ;;  %v1801_v28 = vadd.f32 %v1789_v21, %v1753_v7  ;;  %v1800_v31 = vadd.f32 %v1787_v54, %v1752_v35 }
 0x2b3   :  { %v1818_v57 = vmul.f32 %v7097_v61, %v7152_v36  ;;  %v1828_v26 = vmul.f32 %v7102_v0, %v7169_v51  ;;  %v1860_v4 = vmul.f32 %v7105_v50, %v7169_v51  ;;  %v1916_v25 = vmul.f32 %v7116_v45, %v7142_v2  ;;  %1898 = vrot.lane.b32.xlu0 %v1890_v5, %s5683_s21 }
 0x2b4   :  { %v1807_v23 = vmax.f32 %v1801_v28, 0.0  ;;  %v1871_v43 = vrot.slane %v7165_v13, 2  ;;  %v1806_v60 = vmax.f32 %v1800_v31, 0.0  ;;  %v1892_v22 = vmul.f32 %v7113_v3, %v7152_v36 }
 0x2b5   :  { %v7173_v38 = vadd.f32 %v1818_v57, %v1444_v55  ;;  %v1841_v33 = vrot.slane %v1828_v26, 1  ;;  %v1873_v46 = vrot.slane %v1860_v4, 2  ;;  %v1405_v18 = vadd.f32 %v9902_v40, %v1365_v41 }
 0x2b6   :  { %v1929_v48 = vrot.slane %v1917_v9, 1  ;;  %v1919_v19 = vmul.f32 %v7116_v45, %v7152_v36  ;;  %v7202_v16 = vsel %vm6369_vm13, %v1806_v60, 0.0  ;;  %v1928_v15 = vrot.slane %v1916_v25, 1 }
 0x2b7   :  { %v1842_v20 = vsel %vm166_vm3, %v1839_v29, %v1841_v33  ;;  %v1874_v47 = vsel %vm203_vm4, %v1871_v43, %v1873_v46  ;;  %v1445_v24 = vadd.f32 %v9903_v53, %v1405_v18  ;;  %v7207_v30 = vsel %vm6286_vm9, %v1807_v23, 0.0  ;;  %1902 = vrot.lane.b32.xlu0 %v1892_v22, %s5683_s21 }
 0x2b8   :  { %v1853_v1 = vadd.f32 %v1842_v20, %v1821_v58  ;;  %v1819_v10 = vmul.f32 %v7097_v61, %v7202_v16  ;;  %v1893_v56 = vmul.f32 %v7113_v3, %v7202_v16  ;;  %v1955_v37 = vstv %s7171_s24  ;;  %s5474_s24 = sld [smem:[#allocation8 + $0x26]] }
 0x2b9   :  { %v1920_v42 = vmul.f32 %v7116_v45, %v7202_v16  ;;  %v1918_v62 = vmul.f32 %v7116_v45, %v7169_v51  ;;  %v1930_v8 = vsel %vm166_vm3, %v1928_v15, %v1929_v48  ;;  %v1933_v61 = vrot.slane %v1919_v19, 1 }
 0x2ba   :  { %v7211_v11 = vadd.f32 %v1874_v47, %v1853_v1  ;;  %v7217_v14 = vadd.f32 %v1819_v10, %v1445_v24  ;;  %1904 = vrot.lane.b32.xlu1 %v1893_v56, %s5683_s21  ;;  %v1921_v58 = vmul.f32 %v7116_v45, %v7207_v30  ;;  %v1956_v3 = vmul.f32 %v1955_v37, %v7142_v2 }
 0x2bb   :  { %v1934_v34 = vrot.slane %v1920_v42, 1  ;;  %v1931_v21 = vrot.slane %v1918_v62, 1  ;;  %v1957_v32 = vmul.f32 %v1955_v37, %v7131_v39  ;;  %1938 = vrot.lane.b32.xlu0 %v1930_v8, %s5683_s21  ;;  %v1958_v55 = vmul.f32 %v1955_v37, %v7169_v51 }
 0x2bc   :  { %v1936_v59 = vrot.slane %v1921_v58, 1  ;;  %v1826_v57 = vmul.f32 %v7102_v0, %v7142_v2  ;;  %v1858_v45 = vmul.f32 %v7105_v50, %v7142_v2  ;;  %v1968_v54 = vrot.slane %v1956_v3, 2 }
 0x2bd   :  { %v1935_v7 = vsel %vm166_vm3, %v1933_v61, %v1934_v34  ;;  %v1932_v12 = vsel %vm166_vm3, %v1929_v48, %v1931_v21  ;;  %v1969_v35 = vrot.slane %v1957_v32, 2  ;;  %v1960_v28 = vmul.f32 %v1955_v37, %v7202_v16 }
 0x2be   :  { %1940 = vrot.lane.b32.xlu1 %v1932_v12, %s5683_s21  ;;  %v1831_v26 = vmul.f32 %v7102_v0, %v7207_v30  ;;  %v1830_v9 = vmul.f32 %v7102_v0, %v7202_v16  ;;  %v1862_v52 = vmul.f32 %v7105_v50, %v7202_v16  ;;  %v1937_v41 = vsel %vm166_vm3, %v1934_v34, %v1936_v59 }
 0x2bf   :  { %1942 = vrot.lane.b32.xlu0 %v1935_v7, %s5683_s21  ;;  %v1959_v4 = vmul.f32 %v1955_v37, %v7152_v36  ;;  %v1971_v5 = vrot.slane %v1958_v55, 2  ;;  %v1961_v31 = vmul.f32 %v1955_v37, %v7207_v30  ;;  %v1838_v33 = vrot.slane %v1826_v57, 1 }
 0x2c0   :  { %v1829_v23 = vmul.f32 %v7102_v0, %v7152_v36  ;;  %v1861_v25 = vmul.f32 %v7105_v50, %v7152_v36  ;;  %v1870_v46 = vrot.slane %v1858_v45, 2  ;;  %v1863_v60 = vmul.f32 %v7105_v50, %v7207_v30 }
 0x2c1   :  { %v1970_v22 = vsel %vm203_vm4, %v1968_v54, %v1969_v35  ;;  %v1974_v40 = vrot.slane %v1960_v28, 2  ;;  %v1846_v18 = vrot.slane %v1831_v26, 1  ;;  %v1844_v20 = vrot.slane %v1830_v9, 1 }
 0x2c2   :  { %1944 = vrot.lane.b32.xlu1 %v1937_v41, %s5683_s21  ;;  %v1876_v48 = vrot.slane %v1862_v52, 2  ;;  %v1973_v19 = vrot.slane %v1959_v4, 2  ;;  %v1972_v0 = vsel %vm203_vm4, %v1969_v35, %v1971_v5  ;;  %v1976_v1 = vrot.slane %v1961_v31, 2 }
 0x2c3   :  { %1978 = vrot.lane.b32.xlu0 %v1970_v22, %s5683_s21  ;;  %v1843_v47 = vrot.slane %v1829_v23, 1  ;;  %v1875_v15 = vrot.slane %v1861_v25, 2  ;;  %v1995_v53 = vstv %s7236_s25  ;;  %v1878_v24 = vrot.slane %v1863_v60, 2  ;;  %s5475_s25 = sld [smem:[#allocation8 + $0x29]] }
 0x2c4   :  { %v1975_v50 = vsel %vm203_vm4, %v1973_v19, %v1974_v40  ;;  %v1840_v10 = vsel %vm166_vm3, %v1838_v33, %v1839_v29  ;;  %v1872_v56 = vsel %vm203_vm4, %v1870_v46, %v1871_v43  ;;  %v2021_v37 = vstv %s5446_s26  ;;  %s5476_s26 = sld [smem:[#allocation8 + $0x2c]] }
 0x2c5   :  { %v1852_v42 = vadd.f32 %v1840_v10, %v7159_v27  ;;  %v1977_v62 = vsel %vm203_vm4, %v1974_v40, %v1976_v1  ;;  %v1845_v8 = vsel %vm166_vm3, %v1843_v47, %v1844_v20  ;;  %v1877_v61 = vsel %vm203_vm4, %v1875_v15, %v1876_v48  ;;  %v7324_v1 = vld [vmem:[#allocation2 + $0x8] sm:$0xff]  ;;  %v7327_v15 = vld [vmem:[#allocation2 + $0x10] sm:$0xf] }
 0x2c6   :  { %1980 = vrot.lane.b32.xlu1 %v1972_v0, %s5683_s21  ;;  %v1847_v63 = vsel %vm166_vm3, %v1844_v20, %v1846_v18  ;;  %v1996_v29 = vmul.f32 %v1995_v53, %v7142_v2  ;;  %v1854_v43 = vadd.f32 %v1845_v8, %v7173_v38  ;;  %v2022_v58 = vmul.f32 %v2021_v37, %v7142_v2 }
 0x2c7   :  { %1982 = vrot.lane.b32.xlu0 %v1975_v50, %s5683_s21  ;;  %v7278_v13 = vadd.f32 %v1872_v56, %v1852_v42  ;;  %v2023_v27 = vmul.f32 %v2021_v37, %v7131_v39  ;;  %v1855_v34 = vadd.f32 %v1847_v63, %v7217_v14  ;;  %v1879_v21 = vsel %vm203_vm4, %v1876_v48, %v1878_v24  ;;  %v7336_v56 = vld [vmem:[#allocation2] sm:$0xff]  ;;  %v9910_v63 = vld [vmem:[#allocation40_spill] sm:$0xff] }
 0x2c8   :  { %v1997_v3 = vmul.f32 %v1995_v53, %v7131_v39  ;;  %v7287_v32 = vadd.f32 %v1877_v61, %v1854_v43  ;;  %v2024_v7 = vmul.f32 %v2021_v37, %v7169_v51  ;;  %v1998_v38 = vmul.f32 %v1995_v53, %v7152_v36  ;;  %9905 = vst [vmem:[#allocation41_spill] sm:$0xff] %v7324_v1 }
 0x2c9   :  { %v7290_v12 = vadd.f32 %v1879_v21, %v1855_v34  ;;  %v2034_v59 = vrot.slane %v2022_v58, 1  ;;  %v2035_v55 = vrot.slane %v2023_v27, 1  ;;  %v2026_v14 = vmul.f32 %v2021_v37, %v7202_v16  ;;  %9906 = vst [vmem:[#allocation21_spill] sm:$0xff] %v7327_v15  ;;  %9908 = vst [vmem:[#allocation37_spill] sm:$0xff] %v7336_v56 }
 0x2ca   :  { %1984 = vrot.lane.b32.xlu1 %v1977_v62, %s5683_s21  ;;  %v1999_v57 = vmul.f32 %v1995_v53, %v7202_v16  ;;  %v2061_v45 = vstv %s5447_s27  ;;  %v2025_v54 = vmul.f32 %v2021_v37, %v7152_v36  ;;  %v2037_v35 = vrot.slane %v2024_v7, 1  ;;  %v7340_v62 = vld [vmem:[#allocation2 + $0x20] sm:$0xff]  ;;  %s5469_s27 = sld [smem:[#allocation8 + $0x27]] }
 0x2cb   :  { %2004 = vrot.lane.b32.xlu0 %v1996_v29, %s5684_s23  ;;  %9904 = vst [vmem:[#allocation36_spill] sm:$0xff] %v7290_v12  ;;  %v2027_v28 = vmul.f32 %v2021_v37, %v7207_v30  ;;  %v2036_v26 = vsel %vm166_vm3, %v2034_v59, %v2035_v55  ;;  %v2040_v9 = vrot.slane %v2026_v14, 1  ;;  %v2062_v52 = vmul.f32 %v2061_v45, %v7142_v2 }
 0x2cc   :  { %v2063_v41 = vmul.f32 %v2061_v45, %v7131_v39  ;;  %v2039_v4 = vrot.slane %v2025_v54, 1  ;;  %v2038_v5 = vsel %vm166_vm3, %v2035_v55, %v2037_v35  ;;  %v2064_v33 = vmul.f32 %v2061_v45, %v7169_v51  ;;  %9909 = vst [vmem:[#allocation42_spill] sm:$0xff] %v7340_v62 }
 0x2cd   :  { %v2042_v31 = vrot.slane %v2027_v28, 1  ;;  %v2074_v25 = vrot.slane %v2062_v52, 2  ;;  %v2066_v60 = vmul.f32 %v2061_v45, %v7202_v16  ;;  %v2065_v2 = vmul.f32 %v2061_v45, %v7152_v36 }
 0x2ce   :  { %2006 = vrot.lane.b32.xlu1 %v1997_v3, %s5684_s23  ;;  %v2041_v23 = vsel %vm166_vm3, %v2039_v4, %v2040_v9  ;;  %v2075_v46 = vrot.slane %v2063_v41, 2  ;;  %v2077_v22 = vrot.slane %v2064_v33, 2  ;;  %v2067_v40 = vmul.f32 %v2061_v45, %v7207_v30 }
 0x2cf   :  { %2008 = vrot.lane.b32.xlu0 %v1998_v38, %s5684_s23  ;;  %v2043_v39 = vsel %vm166_vm3, %v2040_v9, %v2042_v31  ;;  %v2080_v18 = vrot.slane %v2066_v60, 2  ;;  %v2079_v20 = vrot.slane %v2065_v2, 2  ;;  %v2189_v36 = vstv %s5452_s28  ;;  %s5468_s28 = sld [smem:[#allocation8 + $0x24]] }
 0x2d0   :  { %v2076_v51 = vsel %vm203_vm4, %v2074_v25, %v2075_v46  ;;  %v2078_v16 = vsel %vm203_vm4, %v2075_v46, %v2077_v22  ;;  %v2082_v48 = vrot.slane %v2067_v40, 2  ;;  %v2190_v0 = vmul.f32 %v6837_v49, %v2189_v36  ;;  %v7333_v49 = vld [vmem:[#allocation2 + $0x18] sm:$0xff] }
 0x2d1   :  { %v2081_v19 = vsel %vm203_vm4, %v2079_v20, %v2080_v18  ;;  %v2191_v47 = vmul.f32 %v7324_v1, %v2189_v36  ;;  %v2192_v53 = vmul.f32 %v7327_v15, %v2189_v36  ;;  %v2227_v24 = vstv %s5453_s2  ;;  %9907 = vst [vmem:[#allocation17_spill] sm:$0xff] %v7333_v49  ;;  %s5470_s2 = sld [smem:[#allocation8 + $0x2a]] }
 0x2d2   :  { %2010 = vrot.lane.b32.xlu1 %v1999_v57, %s5684_s23  ;;  %v2083_v30 = vsel %vm203_vm4, %v2080_v18, %v2082_v48  ;;  %v2229_v50 = vmul.f32 %v7324_v1, %v2227_v24  ;;  %v2193_v10 = vmul.f32 %v7333_v49, %v2189_v36  ;;  %v2228_v37 = vmul.f32 %v7336_v56, %v2227_v24 }
 0x2d3   :  { %2044 = vrot.lane.b32.xlu0 %v2036_v26, %s5684_s23  ;;  %v2230_v42 = vmul.f32 %v7327_v15, %v2227_v24  ;;  %v2194_v8 = vmul.f32 %v7340_v62, %v2189_v36  ;;  %v2195_v29 = vmul.f32 %v9910_v63, %v2189_v36  ;;  %v2232_v27 = vmul.f32 %v7340_v62, %v2227_v24 }
 0x2d4   :  { %v2241_v61 = vrot.slane %v2229_v50, 1  ;;  %v2240_v43 = vrot.slane %v2228_v37, 1  ;;  %v2231_v34 = vmul.f32 %v7333_v49, %v2227_v24  ;;  %v2233_v3 = vmul.f32 %v9910_v63, %v2227_v24 }
 0x2d5   :  { %v2243_v58 = vrot.slane %v2230_v42, 1  ;;  %v2246_v38 = vrot.slane %v2232_v27, 1  ;;  %v2275_v55 = vstv %s5454_s29  ;;  %v2323_v2 = vstv %s5455_s30  ;;  %s5467_s29 = sld [smem:[#allocation9 + $0x4]]  ;;  %s5478_s30 = sld [smem:[#allocation11 + $0x27]] }
 0x2d6   :  { %2046 = vrot.lane.b32.xlu1 %v2038_v5, %s5684_s23  ;;  %v2242_v21 = vsel %vm166_vm3, %v2240_v43, %v2241_v61  ;;  %v2245_v59 = vrot.slane %v2231_v34, 1  ;;  %v2248_v14 = vrot.slane %v2233_v3, 1  ;;  %v2277_v57 = vmul.f32 %v7324_v1, %v2275_v55 }
 0x2d7   :  { %2048 = vrot.lane.b32.xlu0 %v2041_v23, %s5684_s23  ;;  %v2244_v7 = vsel %vm166_vm3, %v2241_v61, %v2243_v58  ;;  %v2276_v54 = vmul.f32 %v7336_v56, %v2275_v55  ;;  %v2278_v35 = vmul.f32 %v7327_v15, %v2275_v55  ;;  %v2280_v41 = vmul.f32 %v7340_v62, %v2275_v55 }
 0x2d8   :  { %v2247_v45 = vsel %vm166_vm3, %v2245_v59, %v2246_v38  ;;  %v2249_v28 = vsel %vm166_vm3, %v2246_v38, %v2248_v14  ;;  %v2289_v26 = vrot.slane %v2277_v57, 2  ;;  %v2279_v4 = vmul.f32 %v7333_v49, %v2275_v55 }
 0x2d9   :  { %v2288_v9 = vrot.slane %v2276_v54, 2  ;;  %v2291_v52 = vrot.slane %v2278_v35, 2  ;;  %v2281_v31 = vmul.f32 %v9910_v63, %v2275_v55  ;;  %v2294_v23 = vrot.slane %v2280_v41, 2 }
 0x2da   :  { %2050 = vrot.lane.b32.xlu1 %v2043_v39, %s5684_s23  ;;  %v2293_v25 = vrot.slane %v2279_v4, 2  ;;  %v2324_v22 = vmul.f32 %v7336_v56, %v2323_v2  ;;  %v2325_v40 = vmul.f32 %v7324_v1, %v2323_v2  ;;  %v2361_v18 = vstv %s5456_s6  ;;  %s5479_s6 = sld [smem:[#allocation11 + $0x2a]] }
 0x2db   :  { %2084 = vrot.lane.b32.xlu0 %v2076_v51, %s5684_s23  ;;  %v2290_v5 = vsel %vm203_vm4, %v2288_v9, %v2289_v26  ;;  %v2292_v33 = vsel %vm203_vm4, %v2289_v26, %v2291_v52  ;;  %v2296_v46 = vrot.slane %v2281_v31, 2  ;;  %v2326_v51 = vmul.f32 %v7327_v15, %v2323_v2 }
 0x2dc   :  { %v2295_v60 = vsel %vm203_vm4, %v2293_v25, %v2294_v23  ;;  %v2363_v20 = vmul.f32 %v7324_v1, %v2361_v18  ;;  %v2362_v48 = vmul.f32 %v7336_v56, %v2361_v18  ;;  %v2328_v36 = vmul.f32 %v7340_v62, %v2323_v2 }
 0x2dd   :  { %v2297_v39 = vsel %vm203_vm4, %v2294_v23, %v2296_v46  ;;  %v2366_v24 = vmul.f32 %v7340_v62, %v2361_v18  ;;  %v2365_v50 = vmul.f32 %v7333_v49, %v2361_v18  ;;  %v2367_v37 = vmul.f32 %v9910_v63, %v2361_v18 }
 0x2de   :  { %2086 = vrot.lane.b32.xlu1 %v2078_v16, %s5684_s23  ;;  %v2327_v16 = vmul.f32 %v7333_v49, %v2323_v2 }
 0x2df   :  { %2088 = vrot.lane.b32.xlu0 %v2081_v19, %s5684_s23  ;;  %v2364_v19 = vmul.f32 %v7327_v15, %v2361_v18  ;;  %v2379_v61 = vrot.slane %v2365_v50, 1  ;;  %v2382_v43 = vrot.slane %v2367_v37, 1 }
 0x2e2   :  { %2090 = vrot.lane.b32.xlu1 %v2083_v30, %s5684_s23  ;;  %v2375_v30 = vrot.slane %v2363_v20, 1 }
 0x2e3   :  { %2202 = vrot.lane.b32.xlu0 %v2190_v0, %s5683_s21  ;;  %v2329_v0 = vmul.f32 %v9910_v63, %v2323_v2 }
 0x2e6   :  { %2204 = vrot.lane.b32.xlu1 %v2191_v47, %s5683_s21  ;;  %v2374_v47 = vrot.slane %v2362_v48, 1 }
 0x2e7   :  { %2206 = vrot.lane.b32.xlu0 %v2192_v53, %s5683_s21  ;;  %v2377_v53 = vrot.slane %v2364_v19, 1 }
 0x2e9   :  { %v2378_v42 = vsel %vm166_vm3, %v2375_v30, %v2377_v53 }
 0x2ea   :  { %2208 = vrot.lane.b32.xlu1 %v2193_v10, %s5683_s21  ;;  %v2376_v10 = vsel %vm166_vm3, %v2374_v47, %v2375_v30 }
 0x2eb   :  { %2210 = vrot.lane.b32.xlu0 %v2194_v8, %s5683_s21  ;;  %v2380_v8 = vrot.slane %v2366_v24, 1 }
 0x2ed   :  { %v2381_v27 = vsel %vm166_vm3, %v2379_v61, %v2380_v8  ;;  %v2383_v3 = vsel %vm166_vm3, %v2380_v8, %v2382_v43 }
 0x2ee   :  { %2212 = vrot.lane.b32.xlu1 %v2195_v29, %s5683_s21  ;;  %v2409_v29 = vstv %s5457_s9  ;;  %s8021_s9 = sld [smem:[#allocation11 + $0x25]] }
 0x2ef   :  { %2250 = vrot.lane.b32.xlu0 %v2242_v21, %s5683_s21  ;;  %v2410_v34 = vmul.f32 %v7336_v56, %v2409_v29  ;;  %v2412_v21 = vmul.f32 %v7327_v15, %v2409_v29  ;;  %v2414_v55 = vmul.f32 %v7340_v62, %v2409_v29 }
 0x2f1   :  { %v2422_v38 = vrot.slane %v2410_v34, 2  ;;  %v2425_v59 = vrot.slane %v2412_v21, 2  ;;  %v2428_v35 = vrot.slane %v2414_v55, 2  ;;  %v2117_v55 = vstv %s5450_s10  ;;  %s8029_s10 = sld [smem:[#allocation11 + $0x28]] }
 0x2f2   :  { %2252 = vrot.lane.b32.xlu1 %v2244_v7, %s5683_s21 }
 0x2f3   :  { %2254 = vrot.lane.b32.xlu0 %v2243_v58, %s5683_s21  ;;  %v2411_v58 = vmul.f32 %v7324_v1, %v2409_v29 }
 0x2f5   :  { %v2423_v7 = vrot.slane %v2411_v58, 2 }
 0x2f6   :  { %2256 = vrot.lane.b32.xlu1 %v2247_v45, %s5683_s21  ;;  %v2415_v45 = vmul.f32 %v9910_v63, %v2409_v29 }
 0x2f7   :  { %2258 = vrot.lane.b32.xlu0 %v2249_v28, %s5683_s21  ;;  %v2424_v57 = vsel %vm203_vm4, %v2422_v38, %v2423_v7  ;;  %v2426_v54 = vsel %vm203_vm4, %v2423_v7, %v2425_v59 }
 0x2f8   :  { %v2430_v26 = vrot.slane %v2415_v45, 2 }
 0x2fa   :  { %2260 = vrot.lane.b32.xlu1 %v2248_v14, %s5683_s21  ;;  %v2413_v14 = vmul.f32 %v7333_v49, %v2409_v29  ;;  %v2431_v41 = vsel %vm203_vm4, %v2428_v35, %v2430_v26 }
 0x2fb   :  { %2298 = vrot.lane.b32.xlu0 %v2290_v5, %s5683_s21 }
 0x2fc   :  { %v2427_v28 = vrot.slane %v2413_v14, 2  ;;  %v2103_v14 = vstv %s5449_s11  ;;  %s8038_s11 = sld [smem:[#allocation11 + $0x2b]] }
 0x2fe   :  { %2300 = vrot.lane.b32.xlu1 %v2292_v33, %s5683_s21  ;;  %v2429_v9 = vsel %vm203_vm4, %v2427_v28, %v2428_v35  ;;  %v2120_v35 = vmul.f32 %v7327_v15, %v2117_v55  ;;  %v2118_v28 = vmul.f32 %v7336_v56, %v2117_v55 }
 0x2ff   :  { %2302 = vrot.lane.b32.xlu0 %v2291_v52, %s5683_s21 }
 0x302   :  { %2304 = vrot.lane.b32.xlu1 %v2295_v60, %s5683_s21 }
 0x303   :  { %2306 = vrot.lane.b32.xlu0 %v2297_v39, %s5683_s21 }
 0x306   :  { %2308 = vrot.lane.b32.xlu1 %v2296_v46, %s5683_s21 }
 0x307   :  { %2336 = vrot.lane.b32.xlu0 %v2324_v22, %s5684_s23 }
 0x30a   :  { %2338 = vrot.lane.b32.xlu1 %v2325_v40, %s5684_s23 }
 0x30b   :  { %2340 = vrot.lane.b32.xlu0 %v2326_v51, %s5684_s23 }
 0x30e   :  { %2342 = vrot.lane.b32.xlu1 %v2327_v16, %s5684_s23 }
 0x30f   :  { %2344 = vrot.lane.b32.xlu0 %v2328_v36, %s5684_s23 }
 0x312   :  { %2346 = vrot.lane.b32.xlu1 %v2329_v0, %s5684_s23 }
 0x313   :  { %2384 = vrot.lane.b32.xlu0 %v2376_v10, %s5684_s23 }
 0x316   :  { %2386 = vrot.lane.b32.xlu1 %v2378_v42, %s5684_s23 }
 0x317   :  { %2388 = vrot.lane.b32.xlu0 %v2377_v53, %s5684_s23 }
 0x31a   :  { %2390 = vrot.lane.b32.xlu1 %v2381_v27, %s5684_s23 }
 0x31b   :  { %2392 = vrot.lane.b32.xlu0 %v2383_v3, %s5684_s23 }
 0x31e   :  { %2394 = vrot.lane.b32.xlu1 %v2382_v43, %s5684_s23 }
 0x31f   :  { %2432 = vrot.lane.b32.xlu0 %v2424_v57, %s5684_s23  ;;  %v2119_v57 = vmul.f32 %v7324_v1, %v2117_v55 }
 0x322   :  { %2434 = vrot.lane.b32.xlu1 %v2426_v54, %s5684_s23  ;;  %v2153_v54 = vstv %s5451_s12  ;;  %s8059_s12 = sld [smem:[#allocation11 + $0x26]] }
 0x323   :  { %2436 = vrot.lane.b32.xlu0 %v2425_v59, %s5684_s23  ;;  %v7420_v4 = vpop.permute.xlu1 %1900  ;;  %v2159_v17 = vmul.f32 %v9910_v63, %v2153_v54 }
 0x325   :  { %v7416_v52 = vpop.permute.xlu0 %1898 }
 0x326   :  { %2438 = vrot.lane.b32.xlu1 %v2429_v9, %s5684_s23  ;;  %v2104_v9 = vmul.f32 %v7336_v56, %v2103_v14 }
 0x327   :  { %2440 = vrot.lane.b32.xlu0 %v2431_v41, %s5684_s23  ;;  %v2101_v41 = vstv %s5448_s13  ;;  %s8082_s13 = sld [smem:[#allocation11 + $0x29]] }
 0x329   :  { %v7423_v5 = vpop.permute.xlu0 %1902 }
 0x32a   :  { %9911 = vst [vmem:[#allocation18_spill] sm:$0xff] %v7423_v5  ;;  %2442 = vrot.lane.b32.xlu1 %v2430_v26, %s5684_s23 }
 0x32c   :  { %v7426_v31 = vpop.permute.xlu1 %1904 }
 0x32d   :  { %9912 = vst [vmem:[#allocation31_spill] sm:$0xff] %v7426_v31  ;;  %v7428_v33 = vpop.permute.xlu0 %1938 }
 0x32e   :  { %9913 = vst [vmem:[#allocation19_spill] sm:$0xff] %v7428_v33 }
 0x330   :  { %v7430_v23 = vpop.permute.xlu1 %1940 }
 0x331   :  { %9914 = vst [vmem:[#allocation20_spill] sm:$0xff] %v7430_v23  ;;  %v7432_v25 = vpop.permute.xlu0 %1942  ;;  %v2158_v23 = vmul.f32 %v7340_v62, %v2153_v54 }
 0x332   :  { %9915 = vst [vmem:[#allocation43_spill] sm:$0xff] %v7432_v25 }
 0x334   :  { %v7434_v46 = vpop.permute.xlu1 %1944 }
 0x335   :  { %9916 = vst [vmem:[#allocation22_spill] sm:$0xff] %v7434_v46  ;;  %v7436_v60 = vpop.permute.xlu0 %1978  ;;  %v2157_v46 = vmul.f32 %v7333_v49, %v2153_v54 }
 0x336   :  { %9917 = vst [vmem:[#allocation30_spill] sm:$0xff] %v7436_v60  ;;  %v2107_v60 = vmul.f32 %v7333_v49, %v2103_v14 }
 0x337   :  { %v2171_v31 = vrot.slane %v2157_v46, 2 }
 0x338   :  { %v7438_v39 = vpop.permute.xlu1 %1980 }
 0x339   :  { %9918 = vst [vmem:[#allocation23_spill] sm:$0xff] %v7438_v39  ;;  %v7440_v2 = vpop.permute.xlu0 %1982  ;;  %v2156_v39 = vmul.f32 %v7327_v15, %v2153_v54 }
 0x33a   :  { %9919 = vst [vmem:[#allocation38_spill] sm:$0xff] %v7440_v2 }
 0x33c   :  { %v7442_v22 = vpop.permute.xlu1 %1984 }
 0x33d   :  { %9920 = vst [vmem:[#allocation32_spill] sm:$0xff] %v7442_v22  ;;  %v7444_v40 = vpop.permute.xlu0 %2004 }
 0x33e   :  { %9921 = vst [vmem:[#allocation39_spill] sm:$0xff] %v7444_v40  ;;  %v2106_v40 = vmul.f32 %v7327_v15, %v2103_v14 }
 0x340   :  { %v7446_v51 = vpop.permute.xlu1 %2006 }
 0x341   :  { %9922 = vst [vmem:[#allocation25_spill] sm:$0xff] %v7446_v51  ;;  %v7448_v18 = vpop.permute.xlu0 %2008  ;;  %v2110_v51 = vadd.f32 %v2104_v9, %v2101_v41 }
 0x342   :  { %9923 = vst [vmem:[#allocation27_spill] sm:$0xff] %v7448_v18 }
 0x344   :  { %v7450_v20 = vpop.permute.xlu1 %2010 }
 0x345   :  { %9924 = vst [vmem:[#allocation28_spill] sm:$0xff] %v7450_v20  ;;  %v7452_v16 = vpop.permute.xlu0 %2044  ;;  %v2122_v20 = vmul.f32 %v7340_v62, %v2117_v55 }
 0x346   :  { %9925 = vst [vmem:[#allocation29_spill] sm:$0xff] %v7452_v16  ;;  %v2121_v16 = vmul.f32 %v7333_v49, %v2117_v55 }
 0x347   :  { %v2136_v25 = vrot.slane %v2122_v20, 1  ;;  %v2113_v20 = vadd.f32 %v2107_v60, %v2101_v41 }
 0x348   :  { %v7454_v48 = vpop.permute.xlu1 %2046  ;;  %v2135_v9 = vrot.slane %v2121_v16, 1 }
 0x349   :  { %9926 = vst [vmem:[#allocation24_spill] sm:$0xff] %v7454_v48  ;;  %v7456_v19 = vpop.permute.xlu0 %2048  ;;  %v2130_v48 = vrot.slane %v2118_v28, 1 }
 0x34a   :  { %9927 = vst [vmem:[#allocation26_spill] sm:$0xff] %v7456_v19  ;;  %v2133_v19 = vrot.slane %v2120_v35, 1  ;;  %v2137_v6 = vsel %vm166_vm3, %v2135_v9, %v2136_v25 }
 0x34c   :  { %v7458_v36 = vpop.permute.xlu1 %2050 }
 0x34d   :  { %9928 = vst [vmem:[#allocation40_spill] sm:$0xff] %v7458_v36  ;;  %v7460_v30 = vpop.permute.xlu0 %2084  ;;  %v2105_v36 = vmul.f32 %v7324_v1, %v2103_v14 }
 0x34e   :  { %9929 = vst [vmem:[#allocation44_spill] sm:$0xff] %v7460_v30 }
 0x34f   :  { %v2111_v35 = vadd.f32 %v2105_v36, %v2101_v41  ;;  %v2169_v36 = vrot.slane %v2156_v39, 2 }
 0x350   :  { %v7462_v0 = vpop.permute.xlu1 %2086 }
 0x351   :  { %9930 = vst [vmem:[#allocation45_spill] sm:$0xff] %v7462_v0  ;;  %v7464_v47 = vpop.permute.xlu0 %2088  ;;  %v2155_v0 = vmul.f32 %v7324_v1, %v2153_v54 }
 0x352   :  { %9931 = vst [vmem:[#allocation46_spill] sm:$0xff] %v7464_v47  ;;  %v2154_v47 = vmul.f32 %v7336_v56, %v2153_v54  ;;  %v2174_v54 = vrot.slane %v2159_v17, 2 }
 0x353   :  { %v2167_v2 = vrot.slane %v2155_v0, 2 }
 0x354   :  { %v7466_v53 = vpop.permute.xlu1 %2090  ;;  %v2166_v22 = vrot.slane %v2154_v47, 2  ;;  %v2112_v47 = vadd.f32 %v2106_v40, %v2101_v41 }
 0x355   :  { %9932 = vst [vmem:[#allocation47_spill] sm:$0xff] %v7466_v53  ;;  %v7468_v24 = vpop.permute.xlu0 %2202  ;;  %v2131_v53 = vrot.slane %v2119_v57, 1  ;;  %v2123_v57 = vmul.f32 %v9910_v63, %v2117_v55  ;;  %v2108_v55 = vmul.f32 %v7340_v62, %v2103_v14  ;;  %v2172_v62 = vrot.slane %v2158_v23, 2 }
 0x356   :  { %v2168_v49 = vsel %vm203_vm4, %v2166_v22, %v2167_v2  ;;  %v2148_v40 = vadd.f32 %v2133_v19, %v2112_v47  ;;  %v2170_v39 = vsel %vm203_vm4, %v2167_v2, %v2169_v36 }
 0x357   :  { %v2132_v56 = vsel %vm166_vm3, %v2130_v48, %v2131_v53  ;;  %v2134_v28 = vsel %vm166_vm3, %v2131_v53, %v2133_v19  ;;  %v2138_v15 = vrot.slane %v2123_v57, 1  ;;  %v2109_v53 = vmul.f32 %v9910_v63, %v2103_v14 }
 0x358   :  { %v7470_v50 = vpop.permute.xlu1 %2204  ;;  %v2146_v0 = vadd.f32 %v2132_v56, %v2110_v51  ;;  %v2147_v16 = vadd.f32 %v2134_v28, %v2111_v35  ;;  %v2114_v12 = vadd.f32 %v2108_v55, %v2101_v41  ;;  %v2149_v35 = vadd.f32 %v2137_v6, %v2113_v20 }
 0x359   :  { %v7472_v10 = vpop.permute.xlu0 %2206  ;;  %v2139_v51 = vsel %vm166_vm3, %v2136_v25, %v2138_v15  ;;  %v2115_v63 = vadd.f32 %v2109_v53, %v2101_v41  ;;  %v2173_v60 = vsel %vm203_vm4, %v2171_v31, %v2172_v62  ;;  %v2184_v23 = vadd.f32 %v2169_v36, %v2148_v40 }
 0x35a   :  { %v2182_v56 = vadd.f32 %v2168_v49, %v2146_v0  ;;  %v2183_v22 = vadd.f32 %v2170_v39, %v2147_v16  ;;  %v2150_v28 = vadd.f32 %v2139_v51, %v2114_v12  ;;  %v2175_v25 = vsel %vm203_vm4, %v2172_v62, %v2174_v54 }
 0x35b   :  { %v2151_v2 = vadd.f32 %v2138_v15, %v2115_v63  ;;  %v2185_v6 = vadd.f32 %v2173_v60, %v2149_v35  ;;  %v2543_v20 = vstv %s7545_s16  ;;  %s5490_s16 = sld [smem:[#allocation8 + $0x2e]] }
 0x35c   :  { %v7474_v37 = vpop.permute.xlu1 %2208  ;;  %v2220_v57 = vadd.f32 %v7468_v24, %v2182_v56  ;;  %v2221_v49 = vadd.f32 %v7470_v50, %v2183_v22  ;;  %v2222_v24 = vadd.f32 %v7472_v10, %v2184_v23  ;;  %v2186_v41 = vadd.f32 %v2175_v25, %v2150_v28  ;;  %v9937_v25 = vld [vmem:[#allocation19_spill] sm:$0xff] }
 0x35d   :  { %v7476_v42 = vpop.permute.xlu0 %2210  ;;  %v2223_v50 = vadd.f32 %v7474_v37, %v2185_v6  ;;  %v2187_v10 = vadd.f32 %v2174_v54, %v2151_v2 }
 0x35e   :  { %v2224_v55 = vadd.f32 %v7476_v42, %v2186_v41 }
 0x360   :  { %v7478_v8 = vpop.permute.xlu1 %2212 }
 0x361   :  { %v7480_v61 = vpop.permute.xlu0 %2250  ;;  %v2225_v37 = vadd.f32 %v7478_v8, %v2187_v10 }
 0x362   :  { %v2268_v17 = vadd.f32 %v7480_v61, %v2220_v57 }
 0x364   :  { %v7482_v29 = vpop.permute.xlu1 %2252 }
 0x365   :  { %v7484_v43 = vpop.permute.xlu0 %2254  ;;  %v2269_v31 = vadd.f32 %v7482_v29, %v2221_v49 }
 0x366   :  { %v2270_v62 = vadd.f32 %v7484_v43, %v2222_v24  ;;  %v7601_v24 = vstv %s7566_s18  ;;  %s5492_s18 = sld [smem:[#allocation8 + $0x34]] }
 0x368   :  { %v7486_v58 = vpop.permute.xlu1 %2256 }
 0x369   :  { %v7488_v27 = vpop.permute.xlu0 %2258  ;;  %v2271_v29 = vadd.f32 %v7486_v58, %v2223_v50 }
 0x36a   :  { %v2272_v43 = vadd.f32 %v7488_v27, %v2224_v55 }
 0x36c   :  { %v7490_v34 = vpop.permute.xlu1 %2260 }
 0x36d   :  { %v7492_v21 = vpop.permute.xlu0 %2298  ;;  %v2273_v8 = vadd.f32 %v7490_v34, %v2225_v37  ;;  %v9942_v37 = vld [vmem:[#allocation30_spill] sm:$0xff] }
 0x36e   :  { %v2316_v12 = vadd.f32 %v7492_v21, %v2268_v17 }
 0x370   :  { %v7494_v3 = vpop.permute.xlu1 %2300 }
 0x371   :  { %v7496_v7 = vpop.permute.xlu0 %2302  ;;  %v2317_v15 = vadd.f32 %v7494_v3, %v2269_v31  ;;  %v7562_v3 = vstv %s5459_s14  ;;  %s8110_s14 = sld [smem:[#allocation11 + $0x2c]] }
 0x372   :  { %v2318_v21 = vadd.f32 %v7496_v7, %v2270_v62  ;;  %v9940_v62 = vld [vmem:[#allocation43_spill] sm:$0xff] }
 0x374   :  { %v7498_v38 = vpop.permute.xlu1 %2304 }
 0x375   :  { %v7500_v59 = vpop.permute.xlu0 %2306  ;;  %v2319_v42 = vadd.f32 %v7498_v38, %v2271_v29 }
 0x376   :  { %v2320_v27 = vadd.f32 %v7500_v59, %v2272_v43 }
 0x378   :  { %v7503_v45 = vpop.permute.xlu1 %2308 }
 0x379   :  { %v7507_v26 = vpop.permute.xlu0 %2336  ;;  %v2321_v38 = vadd.f32 %v7503_v45, %v2273_v8 }
 0x37a   :  { %v2354_v61 = vadd.f32 %v7507_v26, %v2316_v12  ;;  %v7564_v26 = vstv %s5460_s15  ;;  %s8135_s15 = sld [smem:[#allocation11 + $0x24]] }
 0x37c   :  { %v7512_v30 = vpop.permute.xlu1 %2338 }
 0x37d   :  { %v7517_v18 = vpop.permute.xlu0 %2340  ;;  %v2355_v47 = vadd.f32 %v7512_v30, %v2317_v15 }
 0x37e   :  { %v2356_v58 = vadd.f32 %v7517_v18, %v2318_v21  ;;  %v1910_v18 = vadd.f32 %v7416_v52, %v7278_v13  ;;  %v9934_v13 = vld [vmem:[#allocation36_spill] sm:$0xff]  ;;  %v9935_v52 = vld [vmem:[#allocation31_spill] sm:$0xff] }
 0x37f   :  { %v1913_v45 = vadd.f32 %v9935_v52, %v9934_v13 }
 0x380   :  { %v7523_v1 = vpop.permute.xlu1 %2342  ;;  %v1950_v17 = vadd.f32 %v9937_v25, %v1910_v18 }
 0x381   :  { %v7530_v48 = vpop.permute.xlu0 %2344  ;;  %v2357_v56 = vadd.f32 %v7523_v1, %v2319_v42 }
 0x382   :  { %v2358_v39 = vadd.f32 %v7530_v48, %v2320_v27  ;;  %v1990_v43 = vadd.f32 %v9942_v37, %v1950_v17  ;;  %v9951_v17 = vld [vmem:[#allocation24_spill] sm:$0xff]  ;;  %v9956_v37 = vld [vmem:[#allocation46_spill] sm:$0xff] }
 0x384   :  { %v7534_v33 = vpop.permute.xlu1 %2346 }
 0x385   :  { %v2385_v5 = vpop.permute.xlu0 %2384  ;;  %v2359_v48 = vadd.f32 %v7534_v33, %v2321_v38 }
 0x386   :  { %v2402_v36 = vadd.f32 %v2385_v5, %v2354_v61  ;;  %v1911_v5 = vadd.f32 %v7420_v4, %v7211_v11  ;;  %v2569_v11 = vstv %s7550_s17  ;;  %v9941_v61 = vld [vmem:[#allocation22_spill] sm:$0xff]  ;;  %s5491_s17 = sld [smem:[#allocation8 + $0x31]] }
 0x387   :  { %v1953_v55 = vadd.f32 %v9941_v61, %v1913_v45  ;;  %v7648_v45 = vstv %s7603_s1  ;;  %s5494_s1 = sld [smem:[#allocation8 + $0x32]] }
 0x388   :  { %v2387_v14 = vpop.permute.xlu1 %2386 }
 0x389   :  { %v2389_v46 = vpop.permute.xlu0 %2388  ;;  %v2403_v7 = vadd.f32 %v2387_v14, %v2355_v47  ;;  %v9933_v14 = vld [vmem:[#allocation18_spill] sm:$0xff] }
 0x38a   :  { %v2404_v40 = vadd.f32 %v2389_v46, %v2356_v58  ;;  %v1912_v57 = vadd.f32 %v9933_v14, %v7287_v32 }
 0x38c   :  { %v2391_v19 = vpop.permute.xlu1 %2390  ;;  %v1952_v15 = vadd.f32 %v9940_v62, %v1912_v57  ;;  %v9948_v57 = vld [vmem:[#allocation27_spill] sm:$0xff]  ;;  %v9954_v62 = vld [vmem:[#allocation44_spill] sm:$0xff] }
 0x38d   :  { %v2393_v9 = vpop.permute.xlu0 %2392  ;;  %v2405_v4 = vadd.f32 %v2391_v19, %v2357_v56 }
 0x38e   :  { %v2406_v60 = vadd.f32 %v2393_v9, %v2358_v39  ;;  %v9939_v9 = vld [vmem:[#allocation20_spill] sm:$0xff] }
 0x38f   :  { %v1951_v50 = vadd.f32 %v9939_v9, %v1911_v5  ;;  %v9953_v9 = vld [vmem:[#allocation40_spill] sm:$0xff] }
 0x390   :  { %v2395_v0 = vpop.permute.xlu1 %2394 }
 0x391   :  { %v2433_v53 = vpop.permute.xlu0 %2432  ;;  %v2407_v2 = vadd.f32 %v2395_v0, %v2359_v48 }
 0x392   :  { %v2450_v30 = vadd.f32 %v2433_v53, %v2402_v36  ;;  %v9943_v53 = vld [vmem:[#allocation23_spill] sm:$0xff] }
 0x393   :  { %v1991_v42 = vadd.f32 %v9943_v53, %v1951_v50  ;;  %v9957_v53 = vld [vmem:[#allocation47_spill] sm:$0xff] }
 0x394   :  { %v2435_v16 = vpop.permute.xlu1 %2434  ;;  %v2456_v51 = vmax.f32 %v2450_v30, 0.0 }
 0x395   :  { %v2451_v54 = vadd.f32 %v2435_v16, %v2403_v7  ;;  %v2437_v63 = vpop.permute.xlu0 %2436  ;;  %v7624_v7 = vstv %s7581_s0  ;;  %v9944_v16 = vld [vmem:[#allocation38_spill] sm:$0xff]  ;;  %s5493_s0 = sld [smem:[#allocation8 + $0x2f]] }
 0x396   :  { %v7585_v34 = vsel %vm6337_vm12, %v2456_v51, 0.0  ;;  %v2452_v59 = vadd.f32 %v2437_v63, %v2404_v40  ;;  %v1992_v56 = vadd.f32 %v9944_v16, %v1952_v15  ;;  %v9945_v40 = vld [vmem:[#allocation32_spill] sm:$0xff] }
 0x397   :  { %v2457_v1 = vmax.f32 %v2451_v54, 0.0  ;;  %v2544_v35 = vmul.f32 %v2543_v20, %v7585_v34  ;;  %v2570_v0 = vmul.f32 %v2569_v11, %v7585_v34  ;;  %v1993_v51 = vadd.f32 %v9945_v40, %v1953_v55  ;;  %v9946_v54 = vld [vmem:[#allocation39_spill] sm:$0xff] }
 0x398   :  { %v2439_v22 = vpop.permute.xlu1 %2438  ;;  %v2458_v49 = vmax.f32 %v2452_v59, 0.0  ;;  %v2016_v18 = vadd.f32 %v9946_v54, %v1990_v43  ;;  %v9947_v59 = vld [vmem:[#allocation25_spill] sm:$0xff]  ;;  %v2018_v13 = vadd.f32 %v9948_v57, %v1992_v56  ;;  %v2650_v16 = vmul.f32 %v7624_v7, %v7585_v34 }
 0x399   :  { %v7595_v46 = vsel %vm6369_vm13, %v2457_v1, 0.0  ;;  %v2453_v23 = vadd.f32 %v2439_v22, %v2405_v4  ;;  %2552 = vrot.lane.b32.xlu0 %v2544_v35, %s5683_s21  ;;  %v2441_v32 = vpop.permute.xlu0 %2440  ;;  %v2582_v63 = vrot.slane %v2570_v0, 1  ;;  %v2017_v14 = vadd.f32 %v9947_v59, %v1991_v42 }
 0x39a   :  { %v2545_v19 = vmul.f32 %v2543_v20, %v7595_v46  ;;  %v7607_v6 = vsel %vm6286_vm9, %v2458_v49, 0.0  ;;  %v2454_v12 = vadd.f32 %v2441_v32, %v2406_v60  ;;  %v2571_v41 = vmul.f32 %v2569_v11, %v7595_v46  ;;  %v9949_v60 = vld [vmem:[#allocation28_spill] sm:$0xff] }
 0x39b   :  { %v2459_v31 = vmax.f32 %v2453_v23, 0.0  ;;  %v2572_v36 = vmul.f32 %v2569_v11, %v7607_v6  ;;  %v2611_v35 = vmul.f32 %v7601_v24, %v7595_v46  ;;  %v2019_v49 = vadd.f32 %v9949_v60, %v1993_v51  ;;  %v9950_v23 = vld [vmem:[#allocation29_spill] sm:$0xff] }
 0x39c   :  { %2554 = vrot.lane.b32.xlu1 %v2545_v19, %s5683_s21  ;;  %v2443_v10 = vpop.permute.xlu1 %2442  ;;  %v2460_v21 = vmax.f32 %v2454_v12, 0.0  ;;  %v2583_v8 = vrot.slane %v2571_v41, 1  ;;  %v2056_v25 = vadd.f32 %v9950_v23, %v2016_v18  ;;  %v9952_v19 = vld [vmem:[#allocation26_spill] sm:$0xff]  ;;  %v2610_v12 = vmul.f32 %v7601_v24, %v7585_v34 }
 0x39d   :  { %v7617_v29 = vsel %vm6337_vm12, %v2459_v31, 0.0  ;;  %v2455_v47 = vadd.f32 %v2443_v10, %v2407_v2  ;;  %v2585_v4 = vrot.slane %v2572_v36, 1  ;;  %v2057_v2 = vadd.f32 %v9951_v17, %v2017_v14  ;;  %v9955_v10 = vld [vmem:[#allocation45_spill] sm:$0xff] }
 0x39e   :  { %v2546_v58 = vmul.f32 %v2543_v20, %v7617_v29  ;;  %v7628_v30 = vsel %vm6369_vm13, %v2460_v21, 0.0  ;;  %v2573_v27 = vmul.f32 %v2569_v11, %v7617_v29  ;;  %v2612_v41 = vmul.f32 %v7601_v24, %v7607_v6 }
 0x39f   :  { %v2461_v5 = vmax.f32 %v2455_v47, 0.0  ;;  %v2547_v38 = vmul.f32 %v2543_v20, %v7628_v30  ;;  %v2574_v1 = vmul.f32 %v2569_v11, %v7628_v30  ;;  %v2584_v20 = vsel %vm166_vm3, %v2582_v63, %v2583_v8 }
 0x3a0   :  { %2556 = vrot.lane.b32.xlu0 %v2546_v58, %s5683_s21  ;;  %v2587_v48 = vrot.slane %v2573_v27, 1  ;;  %v2586_v31 = vsel %vm166_vm3, %v2583_v8, %v2585_v4  ;;  %v2059_v50 = vadd.f32 %v9953_v9, %v2019_v49  ;;  %v2096_v15 = vadd.f32 %v9954_v62, %v2056_v25 }
 0x3a1   :  { %v7640_v39 = vsel %vm6286_vm9, %v2461_v5, 0.0  ;;  %2558 = vrot.lane.b32.xlu1 %v2547_v38, %s5683_s21  ;;  %v2588_v22 = vrot.slane %v2574_v1, 1  ;;  %v2613_v61 = vmul.f32 %v7601_v24, %v7617_v29  ;;  %v2614_v55 = vmul.f32 %v7601_v24, %v7628_v30 }
 0x3a2   :  { %v2575_v52 = vmul.f32 %v2569_v11, %v7640_v39  ;;  %v2058_v11 = vadd.f32 %v9952_v19, %v2018_v13  ;;  %v2097_v0 = vadd.f32 %v9955_v10, %v2057_v2  ;;  %v2623_v36 = vrot.slane %v2611_v35, 2 }
 0x3a3   :  { %v2589_v21 = vsel %vm166_vm3, %v2587_v48, %v2588_v22  ;;  %v2099_v42 = vadd.f32 %v9957_v53, %v2059_v50  ;;  %v2615_v58 = vmul.f32 %v7601_v24, %v7640_v39  ;;  %v2469_v5 = vstv %s7636_s3  ;;  %s5495_s3 = sld [smem:[#allocation8 + $0x35]] }
 0x3a4   :  { %2592 = vrot.lane.b32.xlu0 %v2584_v20, %s5683_s21  ;;  %v2590_v32 = vrot.slane %v2575_v52, 1  ;;  %v7674_v43 = vadd.f32 %v9956_v37, %v2058_v11  ;;  %v2622_v8 = vrot.slane %v2610_v12, 2  ;;  %v2625_v27 = vrot.slane %v2612_v41, 2 }
 0x3a5   :  { %2594 = vrot.lane.b32.xlu1 %v2586_v31, %s5683_s21  ;;  %v7685_v56 = vmul.f32 %v7648_v45, %v7585_v34  ;;  %v2481_v40 = vmul.f32 %v7562_v3, %v7595_v46  ;;  %v2513_v51 = vmul.f32 %v7564_v26, %v7595_v46  ;;  %v2627_v54 = vrot.slane %v2613_v61, 2 }
 0x3a6   :  { %v2591_v47 = vsel %vm166_vm3, %v2588_v22, %v2590_v32  ;;  %v2628_v24 = vrot.slane %v2614_v55, 2  ;;  %v2482_v18 = vmul.f32 %v7562_v3, %v7607_v6  ;;  %v7696_v38 = vmul.f32 %v7562_v3, %v7628_v30 }
 0x3a7   :  { %v7700_v63 = vmul.f32 %v7564_v26, %v7628_v30  ;;  %v2624_v4 = vsel %vm203_vm4, %v2622_v8, %v2623_v36  ;;  %v2485_v1 = vmul.f32 %v7562_v3, %v7640_v39  ;;  %v2630_v59 = vrot.slane %v2615_v58, 2 }
 0x3a8   :  { %2596 = vrot.lane.b32.xlu0 %v2589_v21, %s5683_s21  ;;  %v2651_v14 = vmul.f32 %v7624_v7, %v7595_v46  ;;  %v2470_v57 = vmul.f32 %v2469_v5, %v7585_v34  ;;  %v2626_v13 = vsel %vm203_vm4, %v2623_v36, %v2625_v27  ;;  %v2652_v52 = vmul.f32 %v7624_v7, %v7617_v29 }
 0x3a9   :  { %2598 = vrot.lane.b32.xlu1 %v2591_v47, %s5683_s21  ;;  %v7714_v20 = vmul.f32 %v7648_v45, %v7595_v46  ;;  %v2480_v48 = vmul.f32 %v7562_v3, %v7585_v34  ;;  %v2629_v22 = vsel %vm203_vm4, %v2627_v54, %v2628_v24  ;;  %v7722_v35 = vmul.f32 %v7648_v45, %v7607_v6 }
 0x3aa   :  { %v2493_v60 = vrot.slane %v2481_v40, 1  ;;  %v2512_v49 = vmul.f32 %v7564_v26, %v7585_v34  ;;  %v2525_v25 = vrot.slane %v2513_v51, 2  ;;  %v2474_v17 = vadd.f32 %v2470_v57, %v2096_v15 }
 0x3ab   :  { %v2492_v23 = vrot.slane %v2480_v48, 1  ;;  %v2471_v2 = vmul.f32 %v2469_v5, %v7595_v46  ;;  %v2631_v32 = vsel %vm203_vm4, %v2628_v24, %v2630_v59  ;;  %v2679_v19 = vmul.f32 %v7648_v45, %v7617_v29 }
 0x3ac   :  { %2632 = vrot.lane.b32.xlu0 %v2624_v4, %s5683_s21  ;;  %v2524_v11 = vrot.slane %v2512_v49, 2  ;;  %v2495_v31 = vrot.slane %v2482_v18, 1  ;;  %v2514_v9 = vmul.f32 %v7564_v26, %v7607_v6  ;;  %v2500_v50 = vrot.slane %v2485_v1, 1 }
 0x3ad   :  { %2634 = vrot.lane.b32.xlu1 %v2626_v13, %s5683_s21  ;;  %v2494_v12 = vsel %vm166_vm3, %v2492_v23, %v2493_v60  ;;  %v2475_v41 = vadd.f32 %v2471_v2, %v2097_v0  ;;  %v2517_v55 = vmul.f32 %v7564_v26, %v7640_v39  ;;  %v2473_v0 = vmul.f32 %v2469_v5, %v7628_v30 }
 0x3ae   :  { %v2526_v62 = vsel %vm203_vm4, %v2524_v11, %v2525_v25  ;;  %v2506_v15 = vadd.f32 %v2494_v12, %v2474_v17  ;;  %v2496_v61 = vsel %vm166_vm3, %v2493_v60, %v2495_v31  ;;  %v2527_v21 = vrot.slane %v2514_v9, 2  ;;  %v9959_v9 = vld [vmem:[#allocation37_spill] sm:$0xff] }
 0x3af   :  { %v2507_v10 = vadd.f32 %v2496_v61, %v2475_v41  ;;  %v2498_v47 = vrot.slane %v7696_v38, 1  ;;  %v2532_v37 = vrot.slane %v2517_v55, 2  ;;  %v2530_v53 = vrot.slane %v7700_v63, 2  ;;  %v9961_v61 = vld [vmem:[#allocation21_spill] sm:$0xff] }
 0x3b0   :  { %2636 = vrot.lane.b32.xlu0 %v2629_v22, %s5683_s21  ;;  %v7744_v36 = vadd.f32 %v2526_v62, %v2506_v15  ;;  %v2472_v58 = vmul.f32 %v2469_v5, %v7617_v29  ;;  %v2528_v8 = vsel %vm203_vm4, %v2525_v25, %v2527_v21  ;;  %v2477_v27 = vadd.f32 %v2473_v0, %v2099_v42  ;;  %v9960_v62 = vld [vmem:[#allocation41_spill] sm:$0xff] }
 0x3b1   :  { %2638 = vrot.lane.b32.xlu1 %v2631_v32, %s5683_s21  ;;  %v2501_v40 = vsel %vm166_vm3, %v2498_v47, %v2500_v50  ;;  %v2483_v51 = vmul.f32 %v7562_v3, %v7617_v29  ;;  %v7753_v54 = vadd.f32 %v2528_v8, %v2507_v10  ;;  %v2515_v5 = vmul.f32 %v7564_v26, %v7617_v29  ;;  %v9962_v0 = vld [vmem:[#allocation17_spill] sm:$0xff] }
 0x3b2   :  { %v2476_v24 = vadd.f32 %v2472_v58, %v7674_v43  ;;  %v2689_v18 = vrot.slane %v7714_v20, 1  ;;  %v2680_v42 = vmul.f32 %v7648_v45, %v7628_v30  ;;  %v2509_v38 = vadd.f32 %v2501_v40, %v2477_v27  ;;  %v9963_v58 = vld [vmem:[#allocation42_spill] sm:$0xff]  ;;  %v7812_v40 = vld [vmem:[#allocation2 + $0x28] sm:$0xf] }
 0x3b3   :  { %v2497_v63 = vrot.slane %v2483_v51, 1  ;;  %v2653_v3 = vmul.f32 %v7624_v7, %v7628_v30  ;;  %v2688_v4 = vrot.slane %v7685_v56, 1  ;;  %v2529_v1 = vrot.slane %v2515_v5, 2 }
 0x3b4   :  { %2658 = vrot.lane.b32.xlu0 %v2650_v16, %s5684_s23  ;;  %v2533_v16 = vsel %vm203_vm4, %v2530_v53, %v2532_v37  ;;  %v2691_v43 = vrot.slane %v7722_v35, 1  ;;  %v2681_v26 = vmul.f32 %v7648_v45, %v7640_v39  ;;  %v2715_v57 = vstv %s7735_s19  ;;  %s5488_s19 = sld [smem:[#allocation8 + $0x30]] }
 0x3b5   :  { %2660 = vrot.lane.b32.xlu1 %v2651_v14, %s5684_s23  ;;  %v7769_v59 = vadd.f32 %v2533_v16, %v2509_v38  ;;  %v2499_v14 = vsel %vm166_vm3, %v2497_v63, %v2498_v47  ;;  %v2690_v7 = vsel %vm166_vm3, %v2688_v4, %v2689_v18  ;;  %v2693_v20 = vrot.slane %v2679_v19, 1 }
 0x3b6   :  { %v2508_v13 = vadd.f32 %v2499_v14, %v2476_v24  ;;  %v2694_v56 = vrot.slane %v2680_v42, 1  ;;  %v2717_v48 = vmul.f32 %v2715_v57, %v7595_v46  ;;  %v2692_v45 = vsel %vm166_vm3, %v2689_v18, %v2691_v43 }
 0x3b7   :  { %9958 = vst [vmem:[#allocation18_spill] sm:$0xff] %v7769_v59  ;;  %v2696_v35 = vrot.slane %v2681_v26, 1  ;;  %v2716_v60 = vmul.f32 %v2715_v57, %v7585_v34  ;;  %v2718_v49 = vmul.f32 %v2715_v57, %v7607_v6  ;;  %v2719_v17 = vmul.f32 %v2715_v57, %v7617_v29 }
 0x3b8   :  { %2662 = vrot.lane.b32.xlu0 %v2652_v52, %s5684_s23  ;;  %v2531_v52 = vsel %vm203_vm4, %v2529_v1, %v2530_v53  ;;  %v2695_v23 = vsel %vm166_vm3, %v2693_v20, %v2694_v56  ;;  %v2729_v25 = vrot.slane %v2717_v48, 2  ;;  %v2720_v46 = vmul.f32 %v2715_v57, %v7628_v30 }
 0x3b9   :  { %2664 = vrot.lane.b32.xlu1 %v2653_v3, %s5684_s23  ;;  %v7778_v22 = vadd.f32 %v2531_v52, %v2508_v13  ;;  %v2697_v2 = vsel %vm166_vm3, %v2694_v56, %v2696_v35  ;;  %v2728_v32 = vrot.slane %v2716_v60, 2  ;;  %v2731_v19 = vrot.slane %v2718_v49, 2  ;;  %v7827_v13 = vld [vmem:[#allocation2 + $0x10] sm:$0xf]  ;;  %v7836_v60 = vld [vmem:[#allocation2 + $0x20] sm:$0xff] }
 0x3ba   :  { %v2721_v34 = vmul.f32 %v2715_v57, %v7640_v39  ;;  %v2733_v11 = vrot.slane %v2719_v17, 2  ;;  %v2734_v31 = vrot.slane %v2720_v46, 2  ;;  %v2843_v41 = vstv %s5471_s20  ;;  %9964 = vst [vmem:[#allocation36_spill] sm:$0xff] %v7827_v13  ;;  %9966 = vst [vmem:[#allocation19_spill] sm:$0xff] %v7836_v60  ;;  %s5487_s20 = sld [smem:[#allocation8 + $0x2d]] }
 0x3bb   :  { %v2730_v6 = vsel %vm203_vm4, %v2728_v32, %v2729_v25  ;;  %v2732_v29 = vsel %vm203_vm4, %v2729_v25, %v2731_v19  ;;  %v2844_v50 = vmul.f32 %v9959_v9, %v2843_v41  ;;  %v2845_v15 = vmul.f32 %v9960_v62, %v2843_v41 }
 0x3bc   :  { %2698 = vrot.lane.b32.xlu0 %v2690_v7, %s5684_s23  ;;  %v2736_v30 = vrot.slane %v2721_v34, 2  ;;  %v2735_v12 = vsel %vm203_vm4, %v2733_v11, %v2734_v31  ;;  %v2846_v55 = vmul.f32 %v9961_v61, %v2843_v41  ;;  %v2881_v10 = vstv %s5472_s22  ;;  %v7851_v11 = vld [vmem:[#allocation2] sm:$0xff]  ;;  %s5489_s22 = sld [smem:[#allocation8 + $0x33]] }
 0x3bd   :  { %2700 = vrot.lane.b32.xlu1 %v2692_v45, %s5684_s23  ;;  %v2883_v21 = vmul.f32 %v9960_v62, %v2881_v10  ;;  %v2847_v47 = vmul.f32 %v9962_v0, %v2843_v41  ;;  %v2882_v37 = vmul.f32 %v9959_v9, %v2881_v10  ;;  %v2884_v53 = vmul.f32 %v9961_v61, %v2881_v10  ;;  %v7833_v45 = vld [vmem:[#allocation2 + $0x18] sm:$0xff] }
 0x3be   :  { %v2737_v39 = vsel %vm203_vm4, %v2734_v31, %v2736_v30  ;;  %v2848_v8 = vmul.f32 %v9963_v58, %v2843_v41  ;;  %v2849_v51 = vmul.f32 %v7812_v40, %v2843_v41  ;;  %v2885_v5 = vmul.f32 %v9962_v0, %v2881_v10  ;;  %9965 = vst [vmem:[#allocation31_spill] sm:$0xff] %v7833_v45 }
 0x3bf   :  { %v2895_v27 = vrot.slane %v2883_v21, 1  ;;  %v2894_v16 = vrot.slane %v2882_v37, 1  ;;  %v2897_v24 = vrot.slane %v2884_v53, 1  ;;  %v2886_v18 = vmul.f32 %v9963_v58, %v2881_v10  ;;  %9967 = vst [vmem:[#allocation20_spill] sm:$0xff] %v7851_v11 }
 0x3c0   :  { %2702 = vrot.lane.b32.xlu0 %v2695_v23, %s5684_s23  ;;  %v2887_v38 = vmul.f32 %v7812_v40, %v2881_v10  ;;  %v2899_v3 = vrot.slane %v2885_v5, 1  ;;  %v2929_v1 = vstv %s5473_s4  ;;  %v3015_v41 = vstv %s5475_s25  ;;  %s5486_s4 = sld [smem:[#allocation9 + $0x5]]  ;;  %s8517_s25 = sld [smem:[#allocation11 + $0x31]] }
 0x3c1   :  { %2704 = vrot.lane.b32.xlu1 %v2697_v2, %s5684_s23  ;;  %v2896_v42 = vsel %vm166_vm3, %v2894_v16, %v2895_v27  ;;  %v2898_v63 = vsel %vm166_vm3, %v2895_v27, %v2897_v24  ;;  %v2900_v4 = vrot.slane %v2886_v18, 1  ;;  %v2931_v26 = vmul.f32 %v9960_v62, %v2929_v1 }
 0x3c2   :  { %v2902_v43 = vrot.slane %v2887_v38, 1  ;;  %v2930_v57 = vmul.f32 %v9959_v9, %v2929_v1  ;;  %v2932_v52 = vmul.f32 %v7827_v13, %v2929_v1  ;;  %v2933_v35 = vmul.f32 %v7833_v45, %v2929_v1 }
 0x3c3   :  { %v2901_v14 = vsel %vm166_vm3, %v2899_v3, %v2900_v4  ;;  %v2943_v20 = vrot.slane %v2931_v26, 2  ;;  %v2934_v49 = vmul.f32 %v7836_v60, %v2929_v1  ;;  %v2935_v25 = vmul.f32 %v7812_v40, %v2929_v1 }
 0x3c4   :  { %2738 = vrot.lane.b32.xlu0 %v2730_v6, %s5684_s23  ;;  %v2903_v7 = vsel %vm166_vm3, %v2900_v4, %v2902_v43  ;;  %v2942_v56 = vrot.slane %v2930_v57, 2  ;;  %v2945_v48 = vrot.slane %v2932_v52, 2  ;;  %v2947_v46 = vrot.slane %v2933_v35, 2 }
 0x3c5   :  { %2740 = vrot.lane.b32.xlu1 %v2732_v29, %s5684_s23  ;;  %v2948_v2 = vrot.slane %v2934_v49, 2  ;;  %v2950_v32 = vrot.slane %v2935_v25, 2  ;;  %v2977_v6 = vstv %s5474_s24  ;;  %v7855_v29 = vld [vmem:[#allocation2 + $0x8] sm:$0xff]  ;;  %v3018_v62 = vmul.f32 %v7827_v13, %v3015_v41  ;;  %s5499_s24 = sld [smem:[#allocation11 + $0x2e]] }
 0x3c6   :  { %v2944_v23 = vsel %vm203_vm4, %v2942_v56, %v2943_v20  ;;  %v2946_v17 = vsel %vm203_vm4, %v2943_v20, %v2945_v48  ;;  %v2978_v31 = vmul.f32 %v7851_v11, %v2977_v6  ;;  %9968 = vst [vmem:[#allocation43_spill] sm:$0xff] %v7855_v29  ;;  %v2979_v30 = vmul.f32 %v7855_v29, %v2977_v6 }
 0x3c7   :  { %v2949_v19 = vsel %vm203_vm4, %v2947_v46, %v2948_v2  ;;  %v2951_v34 = vsel %vm203_vm4, %v2948_v2, %v2950_v32  ;;  %v2981_v9 = vmul.f32 %v7833_v45, %v2977_v6  ;;  %v3031_v21 = vrot.slane %v3018_v62, 1 }
 0x3c8   :  { %2742 = vrot.lane.b32.xlu0 %v2735_v12, %s5684_s23  ;;  %v2980_v12 = vmul.f32 %v7827_v13, %v2977_v6  ;;  %v3019_v0 = vmul.f32 %v7833_v45, %v3015_v41  ;;  %v3021_v53 = vmul.f32 %v7812_v40, %v3015_v41 }
 0x3c9   :  { %2744 = vrot.lane.b32.xlu1 %v2737_v39, %s5684_s23  ;;  %v3017_v39 = vmul.f32 %v7855_v29, %v3015_v41 }
 0x3ca   :  { %v3036_v16 = vrot.slane %v3021_v53, 1 }
 0x3cb   :  { %v3029_v61 = vrot.slane %v3017_v39, 1 }
 0x3cc   :  { %2856 = vrot.lane.b32.xlu0 %v2844_v50, %s5683_s21  ;;  %v3016_v50 = vmul.f32 %v7851_v11, %v3015_v41 }
 0x3cd   :  { %2858 = vrot.lane.b32.xlu1 %v2845_v15, %s5683_s21  ;;  %v2982_v15 = vmul.f32 %v7836_v60, %v2977_v6  ;;  %v3032_v58 = vsel %vm166_vm3, %v3029_v61, %v3031_v21 }
 0x3ce   :  { %v3028_v10 = vrot.slane %v3016_v50, 1 }
 0x3d0   :  { %2860 = vrot.lane.b32.xlu0 %v2846_v55, %s5683_s21  ;;  %v2983_v55 = vmul.f32 %v7812_v40, %v2977_v6  ;;  %v3030_v37 = vsel %vm166_vm3, %v3028_v10, %v3029_v61 }
 0x3d1   :  { %2862 = vrot.lane.b32.xlu1 %v2847_v47, %s5683_s21  ;;  %v3020_v47 = vmul.f32 %v7836_v60, %v3015_v41 }
 0x3d3   :  { %v3034_v27 = vrot.slane %v3020_v47, 1 }
 0x3d4   :  { %2864 = vrot.lane.b32.xlu0 %v2848_v8, %s5683_s21  ;;  %v3033_v8 = vrot.slane %v3019_v0, 1 }
 0x3d5   :  { %2866 = vrot.lane.b32.xlu1 %v2849_v51, %s5683_s21  ;;  %v3063_v51 = vstv %s5476_s26  ;;  %v3037_v38 = vsel %vm166_vm3, %v3034_v27, %v3036_v16  ;;  %s8527_s26 = sld [smem:[#allocation11 + $0x34]] }
 0x3d6   :  { %v3035_v5 = vsel %vm166_vm3, %v3033_v8, %v3034_v27  ;;  %v3064_v18 = vmul.f32 %v7851_v11, %v3063_v51  ;;  %v3067_v1 = vmul.f32 %v7833_v45, %v3063_v51 }
 0x3d8   :  { %2904 = vrot.lane.b32.xlu0 %v2896_v42, %s5683_s21  ;;  %v3066_v42 = vmul.f32 %v7827_v13, %v3063_v51  ;;  %v3076_v3 = vrot.slane %v3064_v18, 2  ;;  %v3081_v52 = vrot.slane %v3067_v1, 2  ;;  %v2771_v1 = vstv %s5469_s27  ;;  %s8547_s27 = sld [smem:[#allocation11 + $0x2f]] }
 0x3d9   :  { %2906 = vrot.lane.b32.xlu1 %v2898_v63, %s5683_s21 }
 0x3da   :  { %v3079_v4 = vrot.slane %v3066_v42, 2 }
 0x3dc   :  { %2908 = vrot.lane.b32.xlu0 %v2897_v24, %s5683_s21  ;;  %v3065_v24 = vmul.f32 %v7855_v29, %v3063_v51 }
 0x3dd   :  { %2910 = vrot.lane.b32.xlu1 %v2901_v14, %s5683_s21  ;;  %v3069_v14 = vmul.f32 %v7812_v40, %v3063_v51 }
 0x3de   :  { %v3077_v63 = vrot.slane %v3065_v24, 2 }
 0x3df   :  { %v3084_v20 = vrot.slane %v3069_v14, 2  ;;  %v2757_v14 = vstv %s5468_s28  ;;  %s8596_s28 = sld [smem:[#allocation11 + $0x32]] }
 0x3e0   :  { %2912 = vrot.lane.b32.xlu0 %v2903_v7, %s5683_s21  ;;  %v3078_v26 = vsel %vm203_vm4, %v3076_v3, %v3077_v63  ;;  %v3080_v57 = vsel %vm203_vm4, %v3077_v63, %v3079_v4 }
 0x3e1   :  { %2914 = vrot.lane.b32.xlu1 %v2902_v43, %s5683_s21  ;;  %v3068_v43 = vmul.f32 %v7836_v60, %v3063_v51 }
 0x3e3   :  { %v3082_v7 = vrot.slane %v3068_v43, 2  ;;  %v2773_v43 = vmul.f32 %v7855_v29, %v2771_v1 }
 0x3e4   :  { %2952 = vrot.lane.b32.xlu0 %v2944_v23, %s5683_s21 }
 0x3e5   :  { %2954 = vrot.lane.b32.xlu1 %v2946_v17, %s5683_s21  ;;  %v3083_v56 = vsel %vm203_vm4, %v3081_v52, %v3082_v7  ;;  %v3085_v49 = vsel %vm203_vm4, %v3082_v7, %v3084_v20  ;;  %v2807_v52 = vstv %s5470_s2  ;;  %v2772_v7 = vmul.f32 %v7851_v11, %v2771_v1  ;;  %s8616_s2 = sld [smem:[#allocation11 + $0x2d]] }
 0x3e6   :  { %v2813_v33 = vmul.f32 %v7812_v40, %v2807_v52 }
 0x3e8   :  { %2956 = vrot.lane.b32.xlu0 %v2945_v48, %s5683_s21 }
 0x3e9   :  { %2958 = vrot.lane.b32.xlu1 %v2949_v19, %s5683_s21 }
 0x3ec   :  { %2960 = vrot.lane.b32.xlu0 %v2951_v34, %s5683_s21 }
 0x3ed   :  { %2962 = vrot.lane.b32.xlu1 %v2950_v32, %s5683_s21 }
 0x3f0   :  { %2990 = vrot.lane.b32.xlu0 %v2978_v31, %s5684_s23 }
 0x3f1   :  { %2992 = vrot.lane.b32.xlu1 %v2979_v30, %s5684_s23 }
 0x3f4   :  { %2994 = vrot.lane.b32.xlu0 %v2980_v12, %s5684_s23 }
 0x3f5   :  { %2996 = vrot.lane.b32.xlu1 %v2981_v9, %s5684_s23 }
 0x3f8   :  { %2998 = vrot.lane.b32.xlu0 %v2982_v15, %s5684_s23 }
 0x3f9   :  { %3000 = vrot.lane.b32.xlu1 %v2983_v55, %s5684_s23 }
 0x3fc   :  { %3038 = vrot.lane.b32.xlu0 %v3030_v37, %s5684_s23 }
 0x3fd   :  { %3040 = vrot.lane.b32.xlu1 %v3032_v58, %s5684_s23 }
 0x400   :  { %3042 = vrot.lane.b32.xlu0 %v3031_v21, %s5684_s23 }
 0x401   :  { %3044 = vrot.lane.b32.xlu1 %v3035_v5, %s5684_s23 }
 0x404   :  { %3046 = vrot.lane.b32.xlu0 %v3037_v38, %s5684_s23 }
 0x405   :  { %3048 = vrot.lane.b32.xlu1 %v3036_v16, %s5684_s23 }
 0x408   :  { %3086 = vrot.lane.b32.xlu0 %v3078_v26, %s5684_s23 }
 0x409   :  { %3088 = vrot.lane.b32.xlu1 %v3080_v57, %s5684_s23  ;;  %v2774_v57 = vmul.f32 %v7827_v13, %v2771_v1 }
 0x40b   :  { %v7895_v48 = vpop.permute.xlu0 %2552 }
 0x40c   :  { %3090 = vrot.lane.b32.xlu0 %v3079_v4, %s5684_s23 }
 0x40d   :  { %3092 = vrot.lane.b32.xlu1 %v3083_v56, %s5684_s23  ;;  %v2759_v56 = vmul.f32 %v7855_v29, %v2757_v14 }
 0x40e   :  { %v7898_v35 = vpop.permute.xlu1 %2554 }
 0x410   :  { %3094 = vrot.lane.b32.xlu0 %v3085_v49, %s5684_s23  ;;  %v2785_v49 = vrot.slane %v2773_v43, 1  ;;  %v2760_v43 = vmul.f32 %v7827_v13, %v2757_v14 }
 0x411   :  { %3096 = vrot.lane.b32.xlu1 %v3084_v20, %s5684_s23 }
 0x412   :  { %v7903_v23 = vpop.permute.xlu0 %2556 }
 0x413   :  { %v7905_v25 = vpop.permute.xlu1 %2558 }
 0x414   :  { %9969 = vst [vmem:[#allocation22_spill] sm:$0xff] %v7905_v25 }
 0x416   :  { %v7907_v17 = vpop.permute.xlu0 %2592 }
 0x417   :  { %9970 = vst [vmem:[#allocation30_spill] sm:$0xff] %v7907_v17  ;;  %v7909_v46 = vpop.permute.xlu1 %2594 }
 0x418   :  { %9971 = vst [vmem:[#allocation23_spill] sm:$0xff] %v7909_v46  ;;  %v2812_v46 = vmul.f32 %v7836_v60, %v2807_v52 }
 0x41a   :  { %v7911_v2 = vpop.permute.xlu0 %2596 }
 0x41b   :  { %9972 = vst [vmem:[#allocation38_spill] sm:$0xff] %v7911_v2  ;;  %v7913_v32 = vpop.permute.xlu1 %2598 }
 0x41c   :  { %9973 = vst [vmem:[#allocation32_spill] sm:$0xff] %v7913_v32 }
 0x41e   :  { %v7915_v19 = vpop.permute.xlu0 %2632 }
 0x41f   :  { %9974 = vst [vmem:[#allocation39_spill] sm:$0xff] %v7915_v19  ;;  %v7917_v34 = vpop.permute.xlu1 %2634 }
 0x420   :  { %9975 = vst [vmem:[#allocation25_spill] sm:$0xff] %v7917_v34  ;;  %v2761_v34 = vmul.f32 %v7833_v45, %v2757_v14 }
 0x422   :  { %v7919_v6 = vpop.permute.xlu0 %2636 }
 0x423   :  { %9976 = vst [vmem:[#allocation27_spill] sm:$0xff] %v7919_v6  ;;  %v7921_v31 = vpop.permute.xlu1 %2638 }
 0x424   :  { %9977 = vst [vmem:[#allocation28_spill] sm:$0xff] %v7921_v31 }
 0x426   :  { %v7923_v30 = vpop.permute.xlu0 %2658 }
 0x427   :  { %9978 = vst [vmem:[#allocation29_spill] sm:$0xff] %v7923_v30  ;;  %v7925_v12 = vpop.permute.xlu1 %2660  ;;  %v2810_v30 = vmul.f32 %v7827_v13, %v2807_v52 }
 0x428   :  { %9979 = vst [vmem:[#allocation24_spill] sm:$0xff] %v7925_v12 }
 0x429   :  { %v2823_v17 = vrot.slane %v2810_v30, 2 }
 0x42a   :  { %v7927_v41 = vpop.permute.xlu0 %2662 }
 0x42b   :  { %9980 = vst [vmem:[#allocation26_spill] sm:$0xff] %v7927_v41  ;;  %v7929_v39 = vpop.permute.xlu1 %2664 }
 0x42c   :  { %9981 = vst [vmem:[#allocation40_spill] sm:$0xff] %v7929_v39  ;;  %v2776_v39 = vmul.f32 %v7836_v60, %v2771_v1 }
 0x42e   :  { %v7931_v9 = vpop.permute.xlu0 %2698  ;;  %v2790_v32 = vrot.slane %v2776_v39, 1 }
 0x42f   :  { %9982 = vst [vmem:[#allocation44_spill] sm:$0xff] %v7931_v9  ;;  %v7933_v50 = vpop.permute.xlu1 %2700  ;;  %v2784_v9 = vrot.slane %v2772_v7, 1 }
 0x430   :  { %9983 = vst [vmem:[#allocation45_spill] sm:$0xff] %v7933_v50  ;;  %v2775_v50 = vmul.f32 %v7833_v45, %v2771_v1 }
 0x432   :  { %v7935_v62 = vpop.permute.xlu0 %2702  ;;  %v2789_v2 = vrot.slane %v2775_v50, 1 }
 0x433   :  { %9984 = vst [vmem:[#allocation46_spill] sm:$0xff] %v7935_v62  ;;  %v7937_v15 = vpop.permute.xlu1 %2704  ;;  %v2787_v62 = vrot.slane %v2774_v57, 1  ;;  %v2786_v57 = vsel %vm166_vm3, %v2784_v9, %v2785_v49 }
 0x434   :  { %9985 = vst [vmem:[#allocation47_spill] sm:$0xff] %v7937_v15  ;;  %v2808_v15 = vmul.f32 %v7851_v11, %v2807_v52  ;;  %v2791_v28 = vsel %vm166_vm3, %v2789_v2, %v2790_v32 }
 0x436   :  { %v7939_v61 = vpop.permute.xlu0 %2738  ;;  %v2820_v7 = vrot.slane %v2808_v15, 2  ;;  %v2763_v15 = vmul.f32 %v7812_v40, %v2757_v14 }
 0x437   :  { %9986 = vst [vmem:[#allocation37_spill] sm:$0xff] %v7939_v61  ;;  %v7941_v55 = vpop.permute.xlu1 %2740  ;;  %v2755_v61 = vstv %s5467_s29  ;;  %s8623_s29 = sld [smem:[#allocation11 + $0x30]] }
 0x438   :  { %9987 = vst [vmem:[#allocation41_spill] sm:$0xff] %v7941_v55  ;;  %v2765_v12 = vadd.f32 %v2759_v56, %v2755_v61  ;;  %v2811_v56 = vmul.f32 %v7833_v45, %v2807_v52  ;;  %v2767_v45 = vadd.f32 %v2761_v34, %v2755_v61 }
 0x43a   :  { %v7943_v10 = vpop.permute.xlu0 %2742  ;;  %v2825_v25 = vrot.slane %v2811_v56, 2  ;;  %v2803_v34 = vadd.f32 %v2791_v28, %v2767_v45 }
 0x43b   :  { %9988 = vst [vmem:[#allocation21_spill] sm:$0xff] %v7943_v10  ;;  %v7945_v21 = vpop.permute.xlu1 %2744  ;;  %v2809_v10 = vmul.f32 %v7855_v29, %v2807_v52  ;;  %v2777_v29 = vmul.f32 %v7812_v40, %v2771_v1  ;;  %v2762_v1 = vmul.f32 %v7836_v60, %v2757_v14  ;;  %v2826_v60 = vrot.slane %v2812_v46, 2 }
 0x43c   :  { %9989 = vst [vmem:[#allocation17_spill] sm:$0xff] %v7945_v21  ;;  %v2758_v21 = vmul.f32 %v7851_v11, %v2757_v14  ;;  %v2788_v11 = vsel %vm166_vm3, %v2785_v49, %v2787_v62  ;;  %v2769_v14 = vadd.f32 %v2763_v15, %v2755_v61 }
 0x43d   :  { %v2821_v31 = vrot.slane %v2809_v10, 2  ;;  %v2792_v9 = vrot.slane %v2777_v29, 1  ;;  %v2801_v50 = vadd.f32 %v2788_v11, %v2765_v12  ;;  %v2768_v59 = vadd.f32 %v2762_v1, %v2755_v61 }
 0x43e   :  { %v7947_v0 = vpop.permute.xlu0 %2856  ;;  %v2764_v6 = vadd.f32 %v2758_v21, %v2755_v61  ;;  %v2766_v21 = vadd.f32 %v2760_v43, %v2755_v61  ;;  %v2828_v29 = vrot.slane %v2813_v33, 2  ;;  %v2827_v2 = vsel %vm203_vm4, %v2825_v25, %v2826_v60 }
 0x43f   :  { %v7949_v47 = vpop.permute.xlu1 %2858  ;;  %v2822_v39 = vsel %vm203_vm4, %v2820_v7, %v2821_v31  ;;  %v2793_v52 = vsel %vm166_vm3, %v2790_v32, %v2792_v9  ;;  %v2824_v30 = vsel %vm203_vm4, %v2821_v31, %v2823_v17  ;;  %v2805_v61 = vadd.f32 %v2792_v9, %v2769_v14 }
 0x440   :  { %v2800_v10 = vadd.f32 %v2786_v57, %v2764_v6  ;;  %v2802_v43 = vadd.f32 %v2787_v62, %v2766_v21  ;;  %v2837_v11 = vadd.f32 %v2824_v30, %v2801_v50  ;;  %v2804_v7 = vadd.f32 %v2793_v52, %v2768_v59 }
 0x441   :  { %v2829_v32 = vsel %vm203_vm4, %v2826_v60, %v2828_v29  ;;  %v2839_v1 = vadd.f32 %v2827_v2, %v2803_v34  ;;  %v2566_v30 = vadd.f32 %v7903_v23, %v7778_v22  ;;  %v8076_v23 = vstv %s8038_s11  ;;  %s5511_s11 = sld [smem:[#allocation8 + $0x3d]] }
 0x442   :  { %v7951_v37 = vpop.permute.xlu0 %2860  ;;  %v2836_v6 = vadd.f32 %v2822_v39, %v2800_v10  ;;  %v2875_v33 = vadd.f32 %v7949_v47, %v2837_v11  ;;  %v2838_v62 = vadd.f32 %v2823_v17, %v2802_v43  ;;  %v2840_v45 = vadd.f32 %v2829_v32, %v2804_v7  ;;  %v9991_v11 = vld [vmem:[#allocation18_spill] sm:$0xff] }
 0x443   :  { %v7953_v53 = vpop.permute.xlu1 %2862  ;;  %v2841_v10 = vadd.f32 %v2828_v29, %v2805_v61  ;;  %v9994_v32 = vld [vmem:[#allocation30_spill] sm:$0xff] }
 0x444   :  { %v2874_v12 = vadd.f32 %v7947_v0, %v2836_v6  ;;  %v2876_v0 = vadd.f32 %v7951_v37, %v2838_v62  ;;  %v2877_v47 = vadd.f32 %v7953_v53, %v2839_v1 }
 0x446   :  { %v7955_v58 = vpop.permute.xlu0 %2864 }
 0x447   :  { %v7957_v8 = vpop.permute.xlu1 %2866  ;;  %v2878_v37 = vadd.f32 %v7955_v58, %v2840_v45  ;;  %v8048_v58 = vstv %s8021_s9  ;;  %s5509_s9 = sld [smem:[#allocation8 + $0x37]] }
 0x448   :  { %v2879_v15 = vadd.f32 %v7957_v8, %v2841_v10  ;;  %v9998_v10 = vld [vmem:[#allocation38_spill] sm:$0xff] }
 0x44a   :  { %v7959_v27 = vpop.permute.xlu0 %2904 }
 0x44b   :  { %v7961_v51 = vpop.permute.xlu1 %2906  ;;  %v2922_v31 = vadd.f32 %v7959_v27, %v2874_v12  ;;  %v9992_v12 = vld [vmem:[#allocation22_spill] sm:$0xff] }
 0x44c   :  { %v2923_v28 = vadd.f32 %v7961_v51, %v2875_v33  ;;  %v8036_v51 = vstv %s5478_s30  ;;  %v2567_v34 = vadd.f32 %v9992_v12, %v9991_v11  ;;  %v10005_v12 = vld [vmem:[#allocation26_spill] sm:$0xff]  ;;  %s8632_s30 = sld [smem:[#allocation11 + $0x33]] }
 0x44e   :  { %v7963_v16 = vpop.permute.xlu0 %2908 }
 0x44f   :  { %v7965_v24 = vpop.permute.xlu1 %2910  ;;  %v2924_v17 = vadd.f32 %v7963_v16, %v2876_v0 }
 0x452   :  { %v7967_v5 = vpop.permute.xlu0 %2912 }
 0x453   :  { %v7969_v18 = vpop.permute.xlu1 %2914 }
 0x454   :  { %v2927_v8 = vadd.f32 %v7969_v18, %v2879_v15  ;;  %v8104_v15 = vstv %s8059_s12  ;;  %s5512_s12 = sld [smem:[#allocation8 + $0x38]] }
 0x456   :  { %v7971_v42 = vpop.permute.xlu0 %2952 }
 0x457   :  { %v7973_v38 = vpop.permute.xlu1 %2954  ;;  %v2970_v59 = vadd.f32 %v7971_v42, %v2922_v31  ;;  %v2925_v42 = vadd.f32 %v7965_v24, %v2877_v47  ;;  %v9996_v47 = vld [vmem:[#allocation23_spill] sm:$0xff] }
 0x458   :  { %v2971_v60 = vadd.f32 %v7973_v38, %v2923_v28  ;;  %v2926_v38 = vadd.f32 %v7967_v5, %v2878_v37  ;;  %v2606_v37 = vadd.f32 %v9998_v10, %v2566_v30  ;;  %v10002_v30 = vld [vmem:[#allocation28_spill] sm:$0xff] }
 0x45a   :  { %v7975_v63 = vpop.permute.xlu0 %2956 }
 0x45b   :  { %v7977_v3 = vpop.permute.xlu1 %2958  ;;  %v2972_v9 = vadd.f32 %v7975_v63, %v2924_v17 }
 0x45c   :  { %v2973_v39 = vadd.f32 %v7977_v3, %v2925_v42 }
 0x45e   :  { %v7979_v4 = vpop.permute.xlu0 %2960 }
 0x45f   :  { %v7982_v26 = vpop.permute.xlu1 %2962  ;;  %v2974_v5 = vadd.f32 %v7979_v4, %v2926_v38  ;;  %v9999_v38 = vld [vmem:[#allocation25_spill] sm:$0xff] }
 0x462   :  { %v7986_v20 = vpop.permute.xlu0 %2990 }
 0x463   :  { %v7991_v55 = vpop.permute.xlu1 %2992  ;;  %v3008_v27 = vadd.f32 %v7986_v20, %v2970_v59  ;;  %v8045_v20 = vstv %s5479_s6  ;;  %s8706_s6 = sld [smem:[#allocation11 + $0x35]] }
 0x464   :  { %v3009_v53 = vadd.f32 %v7991_v55, %v2971_v60  ;;  %v2564_v55 = vadd.f32 %v7895_v48, %v7744_v36  ;;  %v2975_v36 = vadd.f32 %v7982_v26, %v2927_v8  ;;  %v9997_v60 = vld [vmem:[#allocation32_spill] sm:$0xff] }
 0x466   :  { %v7996_v41 = vpop.permute.xlu0 %2994  ;;  %v2604_v31 = vadd.f32 %v9994_v32, %v2564_v55 }
 0x467   :  { %v8002_v19 = vpop.permute.xlu1 %2996  ;;  %v3010_v6 = vadd.f32 %v7996_v41, %v2972_v9 }
 0x468   :  { %v3011_v29 = vadd.f32 %v8002_v19, %v2973_v39  ;;  %v10000_v39 = vld [vmem:[#allocation39_spill] sm:$0xff] }
 0x46a   :  { %v8009_v13 = vpop.permute.xlu0 %2998 }
 0x46b   :  { %v8013_v49 = vpop.permute.xlu1 %3000 }
 0x46c   :  { %v3013_v2 = vadd.f32 %v8013_v49, %v2975_v36 }
 0x46e   :  { %v3039_v44 = vpop.permute.xlu0 %3038 }
 0x46f   :  { %v3041_v57 = vpop.permute.xlu1 %3040  ;;  %v3056_v16 = vadd.f32 %v3039_v44, %v3008_v27  ;;  %v2565_v44 = vadd.f32 %v7898_v35, %v7753_v54  ;;  %v3012_v54 = vadd.f32 %v8009_v13, %v2974_v5  ;;  %v3223_v35 = vstv %s8029_s10  ;;  %s5510_s10 = sld [smem:[#allocation8 + $0x3a]] }
 0x470   :  { %v3057_v43 = vadd.f32 %v3041_v57, %v3009_v53  ;;  %v2607_v27 = vadd.f32 %v9997_v60, %v2567_v34 }
 0x471   :  { %v2605_v17 = vadd.f32 %v9996_v47, %v2565_v44 }
 0x472   :  { %v3043_v46 = vpop.permute.xlu0 %3042  ;;  %v2647_v36 = vadd.f32 %v10002_v30, %v2607_v27  ;;  %v10010_v27 = vld [vmem:[#allocation46_spill] sm:$0xff]  ;;  %v3123_v30 = vstv %s8135_s15  ;;  %s5507_s15 = sld [smem:[#allocation8 + $0x39]] }
 0x473   :  { %v3045_v56 = vpop.permute.xlu1 %3044  ;;  %v3058_v52 = vadd.f32 %v3043_v46, %v3010_v6  ;;  %v2644_v6 = vadd.f32 %v10000_v39, %v2604_v31  ;;  %v10007_v31 = vld [vmem:[#allocation44_spill] sm:$0xff] }
 0x474   :  { %v3059_v18 = vadd.f32 %v3045_v56, %v3011_v29 }
 0x476   :  { %v3047_v25 = vpop.permute.xlu0 %3046 }
 0x477   :  { %v3049_v21 = vpop.permute.xlu1 %3048  ;;  %v3060_v13 = vadd.f32 %v3047_v25, %v3012_v54  ;;  %v10003_v54 = vld [vmem:[#allocation29_spill] sm:$0xff] }
 0x478   :  { %v3061_v61 = vadd.f32 %v3049_v21, %v3013_v2 }
 0x47a   :  { %v3087_v50 = vpop.permute.xlu0 %3086 }
 0x47b   :  { %v3104_v24 = vadd.f32 %v3087_v50, %v3056_v16  ;;  %v3089_v63 = vpop.permute.xlu1 %3088  ;;  %v2645_v50 = vadd.f32 %v9999_v38, %v2605_v17  ;;  %v10009_v17 = vld [vmem:[#allocation47_spill] sm:$0xff] }
 0x47c   :  { %v3105_v3 = vadd.f32 %v3089_v63, %v3057_v43  ;;  %v10001_v63 = vld [vmem:[#allocation27_spill] sm:$0xff] }
 0x47d   :  { %v3110_v41 = vmax.f32 %v3104_v24, 0.0  ;;  %v2646_v29 = vadd.f32 %v10001_v63, %v2606_v37  ;;  %v8158_v37 = vstv %s8110_s14  ;;  %s5514_s14 = sld [smem:[#allocation8 + $0x3e]] }
 0x47e   :  { %v3091_v48 = vpop.permute.xlu0 %3090  ;;  %v3111_v4 = vmax.f32 %v3105_v3, 0.0 }
 0x47f   :  { %v8068_v19 = vsel %vm6337_vm12, %v3110_v41, 0.0  ;;  %v3106_v57 = vadd.f32 %v3091_v48, %v3058_v52  ;;  %v3093_v7 = vpop.permute.xlu1 %3092  ;;  %v2670_v48 = vadd.f32 %v10003_v54, %v2644_v6  ;;  %v2672_v34 = vadd.f32 %v10005_v12, %v2646_v29  ;;  %v10013_v6 = vld [vmem:[#allocation17_spill] sm:$0xff] }
 0x480   :  { %v3198_v22 = vmul.f32 %v8048_v58, %v8068_v19  ;;  %v8080_v46 = vsel %vm6369_vm13, %v3111_v4, 0.0  ;;  %v3107_v33 = vadd.f32 %v3093_v7, %v3059_v18  ;;  %v3224_v1 = vmul.f32 %v3223_v35, %v8068_v19 }
 0x481   :  { %v3112_v62 = vmax.f32 %v3106_v57, 0.0  ;;  %v3199_v49 = vmul.f32 %v8048_v58, %v8080_v46  ;;  %v3225_v25 = vmul.f32 %v3223_v35, %v8080_v46  ;;  %v8129_v4 = vstv %s8082_s13  ;;  %v10004_v57 = vld [vmem:[#allocation24_spill] sm:$0xff]  ;;  %s5513_s13 = sld [smem:[#allocation8 + $0x3b]] }
 0x482   :  { %3206 = vrot.lane.b32.xlu0 %v3198_v22, %s5683_s21  ;;  %v3095_v56 = vpop.permute.xlu0 %3094  ;;  %v3113_v0 = vmax.f32 %v3107_v33, 0.0  ;;  %v3236_v24 = vrot.slane %v3224_v1, 1  ;;  %v2671_v11 = vadd.f32 %v10004_v57, %v2645_v50  ;;  %v3265_v33 = vmul.f32 %v8076_v23, %v8080_v46  ;;  %v10012_v50 = vld [vmem:[#allocation41_spill] sm:$0xff] }
 0x483   :  { %v8091_v59 = vsel %vm6286_vm9, %v3112_v62, 0.0  ;;  %v3108_v45 = vadd.f32 %v3095_v56, %v3060_v13  ;;  %3208 = vrot.lane.b32.xlu1 %v3199_v49, %s5683_s21  ;;  %v3097_v21 = vpop.permute.xlu1 %3096  ;;  %v3237_v8 = vrot.slane %v3225_v25, 1  ;;  %v3264_v13 = vmul.f32 %v8076_v23, %v8068_v19  ;;  %v10006_v62 = vld [vmem:[#allocation40_spill] sm:$0xff]  ;;  %v10008_v25 = vld [vmem:[#allocation45_spill] sm:$0xff] }
 0x484   :  { %v3226_v42 = vmul.f32 %v3223_v35, %v8091_v59  ;;  %v8101_v9 = vsel %vm6337_vm12, %v3113_v0, 0.0  ;;  %v3109_v53 = vadd.f32 %v3097_v21, %v3061_v61  ;;  %v2673_v32 = vadd.f32 %v10006_v62, %v2647_v36  ;;  %v10011_v21 = vld [vmem:[#allocation37_spill] sm:$0xff] }
 0x485   :  { %v3114_v16 = vmax.f32 %v3108_v45, 0.0  ;;  %v3200_v43 = vmul.f32 %v8048_v58, %v8101_v9  ;;  %v3227_v5 = vmul.f32 %v3223_v35, %v8101_v9  ;;  %v3238_v7 = vsel %vm166_vm3, %v3236_v24, %v3237_v8  ;;  %v10014_v24 = vld [vmem:[#allocation21_spill] sm:$0xff] }
 0x486   :  { %v3115_v55 = vmax.f32 %v3109_v53, 0.0  ;;  %v3239_v41 = vrot.slane %v3226_v42, 1  ;;  %v2710_v61 = vadd.f32 %v10007_v31, %v2670_v48  ;;  %v3266_v49 = vmul.f32 %v8076_v23, %v8091_v59 }
 0x487   :  { %v8114_v44 = vsel %vm6369_vm13, %v3114_v16, 0.0  ;;  %3210 = vrot.lane.b32.xlu0 %v3200_v43, %s5683_s21  ;;  %v3241_v22 = vrot.slane %v3227_v5, 1  ;;  %v2711_v47 = vadd.f32 %v10008_v25, %v2671_v11  ;;  %v2713_v60 = vadd.f32 %v10009_v17, %v2673_v32 }
 0x488   :  { %v3201_v52 = vmul.f32 %v8048_v58, %v8114_v44  ;;  %v3228_v3 = vmul.f32 %v3223_v35, %v8114_v44  ;;  %v8126_v18 = vsel %vm6286_vm9, %v3115_v55, 0.0  ;;  %v3268_v0 = vmul.f32 %v8076_v23, %v8114_v44 }
 0x489   :  { %v3229_v2 = vmul.f32 %v3223_v35, %v8126_v18  ;;  %v3240_v35 = vsel %vm166_vm3, %v3237_v8, %v3239_v41  ;;  %v3269_v45 = vmul.f32 %v8076_v23, %v8126_v18  ;;  %v2712_v10 = vadd.f32 %v10010_v27, %v2672_v34 }
 0x48a   :  { %3212 = vrot.lane.b32.xlu1 %v3201_v52, %s5683_s21  ;;  %v3242_v58 = vrot.slane %v3228_v3, 1  ;;  %v2750_v42 = vadd.f32 %v10011_v21, %v2710_v61  ;;  %v3276_v53 = vrot.slane %v3264_v13, 2  ;;  %v3277_v16 = vrot.slane %v3265_v33, 2 }
 0x48b   :  { %3246 = vrot.lane.b32.xlu0 %v3238_v7, %s5683_s21  ;;  %v3244_v1 = vrot.slane %v3229_v2, 1  ;;  %v3267_v38 = vmul.f32 %v8076_v23, %v8101_v9  ;;  %v2751_v39 = vadd.f32 %v10012_v50, %v2711_v47  ;;  %v8165_v43 = vadd.f32 %v10013_v6, %v2713_v60 }
 0x48c   :  { %v3243_v56 = vsel %vm166_vm3, %v3241_v22, %v3242_v58  ;;  %v2752_v55 = vadd.f32 %v10014_v24, %v2712_v10  ;;  %v3279_v8 = vrot.slane %v3266_v49, 2  ;;  %v3282_v63 = vrot.slane %v3268_v0, 2 }
 0x48d   :  { %v3245_v5 = vsel %vm166_vm3, %v3242_v58, %v3244_v1  ;;  %v3284_v29 = vrot.slane %v3269_v45, 2  ;;  %v8172_v52 = vmul.f32 %v8129_v4, %v8068_v19  ;;  %v3135_v23 = vmul.f32 %v8036_v51, %v8080_v46 }
 0x48e   :  { %3248 = vrot.lane.b32.xlu1 %v3240_v35, %s5683_s21  ;;  %v3167_v3 = vmul.f32 %v8045_v20, %v8080_v46  ;;  %v3304_v41 = vmul.f32 %v8104_v15, %v8068_v19  ;;  %v8184_v36 = vmul.f32 %v8036_v51, %v8114_v44  ;;  %v8188_v54 = vmul.f32 %v8045_v20, %v8114_v44 }
 0x48f   :  { %3250 = vrot.lane.b32.xlu0 %v3243_v56, %s5683_s21  ;;  %v3278_v48 = vsel %vm203_vm4, %v3276_v53, %v3277_v16  ;;  %v3281_v57 = vrot.slane %v3267_v38, 2  ;;  %v3280_v11 = vsel %vm203_vm4, %v3277_v16, %v3279_v8  ;;  %v3306_v12 = vmul.f32 %v8104_v15, %v8101_v9 }
 0x490   :  { %v3305_v34 = vmul.f32 %v8104_v15, %v8080_v46  ;;  %v8199_v58 = vmul.f32 %v8129_v4, %v8080_v46  ;;  %v3285_v7 = vsel %vm203_vm4, %v3282_v63, %v3284_v29  ;;  %v3342_v22 = vrot.slane %v8172_v52, 1 }
 0x491   :  { %v3283_v2 = vsel %vm203_vm4, %v3281_v57, %v3282_v63  ;;  %v3125_v13 = vmul.f32 %v3123_v30, %v8080_v46  ;;  %v8208_v33 = vmul.f32 %v8129_v4, %v8091_v59  ;;  %v3147_v62 = vrot.slane %v3135_v23, 1 }
 0x492   :  { %3252 = vrot.lane.b32.xlu1 %v3245_v5, %s5683_s21  ;;  %v3136_v32 = vmul.f32 %v8036_v51, %v8091_v59  ;;  %v3168_v31 = vmul.f32 %v8045_v20, %v8091_v59  ;;  %v3179_v35 = vrot.slane %v3167_v3, 2  ;;  %v3124_v49 = vmul.f32 %v3123_v30, %v8068_v19 }
 0x493   :  { %3286 = vrot.lane.b32.xlu0 %v3278_v48, %s5683_s21  ;;  %v3129_v61 = vadd.f32 %v3125_v13, %v2751_v39  ;;  %v3134_v56 = vmul.f32 %v8036_v51, %v8068_v19  ;;  %v3166_v45 = vmul.f32 %v8045_v20, %v8068_v19  ;;  %v3126_v25 = vmul.f32 %v3123_v30, %v8101_v9 }
 0x494   :  { %v3149_v1 = vrot.slane %v3136_v32, 1  ;;  %v3181_v0 = vrot.slane %v3168_v31, 2  ;;  %v3128_v17 = vadd.f32 %v3124_v49, %v2750_v42  ;;  %v3137_v60 = vmul.f32 %v8036_v51, %v8101_v9 }
 0x495   :  { %v3146_v47 = vrot.slane %v3134_v56, 1  ;;  %v3152_v27 = vrot.slane %v8184_v36, 1  ;;  %v3178_v53 = vrot.slane %v3166_v45, 2  ;;  %v3130_v16 = vadd.f32 %v3126_v25, %v2752_v55 }
 0x496   :  { %3288 = vrot.lane.b32.xlu1 %v3280_v11, %s5683_s21  ;;  %v3150_v10 = vsel %vm166_vm3, %v3147_v62, %v3149_v1  ;;  %v3182_v21 = vsel %vm203_vm4, %v3179_v35, %v3181_v0  ;;  %v3151_v39 = vrot.slane %v3137_v60, 1  ;;  %v3169_v42 = vmul.f32 %v8045_v20, %v8101_v9 }
 0x497   :  { %3290 = vrot.lane.b32.xlu0 %v3283_v2, %s5683_s21  ;;  %v3161_v38 = vadd.f32 %v3150_v10, %v3129_v61  ;;  %v3148_v50 = vsel %vm166_vm3, %v3146_v47, %v3147_v62  ;;  %v3180_v6 = vsel %vm203_vm4, %v3178_v53, %v3179_v35  ;;  %v3184_v8 = vrot.slane %v8188_v54, 2  ;;  %v10016_v10 = vld [vmem:[#allocation43_spill] sm:$0xff]  ;;  %v10017_v53 = vld [vmem:[#allocation36_spill] sm:$0xff] }
 0x498   :  { %v3160_v24 = vadd.f32 %v3148_v50, %v3128_v17  ;;  %v3139_v5 = vmul.f32 %v8036_v51, %v8126_v18  ;;  %v3153_v55 = vsel %vm166_vm3, %v3151_v39, %v3152_v27  ;;  %v3183_v29 = vrot.slane %v3169_v42, 2  ;;  %v10018_v39 = vld [vmem:[#allocation31_spill] sm:$0xff] }
 0x499   :  { %v8235_v63 = vadd.f32 %v3182_v21, %v3161_v38  ;;  %v3171_v52 = vmul.f32 %v8045_v20, %v8126_v18  ;;  %v3162_v3 = vadd.f32 %v3153_v55, %v3130_v16  ;;  %v3127_v36 = vmul.f32 %v3123_v30, %v8114_v44 }
 0x49a   :  { %3292 = vrot.lane.b32.xlu1 %v3285_v7, %s5683_s21  ;;  %v8241_v23 = vadd.f32 %v3180_v6, %v3160_v24  ;;  %v3343_v54 = vrot.slane %v8199_v58, 1  ;;  %v3334_v51 = vmul.f32 %v8129_v4, %v8114_v44  ;;  %v3185_v48 = vsel %vm203_vm4, %v3183_v29, %v3184_v8 }
 0x49b   :  { %3312 = vrot.lane.b32.xlu0 %v3304_v41, %s5684_s23  ;;  %v3154_v41 = vrot.slane %v3139_v5, 1  ;;  %v3186_v57 = vrot.slane %v3171_v52, 2  ;;  %v3307_v20 = vmul.f32 %v8104_v15, %v8114_v44  ;;  %v8251_v11 = vadd.f32 %v3185_v48, %v3162_v3 }
 0x49c   :  { %v3333_v30 = vmul.f32 %v8129_v4, %v8101_v9  ;;  %v3345_v58 = vrot.slane %v8208_v33, 1  ;;  %v3335_v7 = vmul.f32 %v8129_v4, %v8126_v18  ;;  %v3344_v15 = vsel %vm166_vm3, %v3342_v22, %v3343_v54 }
 0x49d   :  { %v3155_v2 = vsel %vm166_vm3, %v3152_v27, %v3154_v41  ;;  %v3187_v13 = vsel %vm203_vm4, %v3184_v8, %v3186_v57  ;;  %v3348_v62 = vrot.slane %v3334_v51, 1  ;;  %v3371_v32 = vmul.f32 %v8158_v37, %v8080_v46  ;;  %v10019_v8 = vld [vmem:[#allocation19_spill] sm:$0xff] }
 0x49e   :  { %3314 = vrot.lane.b32.xlu1 %v3305_v34, %s5684_s23  ;;  %v3131_v34 = vadd.f32 %v3127_v36, %v8165_v43  ;;  %v3370_v43 = vmul.f32 %v8158_v37, %v8068_v19  ;;  %v3347_v31 = vrot.slane %v3333_v30, 1  ;;  %v3346_v4 = vsel %vm166_vm3, %v3343_v54, %v3345_v58 }
 0x49f   :  { %3316 = vrot.lane.b32.xlu0 %v3306_v12, %s5684_s23  ;;  %v3350_v61 = vrot.slane %v3335_v7, 1  ;;  %v3372_v35 = vmul.f32 %v8158_v37, %v8091_v59  ;;  %v3383_v19 = vrot.slane %v3371_v32, 2  ;;  %v3374_v46 = vmul.f32 %v8158_v37, %v8114_v44 }
 0x4a0   :  { %v3163_v12 = vadd.f32 %v3155_v2, %v3131_v34  ;;  %v3349_v22 = vsel %vm166_vm3, %v3347_v31, %v3348_v62  ;;  %v3382_v49 = vrot.slane %v3370_v43, 2  ;;  %v3373_v1 = vmul.f32 %v8158_v37, %v8101_v9 }
 0x4a1   :  { %v3351_v56 = vsel %vm166_vm3, %v3348_v62, %v3350_v61  ;;  %v3385_v0 = vrot.slane %v3372_v35, 2  ;;  %v3375_v59 = vmul.f32 %v8158_v37, %v8126_v18  ;;  %v3388_v25 = vrot.slane %v3374_v46, 2  ;;  %v10015_v37 = vld [vmem:[#allocation20_spill] sm:$0xff] }
 0x4a2   :  { %3318 = vrot.lane.b32.xlu1 %v3307_v20, %s5684_s23  ;;  %v8268_v33 = vadd.f32 %v3187_v13, %v3163_v12  ;;  %v3384_v45 = vsel %vm203_vm4, %v3382_v49, %v3383_v19  ;;  %v3387_v44 = vrot.slane %v3373_v1, 2  ;;  %v3497_v60 = vstv %s5490_s16  ;;  %s5505_s16 = sld [smem:[#allocation9 + $0x6]] }
 0x4a3   :  { %3352 = vrot.lane.b32.xlu0 %v3344_v15, %s5684_s23  ;;  %v3386_v47 = vsel %vm203_vm4, %v3383_v19, %v3385_v0  ;;  %v3390_v17 = vrot.slane %v3375_v59, 2  ;;  %v3498_v27 = vmul.f32 %v10015_v37, %v3497_v60  ;;  %v3499_v21 = vmul.f32 %v10016_v10, %v3497_v60 }
 0x4a4   :  { %v3389_v9 = vsel %vm203_vm4, %v3387_v44, %v3388_v25  ;;  %v3500_v16 = vmul.f32 %v10017_v53, %v3497_v60  ;;  %v3535_v38 = vstv %s5491_s17  ;;  %v3501_v42 = vmul.f32 %v10018_v39, %v3497_v60  ;;  %s5506_s17 = sld [smem:[#allocation8 + $0x36]] }
 0x4a5   :  { %v3391_v18 = vsel %vm203_vm4, %v3388_v25, %v3390_v17  ;;  %v3537_v50 = vmul.f32 %v10016_v10, %v3535_v38  ;;  %v3536_v6 = vmul.f32 %v10015_v37, %v3535_v38  ;;  %v3538_v24 = vmul.f32 %v10017_v53, %v3535_v38 }
 0x4a6   :  { %3354 = vrot.lane.b32.xlu1 %v3346_v4, %s5684_s23  ;;  %v3502_v5 = vmul.f32 %v10019_v8, %v3497_v60  ;;  %v3503_v29 = vmul.f32 %v7812_v40, %v3497_v60  ;;  %v3540_v41 = vmul.f32 %v10019_v8, %v3535_v38  ;;  %v3539_v36 = vmul.f32 %v10018_v39, %v3535_v38  ;;  %v8326_v4 = vld [vmem:[#allocation2 + $0x28] sm:$0xf] }
 0x4a7   :  { %3356 = vrot.lane.b32.xlu0 %v3349_v22, %s5684_s23  ;;  %v3549_v55 = vrot.slane %v3537_v50, 1  ;;  %v3548_v52 = vrot.slane %v3536_v6, 1  ;;  %v3551_v3 = vrot.slane %v3538_v24, 1  ;;  %v3541_v51 = vmul.f32 %v7812_v40, %v3535_v38  ;;  %10020 = vst [vmem:[#allocation42_spill] sm:$0xff] %v8326_v4 }
 0x4a8   :  { %v3554_v57 = vrot.slane %v3540_v41, 1  ;;  %v3553_v20 = vrot.slane %v3539_v36, 1  ;;  %v3583_v34 = vstv %s5492_s18  ;;  %v3631_v1 = vstv %s5493_s0  ;;  %v8369_v41 = vld [vmem:[#allocation2] sm:$0xff]  ;;  %s5508_s18 = sld [smem:[#allocation8 + $0x3c]]  ;;  %s8969_s0 = sld [smem:[#allocation8 + $0x40]] }
 0x4a9   :  { %v3550_v54 = vsel %vm166_vm3, %v3548_v52, %v3549_v55  ;;  %v3552_v48 = vsel %vm166_vm3, %v3549_v55, %v3551_v3  ;;  %v3556_v2 = vrot.slane %v3541_v51, 1  ;;  %v3585_v30 = vmul.f32 %v10016_v10, %v3583_v34  ;;  %10024 = vst [vmem:[#allocation23_spill] sm:$0xff] %v8369_v41 }
 0x4aa   :  { %3358 = vrot.lane.b32.xlu1 %v3351_v56, %s5684_s23  ;;  %v3555_v58 = vsel %vm166_vm3, %v3553_v20, %v3554_v57  ;;  %v3584_v7 = vmul.f32 %v10015_v37, %v3583_v34  ;;  %v3586_v40 = vmul.f32 %v10017_v53, %v3583_v34  ;;  %v3588_v43 = vmul.f32 %v10019_v8, %v3583_v34 }
 0x4ab   :  { %3392 = vrot.lane.b32.xlu0 %v3384_v45, %s5684_s23  ;;  %v3557_v13 = vsel %vm166_vm3, %v3554_v57, %v3556_v2  ;;  %v3597_v12 = vrot.slane %v3585_v30, 2  ;;  %v3587_v32 = vmul.f32 %v10018_v39, %v3583_v34  ;;  %v3589_v61 = vmul.f32 %v8326_v4, %v3583_v34  ;;  %v8341_v45 = vld [vmem:[#allocation2 + $0x10] sm:$0xf] }
 0x4ac   :  { %v3596_v15 = vrot.slane %v3584_v7, 2  ;;  %v3599_v62 = vrot.slane %v3586_v40, 2  ;;  %v3602_v22 = vrot.slane %v3588_v43, 2  ;;  %v3632_v0 = vmul.f32 %v10015_v37, %v3631_v1  ;;  %10021 = vst [vmem:[#allocation18_spill] sm:$0xff] %v8341_v45 }
 0x4ad   :  { %v3601_v49 = vrot.slane %v3587_v32, 2  ;;  %v3604_v19 = vrot.slane %v3589_v61, 2  ;;  %v3633_v59 = vmul.f32 %v10016_v10, %v3631_v1  ;;  %v3634_v25 = vmul.f32 %v8341_v45, %v3631_v1 }
 0x4ae   :  { %3394 = vrot.lane.b32.xlu1 %v3386_v47, %s5684_s23  ;;  %v3598_v31 = vsel %vm203_vm4, %v3596_v15, %v3597_v12  ;;  %v3600_v35 = vsel %vm203_vm4, %v3597_v12, %v3599_v62  ;;  %v3669_v44 = vstv %s5494_s1  ;;  %v3635_v17 = vmul.f32 %v10018_v39, %v3631_v1  ;;  %v8357_v39 = vld [vmem:[#allocation2 + $0x18] sm:$0xff]  ;;  %s8978_s1 = sld [smem:[#allocation8 + $0x43]] }
 0x4af   :  { %3396 = vrot.lane.b32.xlu0 %v3389_v9, %s5684_s23  ;;  %v3603_v46 = vsel %vm203_vm4, %v3601_v49, %v3602_v22  ;;  %v3605_v56 = vsel %vm203_vm4, %v3602_v22, %v3604_v19  ;;  %v3671_v47 = vmul.f32 %v10016_v10, %v3669_v44  ;;  %v3670_v9 = vmul.f32 %v10015_v37, %v3669_v44 }
 0x4b0   :  { %v3672_v60 = vmul.f32 %v8341_v45, %v3669_v44  ;;  %v3637_v53 = vmul.f32 %v8326_v4, %v3631_v1  ;;  %10023 = vst [vmem:[#allocation30_spill] sm:$0xff] %v8357_v39  ;;  %v3673_v37 = vmul.f32 %v8357_v39, %v3669_v44  ;;  %v3675_v6 = vmul.f32 %v8326_v4, %v3669_v44 }
 0x4b1   :  { %v3717_v55 = vstv %s5495_s3  ;;  %s8989_s3 = sld [smem:[#allocation11 + $0x37]] }
 0x4b2   :  { %3398 = vrot.lane.b32.xlu1 %v3391_v18, %s5684_s23  ;;  %v8350_v18 = vld [vmem:[#allocation2 + $0x20] sm:$0xff]  ;;  %v3685_v38 = vrot.slane %v3672_v60, 1  ;;  %v3719_v52 = vmul.f32 %v10016_v10, %v3717_v55  ;;  %v3718_v36 = vmul.f32 %v8369_v41, %v3717_v55  ;;  %v3721_v34 = vmul.f32 %v8357_v39, %v3717_v55 }
 0x4b3   :  { %3510 = vrot.lane.b32.xlu0 %v3498_v27, %s5683_s21  ;;  %10022 = vst [vmem:[#allocation22_spill] sm:$0xff] %v8350_v18  ;;  %v3636_v27 = vmul.f32 %v8350_v18, %v3631_v1  ;;  %v3674_v50 = vmul.f32 %v8350_v18, %v3669_v44  ;;  %v3722_v10 = vmul.f32 %v8350_v18, %v3717_v55 }
 0x4b4   :  { %v3730_v57 = vrot.slane %v3718_v36, 2  ;;  %v3723_v30 = vmul.f32 %v8326_v4, %v3717_v55  ;;  %v3735_v40 = vrot.slane %v3721_v34, 2  ;;  %v8472_v34 = vld [vmem:[#allocation2 + $0x8] sm:$0xff] }
 0x4b5   :  { %v3688_v8 = vrot.slane %v3674_v50, 1  ;;  %v3736_v7 = vrot.slane %v3722_v10, 2  ;;  %v3411_v10 = vstv %s5487_s20  ;;  %10045 = vst [vmem:[#allocation36_spill] sm:$0xff] %v8472_v34  ;;  %s9000_s20 = sld [smem:[#allocation11 + $0x3d]] }
 0x4b6   :  { %3512 = vrot.lane.b32.xlu1 %v3499_v21, %s5683_s21  ;;  %v3683_v21 = vrot.slane %v3671_v47, 1 }
 0x4b7   :  { %3514 = vrot.lane.b32.xlu0 %v3500_v16, %s5683_s21  ;;  %v3682_v16 = vrot.slane %v3670_v9, 1  ;;  %v3737_v15 = vsel %vm203_vm4, %v3735_v40, %v3736_v7 }
 0x4b8   :  { %v3686_v24 = vsel %vm166_vm3, %v3683_v21, %v3685_v38 }
 0x4ba   :  { %3516 = vrot.lane.b32.xlu1 %v3501_v42, %s5683_s21  ;;  %v3684_v42 = vsel %vm166_vm3, %v3682_v16, %v3683_v21 }
 0x4bb   :  { %3518 = vrot.lane.b32.xlu0 %v3502_v5, %s5683_s21  ;;  %v3687_v5 = vrot.slane %v3673_v37, 1 }
 0x4be   :  { %3520 = vrot.lane.b32.xlu1 %v3503_v29, %s5683_s21  ;;  %v3690_v29 = vrot.slane %v3675_v6, 1 }
 0x4bf   :  { %3558 = vrot.lane.b32.xlu0 %v3550_v54, %s5683_s21  ;;  %v3720_v54 = vmul.f32 %v8341_v45, %v3717_v55 }
 0x4c0   :  { %v3691_v51 = vsel %vm166_vm3, %v3688_v8, %v3690_v29 }
 0x4c1   :  { %v3733_v20 = vrot.slane %v3720_v54, 2 }
 0x4c2   :  { %3560 = vrot.lane.b32.xlu1 %v3552_v48, %s5683_s21  ;;  %v3731_v48 = vrot.slane %v3719_v52, 2 }
 0x4c3   :  { %3562 = vrot.lane.b32.xlu0 %v3551_v3, %s5683_s21  ;;  %v3689_v3 = vsel %vm166_vm3, %v3687_v5, %v3688_v8 }
 0x4c6   :  { %3564 = vrot.lane.b32.xlu1 %v3555_v58, %s5683_s21  ;;  %v3734_v58 = vsel %vm203_vm4, %v3731_v48, %v3733_v20 }
 0x4c7   :  { %3566 = vrot.lane.b32.xlu0 %v3557_v13, %s5683_s21  ;;  %v3738_v13 = vrot.slane %v3723_v30, 2 }
 0x4ca   :  { %3568 = vrot.lane.b32.xlu1 %v3556_v2, %s5683_s21  ;;  %v3732_v2 = vsel %vm203_vm4, %v3730_v57, %v3731_v48 }
 0x4cb   :  { %3606 = vrot.lane.b32.xlu0 %v3598_v31, %s5683_s21 }
 0x4ce   :  { %3608 = vrot.lane.b32.xlu1 %v3600_v35, %s5683_s21 }
 0x4cf   :  { %3610 = vrot.lane.b32.xlu0 %v3599_v62, %s5683_s21  ;;  %v3739_v62 = vsel %vm203_vm4, %v3736_v7, %v3738_v13 }
 0x4d2   :  { %3612 = vrot.lane.b32.xlu1 %v3603_v46, %s5683_s21 }
 0x4d3   :  { %3614 = vrot.lane.b32.xlu0 %v3605_v56, %s5683_s21 }
 0x4d6   :  { %3616 = vrot.lane.b32.xlu1 %v3604_v19, %s5683_s21 }
 0x4d7   :  { %3644 = vrot.lane.b32.xlu0 %v3632_v0, %s5684_s23 }
 0x4da   :  { %3646 = vrot.lane.b32.xlu1 %v3633_v59, %s5684_s23 }
 0x4db   :  { %3648 = vrot.lane.b32.xlu0 %v3634_v25, %s5684_s23 }
 0x4de   :  { %3650 = vrot.lane.b32.xlu1 %v3635_v17, %s5684_s23 }
 0x4df   :  { %3652 = vrot.lane.b32.xlu0 %v3636_v27, %s5684_s23 }
 0x4e2   :  { %3654 = vrot.lane.b32.xlu1 %v3637_v53, %s5684_s23 }
 0x4e3   :  { %3692 = vrot.lane.b32.xlu0 %v3684_v42, %s5684_s23 }
 0x4e6   :  { %3694 = vrot.lane.b32.xlu1 %v3686_v24, %s5684_s23 }
 0x4e7   :  { %3696 = vrot.lane.b32.xlu0 %v3685_v38, %s5684_s23 }
 0x4ea   :  { %3698 = vrot.lane.b32.xlu1 %v3689_v3, %s5684_s23 }
 0x4eb   :  { %3700 = vrot.lane.b32.xlu0 %v3691_v51, %s5684_s23 }
 0x4ee   :  { %3702 = vrot.lane.b32.xlu1 %v3690_v29, %s5684_s23 }
 0x4ef   :  { %3740 = vrot.lane.b32.xlu0 %v3732_v2, %s5684_s23 }
 0x4f2   :  { %3742 = vrot.lane.b32.xlu1 %v3734_v58, %s5684_s23  ;;  %v3461_v58 = vstv %s5489_s22  ;;  %s9069_s22 = sld [smem:[#allocation11 + $0x3b]] }
 0x4f3   :  { %3744 = vrot.lane.b32.xlu0 %v3733_v20, %s5684_s23  ;;  %v3425_v20 = vstv %s5488_s19  ;;  %s8992_s19 = sld [smem:[#allocation11 + $0x3a]] }
 0x4f4   :  { %v8385_v12 = vpop.permute.xlu0 %3206  ;;  %v3427_v2 = vmul.f32 %v8472_v34, %v3425_v20  ;;  %v3428_v7 = vmul.f32 %v8341_v45, %v3425_v20  ;;  %v3426_v40 = vmul.f32 %v8369_v41, %v3425_v20 }
 0x4f5   :  { %v8390_v43 = vpop.permute.xlu1 %3208 }
 0x4f6   :  { %3746 = vrot.lane.b32.xlu1 %v3737_v15, %s5684_s23  ;;  %v3412_v15 = vmul.f32 %v8369_v41, %v3411_v10 }
 0x4f7   :  { %3748 = vrot.lane.b32.xlu0 %v3739_v62, %s5684_s23  ;;  %v3409_v62 = vstv %s5486_s4  ;;  %s9071_s4 = sld [smem:[#allocation11 + $0x3e]] }
 0x4f9   :  { %v8393_v32 = vpop.permute.xlu0 %3210 }
 0x4fa   :  { %3750 = vrot.lane.b32.xlu1 %v3738_v13, %s5684_s23 }
 0x4fc   :  { %v8396_v31 = vpop.permute.xlu1 %3212 }
 0x4fd   :  { %v8398_v61 = vpop.permute.xlu0 %3246 }
 0x4fe   :  { %10025 = vst [vmem:[#allocation32_spill] sm:$0xff] %v8398_v61 }
 0x500   :  { %v8400_v35 = vpop.permute.xlu1 %3248 }
 0x501   :  { %10026 = vst [vmem:[#allocation38_spill] sm:$0xff] %v8400_v35  ;;  %v8402_v22 = vpop.permute.xlu0 %3250  ;;  %v3467_v35 = vmul.f32 %v8326_v4, %v3461_v58 }
 0x502   :  { %10027 = vst [vmem:[#allocation25_spill] sm:$0xff] %v8402_v22  ;;  %v3466_v22 = vmul.f32 %v8350_v18, %v3461_v58 }
 0x504   :  { %v8404_v49 = vpop.permute.xlu1 %3252 }
 0x505   :  { %10028 = vst [vmem:[#allocation39_spill] sm:$0xff] %v8404_v49  ;;  %v8406_v19 = vpop.permute.xlu0 %3286  ;;  %v3465_v49 = vmul.f32 %v8357_v39, %v3461_v58 }
 0x506   :  { %10029 = vst [vmem:[#allocation27_spill] sm:$0xff] %v8406_v19  ;;  %v3415_v19 = vmul.f32 %v8357_v39, %v3411_v10 }
 0x507   :  { %v3479_v14 = vrot.slane %v3465_v49, 2 }
 0x508   :  { %v8408_v46 = vpop.permute.xlu1 %3288 }
 0x509   :  { %10030 = vst [vmem:[#allocation28_spill] sm:$0xff] %v8408_v46  ;;  %v8410_v56 = vpop.permute.xlu0 %3290  ;;  %v3464_v46 = vmul.f32 %v8341_v45, %v3461_v58 }
 0x50a   :  { %10031 = vst [vmem:[#allocation29_spill] sm:$0xff] %v8410_v56 }
 0x50c   :  { %v8412_v1 = vpop.permute.xlu1 %3292 }
 0x50d   :  { %10032 = vst [vmem:[#allocation24_spill] sm:$0xff] %v8412_v1  ;;  %v8414_v0 = vpop.permute.xlu0 %3312 }
 0x50e   :  { %10033 = vst [vmem:[#allocation26_spill] sm:$0xff] %v8414_v0  ;;  %v3414_v0 = vmul.f32 %v8341_v45, %v3411_v10 }
 0x510   :  { %v8416_v59 = vpop.permute.xlu1 %3314 }
 0x511   :  { %10034 = vst [vmem:[#allocation40_spill] sm:$0xff] %v8416_v59  ;;  %v8418_v25 = vpop.permute.xlu0 %3316  ;;  %v3418_v59 = vadd.f32 %v3412_v15, %v3409_v62 }
 0x512   :  { %10035 = vst [vmem:[#allocation44_spill] sm:$0xff] %v8418_v25 }
 0x514   :  { %v8420_v44 = vpop.permute.xlu1 %3318 }
 0x515   :  { %10036 = vst [vmem:[#allocation45_spill] sm:$0xff] %v8420_v44  ;;  %v8422_v47 = vpop.permute.xlu0 %3352  ;;  %v3430_v44 = vmul.f32 %v8350_v18, %v3425_v20 }
 0x516   :  { %10037 = vst [vmem:[#allocation47_spill] sm:$0xff] %v8422_v47  ;;  %v3429_v47 = vmul.f32 %v8357_v39, %v3425_v20 }
 0x517   :  { %v3444_v28 = vrot.slane %v3430_v44, 1  ;;  %v3421_v44 = vadd.f32 %v3415_v19, %v3409_v62 }
 0x518   :  { %v8424_v17 = vpop.permute.xlu1 %3354  ;;  %v3443_v15 = vrot.slane %v3429_v47, 1 }
 0x519   :  { %10038 = vst [vmem:[#allocation46_spill] sm:$0xff] %v8424_v17  ;;  %v8426_v9 = vpop.permute.xlu0 %3356  ;;  %v3438_v17 = vrot.slane %v3426_v40, 1 }
 0x51a   :  { %10039 = vst [vmem:[#allocation37_spill] sm:$0xff] %v8426_v9  ;;  %v3441_v9 = vrot.slane %v3428_v7, 1  ;;  %v3445_v61 = vsel %vm166_vm3, %v3443_v15, %v3444_v28 }
 0x51c   :  { %v8428_v60 = vpop.permute.xlu1 %3358 }
 0x51d   :  { %10040 = vst [vmem:[#allocation41_spill] sm:$0xff] %v8428_v60  ;;  %v8430_v27 = vpop.permute.xlu0 %3392  ;;  %v3413_v60 = vmul.f32 %v8472_v34, %v3411_v10 }
 0x51e   :  { %10041 = vst [vmem:[#allocation17_spill] sm:$0xff] %v8430_v27 }
 0x51f   :  { %v3419_v7 = vadd.f32 %v3413_v60, %v3409_v62  ;;  %v3477_v60 = vrot.slane %v3464_v46, 2 }
 0x520   :  { %v8432_v21 = vpop.permute.xlu1 %3394 }
 0x521   :  { %10042 = vst [vmem:[#allocation21_spill] sm:$0xff] %v8432_v21  ;;  %v8434_v53 = vpop.permute.xlu0 %3396  ;;  %v3463_v21 = vmul.f32 %v8472_v34, %v3461_v58 }
 0x522   :  { %10043 = vst [vmem:[#allocation20_spill] sm:$0xff] %v8434_v53  ;;  %v3462_v53 = vmul.f32 %v8369_v41, %v3461_v58  ;;  %v3482_v58 = vrot.slane %v3467_v35, 2 }
 0x523   :  { %v3475_v56 = vrot.slane %v3463_v21, 2 }
 0x524   :  { %v8436_v16 = vpop.permute.xlu1 %3398  ;;  %v3474_v1 = vrot.slane %v3462_v53, 2  ;;  %v3420_v53 = vadd.f32 %v3414_v0, %v3409_v62 }
 0x525   :  { %10044 = vst [vmem:[#allocation43_spill] sm:$0xff] %v8436_v16  ;;  %v8438_v38 = vpop.permute.xlu0 %3510  ;;  %v3439_v16 = vrot.slane %v3427_v2, 1  ;;  %v3431_v2 = vmul.f32 %v8326_v4, %v3425_v20  ;;  %v3416_v20 = vmul.f32 %v8350_v18, %v3411_v10  ;;  %v3480_v18 = vrot.slane %v3466_v22, 2 }
 0x526   :  { %v3476_v39 = vsel %vm203_vm4, %v3474_v1, %v3475_v56  ;;  %v3456_v0 = vadd.f32 %v3441_v9, %v3420_v53  ;;  %v3478_v46 = vsel %vm203_vm4, %v3475_v56, %v3477_v60  ;;  %v8536_v53 = vstv %s5499_s24  ;;  %s9084_s24 = sld [smem:[#allocation11 + $0x36]] }
 0x527   :  { %v3440_v41 = vsel %vm166_vm3, %v3438_v17, %v3439_v16  ;;  %v3442_v40 = vsel %vm166_vm3, %v3439_v16, %v3441_v9  ;;  %v3446_v45 = vrot.slane %v3431_v2, 1  ;;  %v3417_v16 = vmul.f32 %v8326_v4, %v3411_v10 }
 0x528   :  { %v8440_v50 = vpop.permute.xlu1 %3512  ;;  %v3454_v21 = vadd.f32 %v3440_v41, %v3418_v59  ;;  %v3455_v47 = vadd.f32 %v3442_v40, %v3419_v7  ;;  %v3457_v7 = vadd.f32 %v3445_v61, %v3421_v44  ;;  %v3481_v19 = vsel %vm203_vm4, %v3479_v14, %v3480_v18 }
 0x529   :  { %v8442_v37 = vpop.permute.xlu0 %3514  ;;  %v3447_v59 = vsel %vm166_vm3, %v3444_v28, %v3446_v45  ;;  %v3423_v10 = vadd.f32 %v3417_v16, %v3409_v62  ;;  %v3483_v9 = vsel %vm203_vm4, %v3480_v18, %v3482_v58  ;;  %v3220_v44 = vadd.f32 %v8393_v32, %v8251_v11 }
 0x52a   :  { %v3490_v41 = vadd.f32 %v3476_v39, %v3454_v21  ;;  %v3491_v1 = vadd.f32 %v3478_v46, %v3455_v47  ;;  %v3492_v39 = vadd.f32 %v3477_v60, %v3456_v0  ;;  %v8565_v32 = vstv %s8527_s26  ;;  %s9114_s26 = sld [smem:[#allocation11 + $0x3c]] }
 0x52b   :  { %v3459_v35 = vadd.f32 %v3446_v45, %v3423_v10 }
 0x52c   :  { %v8444_v42 = vpop.permute.xlu1 %3516  ;;  %v3528_v4 = vadd.f32 %v8438_v38, %v3490_v41  ;;  %v3529_v22 = vadd.f32 %v8440_v50, %v3491_v1  ;;  %v3530_v38 = vadd.f32 %v8442_v37, %v3492_v39  ;;  %v10053_v39 = vld [vmem:[#allocation38_spill] sm:$0xff] }
 0x52d   :  { %v8446_v6 = vpop.permute.xlu0 %3518 }
 0x530   :  { %v8448_v24 = vpop.permute.xlu1 %3520 }
 0x531   :  { %v8450_v8 = vpop.permute.xlu0 %3558 }
 0x532   :  { %v3576_v28 = vadd.f32 %v8450_v8, %v3528_v4  ;;  %v3495_v8 = vadd.f32 %v3482_v58, %v3459_v35 }
 0x534   :  { %v8452_v5 = vpop.permute.xlu1 %3560 }
 0x535   :  { %v8454_v55 = vpop.permute.xlu0 %3562  ;;  %v3577_v61 = vadd.f32 %v8452_v5, %v3529_v22 }
 0x538   :  { %v8456_v29 = vpop.permute.xlu1 %3564 }
 0x539   :  { %v8458_v52 = vpop.permute.xlu0 %3566 }
 0x53c   :  { %v8460_v3 = vpop.permute.xlu1 %3568 }
 0x53d   :  { %v8462_v36 = vpop.permute.xlu0 %3606 }
 0x53e   :  { %v3624_v14 = vadd.f32 %v8462_v36, %v3576_v28  ;;  %v10054_v28 = vld [vmem:[#allocation25_spill] sm:$0xff] }
 0x53f   :  { %v3260_v35 = vadd.f32 %v10054_v28, %v3220_v44 }
 0x540   :  { %v8464_v54 = vpop.permute.xlu1 %3608 }
 0x541   :  { %v8466_v51 = vpop.permute.xlu0 %3610  ;;  %v3625_v18 = vadd.f32 %v8464_v54, %v3577_v61  ;;  %v3533_v54 = vadd.f32 %v8448_v24, %v3495_v8  ;;  %v8545_v24 = vstv %s8517_s25  ;;  %s9094_s25 = sld [smem:[#allocation11 + $0x39]] }
 0x544   :  { %v8468_v48 = vpop.permute.xlu1 %3612 }
 0x545   :  { %v8470_v57 = vpop.permute.xlu0 %3614 }
 0x548   :  { %v8475_v30 = vpop.permute.xlu1 %3616 }
 0x549   :  { %10046 = vst [vmem:[#allocation31_spill] sm:$0xff] %v8475_v30  ;;  %v8479_v13 = vpop.permute.xlu0 %3644  ;;  %v3422_v30 = vadd.f32 %v3416_v20, %v3409_v62  ;;  %v3493_v62 = vadd.f32 %v3481_v19, %v3457_v7  ;;  %v3578_v20 = vadd.f32 %v8454_v55, %v3530_v38  ;;  %v3218_v55 = vadd.f32 %v8385_v12, %v8241_v23 }
 0x54a   :  { %v3662_v4 = vadd.f32 %v8479_v13, %v3624_v14 }
 0x54b   :  { %v3458_v40 = vadd.f32 %v3447_v59, %v3422_v30  ;;  %v3531_v50 = vadd.f32 %v8444_v42, %v3493_v62  ;;  %v3626_v5 = vadd.f32 %v8466_v51, %v3578_v20  ;;  %v4115_v62 = vstv %s5508_s18  ;;  %s9560_s18 = sld [smem:[#allocation11 + $0x47]] }
 0x54c   :  { %v8484_v27 = vpop.permute.xlu1 %3646 }
 0x54d   :  { %v8489_v25 = vpop.permute.xlu0 %3648  ;;  %v3494_v30 = vadd.f32 %v3483_v9, %v3458_v40  ;;  %v3579_v37 = vadd.f32 %v8456_v29, %v3531_v50  ;;  %v3663_v36 = vadd.f32 %v8484_v27, %v3625_v18  ;;  %v3219_v27 = vadd.f32 %v8390_v43, %v8235_v63  ;;  %v10056_v50 = vld [vmem:[#allocation39_spill] sm:$0xff] }
 0x54e   :  { %v3664_v29 = vadd.f32 %v8489_v25, %v3626_v5  ;;  %v3221_v63 = vadd.f32 %v8396_v31, %v8268_v33  ;;  %v10057_v18 = vld [vmem:[#allocation27_spill] sm:$0xff] }
 0x54f   :  { %v3532_v45 = vadd.f32 %v8446_v6, %v3494_v30  ;;  %v3627_v60 = vadd.f32 %v8468_v48, %v3579_v37  ;;  %v3259_v9 = vadd.f32 %v10053_v39, %v3219_v27 }
 0x550   :  { %v8495_v34 = vpop.permute.xlu1 %3650  ;;  %v10048_v43 = vld [vmem:[#allocation31_spill] sm:$0xff]  ;;  %v3261_v20 = vadd.f32 %v10056_v50, %v3221_v63  ;;  %v10063_v63 = vld [vmem:[#allocation44_spill] sm:$0xff]  ;;  %v10070_v50 = vld [vmem:[#allocation21_spill] sm:$0xff] }
 0x551   :  { %v8502_v17 = vpop.permute.xlu0 %3652  ;;  %v3580_v13 = vadd.f32 %v8458_v52, %v3532_v45  ;;  %v3665_v52 = vadd.f32 %v8495_v34, %v3627_v60  ;;  %v10060_v60 = vld [vmem:[#allocation24_spill] sm:$0xff] }
 0x552   :  { %10047 = vst [vmem:[#allocation19_spill] sm:$0xff] %v8502_v17 }
 0x553   :  { %v3628_v23 = vadd.f32 %v8470_v57, %v3580_v13  ;;  %v10059_v13 = vld [vmem:[#allocation29_spill] sm:$0xff] }
 0x554   :  { %v8506_v26 = vpop.permute.xlu1 %3654 }
 0x555   :  { %v3693_v17 = vpop.permute.xlu0 %3692 }
 0x556   :  { %v3710_v42 = vadd.f32 %v3693_v17, %v3662_v4  ;;  %v3581_v17 = vadd.f32 %v8460_v3, %v3533_v54 }
 0x558   :  { %v3695_v2 = vpop.permute.xlu1 %3694  ;;  %v3629_v3 = vadd.f32 %v10048_v43, %v3581_v17 }
 0x559   :  { %v3697_v49 = vpop.permute.xlu0 %3696  ;;  %v3711_v16 = vadd.f32 %v3695_v2, %v3663_v36  ;;  %v10049_v57 = vld [vmem:[#allocation19_spill] sm:$0xff]  ;;  %v10051_v2 = vld [vmem:[#allocation32_spill] sm:$0xff] }
 0x55a   :  { %v3712_v47 = vadd.f32 %v3697_v49, %v3664_v29  ;;  %v3666_v41 = vadd.f32 %v10049_v57, %v3628_v23  ;;  %v3258_v1 = vadd.f32 %v10051_v2, %v3218_v55  ;;  %v3667_v7 = vadd.f32 %v8506_v26, %v3629_v3  ;;  %v10058_v55 = vld [vmem:[#allocation28_spill] sm:$0xff] }
 0x55b   :  { %v3299_v54 = vadd.f32 %v10058_v55, %v3259_v9  ;;  %v3301_v29 = vadd.f32 %v10060_v60, %v3261_v20  ;;  %v10067_v9 = vld [vmem:[#allocation37_spill] sm:$0xff] }
 0x55c   :  { %v3699_v56 = vpop.permute.xlu1 %3698  ;;  %v3298_v4 = vadd.f32 %v10057_v18, %v3258_v1 }
 0x55d   :  { %v3701_v15 = vpop.permute.xlu0 %3700  ;;  %v3713_v59 = vadd.f32 %v3699_v56, %v3665_v52 }
 0x55e   :  { %v3714_v31 = vadd.f32 %v3701_v15, %v3666_v41 }
 0x560   :  { %v3703_v21 = vpop.permute.xlu1 %3702 }
 0x561   :  { %v3741_v6 = vpop.permute.xlu0 %3740  ;;  %v3715_v56 = vadd.f32 %v3703_v21, %v3667_v7  ;;  %v8588_v21 = vstv %s8547_s27  ;;  %s5530_s27 = sld [smem:[#allocation8 + $0x46]] }
 0x562   :  { %v3758_v51 = vadd.f32 %v3741_v6, %v3710_v42  ;;  %v3300_v6 = vadd.f32 %v10059_v13, %v3260_v35  ;;  %v3777_v13 = vstv %s8616_s2  ;;  %s5532_s2 = sld [smem:[#allocation8 + $0x44]] }
 0x564   :  { %v3743_v12 = vpop.permute.xlu1 %3742  ;;  %v3764_v48 = vmax.f32 %v3758_v51, 0.0  ;;  %v3326_v43 = vadd.f32 %v10063_v63, %v3300_v6  ;;  %v10072_v6 = vld [vmem:[#allocation43_spill] sm:$0xff] }
 0x565   :  { %v3759_v25 = vadd.f32 %v3743_v12, %v3711_v16  ;;  %v3745_v0 = vpop.permute.xlu0 %3744  ;;  %v10061_v12 = vld [vmem:[#allocation26_spill] sm:$0xff] }
 0x566   :  { %v8558_v46 = vsel %vm6337_vm12, %v3764_v48, 0.0  ;;  %v3760_v10 = vadd.f32 %v3745_v0, %v3712_v47  ;;  %v3324_v52 = vadd.f32 %v10061_v12, %v3298_v4  ;;  %v10062_v47 = vld [vmem:[#allocation40_spill] sm:$0xff]  ;;  %v10064_v0 = vld [vmem:[#allocation45_spill] sm:$0xff]  ;;  %v3366_v28 = vadd.f32 %v10067_v9, %v3326_v43 }
 0x567   :  { %v3765_v34 = vmax.f32 %v3759_v25, 0.0  ;;  %v3852_v33 = vmul.f32 %v8536_v53, %v8558_v46  ;;  %v3878_v8 = vmul.f32 %v8545_v24, %v8558_v46  ;;  %v3325_v48 = vadd.f32 %v10062_v47, %v3299_v54 }
 0x568   :  { %v3747_v11 = vpop.permute.xlu1 %3746  ;;  %v3766_v49 = vmax.f32 %v3760_v10, 0.0  ;;  %v3819_v12 = vstv %s8632_s30  ;;  %s5521_s30 = sld [smem:[#allocation11 + $0x38]] }
 0x569   :  { %v8569_v40 = vsel %vm6369_vm13, %v3765_v34, 0.0  ;;  %v3761_v22 = vadd.f32 %v3747_v11, %v3713_v59  ;;  %3860 = vrot.lane.b32.xlu0 %v3852_v33, %s5683_s21  ;;  %v3749_v26 = vpop.permute.xlu0 %3748  ;;  %v3890_v57 = vrot.slane %v3878_v8, 1  ;;  %v3327_v59 = vadd.f32 %v10064_v0, %v3301_v29  ;;  %v10065_v34 = vld [vmem:[#allocation47_spill] sm:$0xff] }
 0x56a   :  { %v3853_v38 = vmul.f32 %v8536_v53, %v8569_v40  ;;  %v8578_v61 = vsel %vm6286_vm9, %v3766_v49, 0.0  ;;  %v3762_v30 = vadd.f32 %v3749_v26, %v3714_v31  ;;  %v3879_v15 = vmul.f32 %v8545_v24, %v8569_v40  ;;  %v10066_v31 = vld [vmem:[#allocation46_spill] sm:$0xff] }
 0x56b   :  { %v3767_v14 = vmax.f32 %v3761_v22, 0.0  ;;  %v3880_v42 = vmul.f32 %v8545_v24, %v8578_v61  ;;  %v3364_v10 = vadd.f32 %v10065_v34, %v3324_v52  ;;  %v3919_v2 = vmul.f32 %v8565_v32, %v8569_v40 }
 0x56c   :  { %3862 = vrot.lane.b32.xlu1 %v3853_v38, %s5683_s21  ;;  %v3751_v45 = vpop.permute.xlu1 %3750  ;;  %v3768_v5 = vmax.f32 %v3762_v30, 0.0  ;;  %v3891_v17 = vrot.slane %v3879_v15, 1  ;;  %v3920_v33 = vmul.f32 %v8565_v32, %v8578_v61  ;;  %v3365_v49 = vadd.f32 %v10066_v31, %v3325_v48  ;;  %v10068_v38 = vld [vmem:[#allocation41_spill] sm:$0xff] }
 0x56d   :  { %v8592_v37 = vsel %vm6337_vm12, %v3767_v14, 0.0  ;;  %v3763_v36 = vadd.f32 %v3751_v45, %v3715_v56  ;;  %v3893_v41 = vrot.slane %v3880_v42, 1  ;;  %v3918_v56 = vmul.f32 %v8565_v32, %v8558_v46  ;;  %v10069_v30 = vld [vmem:[#allocation17_spill] sm:$0xff] }
 0x56e   :  { %v3854_v16 = vmul.f32 %v8536_v53, %v8592_v37  ;;  %v8605_v51 = vsel %vm6369_vm13, %v3768_v5, 0.0  ;;  %v3881_v23 = vmul.f32 %v8545_v24, %v8592_v37  ;;  %v3892_v1 = vsel %vm166_vm3, %v3890_v57, %v3891_v17 }
 0x56f   :  { %v3769_v27 = vmax.f32 %v3763_v36, 0.0  ;;  %v3855_v25 = vmul.f32 %v8536_v53, %v8605_v51  ;;  %v3882_v44 = vmul.f32 %v8545_v24, %v8605_v51  ;;  %v3922_v39 = vmul.f32 %v8565_v32, %v8605_v51  ;;  %v10071_v36 = vld [vmem:[#allocation20_spill] sm:$0xff] }
 0x570   :  { %3864 = vrot.lane.b32.xlu0 %v3854_v16, %s5683_s21  ;;  %v3895_v7 = vrot.slane %v3881_v23, 1  ;;  %v3894_v35 = vsel %vm166_vm3, %v3891_v17, %v3893_v41  ;;  %v8648_v26 = vstv %s8596_s28  ;;  %v3367_v14 = vadd.f32 %v10068_v38, %v3327_v59  ;;  %s5531_s28 = sld [smem:[#allocation8 + $0x41]] }
 0x571   :  { %v8621_v3 = vsel %vm6286_vm9, %v3769_v27, 0.0  ;;  %3866 = vrot.lane.b32.xlu1 %v3855_v25, %s5683_s21  ;;  %v3896_v11 = vrot.slane %v3882_v44, 1  ;;  %v3404_v15 = vadd.f32 %v10069_v30, %v3364_v10  ;;  %v3405_v20 = vadd.f32 %v10070_v50, %v3365_v49 }
 0x572   :  { %v3883_v53 = vmul.f32 %v8545_v24, %v8621_v3  ;;  %v3921_v24 = vmul.f32 %v8565_v32, %v8592_v37  ;;  %v3931_v18 = vrot.slane %v3919_v2, 2  ;;  %v3933_v8 = vrot.slane %v3920_v33, 2 }
 0x573   :  { %v3897_v4 = vsel %vm166_vm3, %v3895_v7, %v3896_v11  ;;  %v3923_v5 = vmul.f32 %v8565_v32, %v8621_v3  ;;  %v8659_v42 = vadd.f32 %v10071_v36, %v3366_v28  ;;  %v3936_v54 = vrot.slane %v3922_v39, 2 }
 0x574   :  { %3900 = vrot.lane.b32.xlu0 %v3892_v1, %s5683_s21  ;;  %v3898_v22 = vrot.slane %v3883_v53, 1  ;;  %v3935_v55 = vrot.slane %v3921_v24, 2  ;;  %v3407_v60 = vadd.f32 %v10072_v6, %v3367_v14  ;;  %v3930_v29 = vrot.slane %v3918_v56, 2 }
 0x575   :  { %3902 = vrot.lane.b32.xlu1 %v3894_v35, %s5683_s21  ;;  %v8666_v16 = vmul.f32 %v8648_v26, %v8569_v40  ;;  %v3787_v27 = vstv %s8623_s29  ;;  %v3958_v32 = vmul.f32 %v8588_v21, %v8558_v46  ;;  %v3959_v17 = vmul.f32 %v8588_v21, %v8569_v40  ;;  %s5533_s29 = sld [smem:[#allocation8 + $0x47]] }
 0x576   :  { %v3899_v45 = vsel %vm166_vm3, %v3896_v11, %v3898_v22  ;;  %v8676_v23 = vmul.f32 %v8648_v26, %v8558_v46  ;;  %v3932_v52 = vsel %vm203_vm4, %v3930_v29, %v3931_v18  ;;  %v3934_v47 = vsel %vm203_vm4, %v3931_v18, %v3933_v8 }
 0x577   :  { %v3938_v48 = vrot.slane %v3923_v5, 2  ;;  %v3778_v25 = vmul.f32 %v3777_v13, %v8558_v46  ;;  %v3937_v44 = vsel %vm203_vm4, %v3935_v55, %v3936_v54  ;;  %v3960_v63 = vmul.f32 %v8588_v21, %v8592_v37 }
 0x578   :  { %3904 = vrot.lane.b32.xlu0 %v3897_v4, %s5683_s21  ;;  %v3788_v43 = vmul.f32 %v3787_v27, %v8558_v46  ;;  %v3789_v57 = vmul.f32 %v3787_v27, %v8569_v40  ;;  %v3997_v41 = vrot.slane %v8666_v16, 1  ;;  %v8691_v0 = vmul.f32 %v8648_v26, %v8578_v61 }
 0x579   :  { %3906 = vrot.lane.b32.xlu1 %v3899_v45, %s5683_s21  ;;  %v3820_v59 = vmul.f32 %v3819_v12, %v8558_v46  ;;  %v3821_v34 = vmul.f32 %v3819_v12, %v8569_v40  ;;  %v3782_v2 = vadd.f32 %v3778_v25, %v3404_v15  ;;  %v3779_v1 = vmul.f32 %v3777_v13, %v8569_v40 }
 0x57a   :  { %v3800_v10 = vrot.slane %v3788_v43, 1  ;;  %v3801_v53 = vrot.slane %v3789_v57, 1  ;;  %v3939_v7 = vsel %vm203_vm4, %v3936_v54, %v3938_v48  ;;  %v3790_v31 = vmul.f32 %v3787_v27, %v8578_v61 }
 0x57b   :  { %v3832_v11 = vrot.slane %v3820_v59, 2  ;;  %v3833_v33 = vrot.slane %v3821_v34, 2  ;;  %v3783_v22 = vadd.f32 %v3779_v1, %v3405_v20  ;;  %v3822_v24 = vmul.f32 %v3819_v12, %v8578_v61 }
 0x57c   :  { %3940 = vrot.lane.b32.xlu0 %v3932_v52, %s5683_s21  ;;  %v3802_v49 = vsel %vm166_vm3, %v3800_v10, %v3801_v53  ;;  %v3793_v39 = vmul.f32 %v3787_v27, %v8621_v3  ;;  %v3803_v35 = vrot.slane %v3790_v31, 1  ;;  %v3825_v56 = vmul.f32 %v3819_v12, %v8621_v3 }
 0x57d   :  { %3942 = vrot.lane.b32.xlu1 %v3934_v47, %s5683_s21  ;;  %v3834_v9 = vsel %vm203_vm4, %v3832_v11, %v3833_v33  ;;  %v3814_v28 = vadd.f32 %v3802_v49, %v3782_v2  ;;  %v3835_v38 = vrot.slane %v3822_v24, 2  ;;  %v3781_v30 = vmul.f32 %v3777_v13, %v8605_v51 }
 0x57e   :  { %v3808_v14 = vrot.slane %v3793_v39, 1  ;;  %v3792_v15 = vmul.f32 %v3787_v27, %v8605_v51  ;;  %v3804_v20 = vsel %vm166_vm3, %v3801_v53, %v3803_v35  ;;  %v3840_v18 = vrot.slane %v3825_v56, 2  ;;  %v10073_v35 = vld [vmem:[#allocation23_spill] sm:$0xff] }
 0x57f   :  { %v8710_v50 = vadd.f32 %v3834_v9, %v3814_v28  ;;  %v3824_v4 = vmul.f32 %v3819_v12, %v8605_v51  ;;  %v3815_v45 = vadd.f32 %v3804_v20, %v3783_v22  ;;  %v3836_v8 = vsel %vm203_vm4, %v3833_v33, %v3835_v38  ;;  %v10074_v38 = vld [vmem:[#allocation36_spill] sm:$0xff] }
 0x580   :  { %3944 = vrot.lane.b32.xlu0 %v3937_v44, %s5683_s21  ;;  %v3785_v5 = vadd.f32 %v3781_v30, %v3407_v60  ;;  %v3806_v36 = vrot.slane %v3792_v15, 1  ;;  %v3780_v54 = vmul.f32 %v3777_v13, %v8592_v37  ;;  %v3791_v6 = vmul.f32 %v3787_v27, %v8592_v37  ;;  %v10075_v30 = vld [vmem:[#allocation18_spill] sm:$0xff] }
 0x581   :  { %3946 = vrot.lane.b32.xlu1 %v3939_v7, %s5683_s21  ;;  %v3838_v55 = vrot.slane %v3824_v4, 2  ;;  %v3823_v29 = vmul.f32 %v3819_v12, %v8592_v37  ;;  %v3987_v52 = vmul.f32 %v8648_v26, %v8592_v37  ;;  %v8724_v47 = vadd.f32 %v3836_v8, %v3815_v45  ;;  %v10076_v4 = vld [vmem:[#allocation30_spill] sm:$0xff] }
 0x582   :  { %v3809_v60 = vsel %vm166_vm3, %v3806_v36, %v3808_v14  ;;  %v3784_v27 = vadd.f32 %v3780_v54, %v8659_v42  ;;  %v3805_v25 = vrot.slane %v3791_v6, 1  ;;  %v3996_v12 = vrot.slane %v8676_v23, 1  ;;  %v10078_v6 = vld [vmem:[#allocation42_spill] sm:$0xff] }
 0x583   :  { %v3817_v48 = vadd.f32 %v3809_v60, %v3785_v5  ;;  %v3841_v13 = vsel %vm203_vm4, %v3838_v55, %v3840_v18  ;;  %v3837_v44 = vrot.slane %v3823_v29, 2  ;;  %v3999_v43 = vrot.slane %v8691_v0, 1 }
 0x584   :  { %3966 = vrot.lane.b32.xlu0 %v3958_v32, %s5684_s23  ;;  %v3988_v32 = vmul.f32 %v8648_v26, %v8605_v51  ;;  %v3989_v57 = vmul.f32 %v8648_v26, %v8621_v3  ;;  %v3807_v34 = vsel %vm166_vm3, %v3805_v25, %v3806_v36  ;;  %v4023_v42 = vstv %s8706_s6  ;;  %v10077_v36 = vld [vmem:[#allocation22_spill] sm:$0xff]  ;;  %s5526_s6 = sld [smem:[#allocation8 + $0x42]] }
 0x585   :  { %3968 = vrot.lane.b32.xlu1 %v3959_v17, %s5684_s23  ;;  %v3961_v17 = vmul.f32 %v8588_v21, %v8605_v51  ;;  %v8736_v59 = vadd.f32 %v3841_v13, %v3817_v48  ;;  %v3816_v10 = vadd.f32 %v3807_v34, %v3784_v27  ;;  %v3998_v21 = vsel %vm166_vm3, %v3996_v12, %v3997_v41 }
 0x586   :  { %v4001_v23 = vrot.slane %v3987_v52, 1  ;;  %v4002_v53 = vrot.slane %v3988_v32, 1  ;;  %v4025_v0 = vmul.f32 %v4023_v42, %v8569_v40  ;;  %v4000_v2 = vsel %vm166_vm3, %v3997_v41, %v3999_v43 }
 0x587   :  { %v4004_v1 = vrot.slane %v3989_v57, 1  ;;  %v4024_v7 = vmul.f32 %v4023_v42, %v8558_v46  ;;  %v4026_v11 = vmul.f32 %v4023_v42, %v8578_v61  ;;  %v4027_v40 = vmul.f32 %v4023_v42, %v8592_v37 }
 0x588   :  { %3970 = vrot.lane.b32.xlu0 %v3960_v63, %s5684_s23  ;;  %v3839_v63 = vsel %vm203_vm4, %v3837_v44, %v3838_v55  ;;  %v4003_v33 = vsel %vm166_vm3, %v4001_v23, %v4002_v53  ;;  %v4037_v31 = vrot.slane %v4025_v0, 2  ;;  %v4028_v49 = vmul.f32 %v4023_v42, %v8605_v51 }
 0x589   :  { %3972 = vrot.lane.b32.xlu1 %v3961_v17, %s5684_s23  ;;  %v8747_v26 = vadd.f32 %v3839_v63, %v3816_v10  ;;  %v4005_v16 = vsel %vm166_vm3, %v4002_v53, %v4004_v1  ;;  %v4036_v41 = vrot.slane %v4024_v7, 2  ;;  %v4039_v22 = vrot.slane %v4026_v11, 2 }
 0x58a   :  { %v4029_v46 = vmul.f32 %v4023_v42, %v8621_v3  ;;  %v4041_v24 = vrot.slane %v4027_v40, 2  ;;  %v4042_v39 = vrot.slane %v4028_v49, 2  ;;  %v4151_v28 = vstv %s5509_s9  ;;  %s5525_s9 = sld [smem:[#allocation8 + $0x3f]] }
 0x58b   :  { %v4038_v61 = vsel %vm203_vm4, %v4036_v41, %v4037_v31  ;;  %v4040_v37 = vsel %vm203_vm4, %v4037_v31, %v4039_v22  ;;  %v4152_v56 = vmul.f32 %v10073_v35, %v4151_v28  ;;  %v4153_v14 = vmul.f32 %v10074_v38, %v4151_v28 }
 0x58c   :  { %4006 = vrot.lane.b32.xlu0 %v3998_v21, %s5684_s23  ;;  %v4044_v51 = vrot.slane %v4029_v46, 2  ;;  %v4043_v9 = vsel %vm203_vm4, %v4041_v24, %v4042_v39  ;;  %v4154_v15 = vmul.f32 %v10075_v30, %v4151_v28  ;;  %v4189_v20 = vstv %s5510_s10  ;;  %s5527_s10 = sld [smem:[#allocation8 + $0x45]] }
 0x58d   :  { %4008 = vrot.lane.b32.xlu1 %v4000_v2, %s5684_s23  ;;  %v4191_v18 = vmul.f32 %v10074_v38, %v4189_v20  ;;  %v4155_v45 = vmul.f32 %v10076_v4, %v4151_v28  ;;  %v4190_v8 = vmul.f32 %v10073_v35, %v4189_v20  ;;  %v4192_v5 = vmul.f32 %v10075_v30, %v4189_v20 }
 0x58e   :  { %v4045_v3 = vsel %vm203_vm4, %v4042_v39, %v4044_v51  ;;  %v4156_v55 = vmul.f32 %v10077_v36, %v4151_v28  ;;  %v4157_v29 = vmul.f32 %v10078_v6, %v4151_v28  ;;  %v4193_v60 = vmul.f32 %v10076_v4, %v4189_v20 }
 0x58f   :  { %v4203_v54 = vrot.slane %v4191_v18, 1  ;;  %v4202_v52 = vrot.slane %v4190_v8, 1  ;;  %v4205_v32 = vrot.slane %v4192_v5, 1  ;;  %v4194_v48 = vmul.f32 %v10077_v36, %v4189_v20 }
 0x590   :  { %4010 = vrot.lane.b32.xlu0 %v4003_v33, %s5684_s23  ;;  %v4195_v27 = vmul.f32 %v10078_v6, %v4189_v20  ;;  %v4207_v17 = vrot.slane %v4193_v60, 1  ;;  %v4237_v44 = vstv %s5511_s11  ;;  %v4285_v41 = vstv %s5512_s12  ;;  %v8842_v60 = vld [vmem:[#allocation2 + $0x10] sm:$0xf]  ;;  %s5524_s11 = sld [smem:[#allocation9 + $0x7]]  ;;  %s5537_s12 = sld [smem:[#allocation11 + $0x40]] }
 0x591   :  { %4012 = vrot.lane.b32.xlu1 %v4005_v16, %s5684_s23  ;;  %v4204_v13 = vsel %vm166_vm3, %v4202_v52, %v4203_v54  ;;  %v4206_v25 = vsel %vm166_vm3, %v4203_v54, %v4205_v32  ;;  %v4208_v12 = vrot.slane %v4194_v48, 1  ;;  %v4239_v57 = vmul.f32 %v10074_v38, %v4237_v44 }
 0x592   :  { %v4210_v43 = vrot.slane %v4195_v27, 1  ;;  %v4238_v42 = vmul.f32 %v10073_v35, %v4237_v44  ;;  %v4240_v10 = vmul.f32 %v10075_v30, %v4237_v44  ;;  %v4241_v0 = vmul.f32 %v10076_v4, %v4237_v44 }
 0x593   :  { %v4209_v34 = vsel %vm166_vm3, %v4207_v17, %v4208_v12  ;;  %v4251_v21 = vrot.slane %v4239_v57, 2  ;;  %v4242_v2 = vmul.f32 %v10077_v36, %v4237_v44  ;;  %v4243_v7 = vmul.f32 %v10078_v6, %v4237_v44  ;;  %v8849_v44 = vld [vmem:[#allocation2 + $0x20] sm:$0xff] }
 0x594   :  { %4046 = vrot.lane.b32.xlu0 %v4038_v61, %s5684_s23  ;;  %v4211_v63 = vsel %vm166_vm3, %v4208_v12, %v4210_v43  ;;  %v4250_v23 = vrot.slane %v4238_v42, 2  ;;  %v4253_v53 = vrot.slane %v4240_v10, 2  ;;  %v4255_v33 = vrot.slane %v4241_v0, 2  ;;  %10080 = vst [vmem:[#allocation19_spill] sm:$0xff] %v8849_v44 }
 0x595   :  { %4048 = vrot.lane.b32.xlu1 %v4040_v37, %s5684_s23  ;;  %v4256_v31 = vrot.slane %v4242_v2, 2  ;;  %v4258_v40 = vrot.slane %v4243_v7, 2  ;;  %v4286_v22 = vmul.f32 %v10073_v35, %v4285_v41  ;;  %v4287_v46 = vmul.f32 %v10074_v38, %v4285_v41 }
 0x596   :  { %v4252_v1 = vsel %vm203_vm4, %v4250_v23, %v4251_v21  ;;  %v4254_v11 = vsel %vm203_vm4, %v4251_v21, %v4253_v53  ;;  %v4288_v61 = vmul.f32 %v10075_v30, %v4285_v41  ;;  %v4323_v24 = vstv %s5513_s13  ;;  %s9506_s13 = sld [smem:[#allocation11 + $0x43]] }
 0x597   :  { %v4257_v49 = vsel %vm203_vm4, %v4255_v33, %v4256_v31  ;;  %v4259_v16 = vsel %vm203_vm4, %v4256_v31, %v4258_v40  ;;  %v4325_v39 = vmul.f32 %v10074_v38, %v4323_v24  ;;  %v4289_v37 = vmul.f32 %v10076_v4, %v4285_v41 }
 0x598   :  { %4050 = vrot.lane.b32.xlu0 %v4043_v9, %s5684_s23  ;;  %v4324_v51 = vmul.f32 %v10073_v35, %v4323_v24  ;;  %v4326_v9 = vmul.f32 %v10075_v30, %v4323_v24  ;;  %v4290_v28 = vmul.f32 %v10077_v36, %v4285_v41  ;;  %v4327_v18 = vmul.f32 %v10076_v4, %v4323_v24 }
 0x599   :  { %4052 = vrot.lane.b32.xlu1 %v4045_v3, %s5684_s23  ;;  %v4337_v3 = vrot.slane %v4325_v39, 1  ;;  %v4371_v6 = vstv %s5514_s14  ;;  %v4117_v58 = vmul.f32 %v10074_v38, %v4115_v62  ;;  %s9522_s14 = sld [smem:[#allocation11 + $0x46]] }
 0x59a   :  { %v4339_v20 = vrot.slane %v4326_v9, 1  ;;  %v4373_v52 = vmul.f32 %v10074_v38, %v4371_v6  ;;  %v4374_v48 = vmul.f32 %v8842_v60, %v4371_v6  ;;  %v4375_v12 = vmul.f32 %v10076_v4, %v4371_v6 }
 0x59c   :  { %4164 = vrot.lane.b32.xlu0 %v4152_v56, %s5683_s21  ;;  %v8827_v56 = vld [vmem:[#allocation2 + $0x28] sm:$0xf]  ;;  %v4340_v5 = vsel %vm166_vm3, %v4337_v3, %v4339_v20  ;;  %v4385_v27 = vrot.slane %v4373_v52, 2  ;;  %v4387_v17 = vrot.slane %v4374_v48, 2  ;;  %v4389_v42 = vrot.slane %v4375_v12, 2  ;;  %v8946_v12 = vld [vmem:[#allocation2 + $0x18] sm:$0xff] }
 0x59d   :  { %4166 = vrot.lane.b32.xlu1 %v4153_v14, %s5683_s21  ;;  %10079 = vst [vmem:[#allocation31_spill] sm:$0xff] %v8827_v56  ;;  %v4291_v14 = vmul.f32 %v8827_v56, %v4285_v41  ;;  %v4329_v8 = vmul.f32 %v8827_v56, %v4323_v24  ;;  %v4377_v57 = vmul.f32 %v8827_v56, %v4371_v6 }
 0x5a0   :  { %4168 = vrot.lane.b32.xlu0 %v4154_v15, %s5683_s21  ;;  %v4336_v15 = vrot.slane %v4324_v51, 1 }
 0x5a1   :  { %4170 = vrot.lane.b32.xlu1 %v4155_v45, %s5683_s21  ;;  %v4328_v45 = vmul.f32 %v10077_v36, %v4323_v24 }
 0x5a2   :  { %v4338_v30 = vsel %vm166_vm3, %v4336_v15, %v4337_v3 }
 0x5a3   :  { %v4342_v54 = vrot.slane %v4328_v45, 1 }
 0x5a4   :  { %4172 = vrot.lane.b32.xlu0 %v4156_v55, %s5683_s21  ;;  %v4341_v55 = vrot.slane %v4327_v18, 1 }
 0x5a5   :  { %4174 = vrot.lane.b32.xlu1 %v4157_v29, %s5683_s21  ;;  %v4344_v29 = vrot.slane %v4329_v8, 1 }
 0x5a6   :  { %v4343_v36 = vsel %vm166_vm3, %v4341_v55, %v4342_v54 }
 0x5a8   :  { %4212 = vrot.lane.b32.xlu0 %v4204_v13, %s5683_s21  ;;  %v4345_v13 = vsel %vm166_vm3, %v4342_v54, %v4344_v29 }
 0x5a9   :  { %4214 = vrot.lane.b32.xlu1 %v4206_v25, %s5683_s21 }
 0x5ac   :  { %4216 = vrot.lane.b32.xlu0 %v4205_v32, %s5683_s21  ;;  %v4372_v32 = vmul.f32 %v10073_v35, %v4371_v6 }
 0x5ad   :  { %4218 = vrot.lane.b32.xlu1 %v4209_v34, %s5683_s21  ;;  %v4388_v34 = vsel %vm203_vm4, %v4385_v27, %v4387_v17 }
 0x5ae   :  { %v4384_v25 = vrot.slane %v4372_v32, 2 }
 0x5b0   :  { %4220 = vrot.lane.b32.xlu0 %v4211_v63, %s5683_s21  ;;  %v4386_v35 = vsel %vm203_vm4, %v4384_v25, %v4385_v27  ;;  %v4392_v63 = vrot.slane %v4377_v57, 2 }
 0x5b1   :  { %4222 = vrot.lane.b32.xlu1 %v4210_v43, %s5683_s21  ;;  %v4376_v43 = vmul.f32 %v8849_v44, %v4371_v6 }
 0x5b3   :  { %v4390_v10 = vrot.slane %v4376_v43, 2 }
 0x5b4   :  { %4260 = vrot.lane.b32.xlu0 %v4252_v1, %s5683_s21 }
 0x5b5   :  { %4262 = vrot.lane.b32.xlu1 %v4254_v11, %s5683_s21  ;;  %v4391_v4 = vsel %vm203_vm4, %v4389_v42, %v4390_v10  ;;  %v4065_v42 = vstv %s5506_s17  ;;  %s9557_s17 = sld [smem:[#allocation11 + $0x44]] }
 0x5b8   :  { %4264 = vrot.lane.b32.xlu0 %v4253_v53, %s5683_s21  ;;  %v4393_v53 = vsel %vm203_vm4, %v4390_v10, %v4392_v63  ;;  %v8952_v10 = vld [vmem:[#allocation2] sm:$0xff] }
 0x5b9   :  { %4266 = vrot.lane.b32.xlu1 %v4257_v49, %s5683_s21 }
 0x5bc   :  { %4268 = vrot.lane.b32.xlu0 %v4259_v16, %s5683_s21 }
 0x5bd   :  { %4270 = vrot.lane.b32.xlu1 %v4258_v40, %s5683_s21 }
 0x5c0   :  { %4298 = vrot.lane.b32.xlu0 %v4286_v22, %s5684_s23 }
 0x5c1   :  { %4300 = vrot.lane.b32.xlu1 %v4287_v46, %s5684_s23 }
 0x5c4   :  { %4302 = vrot.lane.b32.xlu0 %v4288_v61, %s5684_s23 }
 0x5c5   :  { %4304 = vrot.lane.b32.xlu1 %v4289_v37, %s5684_s23 }
 0x5c8   :  { %4306 = vrot.lane.b32.xlu0 %v4290_v28, %s5684_s23 }
 0x5c9   :  { %4308 = vrot.lane.b32.xlu1 %v4291_v14, %s5684_s23 }
 0x5cc   :  { %4346 = vrot.lane.b32.xlu0 %v4338_v30, %s5684_s23 }
 0x5cd   :  { %4348 = vrot.lane.b32.xlu1 %v4340_v5, %s5684_s23 }
 0x5d0   :  { %4350 = vrot.lane.b32.xlu0 %v4339_v20, %s5684_s23 }
 0x5d1   :  { %4352 = vrot.lane.b32.xlu1 %v4343_v36, %s5684_s23 }
 0x5d4   :  { %4354 = vrot.lane.b32.xlu0 %v4345_v13, %s5684_s23  ;;  %v4079_v13 = vstv %s5507_s15  ;;  %s9546_s15 = sld [smem:[#allocation11 + $0x3f]] }
 0x5d5   :  { %4356 = vrot.lane.b32.xlu1 %v4344_v29, %s5684_s23  ;;  %v4081_v27 = vmul.f32 %v10074_v38, %v4079_v13  ;;  %v4082_v25 = vmul.f32 %v8842_v60, %v4079_v13  ;;  %v4083_v43 = vmul.f32 %v8946_v12, %v4079_v13 }
 0x5d8   :  { %4394 = vrot.lane.b32.xlu0 %v4386_v35, %s5684_s23  ;;  %v4084_v35 = vmul.f32 %v8849_v44, %v4079_v13 }
 0x5d9   :  { %4396 = vrot.lane.b32.xlu1 %v4388_v34, %s5684_s23  ;;  %v4063_v34 = vstv %s5505_s16  ;;  %s9550_s16 = sld [smem:[#allocation11 + $0x41]] }
 0x5db   :  { %v8860_v21 = vpop.permute.xlu0 %3860 }
 0x5dc   :  { %4398 = vrot.lane.b32.xlu0 %v4387_v17, %s5684_s23 }
 0x5dd   :  { %4400 = vrot.lane.b32.xlu1 %v4391_v4, %s5684_s23  ;;  %v4067_v4 = vmul.f32 %v10074_v38, %v4065_v42  ;;  %v4071_v38 = vmul.f32 %v8827_v56, %v4065_v42 }
 0x5de   :  { %v8863_v23 = vpop.permute.xlu1 %3862 }
 0x5e0   :  { %4402 = vrot.lane.b32.xlu0 %v4393_v53, %s5684_s23  ;;  %v4093_v53 = vrot.slane %v4081_v27, 1  ;;  %v4118_v27 = vmul.f32 %v8842_v60, %v4115_v62 }
 0x5e1   :  { %4404 = vrot.lane.b32.xlu1 %v4392_v63, %s5684_s23  ;;  %v4080_v63 = vmul.f32 %v8952_v10, %v4079_v13 }
 0x5e2   :  { %v8868_v0 = vpop.permute.xlu0 %3864 }
 0x5e3   :  { %v8870_v2 = vpop.permute.xlu1 %3866 }
 0x5e6   :  { %v8872_v1 = vpop.permute.xlu0 %3900 }
 0x5e7   :  { %v8874_v7 = vpop.permute.xlu1 %3902 }
 0x5ea   :  { %v8876_v11 = vpop.permute.xlu0 %3904 }
 0x5eb   :  { %v8878_v33 = vpop.permute.xlu1 %3906 }
 0x5ee   :  { %v8880_v31 = vpop.permute.xlu0 %3940 }
 0x5ef   :  { %v8882_v40 = vpop.permute.xlu1 %3942 }
 0x5f2   :  { %v8884_v49 = vpop.permute.xlu0 %3944 }
 0x5f3   :  { %v8886_v16 = vpop.permute.xlu1 %3946 }
 0x5f6   :  { %v8888_v41 = vpop.permute.xlu0 %3966 }
 0x5f7   :  { %v8890_v22 = vpop.permute.xlu1 %3968 }
 0x5fa   :  { %v8892_v46 = vpop.permute.xlu0 %3970 }
 0x5fb   :  { %v8894_v61 = vpop.permute.xlu1 %3972 }
 0x5fe   :  { %v8896_v24 = vpop.permute.xlu0 %4006 }
 0x5ff   :  { %10081 = vst [vmem:[#allocation32_spill] sm:$0xff] %v8896_v24  ;;  %v8898_v39 = vpop.permute.xlu1 %4008  ;;  %v4131_v24 = vrot.slane %v4118_v27, 2 }
 0x600   :  { %10082 = vst [vmem:[#allocation38_spill] sm:$0xff] %v8898_v39 }
 0x602   :  { %v8900_v37 = vpop.permute.xlu0 %4010 }
 0x603   :  { %10083 = vst [vmem:[#allocation25_spill] sm:$0xff] %v8900_v37  ;;  %v8902_v51 = vpop.permute.xlu1 %4012 }
 0x604   :  { %10084 = vst [vmem:[#allocation39_spill] sm:$0xff] %v8902_v51  ;;  %v4068_v51 = vmul.f32 %v8842_v60, %v4065_v42 }
 0x606   :  { %v8904_v9 = vpop.permute.xlu0 %4046 }
 0x607   :  { %10085 = vst [vmem:[#allocation27_spill] sm:$0xff] %v8904_v9  ;;  %v8906_v28 = vpop.permute.xlu1 %4048  ;;  %v4120_v9 = vmul.f32 %v8849_v44, %v4115_v62 }
 0x608   :  { %10086 = vst [vmem:[#allocation28_spill] sm:$0xff] %v8906_v28  ;;  %v4097_v28 = vrot.slane %v4083_v43, 1  ;;  %v4073_v43 = vadd.f32 %v4067_v4, %v4063_v34 }
 0x609   :  { %v4134_v4 = vrot.slane %v4120_v9, 2 }
 0x60a   :  { %v8908_v3 = vpop.permute.xlu0 %4050 }
 0x60b   :  { %10087 = vst [vmem:[#allocation29_spill] sm:$0xff] %v8908_v3  ;;  %v8910_v14 = vpop.permute.xlu1 %4052  ;;  %v4069_v3 = vmul.f32 %v8946_v12, %v4065_v42 }
 0x60c   :  { %10088 = vst [vmem:[#allocation24_spill] sm:$0xff] %v8910_v14  ;;  %v4095_v14 = vrot.slane %v4082_v25, 1  ;;  %v4066_v25 = vmul.f32 %v8952_v10, %v4065_v42 }
 0x60d   :  { %v4075_v37 = vadd.f32 %v4069_v3, %v4063_v34 }
 0x60e   :  { %v8912_v15 = vpop.permute.xlu0 %4164 }
 0x60f   :  { %v8914_v20 = vpop.permute.xlu1 %4166 }
 0x612   :  { %v8916_v18 = vpop.permute.xlu0 %4168 }
 0x613   :  { %v8918_v45 = vpop.permute.xlu1 %4170 }
 0x614   :  { %10089 = vst [vmem:[#allocation26_spill] sm:$0xff] %v8918_v45  ;;  %v4129_v45 = vrot.slane %v4117_v58, 2 }
 0x616   :  { %v8920_v30 = vpop.permute.xlu0 %4172  ;;  %v4132_v58 = vsel %vm203_vm4, %v4129_v45, %v4131_v24 }
 0x617   :  { %10090 = vst [vmem:[#allocation40_spill] sm:$0xff] %v8920_v30  ;;  %v8922_v8 = vpop.permute.xlu1 %4174 }
 0x618   :  { %10091 = vst [vmem:[#allocation44_spill] sm:$0xff] %v8922_v8 }
 0x61a   :  { %v8924_v5 = vpop.permute.xlu0 %4212 }
 0x61b   :  { %v8926_v55 = vpop.permute.xlu1 %4214 }
 0x61e   :  { %v8928_v54 = vpop.permute.xlu0 %4216 }
 0x61f   :  { %10092 = vst [vmem:[#allocation45_spill] sm:$0xff] %v8928_v54  ;;  %v8930_v6 = vpop.permute.xlu1 %4218  ;;  %v4074_v54 = vadd.f32 %v4068_v51, %v4063_v34 }
 0x620   :  { %10093 = vst [vmem:[#allocation47_spill] sm:$0xff] %v8930_v6 }
 0x621   :  { %v4110_v51 = vadd.f32 %v4095_v14, %v4074_v54 }
 0x622   :  { %v8932_v29 = vpop.permute.xlu0 %4220 }
 0x623   :  { %10094 = vst [vmem:[#allocation46_spill] sm:$0xff] %v8932_v29  ;;  %v8934_v52 = vpop.permute.xlu1 %4222  ;;  %v4070_v29 = vmul.f32 %v8849_v44, %v4065_v42  ;;  %v4072_v42 = vadd.f32 %v4066_v25, %v4063_v34  ;;  %v4077_v44 = vadd.f32 %v4071_v38, %v4063_v34  ;;  %v9008_v38 = vld [vmem:[#allocation2 + $0x8] sm:$0xff] }
 0x624   :  { %10095 = vst [vmem:[#allocation37_spill] sm:$0xff] %v8934_v52  ;;  %v4119_v52 = vmul.f32 %v8946_v12, %v4115_v62 }
 0x626   :  { %v8936_v36 = vpop.permute.xlu0 %4260 }
 0x627   :  { %v8938_v32 = vpop.permute.xlu1 %4262 }
 0x628   :  { %10096 = vst [vmem:[#allocation41_spill] sm:$0xff] %v8938_v32  ;;  %v4133_v32 = vrot.slane %v4119_v52, 2 }
 0x62a   :  { %v8940_v48 = vpop.permute.xlu0 %4264  ;;  %v4135_v9 = vsel %vm203_vm4, %v4133_v32, %v4134_v4 }
 0x62b   :  { %10097 = vst [vmem:[#allocation17_spill] sm:$0xff] %v8940_v48  ;;  %v8944_v17 = vpop.permute.xlu1 %4266 }
 0x62c   :  { %10098 = vst [vmem:[#allocation21_spill] sm:$0xff] %v8944_v17  ;;  %v4098_v17 = vrot.slane %v4084_v35, 1  ;;  %v4116_v35 = vmul.f32 %v8952_v10, %v4115_v62 }
 0x62e   :  { %v8950_v57 = vpop.permute.xlu0 %4268 }
 0x62f   :  { %10099 = vst [vmem:[#allocation20_spill] sm:$0xff] %v8950_v57  ;;  %v8956_v19 = vpop.permute.xlu1 %4270  ;;  %v4085_v57 = vmul.f32 %v8827_v56, %v4079_v13  ;;  %v4096_v13 = vsel %vm166_vm3, %v4093_v53, %v4095_v14 }
 0x630   :  { %10100 = vst [vmem:[#allocation43_spill] sm:$0xff] %v8956_v19  ;;  %v4092_v19 = vrot.slane %v4080_v63, 1  ;;  %v4099_v63 = vsel %vm166_vm3, %v4097_v28, %v4098_v17  ;;  %v4128_v28 = vrot.slane %v4116_v35, 2 }
 0x631   :  { %v4100_v39 = vrot.slane %v4085_v57, 1 }
 0x632   :  { %v8964_v48 = vpop.permute.xlu0 %4298  ;;  %v4094_v8 = vsel %vm166_vm3, %v4092_v19, %v4093_v53  ;;  %v4076_v19 = vadd.f32 %v4070_v29, %v4063_v34  ;;  %v8995_v29 = vstv %s8969_s0  ;;  %v9004_v34 = vstv %s8978_s1  ;;  %s9562_s0 = sld [smem:[#allocation11 + $0x42]]  ;;  %s9569_s1 = sld [smem:[#allocation11 + $0x45]] }
 0x633   :  { %10101 = vst [vmem:[#allocation23_spill] sm:$0xff] %v8964_v48  ;;  %v8974_v6 = vpop.permute.xlu1 %4300  ;;  %v4121_v48 = vmul.f32 %v8827_v56, %v4115_v62  ;;  %v4108_v57 = vadd.f32 %v4094_v8, %v4072_v42  ;;  %v4111_v62 = vadd.f32 %v4099_v63, %v4075_v37  ;;  %v4101_v56 = vsel %vm166_vm3, %v4098_v17, %v4100_v39 }
 0x634   :  { %10102 = vst [vmem:[#allocation36_spill] sm:$0xff] %v8974_v6  ;;  %v4109_v6 = vadd.f32 %v4096_v13, %v4073_v43  ;;  %v4113_v27 = vadd.f32 %v4100_v39, %v4077_v44  ;;  %v4130_v8 = vsel %vm203_vm4, %v4128_v28, %v4129_v45  ;;  %v3872_v44 = vadd.f32 %v8860_v21, %v8710_v50 }
 0x635   :  { %v4136_v53 = vrot.slane %v4121_v48, 2  ;;  %v4112_v48 = vadd.f32 %v4101_v56, %v4076_v19  ;;  %v4144_v14 = vadd.f32 %v4130_v8, %v4108_v57  ;;  %v4147_v54 = vadd.f32 %v4135_v9, %v4111_v62 }
 0x636   :  { %v8981_v30 = vpop.permute.xlu0 %4302  ;;  %v4145_v37 = vadd.f32 %v4132_v58, %v4109_v6  ;;  %v4146_v39 = vadd.f32 %v4131_v24, %v4110_v51  ;;  %v9012_v56 = vmul.f32 %v9008_v38, %v8995_v29  ;;  %v9016_v45 = vmul.f32 %v8952_v10, %v8995_v29 }
 0x637   :  { %v8983_v3 = vpop.permute.xlu1 %4304  ;;  %v4137_v32 = vsel %vm203_vm4, %v4134_v4, %v4136_v53  ;;  %v3873_v6 = vadd.f32 %v8863_v23, %v8724_v47  ;;  %v4149_v43 = vadd.f32 %v4136_v53, %v4113_v27  ;;  %v9022_v50 = vmul.f32 %v8946_v12, %v8995_v29 }
 0x638   :  { %v9026_v21 = vmul.f32 %v8842_v60, %v8995_v29  ;;  %v3875_v24 = vadd.f32 %v8870_v2, %v8736_v59  ;;  %v3874_v13 = vadd.f32 %v8868_v0, %v8747_v26  ;;  %v3912_v35 = vadd.f32 %v8872_v1, %v3872_v44 }
 0x639   :  { %v4148_v47 = vadd.f32 %v4137_v32, %v4112_v48  ;;  %v3913_v63 = vadd.f32 %v8874_v7, %v3873_v6  ;;  %v4182_v4 = vadd.f32 %v8912_v15, %v4144_v14  ;;  %v9037_v42 = vmul.f32 %v9008_v38, %v9004_v34  ;;  %v10111_v6 = vld [vmem:[#allocation44_spill] sm:$0xff] }
 0x63a   :  { %v8987_v52 = vpop.permute.xlu0 %4306  ;;  %v9041_v59 = vmul.f32 %v8842_v60, %v9004_v34  ;;  %v3915_v26 = vadd.f32 %v8878_v33, %v3875_v24  ;;  %v3914_v0 = vadd.f32 %v8876_v11, %v3874_v13  ;;  %v3952_v2 = vadd.f32 %v8880_v31, %v3912_v35 }
 0x63b   :  { %v8998_v17 = vpop.permute.xlu1 %4308  ;;  %v9047_v19 = vstv %s8989_s3  ;;  %v3953_v7 = vadd.f32 %v8882_v40, %v3913_v63  ;;  %v4183_v15 = vadd.f32 %v8914_v20, %v4145_v37  ;;  %v4230_v57 = vadd.f32 %v8924_v5, %v4182_v4  ;;  %v10113_v63 = vld [vmem:[#allocation46_spill] sm:$0xff] }
 0x63c   :  { %v9053_v62 = vstv %s8992_s19  ;;  %v3955_v53 = vadd.f32 %v8886_v16, %v3915_v26  ;;  %v3954_v28 = vadd.f32 %v8884_v49, %v3914_v0  ;;  %v3978_v33 = vadd.f32 %v8888_v41, %v3952_v2  ;;  %v10103_v16 = vld [vmem:[#allocation32_spill] sm:$0xff]  ;;  %v10104_v49 = vld [vmem:[#allocation26_spill] sm:$0xff]  ;;  %v10114_v26 = vld [vmem:[#allocation17_spill] sm:$0xff] }
 0x63d   :  { %v9059_v9 = vstv %s9000_s20  ;;  %v3979_v31 = vadd.f32 %v8890_v22, %v3953_v7  ;;  %v4184_v51 = vadd.f32 %v8916_v18, %v4146_v39  ;;  %v4231_v40 = vadd.f32 %v8926_v55, %v4183_v15  ;;  %v10105_v22 = vld [vmem:[#allocation40_spill] sm:$0xff]  ;;  %v10106_v18 = vld [vmem:[#allocation45_spill] sm:$0xff]  ;;  %v10116_v15 = vld [vmem:[#allocation39_spill] sm:$0xff] }
 0x63e   :  { %v4347_v25 = vpop.permute.xlu0 %4346  ;;  %v4278_v20 = vadd.f32 %v8936_v36, %v4230_v57  ;;  %v3981_v5 = vadd.f32 %v8894_v61, %v3955_v53  ;;  %v3980_v58 = vadd.f32 %v8892_v46, %v3954_v28  ;;  %v4018_v27 = vadd.f32 %v10103_v16, %v3978_v33  ;;  %v10107_v55 = vld [vmem:[#allocation41_spill] sm:$0xff]  ;;  %v10108_v36 = vld [vmem:[#allocation23_spill] sm:$0xff]  ;;  %v10109_v61 = vld [vmem:[#allocation38_spill] sm:$0xff] }
 0x63f   :  { %v4349_v23 = vpop.permute.xlu1 %4348  ;;  %v4185_v37 = vadd.f32 %v10104_v49, %v4147_v54  ;;  %v4186_v8 = vadd.f32 %v10105_v22, %v4148_v47  ;;  %v4232_v48 = vadd.f32 %v10106_v18, %v4184_v51  ;;  %v4279_v14 = vadd.f32 %v10107_v55, %v4231_v40  ;;  %v10110_v46 = vld [vmem:[#allocation25_spill] sm:$0xff]  ;;  %v10112_v54 = vld [vmem:[#allocation47_spill] sm:$0xff]  ;;  %v10115_v47 = vld [vmem:[#allocation36_spill] sm:$0xff] }
 0x640   :  { %v4316_v32 = vadd.f32 %v10108_v36, %v4278_v20  ;;  %v4019_v44 = vadd.f32 %v10109_v61, %v3979_v31  ;;  %v4020_v39 = vadd.f32 %v10110_v46, %v3980_v58  ;;  %v4187_v24 = vadd.f32 %v10111_v6, %v4149_v43  ;;  %v10117_v53 = vld [vmem:[#allocation27_spill] sm:$0xff]  ;;  %v10118_v33 = vld [vmem:[#allocation37_spill] sm:$0xff]  ;;  %v10120_v20 = vld [vmem:[#allocation20_spill] sm:$0xff] }
 0x641   :  { %v4233_v13 = vadd.f32 %v10112_v54, %v4185_v37  ;;  %v4234_v4 = vadd.f32 %v10113_v63, %v4186_v8  ;;  %v4280_v0 = vadd.f32 %v10114_v26, %v4232_v48  ;;  %v4317_v2 = vadd.f32 %v10115_v47, %v4279_v14  ;;  %v10119_v31 = vld [vmem:[#allocation21_spill] sm:$0xff]  ;;  %v10123_v8 = vld [vmem:[#allocation43_spill] sm:$0xff] }
 0x642   :  { %v4351_v1 = vpop.permute.xlu0 %4350  ;;  %v4364_v7 = vadd.f32 %v4347_v25, %v4316_v32  ;;  %v9087_v57 = vadd.f32 %v10116_v15, %v3981_v5  ;;  %v9090_v28 = vadd.f32 %v10117_v53, %v4018_v27  ;;  %v4235_v43 = vadd.f32 %v10118_v33, %v4187_v24  ;;  %v10121_v5 = vld [vmem:[#allocation28_spill] sm:$0xff]  ;;  %v10122_v27 = vld [vmem:[#allocation29_spill] sm:$0xff] }
 0x643   :  { %v4353_v11 = vpop.permute.xlu1 %4352  ;;  %v4281_v51 = vadd.f32 %v10119_v31, %v4233_v13  ;;  %v4282_v58 = vadd.f32 %v10120_v20, %v4234_v4  ;;  %v4318_v25 = vadd.f32 %v8981_v30, %v4280_v0  ;;  %v4365_v16 = vadd.f32 %v4349_v23, %v4317_v2 }
 0x644   :  { %v9099_v37 = vadd.f32 %v10121_v5, %v4019_v44  ;;  %v9102_v22 = vadd.f32 %v10122_v27, %v4020_v39  ;;  %v4283_v18 = vadd.f32 %v10123_v8, %v4235_v43  ;;  %v9109_v44 = vstv %s9069_s22 }
 0x645   :  { %v4319_v48 = vadd.f32 %v8983_v3, %v4281_v51  ;;  %v4320_v14 = vadd.f32 %v8987_v52, %v4282_v58  ;;  %v4366_v36 = vadd.f32 %v4351_v1, %v4318_v25  ;;  %v9112_v6 = vstv %s9071_s4 }
 0x646   :  { %v4355_v41 = vpop.permute.xlu0 %4354  ;;  %v4321_v30 = vadd.f32 %v8998_v17, %v4283_v18  ;;  %v9131_v47 = vstv %s9084_s24  ;;  %v9141_v53 = vstv %s9094_s25  ;;  %v5085_v43 = vstv %s9546_s15 }
 0x647   :  { %v4357_v35 = vpop.permute.xlu1 %4356  ;;  %v4367_v23 = vadd.f32 %v4353_v11, %v4319_v48  ;;  %v4368_v39 = vadd.f32 %v4355_v41, %v4320_v14 }
 0x648   :  { %v4369_v1 = vadd.f32 %v4357_v35, %v4321_v30 }
 0x64a   :  { %v4395_v40 = vpop.permute.xlu0 %4394 }
 0x64b   :  { %v4412_v49 = vadd.f32 %v4395_v40, %v4364_v7  ;;  %v4397_v55 = vpop.permute.xlu1 %4396 }
 0x64c   :  { %v4413_v32 = vadd.f32 %v4397_v55, %v4365_v16 }
 0x64d   :  { %v4418_v61 = vmax.f32 %v4412_v49, 0.0 }
 0x64e   :  { %v4399_v46 = vpop.permute.xlu0 %4398  ;;  %v4419_v24 = vmax.f32 %v4413_v32, 0.0 }
 0x64f   :  { %v9118_v54 = vsel %vm6337_vm12, %v4418_v61, 0.0  ;;  %v4414_v52 = vadd.f32 %v4399_v46, %v4366_v36  ;;  %v4401_v13 = vpop.permute.xlu1 %4400  ;;  %v9161_v36 = vstv %s9114_s26 }
 0x650   :  { %v4506_v17 = vmul.f32 %v9047_v19, %v9118_v54  ;;  %v4532_v11 = vmul.f32 %v9053_v62, %v9118_v54  ;;  %v4572_v63 = vmul.f32 %v9059_v9, %v9118_v54  ;;  %v9128_v41 = vsel %vm6369_vm13, %v4419_v24, 0.0 }
 0x651   :  { %v4415_v26 = vadd.f32 %v4401_v13, %v4367_v23  ;;  %v4420_v0 = vmax.f32 %v4414_v52, 0.0  ;;  %v4507_v35 = vmul.f32 %v9047_v19, %v9128_v41  ;;  %v4533_v7 = vmul.f32 %v9053_v62, %v9128_v41 }
 0x652   :  { %4514 = vrot.lane.b32.xlu0 %v4506_v17, %s5683_s21  ;;  %v4403_v2 = vpop.permute.xlu0 %4402  ;;  %v4573_v15 = vmul.f32 %v9059_v9, %v9128_v41  ;;  %v4544_v40 = vrot.slane %v4532_v11, 1  ;;  %v4584_v16 = vrot.slane %v4572_v63, 2  ;;  %v4638_v23 = vmul.f32 %v9109_v44, %v9118_v54 }
 0x653   :  { %v4421_v33 = vmax.f32 %v4415_v26, 0.0  ;;  %v9145_v31 = vsel %vm6286_vm9, %v4420_v0, 0.0  ;;  %v4416_v51 = vadd.f32 %v4403_v2, %v4368_v39  ;;  %4516 = vrot.lane.b32.xlu1 %v4507_v35, %s5683_s21  ;;  %v4405_v20 = vpop.permute.xlu1 %4404  ;;  %v4545_v58 = vrot.slane %v4533_v7, 1 }
 0x654   :  { %v4534_v25 = vmul.f32 %v9053_v62, %v9145_v31  ;;  %v4585_v49 = vrot.slane %v4573_v15, 2  ;;  %v4417_v27 = vadd.f32 %v4405_v20, %v4369_v1  ;;  %v4574_v18 = vmul.f32 %v9059_v9, %v9145_v31 }
 0x655   :  { %v9152_v5 = vsel %vm6337_vm12, %v4421_v33, 0.0  ;;  %v4422_v8 = vmax.f32 %v4416_v51, 0.0  ;;  %v4546_v46 = vsel %vm166_vm3, %v4544_v40, %v4545_v58  ;;  %v4639_v7 = vmul.f32 %v9109_v44, %v9128_v41 }
 0x656   :  { %v4508_v48 = vmul.f32 %v9047_v19, %v9152_v5  ;;  %v4535_v55 = vmul.f32 %v9053_v62, %v9152_v5  ;;  %v4547_v14 = vrot.slane %v4534_v25, 1  ;;  %v4423_v32 = vmax.f32 %v4417_v27, 0.0 }
 0x657   :  { %v9165_v61 = vsel %vm6369_vm13, %v4422_v8, 0.0  ;;  %v4575_v30 = vmul.f32 %v9059_v9, %v9152_v5  ;;  %v4586_v52 = vsel %vm203_vm4, %v4584_v16, %v4585_v49  ;;  %v4587_v11 = vrot.slane %v4574_v18, 2 }
 0x658   :  { %4518 = vrot.lane.b32.xlu0 %v4508_v48, %s5683_s21  ;;  %v4509_v39 = vmul.f32 %v9047_v19, %v9165_v61  ;;  %v4536_v24 = vmul.f32 %v9053_v62, %v9165_v61  ;;  %v9180_v1 = vsel %vm6286_vm9, %v4423_v32, 0.0  ;;  %v4549_v13 = vrot.slane %v4535_v55, 1 }
 0x659   :  { %v4576_v17 = vmul.f32 %v9059_v9, %v9165_v61  ;;  %v4548_v26 = vsel %vm166_vm3, %v4545_v58, %v4547_v14  ;;  %v4537_v19 = vmul.f32 %v9053_v62, %v9180_v1  ;;  %v4577_v0 = vmul.f32 %v9059_v9, %v9180_v1 }
 0x65a   :  { %4520 = vrot.lane.b32.xlu1 %v4509_v39, %s5683_s21  ;;  %v4550_v63 = vrot.slane %v4536_v24, 1  ;;  %v4589_v35 = vrot.slane %v4575_v30, 2  ;;  %v4650_v15 = vrot.slane %v4638_v23, 1  ;;  %v4588_v40 = vsel %vm203_vm4, %v4585_v49, %v4587_v11 }
 0x65b   :  { %v4590_v2 = vrot.slane %v4576_v17, 2  ;;  %v4552_v51 = vrot.slane %v4537_v19, 1  ;;  %v4592_v20 = vrot.slane %v4577_v0, 2  ;;  %v4651_v62 = vrot.slane %v4639_v7, 1 }
 0x65c   :  { %4554 = vrot.lane.b32.xlu0 %v4546_v46, %s5683_s21  ;;  %v4551_v33 = vsel %vm166_vm3, %v4549_v13, %v4550_v63  ;;  %v4641_v9 = vmul.f32 %v9109_v44, %v9152_v5  ;;  %v4642_v25 = vmul.f32 %v9109_v44, %v9165_v61  ;;  %v4640_v49 = vmul.f32 %v9109_v44, %v9145_v31 }
 0x65d   :  { %v4591_v58 = vsel %vm203_vm4, %v4589_v35, %v4590_v2  ;;  %v4553_v16 = vsel %vm166_vm3, %v4550_v63, %v4552_v51  ;;  %v9203_v27 = vsel %vm203_vm4, %v4590_v2, %v4592_v20  ;;  %v4678_v8 = vmul.f32 %v9112_v6, %v9118_v54 }
 0x65e   :  { %4556 = vrot.lane.b32.xlu1 %v4548_v26, %s5683_s21  ;;  %v9210_v18 = vsel %vm166_vm3, %v4650_v15, %v4651_v62  ;;  %v4655_v48 = vrot.slane %v4641_v9, 1  ;;  %v4656_v55 = vrot.slane %v4642_v25, 1  ;;  %v4679_v14 = vmul.f32 %v9112_v6, %v9128_v41 }
 0x65f   :  { %v4653_v32 = vrot.slane %v4640_v49, 1  ;;  %v4690_v30 = vrot.slane %v4678_v8, 2  ;;  %v4643_v23 = vmul.f32 %v9109_v44, %v9180_v1  ;;  %v4433_v46 = vmul.f32 %v9131_v47, %v9128_v41 }
 0x660   :  { %4558 = vrot.lane.b32.xlu0 %v4551_v33, %s5683_s21  ;;  %v9220_v39 = vsel %vm166_vm3, %v4655_v48, %v4656_v55  ;;  %v4691_v24 = vrot.slane %v4679_v14, 2  ;;  %v4443_v13 = vmul.f32 %v9141_v53, %v9128_v41  ;;  %v4475_v17 = vmul.f32 %v9161_v36, %v9128_v41 }
 0x661   :  { %v9228_v11 = vsel %vm166_vm3, %v4651_v62, %v4653_v32  ;;  %v4658_v63 = vrot.slane %v4643_v23, 1  ;;  %v4437_v44 = vadd.f32 %v4433_v46, %v9099_v37  ;;  %v4444_v26 = vmul.f32 %v9141_v53, %v9145_v31 }
 0x662   :  { %4560 = vrot.lane.b32.xlu1 %v4553_v16, %s5683_s21  ;;  %v9234_v19 = vsel %vm203_vm4, %v4690_v30, %v4691_v24  ;;  %v4455_v0 = vrot.slane %v4443_v13, 1  ;;  %v4487_v35 = vrot.slane %v4475_v17, 2  ;;  %v4476_v2 = vmul.f32 %v9161_v36, %v9145_v31 }
 0x663   :  { %v9240_v7 = vsel %vm166_vm3, %v4656_v55, %v4658_v63  ;;  %v4457_v15 = vrot.slane %v4444_v26, 1  ;;  %v4432_v37 = vmul.f32 %v9131_v47, %v9118_v54  ;;  %v4442_v33 = vmul.f32 %v9141_v53, %v9118_v54 }
 0x664   :  { %4594 = vrot.lane.b32.xlu0 %v4586_v52, %s5683_s21  ;;  %v4489_v51 = vrot.slane %v4476_v2, 2  ;;  %v4474_v20 = vmul.f32 %v9161_v36, %v9118_v54  ;;  %v4681_v62 = vmul.f32 %v9112_v6, %v9152_v5  ;;  %v4682_v52 = vmul.f32 %v9112_v6, %v9165_v61 }
 0x665   :  { %v4458_v9 = vsel %vm166_vm3, %v4455_v0, %v4457_v15  ;;  %v4454_v25 = vrot.slane %v4442_v33, 1  ;;  %v4436_v16 = vadd.f32 %v4432_v37, %v9090_v28  ;;  %v4680_v49 = vmul.f32 %v9112_v6, %v9145_v31  ;;  %v10127_v37 = vld [vmem:[#allocation24_spill] sm:$0xff] }
 0x666   :  { %4596 = vrot.lane.b32.xlu1 %v4588_v40, %s5683_s21  ;;  %v4469_v8 = vadd.f32 %v4458_v9, %v4437_v44  ;;  %v4490_v48 = vsel %vm203_vm4, %v4487_v35, %v4489_v51  ;;  %v4486_v55 = vrot.slane %v4474_v20, 2  ;;  %v4695_v14 = vrot.slane %v4681_v62, 2 }
 0x667   :  { %v4456_v32 = vsel %vm166_vm3, %v4454_v25, %v4455_v0  ;;  %v4696_v30 = vrot.slane %v4682_v52, 2  ;;  %v4693_v23 = vrot.slane %v4680_v49, 2  ;;  %v4434_v40 = vmul.f32 %v9131_v47, %v9152_v5 }
 0x668   :  { %4598 = vrot.lane.b32.xlu0 %v4591_v58, %s5683_s21  ;;  %v9262_v46 = vadd.f32 %v4490_v48, %v4469_v8  ;;  %v4488_v28 = vsel %vm203_vm4, %v4486_v55, %v4487_v35  ;;  %v4468_v13 = vadd.f32 %v4456_v32, %v4436_v16  ;;  %v4445_v31 = vmul.f32 %v9141_v53, %v9152_v5 }
 0x669   :  { %v9270_v58 = vsel %vm203_vm4, %v4695_v14, %v4696_v30  ;;  %v9273_v17 = vsel %vm203_vm4, %v4691_v24, %v4693_v23  ;;  %v4438_v63 = vadd.f32 %v4434_v40, %v9102_v22  ;;  %v4446_v44 = vmul.f32 %v9141_v53, %v9165_v61  ;;  %v10129_v14 = vld [vmem:[#allocation31_spill] sm:$0xff] }
 0x66a   :  { %4818 = vrot.lane.b32.xlu1 %v9016_v45, %s5683_s21  ;;  %v9278_v26 = vadd.f32 %v4488_v28, %v4468_v13  ;;  %v4459_v0 = vrot.slane %v4445_v31, 1  ;;  %v4477_v35 = vmul.f32 %v9161_v36, %v9152_v5  ;;  %v4478_v45 = vmul.f32 %v9161_v36, %v9165_v61 }
 0x66b   :  { %v4460_v2 = vrot.slane %v4446_v44, 1  ;;  %v4683_v24 = vmul.f32 %v9112_v6, %v9180_v1  ;;  %v4447_v22 = vmul.f32 %v9141_v53, %v9180_v1  ;;  %v4479_v15 = vmul.f32 %v9161_v36, %v9180_v1 }
 0x66c   :  { %4820 = vrot.lane.b32.xlu0 %v9012_v56, %s5683_s21  ;;  %v4061_v33 = vadd.f32 %v10127_v37, %v9087_v57  ;;  %v4491_v51 = vrot.slane %v4477_v35, 2  ;;  %v4492_v20 = vrot.slane %v4478_v45, 2  ;;  %v4435_v62 = vmul.f32 %v9131_v47, %v9165_v61  ;;  %v10128_v47 = vld [vmem:[#allocation19_spill] sm:$0xff] }
 0x66d   :  { %v4461_v56 = vsel %vm166_vm3, %v4459_v0, %v4460_v2  ;;  %v4698_v6 = vrot.slane %v4683_v24, 2  ;;  %v4462_v52 = vrot.slane %v4447_v22, 1  ;;  %v4494_v9 = vrot.slane %v4479_v15, 2 }
 0x66e   :  { %4822 = vrot.lane.b32.xlu1 %v9026_v21, %s5683_s21  ;;  %v4844_v53 = vmul.f32 %v8952_v10, %v9004_v34  ;;  %v4470_v36 = vadd.f32 %v4461_v56, %v4438_v63  ;;  %v4493_v1 = vsel %vm203_vm4, %v4491_v51, %v4492_v20  ;;  %v4439_v57 = vadd.f32 %v4435_v62, %v4061_v33 }
 0x66f   :  { %v4810_v25 = vmul.f32 %v10128_v47, %v8995_v29  ;;  %v9307_v21 = vsel %vm203_vm4, %v4696_v30, %v4698_v6  ;;  %v4463_v16 = vsel %vm166_vm3, %v4460_v2, %v4462_v52  ;;  %v4495_v49 = vsel %vm203_vm4, %v4492_v20, %v4494_v9 }
 0x670   :  { %4824 = vrot.lane.b32.xlu0 %v9022_v50, %s5683_s21  ;;  %v4857_v8 = vrot.slane %v9037_v42, 1  ;;  %v9312_v48 = vadd.f32 %v4493_v1, %v4470_v36  ;;  %v4471_v55 = vadd.f32 %v4463_v16, %v4439_v57  ;;  %v4811_v32 = vmul.f32 %v10129_v14, %v8995_v29 }
 0x671   :  { %v4847_v50 = vmul.f32 %v8946_v12, %v9004_v34  ;;  %v4859_v30 = vrot.slane %v9041_v59, 1  ;;  %v4856_v23 = vrot.slane %v4844_v53, 1  ;;  %v4848_v40 = vmul.f32 %v10128_v47, %v9004_v34 }
 0x672   :  { %4826 = vrot.lane.b32.xlu1 %v4810_v25, %s5683_s21  ;;  %v9322_v28 = vadd.f32 %v4495_v49, %v4471_v55  ;;  %v4849_v29 = vmul.f32 %v10129_v14, %v9004_v34  ;;  %v4891_v59 = vstv %s5530_s27  ;;  %v4939_v36 = vstv %s5531_s28 }
 0x673   :  { %v4858_v42 = vsel %vm166_vm3, %v4856_v23, %v4857_v8  ;;  %v4860_v13 = vsel %vm166_vm3, %v4857_v8, %v4859_v30  ;;  %v4861_v31 = vrot.slane %v4847_v50, 1  ;;  %v4862_v63 = vrot.slane %v4848_v40, 1 }
 0x674   :  { %4828 = vrot.lane.b32.xlu0 %v4811_v32, %s5683_s21  ;;  %v4864_v44 = vrot.slane %v4849_v29, 1  ;;  %v4893_v0 = vmul.f32 %v9008_v38, %v4891_v59  ;;  %v4894_v45 = vmul.f32 %v8842_v60, %v4891_v59  ;;  %v4892_v34 = vmul.f32 %v8952_v10, %v4891_v59 }
 0x675   :  { %v4863_v35 = vsel %vm166_vm3, %v4861_v31, %v4862_v63  ;;  %v4895_v37 = vmul.f32 %v8946_v12, %v4891_v59  ;;  %v4896_v33 = vmul.f32 %v10128_v47, %v4891_v59  ;;  %v4897_v20 = vmul.f32 %v10129_v14, %v4891_v59 }
 0x676   :  { %4866 = vrot.lane.b32.xlu1 %v4858_v42, %s5683_s21  ;;  %v4865_v2 = vsel %vm166_vm3, %v4862_v63, %v4864_v44  ;;  %v4905_v24 = vrot.slane %v4893_v0, 2  ;;  %v4907_v22 = vrot.slane %v4894_v45, 2  ;;  %v4904_v15 = vrot.slane %v4892_v34, 2 }
 0x677   :  { %v4909_v56 = vrot.slane %v4895_v37, 2  ;;  %v4910_v6 = vrot.slane %v4896_v33, 2  ;;  %v4912_v52 = vrot.slane %v4897_v20, 2  ;;  %v4940_v1 = vmul.f32 %v8952_v10, %v4939_v36 }
 0x678   :  { %4868 = vrot.lane.b32.xlu0 %v4860_v13, %s5683_s21  ;;  %v4906_v51 = vsel %vm203_vm4, %v4904_v15, %v4905_v24  ;;  %v4908_v62 = vsel %vm203_vm4, %v4905_v24, %v4907_v22  ;;  %v4941_v57 = vmul.f32 %v9008_v38, %v4939_v36  ;;  %v4942_v25 = vmul.f32 %v8842_v60, %v4939_v36 }
 0x679   :  { %v4911_v9 = vsel %vm203_vm4, %v4909_v56, %v4910_v6  ;;  %v4913_v53 = vsel %vm203_vm4, %v4910_v6, %v4912_v52  ;;  %v4977_v16 = vstv %s5532_s2  ;;  %v4943_v8 = vmul.f32 %v8946_v12, %v4939_v36 }
 0x67a   :  { %4870 = vrot.lane.b32.xlu1 %v4859_v30, %s5683_s21  ;;  %v4979_v49 = vmul.f32 %v9008_v38, %v4977_v16  ;;  %v4980_v55 = vmul.f32 %v8842_v60, %v4977_v16  ;;  %v4978_v32 = vmul.f32 %v8952_v10, %v4977_v16  ;;  %v4944_v50 = vmul.f32 %v10128_v47, %v4939_v36 }
 0x67b   :  { %v4945_v23 = vmul.f32 %v10129_v14, %v4939_v36  ;;  %v4981_v29 = vmul.f32 %v8946_v12, %v4977_v16  ;;  %v4982_v13 = vmul.f32 %v10128_v47, %v4977_v16  ;;  %v4983_v63 = vmul.f32 %v10129_v14, %v4977_v16 }
 0x67c   :  { %4872 = vrot.lane.b32.xlu0 %v4863_v35, %s5683_s21  ;;  %v4991_v30 = vrot.slane %v4979_v49, 1  ;;  %v4993_v40 = vrot.slane %v4980_v55, 1  ;;  %v4990_v42 = vrot.slane %v4978_v32, 1  ;;  %v5025_v35 = vstv %s5533_s29 }
 0x67d   :  { %v4996_v0 = vrot.slane %v4982_v13, 1  ;;  %v4998_v45 = vrot.slane %v4983_v63, 1  ;;  %v5027_v34 = vmul.f32 %v9008_v38, %v5025_v35  ;;  %v5028_v24 = vmul.f32 %v8842_v60, %v5025_v35 }
 0x67e   :  { %4874 = vrot.lane.b32.xlu1 %v4865_v2, %s5683_s21  ;;  %v4992_v31 = vsel %vm166_vm3, %v4990_v42, %v4991_v30  ;;  %v4994_v59 = vsel %vm166_vm3, %v4991_v30, %v4993_v40  ;;  %v5029_v20 = vmul.f32 %v8946_v12, %v5025_v35  ;;  %v5031_v60 = vmul.f32 %v10129_v14, %v5025_v35 }
 0x67f   :  { %v4999_v15 = vsel %vm166_vm3, %v4996_v0, %v4998_v45  ;;  %v5039_v37 = vrot.slane %v5027_v34, 2  ;;  %v5041_v33 = vrot.slane %v5028_v24, 2  ;;  %v4611_v14 = vstv %s5521_s30 }
 0x680   :  { %4876 = vrot.lane.b32.xlu0 %v4864_v44, %s5683_s21  ;;  %v4995_v44 = vrot.slane %v4981_v29, 1  ;;  %v4615_v16 = vmul.f32 %v4611_v14, %v9165_v61 }
 0x681   :  { %v5042_v6 = vsel %vm203_vm4, %v5039_v37, %v5041_v33 }
 0x682   :  { %4914 = vrot.lane.b32.xlu1 %v4906_v51, %s5683_s21  ;;  %v4997_v2 = vsel %vm166_vm3, %v4995_v44, %v4996_v0 }
 0x684   :  { %4916 = vrot.lane.b32.xlu0 %v4908_v62, %s5683_s21  ;;  %v5030_v62 = vmul.f32 %v10128_v47, %v5025_v35 }
 0x686   :  { %4918 = vrot.lane.b32.xlu1 %v4907_v22, %s5683_s21  ;;  %v5026_v22 = vmul.f32 %v8952_v10, %v5025_v35 }
 0x688   :  { %4920 = vrot.lane.b32.xlu0 %v4911_v9, %s5683_s21  ;;  %v5038_v51 = vrot.slane %v5026_v22, 2  ;;  %v5044_v9 = vrot.slane %v5030_v62, 2  ;;  %v5584_v62 = vld [vmem:[#allocation2 + $0x10] sm:$0xf] }
 0x68a   :  { %4922 = vrot.lane.b32.xlu1 %v4913_v53, %s5683_s21  ;;  %v5040_v56 = vsel %vm203_vm4, %v5038_v51, %v5039_v37  ;;  %v5046_v53 = vrot.slane %v5031_v60, 2  ;;  %v4719_v37 = vstv %s5525_s9 }
 0x68c   :  { %4924 = vrot.lane.b32.xlu0 %v4912_v52, %s5683_s21  ;;  %v5043_v52 = vrot.slane %v5029_v20, 2  ;;  %v5047_v36 = vsel %vm203_vm4, %v5044_v9, %v5046_v53  ;;  %v4769_v20 = vstv %s5527_s10 }
 0x68e   :  { %4952 = vrot.lane.b32.xlu1 %v4940_v1, %s5684_s23  ;;  %v5045_v47 = vsel %vm203_vm4, %v5043_v52, %v5044_v9  ;;  %v4612_v1 = vmul.f32 %v4611_v14, %v9118_v54  ;;  %v4720_v52 = vmul.f32 %v8952_v10, %v4719_v37  ;;  %v4717_v9 = vstv %s5524_s11 }
 0x690   :  { %4954 = vrot.lane.b32.xlu0 %v4941_v57, %s5684_s23  ;;  %v4613_v57 = vmul.f32 %v4611_v14, %v9128_v41 }
 0x692   :  { %4956 = vrot.lane.b32.xlu1 %v4942_v25, %s5684_s23  ;;  %v4614_v25 = vmul.f32 %v4611_v14, %v9152_v5 }
 0x694   :  { %4958 = vrot.lane.b32.xlu0 %v4943_v8, %s5684_s23 }
 0x696   :  { %4960 = vrot.lane.b32.xlu1 %v4944_v50, %s5684_s23 }
 0x698   :  { %4962 = vrot.lane.b32.xlu0 %v4945_v23, %s5684_s23 }
 0x69a   :  { %5000 = vrot.lane.b32.xlu1 %v4992_v31, %s5684_s23 }
 0x69c   :  { %5002 = vrot.lane.b32.xlu0 %v4994_v59, %s5684_s23 }
 0x69e   :  { %5004 = vrot.lane.b32.xlu1 %v4993_v40, %s5684_s23 }
 0x6a0   :  { %5006 = vrot.lane.b32.xlu0 %v4997_v2, %s5684_s23 }
 0x6a2   :  { %5008 = vrot.lane.b32.xlu1 %v4999_v15, %s5684_s23  ;;  %v4733_v15 = vstv %s5526_s6 }
 0x6a3   :  { %v4734_v60 = vmul.f32 %v8952_v10, %v4733_v15 }
 0x6a4   :  { %5010 = vrot.lane.b32.xlu0 %v4998_v45, %s5684_s23 }
 0x6a6   :  { %5048 = vrot.lane.b32.xlu1 %v5040_v56, %s5684_s23  ;;  %v4736_v56 = vmul.f32 %v5584_v62, %v4733_v15 }
 0x6a8   :  { %5050 = vrot.lane.b32.xlu0 %v5042_v6, %s5684_s23 }
 0x6aa   :  { %5052 = vrot.lane.b32.xlu1 %v5041_v33, %s5684_s23  ;;  %v4735_v33 = vmul.f32 %v9008_v38, %v4733_v15 }
 0x6ac   :  { %5054 = vrot.lane.b32.xlu0 %v5045_v47, %s5684_s23  ;;  %v4770_v47 = vmul.f32 %v8952_v10, %v4769_v20 }
 0x6ae   :  { %5056 = vrot.lane.b32.xlu1 %v5047_v36, %s5684_s23  ;;  %v4721_v36 = vmul.f32 %v9008_v38, %v4719_v37 }
 0x6b0   :  { %5058 = vrot.lane.b32.xlu0 %v5046_v53, %s5684_s23  ;;  %v4747_v53 = vrot.slane %v4735_v33, 1 }
 0x6b2   :  { %4600 = vrot.lane.b32.xlu1 %v9203_v27, %s5683_s21 }
 0x6b4   :  { %4620 = vrot.lane.b32.xlu0 %v4612_v1, %s5684_s23  ;;  %v4771_v1 = vmul.f32 %v9008_v38, %v4769_v20 }
 0x6b6   :  { %4622 = vrot.lane.b32.xlu1 %v4613_v57, %s5684_s23  ;;  %v4749_v57 = vrot.slane %v4736_v56, 1  ;;  %v4783_v38 = vrot.slane %v4771_v1, 2 }
 0x6b8   :  { %4624 = vrot.lane.b32.xlu0 %v4614_v25, %s5684_s23  ;;  %v4746_v25 = vrot.slane %v4734_v60, 1 }
 0x6ba   :  { %4626 = vrot.lane.b32.xlu1 %v4615_v16, %s5684_s23  ;;  %v4737_v16 = vmul.f32 %v8946_v12, %v4733_v15  ;;  %v4748_v10 = vsel %vm166_vm3, %v4746_v25, %v4747_v53 }
 0x6bc   :  { %4660 = vrot.lane.b32.xlu0 %v9210_v18, %s5684_s23 }
 0x6be   :  { %4662 = vrot.lane.b32.xlu1 %v9228_v11, %s5684_s23 }
 0x6c0   :  { %4664 = vrot.lane.b32.xlu0 %v9220_v39, %s5684_s23 }
 0x6c2   :  { %4666 = vrot.lane.b32.xlu1 %v9240_v7, %s5684_s23 }
 0x6c4   :  { %4700 = vrot.lane.b32.xlu0 %v9234_v19, %s5684_s23  ;;  %v4515_v54 = vpop.permute.xlu0 %4514 }
 0x6c5   :  { %v4526_v41 = vadd.f32 %v4515_v54, %v9278_v26  ;;  %v4517_v5 = vpop.permute.xlu1 %4516  ;;  %v5585_v54 = vld [vmem:[#allocation2 + $0x20] sm:$0xff] }
 0x6c6   :  { %4702 = vrot.lane.b32.xlu1 %v9273_v17, %s5684_s23  ;;  %v4527_v61 = vadd.f32 %v4517_v5, %v9262_v46 }
 0x6c8   :  { %4704 = vrot.lane.b32.xlu0 %v9270_v58, %s5684_s23 }
 0x6ca   :  { %v4519_v27 = vpop.permute.xlu0 %4518  ;;  %4706 = vrot.lane.b32.xlu1 %v9307_v21, %s5684_s23 }
 0x6cb   :  { %v4528_v18 = vadd.f32 %v4519_v27, %v9312_v48  ;;  %v4722_v27 = vmul.f32 %v5584_v62, %v4719_v37 }
 0x6cc   :  { %v4521_v39 = vpop.permute.xlu1 %4520 }
 0x6cd   :  { %v4529_v11 = vadd.f32 %v4521_v39, %v9322_v28  ;;  %v4728_v56 = vadd.f32 %v4722_v27, %v4717_v9 }
 0x6ce   :  { %v4555_v19 = vpop.permute.xlu0 %4554 }
 0x6cf   :  { %v4566_v7 = vadd.f32 %v4555_v19, %v4526_v41  ;;  %v4738_v41 = vmul.f32 %v5585_v54, %v4733_v15  ;;  %v4727_v19 = vadd.f32 %v4721_v36, %v4717_v9 }
 0x6d0   :  { %v4557_v26 = vpop.permute.xlu1 %4556 }
 0x6d1   :  { %v4567_v49 = vadd.f32 %v4557_v26, %v4527_v61  ;;  %v4726_v61 = vadd.f32 %v4720_v52, %v4717_v9 }
 0x6d2   :  { %v4559_v8 = vpop.permute.xlu0 %4558 }
 0x6d3   :  { %v4568_v17 = vadd.f32 %v4559_v8, %v4528_v18  ;;  %v5586_v18 = vld [vmem:[#allocation2 + $0x28] sm:$0xf]  ;;  %v4723_v8 = vmul.f32 %v8946_v12, %v4719_v37 }
 0x6d4   :  { %v4561_v55 = vpop.permute.xlu1 %4560  ;;  %v4739_v39 = vmul.f32 %v5586_v18, %v4733_v15  ;;  %v4762_v15 = vadd.f32 %v4748_v10, %v4726_v61  ;;  %v4775_v52 = vmul.f32 %v5586_v18, %v4769_v20 }
 0x6d5   :  { %v9427_v46 = vadd.f32 %v4561_v55, %v4529_v11  ;;  %v4782_v11 = vrot.slane %v4770_v47, 2  ;;  %v4751_v55 = vrot.slane %v4737_v16, 1  ;;  %v4725_v47 = vmul.f32 %v5586_v18, %v4719_v37 }
 0x6d6   :  { %v4595_v32 = vpop.permute.xlu0 %4594  ;;  %v4754_v60 = vrot.slane %v4739_v39, 1  ;;  %v4729_v25 = vadd.f32 %v4723_v8, %v4717_v9  ;;  %v4790_v27 = vrot.slane %v4775_v52, 2 }
 0x6d7   :  { %v9429_v58 = vadd.f32 %v4595_v32, %v4566_v7  ;;  %v4772_v7 = vmul.f32 %v5584_v62, %v4769_v20  ;;  %v4752_v32 = vrot.slane %v4738_v41, 1 }
 0x6d8   :  { %v4597_v50 = vpop.permute.xlu1 %4596 }
 0x6d9   :  { %10130 = vst [vmem:[#allocation18_spill] sm:$0xff] %v9429_v58  ;;  %v9431_v30 = vadd.f32 %v4597_v50, %v4567_v49  ;;  %v4750_v49 = vsel %vm166_vm3, %v4747_v53, %v4749_v57  ;;  %v4774_v50 = vmul.f32 %v5585_v54, %v4769_v20  ;;  %v4785_v62 = vrot.slane %v4772_v7, 2 }
 0x6da   :  { %v4599_v21 = vpop.permute.xlu0 %4598  ;;  %v4784_v53 = vsel %vm203_vm4, %v4782_v11, %v4783_v38  ;;  %v4763_v1 = vadd.f32 %v4750_v49, %v4727_v19  ;;  %v4764_v58 = vadd.f32 %v4749_v57, %v4728_v56  ;;  %v4755_v61 = vsel %vm166_vm3, %v4752_v32, %v4754_v60 }
 0x6db   :  { %10131 = vst [vmem:[#allocation30_spill] sm:$0xff] %v9431_v30  ;;  %v9433_v48 = vadd.f32 %v4599_v21, %v4568_v17  ;;  %v4773_v17 = vmul.f32 %v8946_v12, %v4769_v20  ;;  %v4724_v21 = vmul.f32 %v5585_v54, %v4719_v37  ;;  %v4753_v12 = vsel %vm166_vm3, %v4751_v55, %v4752_v32 }
 0x6dc   :  { %v9435_v23 = vpop.permute.xlu1 %4818  ;;  %v4788_v41 = vrot.slane %v4774_v50, 2  ;;  %v4798_v30 = vadd.f32 %v4784_v53, %v4762_v15  ;;  %v4786_v20 = vsel %vm203_vm4, %v4783_v38, %v4785_v62  ;;  %v4731_v37 = vadd.f32 %v4725_v47, %v4717_v9 }
 0x6dd   :  { %10132 = vst [vmem:[#allocation22_spill] sm:$0xff] %v9433_v48  ;;  %v4787_v16 = vrot.slane %v4773_v17, 2  ;;  %v4730_v48 = vadd.f32 %v4724_v21, %v4717_v9  ;;  %v4799_v10 = vadd.f32 %v4786_v20, %v4763_v1  ;;  %v4765_v11 = vadd.f32 %v4753_v12, %v4729_v25 }
 0x6de   :  { %v9437_v28 = vpop.permute.xlu0 %4820  ;;  %v4836_v39 = vadd.f32 %v9435_v23, %v4798_v30  ;;  %v4800_v17 = vadd.f32 %v4785_v62, %v4764_v58  ;;  %v4791_v57 = vsel %vm203_vm4, %v4788_v41, %v4790_v27  ;;  %v4767_v32 = vadd.f32 %v4754_v60, %v4731_v37 }
 0x6df   :  { %v4789_v19 = vsel %vm203_vm4, %v4787_v16, %v4788_v41  ;;  %v4766_v7 = vadd.f32 %v4755_v61, %v4730_v48  ;;  %v4837_v8 = vadd.f32 %v9437_v28, %v4799_v10  ;;  %v5159_v25 = vstv %s5537_s12 }
 0x6e0   :  { %v9439_v40 = vpop.permute.xlu1 %4822  ;;  %v4801_v38 = vadd.f32 %v4789_v19, %v4765_v11  ;;  %v5185_v41 = vstv %s9506_s13 }
 0x6e1   :  { %v4838_v9 = vadd.f32 %v9439_v40, %v4800_v17  ;;  %v4802_v21 = vadd.f32 %v4791_v57, %v4766_v7  ;;  %v4803_v40 = vadd.f32 %v4790_v27, %v4767_v32  ;;  %v5225_v57 = vstv %s9522_s14 }
 0x6e2   :  { %v9441_v42 = vpop.permute.xlu0 %4824 }
 0x6e3   :  { %v4839_v58 = vadd.f32 %v9441_v42, %v4801_v38 }
 0x6e4   :  { %v9443_v29 = vpop.permute.xlu1 %4826 }
 0x6e5   :  { %v4840_v56 = vadd.f32 %v9443_v29, %v4802_v21 }
 0x6e6   :  { %v9445_v13 = vpop.permute.xlu0 %4828 }
 0x6e7   :  { %v4841_v47 = vadd.f32 %v9445_v13, %v4803_v40 }
 0x6e8   :  { %v9447_v31 = vpop.permute.xlu1 %4866 }
 0x6e9   :  { %v4884_v55 = vadd.f32 %v9447_v31, %v4836_v39 }
 0x6ea   :  { %v9449_v63 = vpop.permute.xlu0 %4868 }
 0x6eb   :  { %v4885_v30 = vadd.f32 %v9449_v63, %v4837_v8 }
 0x6ec   :  { %v9451_v59 = vpop.permute.xlu1 %4870 }
 0x6ed   :  { %v4886_v28 = vadd.f32 %v9451_v59, %v4838_v9 }
 0x6ee   :  { %v9453_v44 = vpop.permute.xlu0 %4872 }
 0x6ef   :  { %v4887_v63 = vadd.f32 %v9453_v44, %v4839_v58 }
 0x6f0   :  { %v9455_v0 = vpop.permute.xlu1 %4874 }
 0x6f1   :  { %v4888_v42 = vadd.f32 %v9455_v0, %v4840_v56 }
 0x6f2   :  { %v9457_v35 = vpop.permute.xlu0 %4876 }
 0x6f3   :  { %v4889_v1 = vadd.f32 %v9457_v35, %v4841_v47 }
 0x6f4   :  { %v9459_v45 = vpop.permute.xlu1 %4914 }
 0x6f5   :  { %v4932_v23 = vadd.f32 %v9459_v45, %v4884_v55 }
 0x6f6   :  { %v9461_v34 = vpop.permute.xlu0 %4916 }
 0x6f7   :  { %v4933_v31 = vadd.f32 %v9461_v34, %v4885_v30 }
 0x6f8   :  { %v9463_v2 = vpop.permute.xlu1 %4918 }
 0x6f9   :  { %v4934_v45 = vadd.f32 %v9463_v2, %v4886_v28 }
 0x6fa   :  { %v9465_v24 = vpop.permute.xlu0 %4920 }
 0x6fb   :  { %v4935_v34 = vadd.f32 %v9465_v24, %v4887_v63 }
 0x6fc   :  { %v9467_v22 = vpop.permute.xlu1 %4922 }
 0x6fd   :  { %v4936_v44 = vadd.f32 %v9467_v22, %v4888_v42 }
 0x6fe   :  { %v9470_v51 = vpop.permute.xlu0 %4924 }
 0x6ff   :  { %v4937_v24 = vadd.f32 %v9470_v51, %v4889_v1 }
 0x700   :  { %v9473_v6 = vpop.permute.xlu1 %4952 }
 0x701   :  { %v4970_v15 = vadd.f32 %v9473_v6, %v4932_v23 }
 0x702   :  { %v9478_v14 = vpop.permute.xlu0 %4954 }
 0x703   :  { %v4971_v52 = vadd.f32 %v9478_v14, %v4933_v31 }
 0x704   :  { %v9482_v5 = vpop.permute.xlu1 %4956 }
 0x705   :  { %v4972_v6 = vadd.f32 %v9482_v5, %v4934_v45 }
 0x706   :  { %v9485_v26 = vpop.permute.xlu0 %4958 }
 0x707   :  { %v4973_v13 = vadd.f32 %v9485_v26, %v4935_v34 }
 0x708   :  { %v9490_v33 = vpop.permute.xlu1 %4960 }
 0x709   :  { %v4974_v16 = vadd.f32 %v9490_v33, %v4936_v44 }
 0x70a   :  { %v9492_v36 = vpop.permute.xlu0 %4962 }
 0x70b   :  { %v4975_v27 = vadd.f32 %v9492_v36, %v4937_v24 }
 0x70c   :  { %v5001_v54 = vpop.permute.xlu1 %5000 }
 0x70d   :  { %v5018_v62 = vadd.f32 %v5001_v54, %v4970_v15 }
 0x70e   :  { %v5003_v18 = vpop.permute.xlu0 %5002 }
 0x70f   :  { %v5019_v29 = vadd.f32 %v5003_v18, %v4971_v52 }
 0x710   :  { %v5005_v49 = vpop.permute.xlu1 %5004 }
 0x711   :  { %v5020_v14 = vadd.f32 %v5005_v49, %v4972_v6 }
 0x712   :  { %v5007_v50 = vpop.permute.xlu0 %5006 }
 0x713   :  { %v5021_v54 = vadd.f32 %v5007_v50, %v4973_v13 }
 0x714   :  { %v5009_v48 = vpop.permute.xlu1 %5008 }
 0x715   :  { %v5022_v37 = vadd.f32 %v5009_v48, %v4974_v16 }
 0x716   :  { %v5011_v60 = vpop.permute.xlu0 %5010 }
 0x717   :  { %v5023_v39 = vadd.f32 %v5011_v60, %v4975_v27 }
 0x718   :  { %v5049_v59 = vpop.permute.xlu1 %5048 }
 0x719   :  { %v5066_v53 = vadd.f32 %v5049_v59, %v5018_v62 }
 0x71a   :  { %v5051_v2 = vpop.permute.xlu0 %5050 }
 0x71b   :  { %v5072_v0 = vmax.f32 %v5066_v53, 0.0  ;;  %v5067_v12 = vadd.f32 %v5051_v2, %v5019_v29  ;;  %v5265_v29 = vstv %s9550_s16 }
 0x71c   :  { %v5053_v5 = vpop.permute.xlu1 %5052 }
 0x71d   :  { %v9530_v35 = vsel %vm6337_vm12, %v5072_v0, 0.0  ;;  %v5073_v22 = vmax.f32 %v5067_v12, 0.0  ;;  %v5068_v61 = vadd.f32 %v5053_v5, %v5020_v14  ;;  %v5291_v0 = vstv %s9557_s17 }
 0x71e   :  { %v5055_v20 = vpop.permute.xlu0 %5054  ;;  %v5160_v26 = vmul.f32 %v5159_v25, %v9530_v35  ;;  %v5186_v19 = vmul.f32 %v5185_v41, %v9530_v35  ;;  %v5226_v56 = vmul.f32 %v5225_v57, %v9530_v35  ;;  %v9595_v12 = vstv %s9560_s18 }
 0x71f   :  { %v9536_v51 = vsel %vm6369_vm13, %v5073_v22, 0.0  ;;  %v5074_v33 = vmax.f32 %v5068_v61, 0.0  ;;  %v5069_v18 = vadd.f32 %v5055_v20, %v5021_v54  ;;  %v5086_v16 = vmul.f32 %v5085_v43, %v9530_v35 }
 0x720   :  { %5168 = vrot.lane.b32.xlu0 %v5160_v26, %s5683_s21  ;;  %v5057_v10 = vpop.permute.xlu1 %5056  ;;  %v5161_v11 = vmul.f32 %v5159_v25, %v9536_v51  ;;  %v5187_v8 = vmul.f32 %v5185_v41, %v9536_v51  ;;  %v5198_v23 = vrot.slane %v5186_v19, 1  ;;  %v5227_v60 = vmul.f32 %v5225_v57, %v9536_v51 }
 0x721   :  { %v9543_v36 = vsel %vm6286_vm9, %v5074_v33, 0.0  ;;  %v5075_v7 = vmax.f32 %v5069_v18, 0.0  ;;  %v5070_v49 = vadd.f32 %v5057_v10, %v5022_v37  ;;  %v5238_v34 = vrot.slane %v5226_v56, 2  ;;  %v10133_v37 = vld [vmem:[#allocation18_spill] sm:$0xff] }
 0x722   :  { %5170 = vrot.lane.b32.xlu1 %v5161_v11, %s5683_s21  ;;  %v5059_v17 = vpop.permute.xlu0 %5058  ;;  %v5188_v9 = vmul.f32 %v5185_v41, %v9543_v36  ;;  %v5199_v48 = vrot.slane %v5187_v8, 1  ;;  %v5228_v42 = vmul.f32 %v5225_v57, %v9543_v36  ;;  %v5239_v2 = vrot.slane %v5227_v60, 2  ;;  %v10134_v10 = vld [vmem:[#allocation30_spill] sm:$0xff] }
 0x723   :  { %v9554_v55 = vsel %vm6337_vm12, %v5075_v7, 0.0  ;;  %v5076_v32 = vmax.f32 %v5070_v49, 0.0  ;;  %v5071_v50 = vadd.f32 %v5059_v17, %v5023_v39  ;;  %v9599_v5 = vstv %s9562_s0  ;;  %v10135_v17 = vld [vmem:[#allocation22_spill] sm:$0xff] }
 0x724   :  { %v4601_v38 = vpop.permute.xlu1 %4600  ;;  %v5162_v30 = vmul.f32 %v5159_v25, %v9554_v55  ;;  %v5189_v58 = vmul.f32 %v5185_v41, %v9554_v55  ;;  %v5201_v40 = vrot.slane %v5188_v9, 1  ;;  %v5200_v62 = vsel %vm166_vm3, %v5198_v23, %v5199_v48 }
 0x725   :  { %v9566_v21 = vsel %vm6369_vm13, %v5076_v32, 0.0  ;;  %v5077_v3 = vmax.f32 %v5071_v50, 0.0  ;;  %v5229_v14 = vmul.f32 %v5225_v57, %v9554_v55  ;;  %v5241_v24 = vrot.slane %v5228_v42, 2 }
 0x726   :  { %5172 = vrot.lane.b32.xlu0 %v5162_v30, %s5683_s21  ;;  %v4621_v28 = vpop.permute.xlu0 %4620  ;;  %v5163_v31 = vmul.f32 %v5159_v25, %v9566_v21  ;;  %v5190_v15 = vmul.f32 %v5185_v41, %v9566_v21  ;;  %v5203_v47 = vrot.slane %v5189_v58, 1  ;;  %v5230_v6 = vmul.f32 %v5225_v57, %v9566_v21 }
 0x727   :  { %v9577_v4 = vsel %vm6286_vm9, %v5077_v3, 0.0  ;;  %v5202_v1 = vsel %vm166_vm3, %v5199_v48, %v5201_v40  ;;  %v9606_v61 = vmul.f32 %v5085_v43, %v9536_v51  ;;  %v5266_v27 = vmul.f32 %v5265_v29, %v9530_v35 }
 0x728   :  { %v4623_v63 = vpop.permute.xlu1 %4622  ;;  %5174 = vrot.lane.b32.xlu1 %v5163_v31, %s5683_s21  ;;  %v5204_v45 = vrot.slane %v5190_v15, 1  ;;  %v5191_v52 = vmul.f32 %v5185_v41, %v9577_v4  ;;  %v5231_v53 = vmul.f32 %v5225_v57, %v9577_v4  ;;  %v9602_v41 = vstv %s9569_s1 }
 0x729   :  { %v5244_v22 = vrot.slane %v5230_v6, 2  ;;  %v4609_v26 = vadd.f32 %v4601_v38, %v9427_v46  ;;  %v4632_v33 = vadd.f32 %v4621_v28, %v10133_v37  ;;  %v5240_v18 = vsel %vm203_vm4, %v5238_v34, %v5239_v2 }
 0x72a   :  { %5208 = vrot.lane.b32.xlu0 %v5200_v62, %s5683_s21  ;;  %v4625_v59 = vpop.permute.xlu0 %4624  ;;  %v5205_v44 = vsel %vm166_vm3, %v5203_v47, %v5204_v45  ;;  %v5206_v25 = vrot.slane %v5191_v52, 1  ;;  %v5246_v20 = vrot.slane %v5231_v53, 2  ;;  %v4633_v11 = vadd.f32 %v4623_v63, %v10134_v10 }
 0x72b   :  { %v5243_v7 = vrot.slane %v5229_v14, 2  ;;  %v5088_v49 = vmul.f32 %v5085_v43, %v9554_v55  ;;  %v9617_v8 = vmul.f32 %v5291_v0, %v9530_v35  ;;  %v4634_v57 = vadd.f32 %v4625_v59, %v10135_v17 }
 0x72c   :  { %v4627_v13 = vpop.permute.xlu1 %4626  ;;  %5210 = vrot.lane.b32.xlu1 %v5202_v1, %s5683_s21  ;;  %v5207_v39 = vsel %vm166_vm3, %v5204_v45, %v5206_v25  ;;  %v5242_v46 = vsel %vm203_vm4, %v5239_v2, %v5241_v24  ;;  %v9622_v32 = vmul.f32 %v5291_v0, %v9536_v51  ;;  %v9625_v50 = vmul.f32 %v5291_v0, %v9543_v36 }
 0x72d   :  { %v5245_v38 = vsel %vm203_vm4, %v5243_v7, %v5244_v22  ;;  %v5247_v30 = vsel %vm203_vm4, %v5244_v22, %v5246_v20  ;;  %v5089_v23 = vmul.f32 %v5085_v43, %v9566_v21  ;;  %v5268_v3 = vmul.f32 %v5265_v29, %v9554_v55 }
 0x72e   :  { %5212 = vrot.lane.b32.xlu0 %v5205_v44, %s5683_s21  ;;  %v4661_v54 = vpop.permute.xlu0 %4660  ;;  %v4635_v48 = vadd.f32 %v4627_v13, %v4609_v26  ;;  %v5267_v58 = vmul.f32 %v5265_v29, %v9536_v51  ;;  %v5269_v28 = vmul.f32 %v5265_v29, %v9566_v21  ;;  %v9635_v31 = vmul.f32 %v5291_v0, %v9554_v55 }
 0x72f   :  { %v4672_v15 = vadd.f32 %v4661_v54, %v4632_v33  ;;  %v5304_v40 = vrot.slane %v9617_v8, 1  ;;  %v9640_v60 = vmul.f32 %v5291_v0, %v9566_v21  ;;  %v5098_v63 = vmul.f32 %v9599_v5, %v9543_v36 }
 0x730   :  { %v4663_v19 = vpop.permute.xlu1 %4662  ;;  %5214 = vrot.lane.b32.xlu1 %v5207_v39, %s5683_s21  ;;  %v5305_v45 = vrot.slane %v9622_v32, 1  ;;  %v5307_v52 = vrot.slane %v9625_v50, 1  ;;  %v5130_v62 = vmul.f32 %v9602_v41, %v9543_v36  ;;  %v5097_v47 = vmul.f32 %v9599_v5, %v9536_v51 }
 0x731   :  { %v4673_v42 = vadd.f32 %v4663_v19, %v4633_v11  ;;  %v9652_v59 = vmul.f32 %v5291_v0, %v9577_v4  ;;  %v5111_v34 = vrot.slane %v5098_v63, 1  ;;  %v5129_v6 = vmul.f32 %v9602_v41, %v9536_v51 }
 0x732   :  { %5248 = vrot.lane.b32.xlu0 %v5240_v18, %s5683_s21  ;;  %v4665_v9 = vpop.permute.xlu0 %4664  ;;  %v5143_v1 = vrot.slane %v5130_v62, 2  ;;  %v5109_v44 = vrot.slane %v5097_v47, 1  ;;  %v5096_v14 = vmul.f32 %v9599_v5, %v9530_v35  ;;  %v5128_v0 = vmul.f32 %v9602_v41, %v9530_v35 }
 0x733   :  { %v4674_v29 = vadd.f32 %v4665_v9, %v4634_v57  ;;  %v5141_v13 = vrot.slane %v5129_v6, 2  ;;  %v5099_v20 = vmul.f32 %v9599_v5, %v9554_v55  ;;  %v5100_v39 = vmul.f32 %v9599_v5, %v9566_v21 }
 0x734   :  { %v4667_v56 = vpop.permute.xlu1 %4666  ;;  %5250 = vrot.lane.b32.xlu1 %v5242_v46, %s5683_s21  ;;  %v5112_v22 = vsel %vm166_vm3, %v5109_v44, %v5111_v34  ;;  %v5108_v33 = vrot.slane %v5096_v14, 1  ;;  %v5140_v18 = vrot.slane %v5128_v0, 2  ;;  %v5131_v19 = vmul.f32 %v9602_v41, %v9554_v55 }
 0x735   :  { %v4675_v2 = vadd.f32 %v4667_v56, %v4635_v48  ;;  %v5144_v37 = vsel %vm203_vm4, %v5141_v13, %v5143_v1  ;;  %v5114_v17 = vrot.slane %v5100_v39, 1  ;;  %v5132_v57 = vmul.f32 %v9602_v41, %v9566_v21 }
 0x736   :  { %5252 = vrot.lane.b32.xlu0 %v5245_v38, %s5683_s21  ;;  %v4701_v43 = vpop.permute.xlu0 %4700  ;;  %v5142_v8 = vsel %vm203_vm4, %v5140_v18, %v5141_v13  ;;  %v5145_v48 = vrot.slane %v5131_v19, 2  ;;  %v5306_v34 = vsel %vm166_vm3, %v5304_v40, %v5305_v45  ;;  %v5312_v40 = vrot.slane %v9652_v59, 1 }
 0x737   :  { %v4712_v53 = vadd.f32 %v4701_v43, %v4672_v15  ;;  %v5146_v15 = vrot.slane %v5132_v57, 2  ;;  %v5336_v50 = vmul.f32 %v9595_v12, %v9566_v21  ;;  %v5337_v59 = vmul.f32 %v9595_v12, %v9577_v4 }
 0x738   :  { %v4703_v25 = vpop.permute.xlu1 %4702  ;;  %5254 = vrot.lane.b32.xlu1 %v5247_v30, %s5683_s21  ;;  %s5685_s21 = smov [#allocation12]  }
 0x739   :  { %v5090_v24 = vadd.f32 %v5086_v16, %v4712_v53  ;;  %v4713_v54 = vadd.f32 %v4703_v25, %v4673_v42  ;;  %v5113_v16 = vrot.slane %v5099_v20, 1  ;;  %v5147_v42 = vsel %vm203_vm4, %v5145_v48, %v5146_v15 }
 0x73a   :  { %5274 = vrot.lane.b32.xlu0 %v5266_v27, %s5684_s23  ;;  %v4705_v26 = vpop.permute.xlu0 %4704  ;;  %v5110_v27 = vsel %vm166_vm3, %v5108_v33, %v5109_v44  ;;  %v5350_v25 = vrot.slane %v5336_v50, 2  ;;  %v5352_v14 = vrot.slane %v5337_v59, 2 }
 0x73b   :  { %v5091_v10 = vadd.f32 %v9606_v61, %v4713_v54  ;;  %v4714_v11 = vadd.f32 %v4705_v26, %v4674_v29  ;;  %v5122_v61 = vadd.f32 %v5110_v27, %v5090_v24  ;;  %v5115_v30 = vsel %vm166_vm3, %v5113_v16, %v5114_v17 }
 0x73c   :  { %v4707_v7 = vpop.permute.xlu1 %4706  ;;  %5276 = vrot.lane.b32.xlu1 %v5267_v58, %s5684_s23  ;;  %v5101_v58 = vmul.f32 %v9599_v5, %v9577_v4  ;;  %v5310_v5 = vrot.slane %v9640_v60, 1  ;;  %v5334_v60 = vmul.f32 %v9595_v12, %v9543_v36  ;;  %v5335_v36 = vmul.f32 %v9595_v12, %v9554_v55 }
 0x73d   :  { %v5092_v46 = vadd.f32 %v5088_v49, %v4714_v11  ;;  %v4715_v9 = vadd.f32 %v4707_v7, %v4675_v2  ;;  %v5123_v38 = vadd.f32 %v5112_v22, %v5091_v10  ;;  %v5154_v62 = vadd.f32 %v5142_v8, %v5122_v61 }
 0x73e   :  { %5278 = vrot.lane.b32.xlu0 %v5268_v3, %s5684_s23  ;;  %v5332_v49 = vmul.f32 %v9595_v12, %v9530_v35  ;;  %v5116_v43 = vrot.slane %v5101_v58, 1  ;;  %v5133_v3 = vmul.f32 %v9602_v41, %v9577_v4  ;;  %v5309_v35 = vrot.slane %v9635_v31, 1 }
 0x73f   :  { %v5093_v56 = vadd.f32 %v5089_v23, %v4715_v9  ;;  %v5155_v63 = vadd.f32 %v5144_v37, %v5123_v38  ;;  %v5124_v47 = vadd.f32 %v5115_v30, %v5092_v46  ;;  %v5333_v23 = vmul.f32 %v9595_v12, %v9536_v51 }
 0x740   :  { %5280 = vrot.lane.b32.xlu1 %v5269_v28, %s5684_s23  ;;  %v5117_v28 = vsel %vm166_vm3, %v5114_v17, %v5116_v43  ;;  %v5148_v29 = vrot.slane %v5133_v3, 2  ;;  %v5308_v41 = vsel %vm166_vm3, %v5305_v45, %v5307_v52  ;;  %v5344_v53 = vrot.slane %v5332_v49, 2 }
 0x741   :  { %v5156_v6 = vadd.f32 %v5147_v42, %v5124_v47  ;;  %v5125_v51 = vadd.f32 %v5117_v28, %v5093_v56  ;;  %v5311_v1 = vsel %vm166_vm3, %v5309_v35, %v5310_v5  ;;  %v5345_v44 = vrot.slane %v5333_v23, 2 }
 0x742   :  { %5314 = vrot.lane.b32.xlu0 %v5306_v34, %s5684_s23  ;;  %v5149_v31 = vsel %vm203_vm4, %v5146_v15, %v5148_v29  ;;  %v5313_v45 = vsel %vm166_vm3, %v5310_v5, %v5312_v40  ;;  %v5347_v52 = vrot.slane %v5334_v60, 2  ;;  %v5349_v21 = vrot.slane %v5335_v36, 2 }
 0x743   :  { %v5157_v32 = vadd.f32 %v5149_v31, %v5125_v51  ;;  %v5346_v2 = vsel %vm203_vm4, %v5344_v53, %v5345_v44  ;;  %v5353_v55 = vsel %vm203_vm4, %v5350_v25, %v5352_v14 }
 0x744   :  { %5316 = vrot.lane.b32.xlu1 %v5308_v41, %s5684_s23  ;;  %v5348_v13 = vsel %vm203_vm4, %v5345_v44, %v5347_v52  ;;  %v5351_v0 = vsel %vm203_vm4, %v5349_v21, %v5350_v25 }
 0x746   :  { %5318 = vrot.lane.b32.xlu0 %v5311_v1, %s5684_s23 }
 0x748   :  { %5320 = vrot.lane.b32.xlu1 %v5313_v45, %s5684_s23 }
 0x74a   :  { %5354 = vrot.lane.b32.xlu0 %v5346_v2, %s5684_s23 }
 0x74c   :  { %5356 = vrot.lane.b32.xlu1 %v5348_v13, %s5684_s23 }
 0x74e   :  { %5358 = vrot.lane.b32.xlu0 %v5351_v0, %s5684_s23 }
 0x750   :  { %5360 = vrot.lane.b32.xlu1 %v5353_v55, %s5684_s23  ;;  %s5380_s23 = sshll.u32 %s5685_s21, 4  ;;  %s5381_s23 = int_to_ptr.vmem [resolvable:$true] %s5380_s23 }
 0x751   :  { %s5645_s3 = scalar_lea.vmem %s5381_s23, 512  ;;  %p5650_p10 = scmp.lt.s32.totalorder %s5381_s23, %s5381_s23 }
 0x752   :  { %p5646_p9 = scmp.ne.s32.totalorder %s5381_s23, %s5645_s3  ;;  %p5651_p11 = scmp.lt.s32.totalorder %s5645_s3, %s5645_s3 }
 0x754   :  { %p5652_p12 = por %p5651_p11, %p5650_p10 }
 0x756   :  { %p5653_p13 = pnand %p5652_p12, %p5646_p9 }
 0x792   :  { %v5169_v4 = vpop.permute.xlu0 %5168 }
 0x793   :  { %v5180_v27 = vadd.f32 %v5169_v4, %v5154_v62 }
 0x794   :  { %v5171_v12 = vpop.permute.xlu1 %5170 }
 0x795   :  { %v5181_v17 = vadd.f32 %v5171_v12, %v5155_v63 }
 0x798   :  { %v5173_v24 = vpop.permute.xlu0 %5172 }
 0x799   :  { %v5182_v9 = vadd.f32 %v5173_v24, %v5156_v6 }
 0x79a   :  { %v5175_v54 = vpop.permute.xlu1 %5174 }
 0x79b   :  { %v5183_v48 = vadd.f32 %v5175_v54, %v5157_v32 }
 0x79c   :  { %v5209_v22 = vpop.permute.xlu0 %5208 }
 0x79d   :  { %v5220_v57 = vadd.f32 %v5209_v22, %v5180_v27 }
 0x79e   :  { %v5211_v20 = vpop.permute.xlu1 %5210 }
 0x79f   :  { %v5221_v38 = vadd.f32 %v5211_v20, %v5181_v17 }
 0x7a0   :  { %v5213_v26 = vpop.permute.xlu0 %5212 }
 0x7a1   :  { %v5222_v15 = vadd.f32 %v5213_v26, %v5182_v9 }
 0x7a2   :  { %v5215_v37 = vpop.permute.xlu1 %5214 }
 0x7a3   :  { %v5223_v49 = vadd.f32 %v5215_v37, %v5183_v48 }
 0x7a4   :  { %v5249_v33 = vpop.permute.xlu0 %5248 }
 0x7a5   :  { %v5260_v61 = vadd.f32 %v5249_v33, %v5220_v57 }
 0x7a6   :  { %v5251_v18 = vpop.permute.xlu1 %5250 }
 0x7a7   :  { %v5261_v58 = vadd.f32 %v5251_v18, %v5221_v38 }
 0x7a8   :  { %v5253_v39 = vpop.permute.xlu0 %5252 }
 0x7a9   :  { %v5262_v42 = vadd.f32 %v5253_v39, %v5222_v15 }
 0x7aa   :  { %v5255_v10 = vpop.permute.xlu1 %5254 }
 0x7ab   :  { %v5263_v62 = vadd.f32 %v5255_v10, %v5223_v49 }
 0x7ac   :  { %v5275_v11 = vpop.permute.xlu0 %5274 }
 0x7ad   :  { %v5286_v56 = vadd.f32 %v5275_v11, %v5260_v61 }
 0x7ae   :  { %v5277_v16 = vpop.permute.xlu1 %5276 }
 0x7af   :  { %v5287_v43 = vadd.f32 %v5277_v16, %v5261_v58 }
 0x7b0   :  { %v5279_v19 = vpop.permute.xlu0 %5278 }
 0x7b1   :  { %v5288_v5 = vadd.f32 %v5279_v19, %v5262_v42 }
 0x7b2   :  { %v5281_v7 = vpop.permute.xlu1 %5280 }
 0x7b3   :  { %v5289_v6 = vadd.f32 %v5281_v7, %v5263_v62 }
 0x7b4   :  { %v5315_v8 = vpop.permute.xlu0 %5314 }
 0x7b5   :  { %v5326_v3 = vadd.f32 %v5315_v8, %v5286_v56 }
 0x7b6   :  { %v5317_v46 = vpop.permute.xlu1 %5316 }
 0x7b7   :  { %v5327_v63 = vadd.f32 %v5317_v46, %v5287_v43 }
 0x7b8   :  { %v5319_v30 = vpop.permute.xlu0 %5318 }
 0x7b9   :  { %v5328_v28 = vadd.f32 %v5319_v30, %v5288_v5 }
 0x7ba   :  { %v5321_v47 = vpop.permute.xlu1 %5320 }
 0x7bb   :  { %v5329_v40 = vadd.f32 %v5321_v47, %v5289_v6 }
 0x7bc   :  { %v5355_v34 = vpop.permute.xlu0 %5354 }
 0x7bd   :  { %v5366_v23 = vadd.f32 %v5355_v34, %v5326_v3 }
 0x7be   :  { %v5357_v35 = vpop.permute.xlu1 %5356 }
 0x7bf   :  { %5371 = vst.msk [vmem:[#allocation12] sm:$0xff] %vm5370_vm14, %v5366_v23  ;;  %v5367_v29 = vadd.f32 %v5357_v35, %v5327_v63 }
 0x7c0   :  { %v5359_v41 = vpop.permute.xlu0 %5358 }
 0x7c1   :  { %5372 = vst.msk [vmem:[#allocation12 + $0x8] sm:$0xff] %vm5370_vm14, %v5367_v29  ;;  %v5368_v60 = vadd.f32 %v5359_v41, %v5328_v28 }
 0x7c2   :  { %v5361_v51 = vpop.permute.xlu1 %5360 }
 0x7c3   :  { %5373 = vst.msk [vmem:[#allocation12 + $0x10] sm:$0xff] %vm5370_vm14, %v5368_v60  ;;  %v5369_v53 = vadd.f32 %v5361_v51, %v5329_v40 }
 0x7c5   :  { %5374 = vst.msk [vmem:[#allocation12 + $0x18] sm:$0xff] %vm5370_vm14, %v5369_v53 }
 0x7c6   :  { %5656 = shalt.err (!%p5653_p13)
}
 0x7c7   :  { %s5657_s22 = scalar_lea.hbm %s9747_s5, 512 }
 0x7c8   :  { %p5658_p0 = scmp.ne.s32.totalorder %s9747_s5, %s5657_s22  ;;  %p5661_p1 = scmp.lt.u32.totalorder %s5657_s22, %s9747_s5 }
 0x7ca   :  { %p5663_p2 = pnand %p5661_p1, %p5658_p0 }
 0x7cc   :  { %5666 = shalt.err (!%p5663_p2)
}
 0x7cd   :  { %5386 = dma.vmem_to_hbm [thread:$0]  %s5381_s23, 512, %s9747_s5, [#allocation6], %s5677_s7, %s5677_s7, %s5678_s8  }
 0x7ce   :  { %5673 = dma.done.wait [#allocation6], 512  }
 0x7cf   :  { %5674 = vsyncadd [#allocation6], 4294966784 }
 0x7d0   :  { %5390 = vsyncpa [#allocation5], 1 }
 0x7d1   :  { %5391 = vsyncpa [#allocation6], 1 }
 0x7d2   :  { %5392 = vsyncpa [#allocation7], 1 }
 0x7d3   :  { %5393 = vsyncpa [#allocation10], 1 }

</bundles_post_ra>
